<compile_context>
chip_gen: v5e
topology: v5e:2x2
jax: 0.10.0
libtpu: 0.0.40
codegen_flags: <defaults>
</compile_context>

<pallas_src>
import functools

import jax
import jax.numpy as jnp
from jax import lax
from jax.experimental import pallas as pl
from jax.experimental.pallas import tpu as pltpu


def _pow(x, gamma):
    """x**gamma for x >= 0 (matches torch.pow on the relevant domain)."""
    if gamma == 0.5:
        return jnp.sqrt(x)
    if gamma == 1.0:
        return x
    if gamma == 2.0:
        return x * x
    safe = jnp.where(x > 0, x, 1.0)
    return jnp.where(x > 0, jnp.exp(gamma * jnp.log(safe)), 0.0)


def _to_col(row, eye_bool):
    """[1, K] -> [K, 1] via a masked lane reduction (no transpose relayout)."""
    return jnp.sum(jnp.where(eye_bool, row, 0.0), axis=1, keepdims=True)


# --------------------------------------------------------------------------- #
# Pallas kernel
# --------------------------------------------------------------------------- #
def _fmap_kernel(feat_x_ref, feat_y_ref, evx_ref, evy_ref, etx_ref, ety_ref,
                 out_ref, a_acc, b_acc, *opt_scratch,
                 lmbda, gamma, K, Bb, ndir, Vx, Vy, Vtx, Vty, nV, gpc,
                 use_loop):
    f32 = jnp.float32
    v = pl.program_id(1)

    # --------------------------------------------------------------- #
    # Phase 1 (every v step): accumulate spectral projections into f32
    # VMEM scratch:  A_b += etx_b[:, tile] @ feat_x_b[tile, :]  (same for y).
    # --------------------------------------------------------------- #
    @pl.when(v == 0)
    def _():
        a_acc[...] = jnp.zeros_like(a_acc)
        b_acc[...] = jnp.zeros_like(b_acc)

    def _load_masked(feat_ref, evec_ref, V, Vt):
        f = feat_ref[...]
        e = evec_ref[...]
        n_blocks = (V + Vt - 1) // Vt
        if V % Vt == 0 and n_blocks == nV:
            return f, e          # every tile of this input is fully valid
        # Boundary tiles (or repeated tiles when this input has fewer V blocks
        # than the grid) are zero-masked so they contribute nothing.
        valid = V - v * Vt
        row_ok = lax.broadcasted_iota(jnp.int32, (1, Vt, 1), 1) < valid
        col_ok = lax.broadcasted_iota(jnp.int32, (1, 1, Vt), 2) < valid
        return jnp.where(row_ok, f, 0), jnp.where(col_ok, e, 0)

    fx, ax = _load_masked(feat_x_ref, etx_ref, Vx, Vtx)
    fy, ay = _load_masked(feat_y_ref, ety_ref, Vy, Vty)
    for b in range(Bb):
        a_acc[b] += jnp.dot(ax[b], fx[b], preferred_element_type=f32)
        b_acc[b] += jnp.dot(ay[b], fy[b], preferred_element_type=f32)

    # --------------------------------------------------------------- #
    # Phase 2 (last v step only): resolvent masks, Gram matrices and the
    # ndir*Bb*K regularized KxK solves, packed on the lane axis.
    # --------------------------------------------------------------- #
    @pl.when(v == nV - 1)
    def _solve():
        eye_b = (lax.broadcasted_iota(jnp.int32, (K, K), 0)
                 == lax.broadcasted_iota(jnp.int32, (K, K), 1))
        eye = eye_b.astype(f32)

        # One [2K,C] x [C,2K] MXU product per batch element yields all four
        # Gram blocks (AA^T, AB^T, BA^T, BB^T) needed for both directions.
        gram, dmask = [], []
        for b in range(Bb):
            S = jnp.concatenate([a_acc[b], b_acc[b]], axis=0)          # [2K, C]
            gram.append(lax.dot_general(S, S, (((1,), (1,)), ((), ())),
                                        preferred_element_type=f32))  # [2K,2K]

            ex = evx_ref[b].astype(f32)                                # [1, K]
            ey = evy_ref[b].astype(f32)
            sc = jnp.maximum(jnp.max(ex, axis=1, keepdims=True),
                             jnp.max(ey, axis=1, keepdims=True))
            gx_r = _pow(ex / sc, gamma); dx_r = 1.0 / (gx_r * gx_r + 1.0)
            gy_r = _pow(ey / sc, gamma); dy_r = 1.0 / (gy_r * gy_r + 1.0)
            qx_r = gx_r * dx_r;          qy_r = gy_r * dy_r
            qx_c = _to_col(qx_r, eye_b); dx_c = _to_col(dx_r, eye_b)
            qy_c = _to_col(qy_r, eye_b); dy_c = _to_col(dy_r, eye_b)
            # dm[c, s] = resolvent-mask weight of system s at diagonal entry c
            dm_xy = (qy_c - qx_r) ** 2 + (dy_c - dx_r) ** 2            # [K, K]
            dm_yx = (qx_c - qy_r) ** 2 + (dx_c - dy_r) ** 2
            dmask.append((dm_xy, dm_yx))

        def group_data(d, b):
            g2 = gram[b]
            if d == 0:   # Cxy: (AA^T + l*diag) x_s = (BA^T)[s, :]^T
                return g2[:K, :K], dmask[b][0], g2[:K, K:]
            return g2[K:, K:], dmask[b][1], g2[K:, :K]

        groups = [(d, b) for d in range(ndir) for b in range(Bb)]
        chunk = gpc * K     # systems per solver chunk (lane width)

        for c0 in range(0, len(groups), gpc):
            datas = [group_data(d, b) for (d, b) in groups[c0:c0 + gpc]]
            cs = c0 * K
            rhs = jnp.concatenate([r for (_, _, r) in datas], axis=1)  # [K,chunk]

            if not use_loop:
                # Small K: fully unrolled Gauss-Jordan with the RHS carried
                # through (no explicit inverse); eliminated columns dropped.
                cols = [jnp.concatenate(
                            [g[:, c:c + 1]
                             + lmbda * (eye[:, c:c + 1] * dm[c:c + 1, :])
                             for (g, dm, _) in datas], axis=1)
                        for c in range(K)]
                res = rhs
                for k in range(K):
                    colk = cols[k]
                    inv_piv = 1.0 / colk[k:k + 1, :]
                    adj = colk - eye[:, k:k + 1]
                    res = res - adj * (res[k:k + 1, :] * inv_piv)
                    for c in range(k + 1, K):
                        cols[c] = cols[c] - adj * (cols[c][k:k + 1, :] * inv_piv)
                out_ref[:, cs:cs + chunk] = res
            else:
                # Large K: fori_loop Gaussian elimination + back-substitution
                # on a bounded [K, K, chunk] VMEM scratch.  The systems are
                # symmetric, so the pivot column below the diagonal equals the
                # pivot row -> no cross-sublane dynamic slicing of the matrix.
                m_scr = opt_scratch[0]
                m_scr[...] = jnp.concatenate(
                    [g[:, :, None] + lmbda * (eye[:, :, None] * dm[None, :, :])
                     for (g, dm, _) in datas], axis=2)                 # [K,K,chunk]
                r_view = out_ref.at[:, cs:cs + chunk]
                r_view[...] = rhs
                row_i = lax.broadcasted_iota(jnp.int32, (K, chunk), 0)

                def fwd(k, carry):
                    pivrow = m_scr[k]                                  # [K, chunk]
                    sel = row_i == k
                    piv = jnp.sum(jnp.where(sel, pivrow, 0.0),
                                  axis=0, keepdims=True)
                    factor = jnp.where(row_i > k, pivrow * (1.0 / piv), 0.0)
                    r_all = r_view[...]
                    r_k = jnp.sum(jnp.where(sel, r_all, 0.0),
                                  axis=0, keepdims=True)
                    r_view[...] = r_all - factor * r_k
                    m_scr[...] = (m_scr[...]
                                  - factor[:, None, :] * pivrow[None, :, :])
                    return carry

                def bwd(t, carry):
                    k = K - 1 - t
                    urow = m_scr[k]                                    # [K, chunk]
                    sel = row_i == k
                    piv = jnp.sum(jnp.where(sel, urow, 0.0),
                                  axis=0, keepdims=True)
                    xy = r_view[...]
                    y_k = jnp.sum(jnp.where(sel, xy, 0.0),
                                  axis=0, keepdims=True)
                    acc = jnp.sum(jnp.where(row_i > k, urow * xy, 0.0),
                                  axis=0, keepdims=True)
                    x_k = (y_k - acc) * (1.0 / piv)
                    r_view[...] = jnp.where(sel, x_k, xy)
                    return carry

                lax.fori_loop(0, K, fwd, 0)
                lax.fori_loop(0, K, bwd, 0)


# --------------------------------------------------------------------------- #
# Wrapper
# --------------------------------------------------------------------------- #
def _fmap_pallas(feat_x, feat_y, evals_x, evals_y, evecs_trans_x, evecs_trans_y,
                 *, lmbda, gamma, bidirectional, batch_block=8, v_tile=None,
                 compute_dtype=jnp.bfloat16, force_loop_solver=None,
                 vmem_limit_bytes=None):
    B, Vx, C = feat_x.shape
    _, Vy, _ = feat_y.shape
    K = evals_x.shape[1]
    ndir = 2 if bidirectional else 1

    # Batch block: largest divisor of B, capped so the "parallel" grid axis
    # keeps >= 2 steps when possible (v7x megacore uses both TensorCores).
    cap = 1 if B == 1 else min(batch_block, max(1, B // 2))
    Bb = 1
    for d in range(cap, 0, -1):
        if B % d == 0:
            Bb = d
            break

    # V tile (multiple of 128 = lane dim of evecs_trans blocks).  Default aims
    # at ~12 MiB of double-buffered streamed inputs (fits v5e's 16 MiB default
    # scoped VMEM); raise v_tile + vmem_limit_bytes on v6e, keep <=~1024 on v7x.
    esize = jnp.dtype(compute_dtype if compute_dtype is not None
                      else feat_x.dtype).itemsize
    if v_tile is None:
        budget = 12 * 1024 * 1024
        per_row = 2 * Bb * (2 * C + 2 * K) * esize    # x2 = double buffering
        v_tile = max(128, min(4096, budget // max(per_row, 1)))
    vt_base = max(128, ((int(v_tile) + 127) // 128) * 128)
    Vtx = Vx if vt_base >= Vx else vt_base
    Vty = Vy if vt_base >= Vy else vt_base
    nVx = -(-Vx // Vtx)
    nVy = -(-Vy // Vty)
    nV = max(nVx, nVy)

    # Systems-per-chunk for the solver (lane packing vs. bounded working set).
    ngroups = ndir * Bb
    lane_limit = max(128, K)
    gpc = 1
    for d in range(1, ngroups + 1):
        if ngroups % d == 0 and d * K <= lane_limit:
            gpc = d
    use_loop = (K > 32) if force_loop_solver is None else bool(force_loop_solver)

    # Stream feat/evecs in bf16 (halves HBM traffic); accumulation stays f32.
    if compute_dtype is not None:
        feat_x = feat_x.astype(compute_dtype)
        feat_y = feat_y.astype(compute_dtype)
        evecs_trans_x = evecs_trans_x.astype(compute_dtype)
        evecs_trans_y = evecs_trans_y.astype(compute_dtype)
    evx = evals_x.reshape(B, 1, K).astype(jnp.float32)   # lane-dense evals
    evy = evals_y.reshape(B, 1, K).astype(jnp.float32)

    NSd = ndir * Bb * K

    def _vmap_feat(nblocks):
        if nblocks == nV:
            return lambda i, v: (i, v, 0)
        last = nblocks - 1
        return lambda i, v: (i, jnp.minimum(v, last), 0)

    def _vmap_evec(nblocks):
        if nblocks == nV:
            return lambda i, v: (i, 0, v)
        last = nblocks - 1
        return lambda i, v: (i, 0, jnp.minimum(v, last))

    kernel = functools.partial(
        _fmap_kernel, lmbda=float(lmbda), gamma=float(gamma), K=K, Bb=Bb,
        ndir=ndir, Vx=Vx, Vy=Vy, Vtx=Vtx, Vty=Vty, nV=nV, gpc=gpc,
        use_loop=use_loop)

    scratch = [pltpu.VMEM((Bb, K, C), jnp.float32),    # A accumulator
               pltpu.VMEM((Bb, K, C), jnp.float32)]    # B accumulator
    if use_loop:
        scratch.append(pltpu.VMEM((K, K, gpc * K), jnp.float32))

    slab = pl.pallas_call(
        kernel,
        out_shape=jax.ShapeDtypeStruct((B // Bb, K, NSd), jnp.float32),
        grid=(B // Bb, nV),
        in_specs=[
            pl.BlockSpec((Bb, Vtx, C), _vmap_feat(nVx)),
            pl.BlockSpec((Bb, Vty, C), _vmap_feat(nVy)),
            pl.BlockSpec((Bb, 1, K), lambda i, v: (i, 0, 0)),
            pl.BlockSpec((Bb, 1, K), lambda i, v: (i, 0, 0)),
            pl.BlockSpec((Bb, K, Vtx), _vmap_evec(nVx)),
            pl.BlockSpec((Bb, K, Vty), _vmap_evec(nVy)),
        ],
        out_specs=pl.BlockSpec((None, K, NSd), lambda i, v: (i, 0, 0)),
        scratch_shapes=scratch,
        compiler_params=pltpu.CompilerParams(
            dimension_semantics=("parallel", "arbitrary"),
            vmem_limit_bytes=vmem_limit_bytes),
    )(feat_x, feat_y, evx, evy, evecs_trans_x, evecs_trans_y)

    # slab[g, r, d*Bb*K + b*K + s] == C_d[g*Bb + b, s, r]  (lane-dense store;
    # the transpose back to [B, K, K] is cheap layout plumbing in XLA).
    out = slab.reshape(B // Bb, K, ndir, Bb, K)
    out = jnp.transpose(out, (2, 0, 3, 4, 1)).reshape(ndir, B, K, K)
    return out


def regularized_fmnet_forward(feat_x, feat_y, evals_x, evals_y,
                              evecs_trans_x, evecs_trans_y,
                              lmbda=100.0, resolvant_gamma=0.5,
                              bidirectional=False, **kwargs):
    """JAX/Pallas equivalent of RegularizedFMNet.forward."""
    out = _fmap_pallas(feat_x, feat_y, evals_x, evals_y,
                       evecs_trans_x, evecs_trans_y,
                       lmbda=lmbda, gamma=resolvant_gamma,
                       bidirectional=bidirectional, **kwargs)
    Cxy = out[0]
    Cyx = out[1] if bidirectional else None
    return Cxy, Cyx


# --------------------------------------------------------------------------- #
# Pure-JAX reference (mirrors the PyTorch code) for validation
# --------------------------------------------------------------------------- #
def _get_mask_ref(evals_x, evals_y, gamma):
    scaling = jnp.maximum(evals_x.max(axis=1), evals_y.max(axis=1))[:, None]
    exs = evals_x / scaling
    eys = evals_y / scaling
    g1 = jnp.power(exs, gamma)[:, :, None]
    g2 = jnp.power(eys, gamma)[:, None, :]
    d1 = 1.0 / (g1 ** 2 + 1.0)
    d2 = 1.0 / (g2 ** 2 + 1.0)
    m_re = g2 * d2 - g1 * d1
    m_im = d2 - d1
    return m_re ** 2 + m_im ** 2


def _forward_ref(feat_x, feat_y, evals_x, evals_y, etx, ety,
                 lmbda=100.0, gamma=0.5):
    A = jnp.einsum('bkv,bvc->bkc', etx, feat_x)
    Bm = jnp.einsum('bkv,bvc->bkc', ety, feat_y)
    D = _get_mask_ref(evals_x, evals_y, gamma)                  # [B,K,K]
    AAt = jnp.einsum('bic,bjc->bij', A, A)
    BAt = jnp.einsum('bic,bjc->bij', Bm, A)
    K = evals_x.shape[1]
    eye = jnp.eye(K, dtype=jnp.float32)
    Ms = AAt[:, None, :, :] + lmbda * D[:, :, :, None] * eye    # [B,K,K,K]
    sol = jnp.linalg.solve(Ms, BAt[..., None])[..., 0]          # [B,K,K]
    return sol


# --------------------------------------------------------------------------- #
if __name__ == "__main__":
    B, K, Vx, Vy, C = 4, 16, 320, 256, 32
    key = jax.random.PRNGKey(0)
    k1, k2, k3, k4, k5, k6 = jax.random.split(key, 6)

    feat_x = jax.random.normal(k1, (B, Vx, C), dtype=jnp.float32)
    feat_y = jax.random.normal(k2, (B, Vy, C), dtype=jnp.float32)
    evals_x = jnp.sort(jax.random.uniform(k3, (B, K), minval=0.01, maxval=10.0), axis=1)
    evals_y = jnp.sort(jax.random.uniform(k4, (B, K), minval=0.01, maxval=10.0), axis=1)
    evecs_trans_x = 0.1 * jax.random.normal(k5, (B, K, Vx), dtype=jnp.float32)
    evecs_trans_y = 0.1 * jax.random.normal(k6, (B, K, Vy), dtype=jnp.float32)

    # Reference computed on bf16-rounded feat/evecs (the kernel streams those
    # tensors in bf16); evals stay f32 in both.
    rnd = lambda a: a.astype(jnp.bfloat16).astype(jnp.float32)
    fxr, fyr = rnd(feat_x), rnd(feat_y)
    etxr, etyr = rnd(evecs_trans_x), rnd(evecs_trans_y)
    Cxy_ref = _forward_ref(fxr, fyr, evals_x, evals_y, etxr, etyr, 100.0, 0.5)
    Cyx_ref = _forward_ref(fyr, fxr, evals_y, evals_x, etyr, etxr, 100.0, 0.5)

    # Exercise both solver paths (unrolled Gauss-Jordan and fori_loop
    # elimination) with the fused bidirectional call and a tiled V axis.
    for force_loop in (False, True):
        Cxy, Cyx = regularized_fmnet_forward(
            feat_x, feat_y, evals_x, evals_y, evecs_trans_x, evecs_trans_y,
            lmbda=100.0, resolvant_gamma=0.5, bidirectional=True,
            v_tile=128, force_loop_solver=force_loop)
        Cxy = jax.block_until_ready(Cxy)
        Cyx = jax.block_until_ready(Cyx)
        err_xy = float(jnp.max(jnp.abs(Cxy - Cxy_ref)))
        err_yx = float(jnp.max(jnp.abs(Cyx - Cyx_ref)))
        assert err_xy < 2e-3, f"Cxy error (force_loop={force_loop}): {err_xy}"
        assert err_yx < 2e-3, f"Cyx error (force_loop={force_loop}): {err_yx}"

    print("KERNEL_OK")
</pallas_src>

<mosaic_0001>
module attributes {stable_mosaic.version = 11 : i64} {
  func.func @_fmap_kernel(%arg0: i32, %arg1: i32, %arg2: memref<2x128x32xbf16, #tpu.memory_space<vmem>>, %arg3: memref<2x128x32xbf16, #tpu.memory_space<vmem>>, %arg4: memref<2x1x16xf32, #tpu.memory_space<vmem>>, %arg5: memref<2x1x16xf32, #tpu.memory_space<vmem>>, %arg6: memref<2x16x128xbf16, #tpu.memory_space<vmem>>, %arg7: memref<2x16x128xbf16, #tpu.memory_space<vmem>>, %arg8: memref<1x16x64xf32, #tpu.memory_space<vmem>>, %arg9: memref<2x16x32xf32, #tpu.memory_space<vmem>>, %arg10: memref<2x16x32xf32, #tpu.memory_space<vmem>>) attributes {dimension_semantics = [#tpu.dimension_semantics<parallel>, #tpu.dimension_semantics<arbitrary>], iteration_bounds = array<i64: 2, 3>, scalar_prefetch = 0 : i64, scratch_operands = 2 : i64, tpu.core_type = #tpu.core_type<tc>, window_params = [{transform_indices = @transform_0, window_bounds = array<i64: 2, 128, 32>}, {transform_indices = @transform_1, window_bounds = array<i64: 2, 128, 32>}, {transform_indices = @transform_2, window_bounds = array<i64: 2, 1, 16>}, {transform_indices = @transform_3, window_bounds = array<i64: 2, 1, 16>}, {transform_indices = @transform_4, window_bounds = array<i64: 2, 16, 128>}, {transform_indices = @transform_5, window_bounds = array<i64: 2, 16, 128>}, {transform_indices = @transform_6, window_bounds = array<i64: 1, 16, 64>}]} {
    %c0_i32 = arith.constant 0 : i32
    %0 = arith.cmpi eq, %arg1, %c0_i32 : i32
    %1 = arith.extui %0 : i1 to i32
    %c0_i32_0 = arith.constant 0 : i32
    %2 = arith.cmpi ne, %1, %c0_i32_0 : i32
    scf.if %2 {
      %cst_44 = arith.constant 0.000000e+00 : f32
      %90 = vector.broadcast %cst_44 : f32 to vector<2x16x32xf32>
      %c0_45 = arith.constant 0 : index
      %c0_46 = arith.constant 0 : index
      %c0_47 = arith.constant 0 : index
      %91 = vector.load %arg9[%c0_45, %c0_46, %c0_47] : memref<2x16x32xf32, #tpu.memory_space<vmem>>, vector<2x16x32xf32>
      tpu.vector_store %arg9[%c0_45, %c0_46, %c0_47], %90 {strides = array<i32>} : memref<2x16x32xf32, #tpu.memory_space<vmem>>, vector<2x16x32xf32>,
      %cst_48 = arith.constant 0.000000e+00 : f32
      %92 = vector.broadcast %cst_48 : f32 to vector<2x16x32xf32>
      %c0_49 = arith.constant 0 : index
      %c0_50 = arith.constant 0 : index
      %c0_51 = arith.constant 0 : index
      %93 = vector.load %arg10[%c0_49, %c0_50, %c0_51] : memref<2x16x32xf32, #tpu.memory_space<vmem>>, vector<2x16x32xf32>
      tpu.vector_store %arg10[%c0_49, %c0_50, %c0_51], %92 {strides = array<i32>} : memref<2x16x32xf32, #tpu.memory_space<vmem>>, vector<2x16x32xf32>,
    } else {
    }
    %c0 = arith.constant 0 : index
    %c0_1 = arith.constant 0 : index
    %c0_2 = arith.constant 0 : index
    %3 = vector.load %arg2[%c0, %c0_1, %c0_2] : memref<2x128x32xbf16, #tpu.memory_space<vmem>>, vector<2x128x32xbf16>
    %c0_3 = arith.constant 0 : index
    %c0_4 = arith.constant 0 : index
    %c0_5 = arith.constant 0 : index
    %4 = vector.load %arg6[%c0_3, %c0_4, %c0_5] : memref<2x16x128xbf16, #tpu.memory_space<vmem>>, vector<2x16x128xbf16>
    %c128_i32 = arith.constant 128 : i32
    %5 = arith.muli %arg1, %c128_i32 : i32
    %c320_i32 = arith.constant 320 : i32
    %6 = arith.subi %c320_i32, %5 : i32
    %7 = tpu.iota {dimensions = array<i32: 1>} : vector<1x128x1xi32>
    %8 = vector.broadcast %6 : i32 to vector<1x128x1xi32>
    %9 = arith.cmpi slt, %7, %8 : vector<1x128x1xi32>
    %10 = tpu.iota {dimensions = array<i32: 2>} : vector<1x1x128xi32>
    %11 = vector.broadcast %6 : i32 to vector<1x1x128xi32>
    %12 = arith.cmpi slt, %10, %11 : vector<1x1x128xi32>
    %c0_i32_6 = arith.constant 0 : i32
    %13 = arith.sitofp %c0_i32_6 : i32 to bf16
    %14 = vector.shape_cast %9 : vector<1x128x1xi1> to vector<1x128x1xi1>
    %15 = vector.broadcast %14 : vector<1x128x1xi1> to vector<2x128x32xi1>
    %16 = vector.broadcast %13 : bf16 to vector<2x128x32xbf16>
    %17 = arith.select %15, %3, %16 : vector<2x128x32xi1>, vector<2x128x32xbf16>
    %c0_i32_7 = arith.constant 0 : i32
    %18 = arith.sitofp %c0_i32_7 : i32 to bf16
    %19 = vector.shape_cast %12 : vector<1x1x128xi1> to vector<1x1x128xi1>
    %20 = vector.broadcast %19 : vector<1x1x128xi1> to vector<2x16x128xi1>
    %21 = vector.broadcast %18 : bf16 to vector<2x16x128xbf16>
    %22 = arith.select %20, %4, %21 : vector<2x16x128xi1>, vector<2x16x128xbf16>
    %c0_8 = arith.constant 0 : index
    %c0_9 = arith.constant 0 : index
    %c0_10 = arith.constant 0 : index
    %23 = vector.load %arg3[%c0_8, %c0_9, %c0_10] : memref<2x128x32xbf16, #tpu.memory_space<vmem>>, vector<2x128x32xbf16>
    %c0_11 = arith.constant 0 : index
    %c0_12 = arith.constant 0 : index
    %c0_13 = arith.constant 0 : index
    %24 = vector.load %arg7[%c0_11, %c0_12, %c0_13] : memref<2x16x128xbf16, #tpu.memory_space<vmem>>, vector<2x16x128xbf16>
    %c128_i32_14 = arith.constant 128 : i32
    %25 = arith.muli %arg1, %c128_i32_14 : i32
    %c256_i32 = arith.constant 256 : i32
    %26 = arith.subi %c256_i32, %25 : i32
    %27 = tpu.iota {dimensions = array<i32: 1>} : vector<1x128x1xi32>
    %28 = vector.broadcast %26 : i32 to vector<1x128x1xi32>
    %29 = arith.cmpi slt, %27, %28 : vector<1x128x1xi32>
    %30 = tpu.iota {dimensions = array<i32: 2>} : vector<1x1x128xi32>
    %31 = vector.broadcast %26 : i32 to vector<1x1x128xi32>
    %32 = arith.cmpi slt, %30, %31 : vector<1x1x128xi32>
    %c0_i32_15 = arith.constant 0 : i32
    %33 = arith.sitofp %c0_i32_15 : i32 to bf16
    %34 = vector.shape_cast %29 : vector<1x128x1xi1> to vector<1x128x1xi1>
    %35 = vector.broadcast %34 : vector<1x128x1xi1> to vector<2x128x32xi1>
    %36 = vector.broadcast %33 : bf16 to vector<2x128x32xbf16>
    %37 = arith.select %35, %23, %36 : vector<2x128x32xi1>, vector<2x128x32xbf16>
    %c0_i32_16 = arith.constant 0 : i32
    %38 = arith.sitofp %c0_i32_16 : i32 to bf16
    %39 = vector.shape_cast %32 : vector<1x1x128xi1> to vector<1x1x128xi1>
    %40 = vector.broadcast %39 : vector<1x1x128xi1> to vector<2x16x128xi1>
    %41 = vector.broadcast %38 : bf16 to vector<2x16x128xbf16>
    %42 = arith.select %40, %24, %41 : vector<2x16x128xi1>, vector<2x16x128xbf16>
    %c0_17 = arith.constant 0 : index
    %c0_18 = arith.constant 0 : index
    %c0_19 = arith.constant 0 : index
    %43 = vector.load %arg9[%c0_17, %c0_18, %c0_19] : memref<2x16x32xf32, #tpu.memory_space<vmem>>, vector<1x16x32xf32>
    %44 = vector.shape_cast %43 : vector<1x16x32xf32> to vector<16x32xf32>
    %45 = vector.extract_strided_slice %22 {offsets = [0, 0, 0], sizes = [1, 16, 128], strides = [1, 1, 1]} : vector<2x16x128xbf16> to vector<1x16x128xbf16>
    %46 = vector.shape_cast %45 : vector<1x16x128xbf16> to vector<16x128xbf16>
    %47 = vector.extract_strided_slice %17 {offsets = [0, 0, 0], sizes = [1, 128, 32], strides = [1, 1, 1]} : vector<2x128x32xbf16> to vector<1x128x32xbf16>
    %48 = vector.shape_cast %47 : vector<1x128x32xbf16> to vector<128x32xbf16>
    %cst = arith.constant dense<0.000000e+00> : vector<16x32xf32>
    %49 = tpu.matmul %46, %48, %cst {dimension_numbers = #tpu.dot_dimension_numbers<[1], [0], [0], [1], [0, 0, 1, 1], [], []>} : vector<16x128xbf16>, vector<128x32xbf16>, vector<16x32xf32> -> vector<16x32xf32>
    %50 = arith.addf %44, %49 : vector<16x32xf32>
    %c0_20 = arith.constant 0 : index
    %c0_21 = arith.constant 0 : index
    %c0_22 = arith.constant 0 : index
    %51 = vector.load %arg9[%c0_20, %c0_21, %c0_22] : memref<2x16x32xf32, #tpu.memory_space<vmem>>, vector<1x16x32xf32>
    %52 = vector.shape_cast %51 : vector<1x16x32xf32> to vector<16x32xf32>
    %53 = vector.shape_cast %50 : vector<16x32xf32> to vector<1x16x32xf32>
    tpu.vector_store %arg9[%c0_20, %c0_21, %c0_22], %53 {strides = array<i32>} : memref<2x16x32xf32, #tpu.memory_space<vmem>>, vector<1x16x32xf32>,
    %c0_23 = arith.constant 0 : index
    %c0_24 = arith.constant 0 : index
    %c0_25 = arith.constant 0 : index
    %54 = vector.load %arg10[%c0_23, %c0_24, %c0_25] : memref<2x16x32xf32, #tpu.memory_space<vmem>>, vector<1x16x32xf32>
    %55 = vector.shape_cast %54 : vector<1x16x32xf32> to vector<16x32xf32>
    %56 = vector.extract_strided_slice %42 {offsets = [0, 0, 0], sizes = [1, 16, 128], strides = [1, 1, 1]} : vector<2x16x128xbf16> to vector<1x16x128xbf16>
    %57 = vector.shape_cast %56 : vector<1x16x128xbf16> to vector<16x128xbf16>
    %58 = vector.extract_strided_slice %37 {offsets = [0, 0, 0], sizes = [1, 128, 32], strides = [1, 1, 1]} : vector<2x128x32xbf16> to vector<1x128x32xbf16>
    %59 = vector.shape_cast %58 : vector<1x128x32xbf16> to vector<128x32xbf16>
    %cst_26 = arith.constant dense<0.000000e+00> : vector<16x32xf32>
    %60 = tpu.matmul %57, %59, %cst_26 {dimension_numbers = #tpu.dot_dimension_numbers<[1], [0], [0], [1], [0, 0, 1, 1], [], []>} : vector<16x128xbf16>, vector<128x32xbf16>, vector<16x32xf32> -> vector<16x32xf32>
    %61 = arith.addf %55, %60 : vector<16x32xf32>
    %c0_27 = arith.constant 0 : index
    %c0_28 = arith.constant 0 : index
    %c0_29 = arith.constant 0 : index
    %62 = vector.load %arg10[%c0_27, %c0_28, %c0_29] : memref<2x16x32xf32, #tpu.memory_space<vmem>>, vector<1x16x32xf32>
    %63 = vector.shape_cast %62 : vector<1x16x32xf32> to vector<16x32xf32>
    %64 = vector.shape_cast %61 : vector<16x32xf32> to vector<1x16x32xf32>
    tpu.vector_store %arg10[%c0_27, %c0_28, %c0_29], %64 {strides = array<i32>} : memref<2x16x32xf32, #tpu.memory_space<vmem>>, vector<1x16x32xf32>,
    %c1 = arith.constant 1 : index
    %c0_30 = arith.constant 0 : index
    %c0_31 = arith.constant 0 : index
    %65 = vector.load %arg9[%c1, %c0_30, %c0_31] : memref<2x16x32xf32, #tpu.memory_space<vmem>>, vector<1x16x32xf32>
    %66 = vector.shape_cast %65 : vector<1x16x32xf32> to vector<16x32xf32>
    %67 = vector.extract_strided_slice %22 {offsets = [1, 0, 0], sizes = [1, 16, 128], strides = [1, 1, 1]} : vector<2x16x128xbf16> to vector<1x16x128xbf16>
    %68 = vector.shape_cast %67 : vector<1x16x128xbf16> to vector<16x128xbf16>
    %69 = vector.extract_strided_slice %17 {offsets = [1, 0, 0], sizes = [1, 128, 32], strides = [1, 1, 1]} : vector<2x128x32xbf16> to vector<1x128x32xbf16>
    %70 = vector.shape_cast %69 : vector<1x128x32xbf16> to vector<128x32xbf16>
    %cst_32 = arith.constant dense<0.000000e+00> : vector<16x32xf32>
    %71 = tpu.matmul %68, %70, %cst_32 {dimension_numbers = #tpu.dot_dimension_numbers<[1], [0], [0], [1], [0, 0, 1, 1], [], []>} : vector<16x128xbf16>, vector<128x32xbf16>, vector<16x32xf32> -> vector<16x32xf32>
    %72 = arith.addf %66, %71 : vector<16x32xf32>
    %c1_33 = arith.constant 1 : index
    %c0_34 = arith.constant 0 : index
    %c0_35 = arith.constant 0 : index
    %73 = vector.load %arg9[%c1_33, %c0_34, %c0_35] : memref<2x16x32xf32, #tpu.memory_space<vmem>>, vector<1x16x32xf32>
    %74 = vector.shape_cast %73 : vector<1x16x32xf32> to vector<16x32xf32>
    %75 = vector.shape_cast %72 : vector<16x32xf32> to vector<1x16x32xf32>
    tpu.vector_store %arg9[%c1_33, %c0_34, %c0_35], %75 {strides = array<i32>} : memref<2x16x32xf32, #tpu.memory_space<vmem>>, vector<1x16x32xf32>,
    %c1_36 = arith.constant 1 : index
    %c0_37 = arith.constant 0 : index
    %c0_38 = arith.constant 0 : index
    %76 = vector.load %arg10[%c1_36, %c0_37, %c0_38] : memref<2x16x32xf32, #tpu.memory_space<vmem>>, vector<1x16x32xf32>
    %77 = vector.shape_cast %76 : vector<1x16x32xf32> to vector<16x32xf32>
    %78 = vector.extract_strided_slice %42 {offsets = [1, 0, 0], sizes = [1, 16, 128], strides = [1, 1, 1]} : vector<2x16x128xbf16> to vector<1x16x128xbf16>
    %79 = vector.shape_cast %78 : vector<1x16x128xbf16> to vector<16x128xbf16>
    %80 = vector.extract_strided_slice %37 {offsets = [1, 0, 0], sizes = [1, 128, 32], strides = [1, 1, 1]} : vector<2x128x32xbf16> to vector<1x128x32xbf16>
    %81 = vector.shape_cast %80 : vector<1x128x32xbf16> to vector<128x32xbf16>
    %cst_39 = arith.constant dense<0.000000e+00> : vector<16x32xf32>
    %82 = tpu.matmul %79, %81, %cst_39 {dimension_numbers = #tpu.dot_dimension_numbers<[1], [0], [0], [1], [0, 0, 1, 1], [], []>} : vector<16x128xbf16>, vector<128x32xbf16>, vector<16x32xf32> -> vector<16x32xf32>
    %83 = arith.addf %77, %82 : vector<16x32xf32>
    %c1_40 = arith.constant 1 : index
    %c0_41 = arith.constant 0 : index
    %c0_42 = arith.constant 0 : index
    %84 = vector.load %arg10[%c1_40, %c0_41, %c0_42] : memref<2x16x32xf32, #tpu.memory_space<vmem>>, vector<1x16x32xf32>
    %85 = vector.shape_cast %84 : vector<1x16x32xf32> to vector<16x32xf32>
    %86 = vector.shape_cast %83 : vector<16x32xf32> to vector<1x16x32xf32>
    tpu.vector_store %arg10[%c1_40, %c0_41, %c0_42], %86 {strides = array<i32>} : memref<2x16x32xf32, #tpu.memory_space<vmem>>, vector<1x16x32xf32>,
    %c2_i32 = arith.constant 2 : i32
    %87 = arith.cmpi eq, %arg1, %c2_i32 : i32
    %88 = arith.extui %87 : i1 to i32
    %c0_i32_43 = arith.constant 0 : i32
    %89 = arith.cmpi ne, %88, %c0_i32_43 : i32
    scf.if %89 {
      %90 = tpu.iota {dimensions = array<i32: 0>} : vector<16x16xi32>
      %91 = tpu.iota {dimensions = array<i32: 1>} : vector<16x16xi32>
      %92 = arith.cmpi eq, %90, %91 : vector<16x16xi32>
      %93 = arith.extui %92 : vector<16x16xi1> to vector<16x16xi32>
      %94 = arith.sitofp %93 : vector<16x16xi32> to vector<16x16xf32>
      %c0_44 = arith.constant 0 : index
      %c0_45 = arith.constant 0 : index
      %c0_46 = arith.constant 0 : index
      %95 = vector.load %arg9[%c0_44, %c0_45, %c0_46] : memref<2x16x32xf32, #tpu.memory_space<vmem>>, vector<1x16x32xf32>
      %96 = vector.shape_cast %95 : vector<1x16x32xf32> to vector<16x32xf32>
      %c0_47 = arith.constant 0 : index
      %c0_48 = arith.constant 0 : index
      %c0_49 = arith.constant 0 : index
      %97 = vector.load %arg10[%c0_47, %c0_48, %c0_49] : memref<2x16x32xf32, #tpu.memory_space<vmem>>, vector<1x16x32xf32>
      %98 = vector.shape_cast %97 : vector<1x16x32xf32> to vector<16x32xf32>
      %99 = tpu.concatenate %96, %98 in 0 : vector<16x32xf32>, vector<16x32xf32> -> vector<32x32xf32>
      %cst_50 = arith.constant dense<0.000000e+00> : vector<32x32xf32>
      %100 = tpu.matmul %99, %99, %cst_50 {dimension_numbers = #tpu.dot_dimension_numbers<[1], [1], [0], [0], [0, 0, 1, 0], [], []>} : vector<32x32xf32>, vector<32x32xf32>, vector<32x32xf32> -> vector<32x32xf32>
      %c0_51 = arith.constant 0 : index
      %c0_52 = arith.constant 0 : index
      %c0_53 = arith.constant 0 : index
      %101 = vector.load %arg4[%c0_51, %c0_52, %c0_53] : memref<2x1x16xf32, #tpu.memory_space<vmem>>, vector<1x1x16xf32>
      %102 = vector.shape_cast %101 : vector<1x1x16xf32> to vector<1x16xf32>
      %c0_54 = arith.constant 0 : index
      %c0_55 = arith.constant 0 : index
      %c0_56 = arith.constant 0 : index
      %103 = vector.load %arg5[%c0_54, %c0_55, %c0_56] : memref<2x1x16xf32, #tpu.memory_space<vmem>>, vector<1x1x16xf32>
      %104 = vector.shape_cast %103 : vector<1x1x16xf32> to vector<1x16xf32>
      %cst_57 = arith.constant dense<0xFF800000> : vector<1xf32>
      %105 = vector.multi_reduction <maximumf>, %102, %cst_57 [1] : vector<1x16xf32> to vector<1xf32>
      %106 = vector.shape_cast %105 : vector<1xf32> to vector<1x1xf32>
      %cst_58 = arith.constant dense<0xFF800000> : vector<1xf32>
      %107 = vector.multi_reduction <maximumf>, %104, %cst_58 [1] : vector<1x16xf32> to vector<1xf32>
      %108 = vector.shape_cast %107 : vector<1xf32> to vector<1x1xf32>
      %109 = arith.maximumf %106, %108 : vector<1x1xf32>
      %110 = vector.broadcast %109 : vector<1x1xf32> to vector<1x16xf32>
      %111 = arith.divf %102, %110 : vector<1x16xf32>
      %112 = math.sqrt %111 : vector<1x16xf32>
      %113 = arith.mulf %112, %112 : vector<1x16xf32>
      %cst_59 = arith.constant 1.000000e+00 : f32
      %114 = vector.broadcast %cst_59 : f32 to vector<1x16xf32>
      %115 = arith.addf %113, %114 : vector<1x16xf32>
      %cst_60 = arith.constant 1.000000e+00 : f32
      %116 = vector.broadcast %cst_60 : f32 to vector<1x16xf32>
      %117 = arith.divf %116, %115 : vector<1x16xf32>
      %118 = vector.broadcast %109 : vector<1x1xf32> to vector<1x16xf32>
      %119 = arith.divf %104, %118 : vector<1x16xf32>
      %120 = math.sqrt %119 : vector<1x16xf32>
      %121 = arith.mulf %120, %120 : vector<1x16xf32>
      %cst_61 = arith.constant 1.000000e+00 : f32
      %122 = vector.broadcast %cst_61 : f32 to vector<1x16xf32>
      %123 = arith.addf %121, %122 : vector<1x16xf32>
      %cst_62 = arith.constant 1.000000e+00 : f32
      %124 = vector.broadcast %cst_62 : f32 to vector<1x16xf32>
      %125 = arith.divf %124, %123 : vector<1x16xf32>
      %126 = arith.mulf %112, %117 : vector<1x16xf32>
      %127 = arith.mulf %120, %125 : vector<1x16xf32>
      %cst_63 = arith.constant 0.000000e+00 : f32
      %128 = vector.shape_cast %126 : vector<1x16xf32> to vector<1x16xf32>
      %129 = vector.broadcast %128 : vector<1x16xf32> to vector<16x16xf32>
      %130 = vector.broadcast %cst_63 : f32 to vector<16x16xf32>
      %131 = arith.select %92, %129, %130 : vector<16x16xi1>, vector<16x16xf32>
      %cst_64 = arith.constant dense<0.000000e+00> : vector<16xf32>
      %132 = vector.multi_reduction <add>, %131, %cst_64 [1] : vector<16x16xf32> to vector<16xf32>
      %133 = vector.shape_cast %132 : vector<16xf32> to vector<16x1xf32>
      %cst_65 = arith.constant 0.000000e+00 : f32
      %134 = vector.shape_cast %117 : vector<1x16xf32> to vector<1x16xf32>
      %135 = vector.broadcast %134 : vector<1x16xf32> to vector<16x16xf32>
      %136 = vector.broadcast %cst_65 : f32 to vector<16x16xf32>
      %137 = arith.select %92, %135, %136 : vector<16x16xi1>, vector<16x16xf32>
      %cst_66 = arith.constant dense<0.000000e+00> : vector<16xf32>
      %138 = vector.multi_reduction <add>, %137, %cst_66 [1] : vector<16x16xf32> to vector<16xf32>
      %139 = vector.shape_cast %138 : vector<16xf32> to vector<16x1xf32>
      %cst_67 = arith.constant 0.000000e+00 : f32
      %140 = vector.shape_cast %127 : vector<1x16xf32> to vector<1x16xf32>
      %141 = vector.broadcast %140 : vector<1x16xf32> to vector<16x16xf32>
      %142 = vector.broadcast %cst_67 : f32 to vector<16x16xf32>
      %143 = arith.select %92, %141, %142 : vector<16x16xi1>, vector<16x16xf32>
      %cst_68 = arith.constant dense<0.000000e+00> : vector<16xf32>
      %144 = vector.multi_reduction <add>, %143, %cst_68 [1] : vector<16x16xf32> to vector<16xf32>
      %145 = vector.shape_cast %144 : vector<16xf32> to vector<16x1xf32>
      %cst_69 = arith.constant 0.000000e+00 : f32
      %146 = vector.shape_cast %125 : vector<1x16xf32> to vector<1x16xf32>
      %147 = vector.broadcast %146 : vector<1x16xf32> to vector<16x16xf32>
      %148 = vector.broadcast %cst_69 : f32 to vector<16x16xf32>
      %149 = arith.select %92, %147, %148 : vector<16x16xi1>, vector<16x16xf32>
      %cst_70 = arith.constant dense<0.000000e+00> : vector<16xf32>
      %150 = vector.multi_reduction <add>, %149, %cst_70 [1] : vector<16x16xf32> to vector<16xf32>
      %151 = vector.shape_cast %150 : vector<16xf32> to vector<16x1xf32>
      %152 = vector.broadcast %145 : vector<16x1xf32> to vector<16x16xf32>
      %153 = vector.broadcast %126 : vector<1x16xf32> to vector<16x16xf32>
      %154 = arith.subf %152, %153 : vector<16x16xf32>
      %155 = arith.mulf %154, %154 : vector<16x16xf32>
      %156 = vector.broadcast %151 : vector<16x1xf32> to vector<16x16xf32>
      %157 = vector.broadcast %117 : vector<1x16xf32> to vector<16x16xf32>
      %158 = arith.subf %156, %157 : vector<16x16xf32>
      %159 = arith.mulf %158, %158 : vector<16x16xf32>
      %160 = arith.addf %155, %159 : vector<16x16xf32>
      %161 = vector.broadcast %133 : vector<16x1xf32> to vector<16x16xf32>
      %162 = vector.broadcast %127 : vector<1x16xf32> to vector<16x16xf32>
      %163 = arith.subf %161, %162 : vector<16x16xf32>
      %164 = arith.mulf %163, %163 : vector<16x16xf32>
      %165 = vector.broadcast %139 : vector<16x1xf32> to vector<16x16xf32>
      %166 = vector.broadcast %125 : vector<1x16xf32> to vector<16x16xf32>
      %167 = arith.subf %165, %166 : vector<16x16xf32>
      %168 = arith.mulf %167, %167 : vector<16x16xf32>
      %169 = arith.addf %164, %168 : vector<16x16xf32>
      %c1_71 = arith.constant 1 : index
      %c0_72 = arith.constant 0 : index
      %c0_73 = arith.constant 0 : index
      %170 = vector.load %arg9[%c1_71, %c0_72, %c0_73] : memref<2x16x32xf32, #tpu.memory_space<vmem>>, vector<1x16x32xf32>
      %171 = vector.shape_cast %170 : vector<1x16x32xf32> to vector<16x32xf32>
      %c1_74 = arith.constant 1 : index
      %c0_75 = arith.constant 0 : index
      %c0_76 = arith.constant 0 : index
      %172 = vector.load %arg10[%c1_74, %c0_75, %c0_76] : memref<2x16x32xf32, #tpu.memory_space<vmem>>, vector<1x16x32xf32>
      %173 = vector.shape_cast %172 : vector<1x16x32xf32> to vector<16x32xf32>
      %174 = tpu.concatenate %171, %173 in 0 : vector<16x32xf32>, vector<16x32xf32> -> vector<32x32xf32>
      %cst_77 = arith.constant dense<0.000000e+00> : vector<32x32xf32>
      %175 = tpu.matmul %174, %174, %cst_77 {dimension_numbers = #tpu.dot_dimension_numbers<[1], [1], [0], [0], [0, 0, 1, 0], [], []>} : vector<32x32xf32>, vector<32x32xf32>, vector<32x32xf32> -> vector<32x32xf32>
      %c1_78 = arith.constant 1 : index
      %c0_79 = arith.constant 0 : index
      %c0_80 = arith.constant 0 : index
      %176 = vector.load %arg4[%c1_78, %c0_79, %c0_80] : memref<2x1x16xf32, #tpu.memory_space<vmem>>, vector<1x1x16xf32>
      %177 = vector.shape_cast %176 : vector<1x1x16xf32> to vector<1x16xf32>
      %c1_81 = arith.constant 1 : index
      %c0_82 = arith.constant 0 : index
      %c0_83 = arith.constant 0 : index
      %178 = vector.load %arg5[%c1_81, %c0_82, %c0_83] : memref<2x1x16xf32, #tpu.memory_space<vmem>>, vector<1x1x16xf32>
      %179 = vector.shape_cast %178 : vector<1x1x16xf32> to vector<1x16xf32>
      %cst_84 = arith.constant dense<0xFF800000> : vector<1xf32>
      %180 = vector.multi_reduction <maximumf>, %177, %cst_84 [1] : vector<1x16xf32> to vector<1xf32>
      %181 = vector.shape_cast %180 : vector<1xf32> to vector<1x1xf32>
      %cst_85 = arith.constant dense<0xFF800000> : vector<1xf32>
      %182 = vector.multi_reduction <maximumf>, %179, %cst_85 [1] : vector<1x16xf32> to vector<1xf32>
      %183 = vector.shape_cast %182 : vector<1xf32> to vector<1x1xf32>
      %184 = arith.maximumf %181, %183 : vector<1x1xf32>
      %185 = vector.broadcast %184 : vector<1x1xf32> to vector<1x16xf32>
      %186 = arith.divf %177, %185 : vector<1x16xf32>
      %187 = math.sqrt %186 : vector<1x16xf32>
      %188 = arith.mulf %187, %187 : vector<1x16xf32>
      %cst_86 = arith.constant 1.000000e+00 : f32
      %189 = vector.broadcast %cst_86 : f32 to vector<1x16xf32>
      %190 = arith.addf %188, %189 : vector<1x16xf32>
      %cst_87 = arith.constant 1.000000e+00 : f32
      %191 = vector.broadcast %cst_87 : f32 to vector<1x16xf32>
      %192 = arith.divf %191, %190 : vector<1x16xf32>
      %193 = vector.broadcast %184 : vector<1x1xf32> to vector<1x16xf32>
      %194 = arith.divf %179, %193 : vector<1x16xf32>
      %195 = math.sqrt %194 : vector<1x16xf32>
      %196 = arith.mulf %195, %195 : vector<1x16xf32>
      %cst_88 = arith.constant 1.000000e+00 : f32
      %197 = vector.broadcast %cst_88 : f32 to vector<1x16xf32>
      %198 = arith.addf %196, %197 : vector<1x16xf32>
      %cst_89 = arith.constant 1.000000e+00 : f32
      %199 = vector.broadcast %cst_89 : f32 to vector<1x16xf32>
      %200 = arith.divf %199, %198 : vector<1x16xf32>
      %201 = arith.mulf %187, %192 : vector<1x16xf32>
      %202 = arith.mulf %195, %200 : vector<1x16xf32>
      %cst_90 = arith.constant 0.000000e+00 : f32
      %203 = vector.shape_cast %201 : vector<1x16xf32> to vector<1x16xf32>
      %204 = vector.broadcast %203 : vector<1x16xf32> to vector<16x16xf32>
      %205 = vector.broadcast %cst_90 : f32 to vector<16x16xf32>
      %206 = arith.select %92, %204, %205 : vector<16x16xi1>, vector<16x16xf32>
      %cst_91 = arith.constant dense<0.000000e+00> : vector<16xf32>
      %207 = vector.multi_reduction <add>, %206, %cst_91 [1] : vector<16x16xf32> to vector<16xf32>
      %208 = vector.shape_cast %207 : vector<16xf32> to vector<16x1xf32>
      %cst_92 = arith.constant 0.000000e+00 : f32
      %209 = vector.shape_cast %192 : vector<1x16xf32> to vector<1x16xf32>
      %210 = vector.broadcast %209 : vector<1x16xf32> to vector<16x16xf32>
      %211 = vector.broadcast %cst_92 : f32 to vector<16x16xf32>
      %212 = arith.select %92, %210, %211 : vector<16x16xi1>, vector<16x16xf32>
      %cst_93 = arith.constant dense<0.000000e+00> : vector<16xf32>
      %213 = vector.multi_reduction <add>, %212, %cst_93 [1] : vector<16x16xf32> to vector<16xf32>
      %214 = vector.shape_cast %213 : vector<16xf32> to vector<16x1xf32>
      %cst_94 = arith.constant 0.000000e+00 : f32
      %215 = vector.shape_cast %202 : vector<1x16xf32> to vector<1x16xf32>
      %216 = vector.broadcast %215 : vector<1x16xf32> to vector<16x16xf32>
      %217 = vector.broadcast %cst_94 : f32 to vector<16x16xf32>
      %218 = arith.select %92, %216, %217 : vector<16x16xi1>, vector<16x16xf32>
      %cst_95 = arith.constant dense<0.000000e+00> : vector<16xf32>
      %219 = vector.multi_reduction <add>, %218, %cst_95 [1] : vector<16x16xf32> to vector<16xf32>
      %220 = vector.shape_cast %219 : vector<16xf32> to vector<16x1xf32>
      %cst_96 = arith.constant 0.000000e+00 : f32
      %221 = vector.shape_cast %200 : vector<1x16xf32> to vector<1x16xf32>
      %222 = vector.broadcast %221 : vector<1x16xf32> to vector<16x16xf32>
      %223 = vector.broadcast %cst_96 : f32 to vector<16x16xf32>
      %224 = arith.select %92, %222, %223 : vector<16x16xi1>, vector<16x16xf32>
      %cst_97 = arith.constant dense<0.000000e+00> : vector<16xf32>
      %225 = vector.multi_reduction <add>, %224, %cst_97 [1] : vector<16x16xf32> to vector<16xf32>
      %226 = vector.shape_cast %225 : vector<16xf32> to vector<16x1xf32>
      %227 = vector.broadcast %220 : vector<16x1xf32> to vector<16x16xf32>
      %228 = vector.broadcast %201 : vector<1x16xf32> to vector<16x16xf32>
      %229 = arith.subf %227, %228 : vector<16x16xf32>
      %230 = arith.mulf %229, %229 : vector<16x16xf32>
      %231 = vector.broadcast %226 : vector<16x1xf32> to vector<16x16xf32>
      %232 = vector.broadcast %192 : vector<1x16xf32> to vector<16x16xf32>
      %233 = arith.subf %231, %232 : vector<16x16xf32>
      %234 = arith.mulf %233, %233 : vector<16x16xf32>
      %235 = arith.addf %230, %234 : vector<16x16xf32>
      %236 = vector.broadcast %208 : vector<16x1xf32> to vector<16x16xf32>
      %237 = vector.broadcast %202 : vector<1x16xf32> to vector<16x16xf32>
      %238 = arith.subf %236, %237 : vector<16x16xf32>
      %239 = arith.mulf %238, %238 : vector<16x16xf32>
      %240 = vector.broadcast %214 : vector<16x1xf32> to vector<16x16xf32>
      %241 = vector.broadcast %200 : vector<1x16xf32> to vector<16x16xf32>
      %242 = arith.subf %240, %241 : vector<16x16xf32>
      %243 = arith.mulf %242, %242 : vector<16x16xf32>
      %244 = arith.addf %239, %243 : vector<16x16xf32>
      %245 = vector.extract_strided_slice %100 {offsets = [0, 0], sizes = [16, 16], strides = [1, 1]} : vector<32x32xf32> to vector<16x16xf32>
      %246 = vector.extract_strided_slice %100 {offsets = [0, 16], sizes = [16, 16], strides = [1, 1]} : vector<32x32xf32> to vector<16x16xf32>
      %247 = vector.extract_strided_slice %175 {offsets = [0, 0], sizes = [16, 16], strides = [1, 1]} : vector<32x32xf32> to vector<16x16xf32>
      %248 = vector.extract_strided_slice %175 {offsets = [0, 16], sizes = [16, 16], strides = [1, 1]} : vector<32x32xf32> to vector<16x16xf32>
      %249 = vector.extract_strided_slice %100 {offsets = [16, 16], sizes = [16, 16], strides = [1, 1]} : vector<32x32xf32> to vector<16x16xf32>
      %250 = vector.extract_strided_slice %100 {offsets = [16, 0], sizes = [16, 16], strides = [1, 1]} : vector<32x32xf32> to vector<16x16xf32>
      %251 = vector.extract_strided_slice %175 {offsets = [16, 16], sizes = [16, 16], strides = [1, 1]} : vector<32x32xf32> to vector<16x16xf32>
      %252 = vector.extract_strided_slice %175 {offsets = [16, 0], sizes = [16, 16], strides = [1, 1]} : vector<32x32xf32> to vector<16x16xf32>
      %253 = tpu.concatenate %246, %248, %250, %252 in 1 : vector<16x16xf32>, vector<16x16xf32>, vector<16x16xf32>, vector<16x16xf32> -> vector<16x64xf32>
      %254 = vector.extract_strided_slice %245 {offsets = [0, 0], sizes = [16, 1], strides = [1, 1]} : vector<16x16xf32> to vector<16x1xf32>
      %255 = vector.extract_strided_slice %94 {offsets = [0, 0], sizes = [16, 1], strides = [1, 1]} : vector<16x16xf32> to vector<16x1xf32>
      %256 = vector.extract_strided_slice %160 {offsets = [0, 0], sizes = [1, 16], strides = [1, 1]} : vector<16x16xf32> to vector<1x16xf32>
      %257 = vector.broadcast %255 : vector<16x1xf32> to vector<16x16xf32>
      %258 = vector.broadcast %256 : vector<1x16xf32> to vector<16x16xf32>
      %259 = arith.mulf %257, %258 : vector<16x16xf32>
      %cst_98 = arith.constant 1.000000e+02 : f32
      %260 = vector.broadcast %cst_98 : f32 to vector<16x16xf32>
      %261 = arith.mulf %260, %259 : vector<16x16xf32>
      %262 = vector.broadcast %254 : vector<16x1xf32> to vector<16x16xf32>
      %263 = arith.addf %262, %261 : vector<16x16xf32>
      %264 = vector.extract_strided_slice %247 {offsets = [0, 0], sizes = [16, 1], strides = [1, 1]} : vector<16x16xf32> to vector<16x1xf32>
      %265 = vector.extract_strided_slice %94 {offsets = [0, 0], sizes = [16, 1], strides = [1, 1]} : vector<16x16xf32> to vector<16x1xf32>
      %266 = vector.extract_strided_slice %235 {offsets = [0, 0], sizes = [1, 16], strides = [1, 1]} : vector<16x16xf32> to vector<1x16xf32>
      %267 = vector.broadcast %265 : vector<16x1xf32> to vector<16x16xf32>
      %268 = vector.broadcast %266 : vector<1x16xf32> to vector<16x16xf32>
      %269 = arith.mulf %267, %268 : vector<16x16xf32>
      %cst_99 = arith.constant 1.000000e+02 : f32
      %270 = vector.broadcast %cst_99 : f32 to vector<16x16xf32>
      %271 = arith.mulf %270, %269 : vector<16x16xf32>
      %272 = vector.broadcast %264 : vector<16x1xf32> to vector<16x16xf32>
      %273 = arith.addf %272, %271 : vector<16x16xf32>
      %274 = vector.extract_strided_slice %249 {offsets = [0, 0], sizes = [16, 1], strides = [1, 1]} : vector<16x16xf32> to vector<16x1xf32>
      %275 = vector.extract_strided_slice %94 {offsets = [0, 0], sizes = [16, 1], strides = [1, 1]} : vector<16x16xf32> to vector<16x1xf32>
      %276 = vector.extract_strided_slice %169 {offsets = [0, 0], sizes = [1, 16], strides = [1, 1]} : vector<16x16xf32> to vector<1x16xf32>
      %277 = vector.broadcast %275 : vector<16x1xf32> to vector<16x16xf32>
      %278 = vector.broadcast %276 : vector<1x16xf32> to vector<16x16xf32>
      %279 = arith.mulf %277, %278 : vector<16x16xf32>
      %cst_100 = arith.constant 1.000000e+02 : f32
      %280 = vector.broadcast %cst_100 : f32 to vector<16x16xf32>
      %281 = arith.mulf %280, %279 : vector<16x16xf32>
      %282 = vector.broadcast %274 : vector<16x1xf32> to vector<16x16xf32>
      %283 = arith.addf %282, %281 : vector<16x16xf32>
      %284 = vector.extract_strided_slice %251 {offsets = [0, 0], sizes = [16, 1], strides = [1, 1]} : vector<16x16xf32> to vector<16x1xf32>
      %285 = vector.extract_strided_slice %94 {offsets = [0, 0], sizes = [16, 1], strides = [1, 1]} : vector<16x16xf32> to vector<16x1xf32>
      %286 = vector.extract_strided_slice %244 {offsets = [0, 0], sizes = [1, 16], strides = [1, 1]} : vector<16x16xf32> to vector<1x16xf32>
      %287 = vector.broadcast %285 : vector<16x1xf32> to vector<16x16xf32>
      %288 = vector.broadcast %286 : vector<1x16xf32> to vector<16x16xf32>
      %289 = arith.mulf %287, %288 : vector<16x16xf32>
      %cst_101 = arith.constant 1.000000e+02 : f32
      %290 = vector.broadcast %cst_101 : f32 to vector<16x16xf32>
      %291 = arith.mulf %290, %289 : vector<16x16xf32>
      %292 = vector.broadcast %284 : vector<16x1xf32> to vector<16x16xf32>
      %293 = arith.addf %292, %291 : vector<16x16xf32>
      %294 = tpu.concatenate %263, %273, %283, %293 in 1 : vector<16x16xf32>, vector<16x16xf32>, vector<16x16xf32>, vector<16x16xf32> -> vector<16x64xf32>
      %295 = vector.extract_strided_slice %245 {offsets = [0, 1], sizes = [16, 1], strides = [1, 1]} : vector<16x16xf32> to vector<16x1xf32>
      %296 = vector.extract_strided_slice %94 {offsets = [0, 1], sizes = [16, 1], strides = [1, 1]} : vector<16x16xf32> to vector<16x1xf32>
      %297 = vector.extract_strided_slice %160 {offsets = [1, 0], sizes = [1, 16], strides = [1, 1]} : vector<16x16xf32> to vector<1x16xf32>
      %298 = vector.broadcast %296 : vector<16x1xf32> to vector<16x16xf32>
      %299 = vector.broadcast %297 : vector<1x16xf32> to vector<16x16xf32>
      %300 = arith.mulf %298, %299 : vector<16x16xf32>
      %cst_102 = arith.constant 1.000000e+02 : f32
      %301 = vector.broadcast %cst_102 : f32 to vector<16x16xf32>
      %302 = arith.mulf %301, %300 : vector<16x16xf32>
      %303 = vector.broadcast %295 : vector<16x1xf32> to vector<16x16xf32>
      %304 = arith.addf %303, %302 : vector<16x16xf32>
      %305 = vector.extract_strided_slice %247 {offsets = [0, 1], sizes = [16, 1], strides = [1, 1]} : vector<16x16xf32> to vector<16x1xf32>
      %306 = vector.extract_strided_slice %94 {offsets = [0, 1], sizes = [16, 1], strides = [1, 1]} : vector<16x16xf32> to vector<16x1xf32>
      %307 = vector.extract_strided_slice %235 {offsets = [1, 0], sizes = [1, 16], strides = [1, 1]} : vector<16x16xf32> to vector<1x16xf32>
      %308 = vector.broadcast %306 : vector<16x1xf32> to vector<16x16xf32>
      %309 = vector.broadcast %307 : vector<1x16xf32> to vector<16x16xf32>
      %310 = arith.mulf %308, %309 : vector<16x16xf32>
      %cst_103 = arith.constant 1.000000e+02 : f32
      %311 = vector.broadcast %cst_103 : f32 to vector<16x16xf32>
      %312 = arith.mulf %311, %310 : vector<16x16xf32>
      %313 = vector.broadcast %305 : vector<16x1xf32> to vector<16x16xf32>
      %314 = arith.addf %313, %312 : vector<16x16xf32>
      %315 = vector.extract_strided_slice %249 {offsets = [0, 1], sizes = [16, 1], strides = [1, 1]} : vector<16x16xf32> to vector<16x1xf32>
      %316 = vector.extract_strided_slice %94 {offsets = [0, 1], sizes = [16, 1], strides = [1, 1]} : vector<16x16xf32> to vector<16x1xf32>
      %317 = vector.extract_strided_slice %169 {offsets = [1, 0], sizes = [1, 16], strides = [1, 1]} : vector<16x16xf32> to vector<1x16xf32>
      %318 = vector.broadcast %316 : vector<16x1xf32> to vector<16x16xf32>
      %319 = vector.broadcast %317 : vector<1x16xf32> to vector<16x16xf32>
      %320 = arith.mulf %318, %319 : vector<16x16xf32>
      %cst_104 = arith.constant 1.000000e+02 : f32
      %321 = vector.broadcast %cst_104 : f32 to vector<16x16xf32>
      %322 = arith.mulf %321, %320 : vector<16x16xf32>
      %323 = vector.broadcast %315 : vector<16x1xf32> to vector<16x16xf32>
      %324 = arith.addf %323, %322 : vector<16x16xf32>
      %325 = vector.extract_strided_slice %251 {offsets = [0, 1], sizes = [16, 1], strides = [1, 1]} : vector<16x16xf32> to vector<16x1xf32>
      %326 = vector.extract_strided_slice %94 {offsets = [0, 1], sizes = [16, 1], strides = [1, 1]} : vector<16x16xf32> to vector<16x1xf32>
      %327 = vector.extract_strided_slice %244 {offsets = [1, 0], sizes = [1, 16], strides = [1, 1]} : vector<16x16xf32> to vector<1x16xf32>
      %328 = vector.broadcast %326 : vector<16x1xf32> to vector<16x16xf32>
      %329 = vector.broadcast %327 : vector<1x16xf32> to vector<16x16xf32>
      %330 = arith.mulf %328, %329 : vector<16x16xf32>
      %cst_105 = arith.constant 1.000000e+02 : f32
      %331 = vector.broadcast %cst_105 : f32 to vector<16x16xf32>
      %332 = arith.mulf %331, %330 : vector<16x16xf32>
      %333 = vector.broadcast %325 : vector<16x1xf32> to vector<16x16xf32>
      %334 = arith.addf %333, %332 : vector<16x16xf32>
      %335 = tpu.concatenate %304, %314, %324, %334 in 1 : vector<16x16xf32>, vector<16x16xf32>, vector<16x16xf32>, vector<16x16xf32> -> vector<16x64xf32>
      %336 = vector.extract_strided_slice %245 {offsets = [0, 2], sizes = [16, 1], strides = [1, 1]} : vector<16x16xf32> to vector<16x1xf32>
      %337 = vector.extract_strided_slice %94 {offsets = [0, 2], sizes = [16, 1], strides = [1, 1]} : vector<16x16xf32> to vector<16x1xf32>
      %338 = vector.extract_strided_slice %160 {offsets = [2, 0], sizes = [1, 16], strides = [1, 1]} : vector<16x16xf32> to vector<1x16xf32>
      %339 = vector.broadcast %337 : vector<16x1xf32> to vector<16x16xf32>
      %340 = vector.broadcast %338 : vector<1x16xf32> to vector<16x16xf32>
      %341 = arith.mulf %339, %340 : vector<16x16xf32>
      %cst_106 = arith.constant 1.000000e+02 : f32
      %342 = vector.broadcast %cst_106 : f32 to vector<16x16xf32>
      %343 = arith.mulf %342, %341 : vector<16x16xf32>
      %344 = vector.broadcast %336 : vector<16x1xf32> to vector<16x16xf32>
      %345 = arith.addf %344, %343 : vector<16x16xf32>
      %346 = vector.extract_strided_slice %247 {offsets = [0, 2], sizes = [16, 1], strides = [1, 1]} : vector<16x16xf32> to vector<16x1xf32>
      %347 = vector.extract_strided_slice %94 {offsets = [0, 2], sizes = [16, 1], strides = [1, 1]} : vector<16x16xf32> to vector<16x1xf32>
      %348 = vector.extract_strided_slice %235 {offsets = [2, 0], sizes = [1, 16], strides = [1, 1]} : vector<16x16xf32> to vector<1x16xf32>
      %349 = vector.broadcast %347 : vector<16x1xf32> to vector<16x16xf32>
      %350 = vector.broadcast %348 : vector<1x16xf32> to vector<16x16xf32>
      %351 = arith.mulf %349, %350 : vector<16x16xf32>
      %cst_107 = arith.constant 1.000000e+02 : f32
      %352 = vector.broadcast %cst_107 : f32 to vector<16x16xf32>
      %353 = arith.mulf %352, %351 : vector<16x16xf32>
      %354 = vector.broadcast %346 : vector<16x1xf32> to vector<16x16xf32>
      %355 = arith.addf %354, %353 : vector<16x16xf32>
      %356 = vector.extract_strided_slice %249 {offsets = [0, 2], sizes = [16, 1], strides = [1, 1]} : vector<16x16xf32> to vector<16x1xf32>
      %357 = vector.extract_strided_slice %94 {offsets = [0, 2], sizes = [16, 1], strides = [1, 1]} : vector<16x16xf32> to vector<16x1xf32>
      %358 = vector.extract_strided_slice %169 {offsets = [2, 0], sizes = [1, 16], strides = [1, 1]} : vector<16x16xf32> to vector<1x16xf32>
      %359 = vector.broadcast %357 : vector<16x1xf32> to vector<16x16xf32>
      %360 = vector.broadcast %358 : vector<1x16xf32> to vector<16x16xf32>
      %361 = arith.mulf %359, %360 : vector<16x16xf32>
      %cst_108 = arith.constant 1.000000e+02 : f32
      %362 = vector.broadcast %cst_108 : f32 to vector<16x16xf32>
      %363 = arith.mulf %362, %361 : vector<16x16xf32>
      %364 = vector.broadcast %356 : vector<16x1xf32> to vector<16x16xf32>
      %365 = arith.addf %364, %363 : vector<16x16xf32>
      %366 = vector.extract_strided_slice %251 {offsets = [0, 2], sizes = [16, 1], strides = [1, 1]} : vector<16x16xf32> to vector<16x1xf32>
      %367 = vector.extract_strided_slice %94 {offsets = [0, 2], sizes = [16, 1], strides = [1, 1]} : vector<16x16xf32> to vector<16x1xf32>
      %368 = vector.extract_strided_slice %244 {offsets = [2, 0], sizes = [1, 16], strides = [1, 1]} : vector<16x16xf32> to vector<1x16xf32>
      %369 = vector.broadcast %367 : vector<16x1xf32> to vector<16x16xf32>
      %370 = vector.broadcast %368 : vector<1x16xf32> to vector<16x16xf32>
      %371 = arith.mulf %369, %370 : vector<16x16xf32>
      %cst_109 = arith.constant 1.000000e+02 : f32
      %372 = vector.broadcast %cst_109 : f32 to vector<16x16xf32>
      %373 = arith.mulf %372, %371 : vector<16x16xf32>
      %374 = vector.broadcast %366 : vector<16x1xf32> to vector<16x16xf32>
      %375 = arith.addf %374, %373 : vector<16x16xf32>
      %376 = tpu.concatenate %345, %355, %365, %375 in 1 : vector<16x16xf32>, vector<16x16xf32>, vector<16x16xf32>, vector<16x16xf32> -> vector<16x64xf32>
      %377 = vector.extract_strided_slice %245 {offsets = [0, 3], sizes = [16, 1], strides = [1, 1]} : vector<16x16xf32> to vector<16x1xf32>
      %378 = vector.extract_strided_slice %94 {offsets = [0, 3], sizes = [16, 1], strides = [1, 1]} : vector<16x16xf32> to vector<16x1xf32>
      %379 = vector.extract_strided_slice %160 {offsets = [3, 0], sizes = [1, 16], strides = [1, 1]} : vector<16x16xf32> to vector<1x16xf32>
      %380 = vector.broadcast %378 : vector<16x1xf32> to vector<16x16xf32>
      %381 = vector.broadcast %379 : vector<1x16xf32> to vector<16x16xf32>
      %382 = arith.mulf %380, %381 : vector<16x16xf32>
      %cst_110 = arith.constant 1.000000e+02 : f32
      %383 = vector.broadcast %cst_110 : f32 to vector<16x16xf32>
      %384 = arith.mulf %383, %382 : vector<16x16xf32>
      %385 = vector.broadcast %377 : vector<16x1xf32> to vector<16x16xf32>
      %386 = arith.addf %385, %384 : vector<16x16xf32>
      %387 = vector.extract_strided_slice %247 {offsets = [0, 3], sizes = [16, 1], strides = [1, 1]} : vector<16x16xf32> to vector<16x1xf32>
      %388 = vector.extract_strided_slice %94 {offsets = [0, 3], sizes = [16, 1], strides = [1, 1]} : vector<16x16xf32> to vector<16x1xf32>
      %389 = vector.extract_strided_slice %235 {offsets = [3, 0], sizes = [1, 16], strides = [1, 1]} : vector<16x16xf32> to vector<1x16xf32>
      %390 = vector.broadcast %388 : vector<16x1xf32> to vector<16x16xf32>
      %391 = vector.broadcast %389 : vector<1x16xf32> to vector<16x16xf32>
      %392 = arith.mulf %390, %391 : vector<16x16xf32>
      %cst_111 = arith.constant 1.000000e+02 : f32
      %393 = vector.broadcast %cst_111 : f32 to vector<16x16xf32>
      %394 = arith.mulf %393, %392 : vector<16x16xf32>
      %395 = vector.broadcast %387 : vector<16x1xf32> to vector<16x16xf32>
      %396 = arith.addf %395, %394 : vector<16x16xf32>
      %397 = vector.extract_strided_slice %249 {offsets = [0, 3], sizes = [16, 1], strides = [1, 1]} : vector<16x16xf32> to vector<16x1xf32>
      %398 = vector.extract_strided_slice %94 {offsets = [0, 3], sizes = [16, 1], strides = [1, 1]} : vector<16x16xf32> to vector<16x1xf32>
      %399 = vector.extract_strided_slice %169 {offsets = [3, 0], sizes = [1, 16], strides = [1, 1]} : vector<16x16xf32> to vector<1x16xf32>
      %400 = vector.broadcast %398 : vector<16x1xf32> to vector<16x16xf32>
      %401 = vector.broadcast %399 : vector<1x16xf32> to vector<16x16xf32>
      %402 = arith.mulf %400, %401 : vector<16x16xf32>
      %cst_112 = arith.constant 1.000000e+02 : f32
      %403 = vector.broadcast %cst_112 : f32 to vector<16x16xf32>
      %404 = arith.mulf %403, %402 : vector<16x16xf32>
      %405 = vector.broadcast %397 : vector<16x1xf32> to vector<16x16xf32>
      %406 = arith.addf %405, %404 : vector<16x16xf32>
      %407 = vector.extract_strided_slice %251 {offsets = [0, 3], sizes = [16, 1], strides = [1, 1]} : vector<16x16xf32> to vector<16x1xf32>
      %408 = vector.extract_strided_slice %94 {offsets = [0, 3], sizes = [16, 1], strides = [1, 1]} : vector<16x16xf32> to vector<16x1xf32>
      %409 = vector.extract_strided_slice %244 {offsets = [3, 0], sizes = [1, 16], strides = [1, 1]} : vector<16x16xf32> to vector<1x16xf32>
      %410 = vector.broadcast %408 : vector<16x1xf32> to vector<16x16xf32>
      %411 = vector.broadcast %409 : vector<1x16xf32> to vector<16x16xf32>
      %412 = arith.mulf %410, %411 : vector<16x16xf32>
      %cst_113 = arith.constant 1.000000e+02 : f32
      %413 = vector.broadcast %cst_113 : f32 to vector<16x16xf32>
      %414 = arith.mulf %413, %412 : vector<16x16xf32>
      %415 = vector.broadcast %407 : vector<16x1xf32> to vector<16x16xf32>
      %416 = arith.addf %415, %414 : vector<16x16xf32>
      %417 = tpu.concatenate %386, %396, %406, %416 in 1 : vector<16x16xf32>, vector<16x16xf32>, vector<16x16xf32>, vector<16x16xf32> -> vector<16x64xf32>
      %418 = vector.extract_strided_slice %245 {offsets = [0, 4], sizes = [16, 1], strides = [1, 1]} : vector<16x16xf32> to vector<16x1xf32>
      %419 = vector.extract_strided_slice %94 {offsets = [0, 4], sizes = [16, 1], strides = [1, 1]} : vector<16x16xf32> to vector<16x1xf32>
      %420 = vector.extract_strided_slice %160 {offsets = [4, 0], sizes = [1, 16], strides = [1, 1]} : vector<16x16xf32> to vector<1x16xf32>
      %421 = vector.broadcast %419 : vector<16x1xf32> to vector<16x16xf32>
      %422 = vector.broadcast %420 : vector<1x16xf32> to vector<16x16xf32>
      %423 = arith.mulf %421, %422 : vector<16x16xf32>
      %cst_114 = arith.constant 1.000000e+02 : f32
      %424 = vector.broadcast %cst_114 : f32 to vector<16x16xf32>
      %425 = arith.mulf %424, %423 : vector<16x16xf32>
      %426 = vector.broadcast %418 : vector<16x1xf32> to vector<16x16xf32>
      %427 = arith.addf %426, %425 : vector<16x16xf32>
      %428 = vector.extract_strided_slice %247 {offsets = [0, 4], sizes = [16, 1], strides = [1, 1]} : vector<16x16xf32> to vector<16x1xf32>
      %429 = vector.extract_strided_slice %94 {offsets = [0, 4], sizes = [16, 1], strides = [1, 1]} : vector<16x16xf32> to vector<16x1xf32>
      %430 = vector.extract_strided_slice %235 {offsets = [4, 0], sizes = [1, 16], strides = [1, 1]} : vector<16x16xf32> to vector<1x16xf32>
      %431 = vector.broadcast %429 : vector<16x1xf32> to vector<16x16xf32>
      %432 = vector.broadcast %430 : vector<1x16xf32> to vector<16x16xf32>
      %433 = arith.mulf %431, %432 : vector<16x16xf32>
      %cst_115 = arith.constant 1.000000e+02 : f32
      %434 = vector.broadcast %cst_115 : f32 to vector<16x16xf32>
      %435 = arith.mulf %434, %433 : vector<16x16xf32>
      %436 = vector.broadcast %428 : vector<16x1xf32> to vector<16x16xf32>
      %437 = arith.addf %436, %435 : vector<16x16xf32>
      %438 = vector.extract_strided_slice %249 {offsets = [0, 4], sizes = [16, 1], strides = [1, 1]} : vector<16x16xf32> to vector<16x1xf32>
      %439 = vector.extract_strided_slice %94 {offsets = [0, 4], sizes = [16, 1], strides = [1, 1]} : vector<16x16xf32> to vector<16x1xf32>
      %440 = vector.extract_strided_slice %169 {offsets = [4, 0], sizes = [1, 16], strides = [1, 1]} : vector<16x16xf32> to vector<1x16xf32>
      %441 = vector.broadcast %439 : vector<16x1xf32> to vector<16x16xf32>
      %442 = vector.broadcast %440 : vector<1x16xf32> to vector<16x16xf32>
      %443 = arith.mulf %441, %442 : vector<16x16xf32>
      %cst_116 = arith.constant 1.000000e+02 : f32
      %444 = vector.broadcast %cst_116 : f32 to vector<16x16xf32>
      %445 = arith.mulf %444, %443 : vector<16x16xf32>
      %446 = vector.broadcast %438 : vector<16x1xf32> to vector<16x16xf32>
      %447 = arith.addf %446, %445 : vector<16x16xf32>
      %448 = vector.extract_strided_slice %251 {offsets = [0, 4], sizes = [16, 1], strides = [1, 1]} : vector<16x16xf32> to vector<16x1xf32>
      %449 = vector.extract_strided_slice %94 {offsets = [0, 4], sizes = [16, 1], strides = [1, 1]} : vector<16x16xf32> to vector<16x1xf32>
      %450 = vector.extract_strided_slice %244 {offsets = [4, 0], sizes = [1, 16], strides = [1, 1]} : vector<16x16xf32> to vector<1x16xf32>
      %451 = vector.broadcast %449 : vector<16x1xf32> to vector<16x16xf32>
      %452 = vector.broadcast %450 : vector<1x16xf32> to vector<16x16xf32>
      %453 = arith.mulf %451, %452 : vector<16x16xf32>
      %cst_117 = arith.constant 1.000000e+02 : f32
      %454 = vector.broadcast %cst_117 : f32 to vector<16x16xf32>
      %455 = arith.mulf %454, %453 : vector<16x16xf32>
      %456 = vector.broadcast %448 : vector<16x1xf32> to vector<16x16xf32>
      %457 = arith.addf %456, %455 : vector<16x16xf32>
      %458 = tpu.concatenate %427, %437, %447, %457 in 1 : vector<16x16xf32>, vector<16x16xf32>, vector<16x16xf32>, vector<16x16xf32> -> vector<16x64xf32>
      %459 = vector.extract_strided_slice %245 {offsets = [0, 5], sizes = [16, 1], strides = [1, 1]} : vector<16x16xf32> to vector<16x1xf32>
      %460 = vector.extract_strided_slice %94 {offsets = [0, 5], sizes = [16, 1], strides = [1, 1]} : vector<16x16xf32> to vector<16x1xf32>
      %461 = vector.extract_strided_slice %160 {offsets = [5, 0], sizes = [1, 16], strides = [1, 1]} : vector<16x16xf32> to vector<1x16xf32>
      %462 = vector.broadcast %460 : vector<16x1xf32> to vector<16x16xf32>
      %463 = vector.broadcast %461 : vector<1x16xf32> to vector<16x16xf32>
      %464 = arith.mulf %462, %463 : vector<16x16xf32>
      %cst_118 = arith.constant 1.000000e+02 : f32
      %465 = vector.broadcast %cst_118 : f32 to vector<16x16xf32>
      %466 = arith.mulf %465, %464 : vector<16x16xf32>
      %467 = vector.broadcast %459 : vector<16x1xf32> to vector<16x16xf32>
      %468 = arith.addf %467, %466 : vector<16x16xf32>
      %469 = vector.extract_strided_slice %247 {offsets = [0, 5], sizes = [16, 1], strides = [1, 1]} : vector<16x16xf32> to vector<16x1xf32>
      %470 = vector.extract_strided_slice %94 {offsets = [0, 5], sizes = [16, 1], strides = [1, 1]} : vector<16x16xf32> to vector<16x1xf32>
      %471 = vector.extract_strided_slice %235 {offsets = [5, 0], sizes = [1, 16], strides = [1, 1]} : vector<16x16xf32> to vector<1x16xf32>
      %472 = vector.broadcast %470 : vector<16x1xf32> to vector<16x16xf32>
      %473 = vector.broadcast %471 : vector<1x16xf32> to vector<16x16xf32>
      %474 = arith.mulf %472, %473 : vector<16x16xf32>
      %cst_119 = arith.constant 1.000000e+02 : f32
      %475 = vector.broadcast %cst_119 : f32 to vector<16x16xf32>
      %476 = arith.mulf %475, %474 : vector<16x16xf32>
      %477 = vector.broadcast %469 : vector<16x1xf32> to vector<16x16xf32>
      %478 = arith.addf %477, %476 : vector<16x16xf32>
      %479 = vector.extract_strided_slice %249 {offsets = [0, 5], sizes = [16, 1], strides = [1, 1]} : vector<16x16xf32> to vector<16x1xf32>
      %480 = vector.extract_strided_slice %94 {offsets = [0, 5], sizes = [16, 1], strides = [1, 1]} : vector<16x16xf32> to vector<16x1xf32>
      %481 = vector.extract_strided_slice %169 {offsets = [5, 0], sizes = [1, 16], strides = [1, 1]} : vector<16x16xf32> to vector<1x16xf32>
      %482 = vector.broadcast %480 : vector<16x1xf32> to vector<16x16xf32>
      %483 = vector.broadcast %481 : vector<1x16xf32> to vector<16x16xf32>
      %484 = arith.mulf %482, %483 : vector<16x16xf32>
      %cst_120 = arith.constant 1.000000e+02 : f32
      %485 = vector.broadcast %cst_120 : f32 to vector<16x16xf32>
      %486 = arith.mulf %485, %484 : vector<16x16xf32>
      %487 = vector.broadcast %479 : vector<16x1xf32> to vector<16x16xf32>
      %488 = arith.addf %487, %486 : vector<16x16xf32>
      %489 = vector.extract_strided_slice %251 {offsets = [0, 5], sizes = [16, 1], strides = [1, 1]} : vector<16x16xf32> to vector<16x1xf32>
      %490 = vector.extract_strided_slice %94 {offsets = [0, 5], sizes = [16, 1], strides = [1, 1]} : vector<16x16xf32> to vector<16x1xf32>
      %491 = vector.extract_strided_slice %244 {offsets = [5, 0], sizes = [1, 16], strides = [1, 1]} : vector<16x16xf32> to vector<1x16xf32>
      %492 = vector.broadcast %490 : vector<16x1xf32> to vector<16x16xf32>
      %493 = vector.broadcast %491 : vector<1x16xf32> to vector<16x16xf32>
      %494 = arith.mulf %492, %493 : vector<16x16xf32>
      %cst_121 = arith.constant 1.000000e+02 : f32
      %495 = vector.broadcast %cst_121 : f32 to vector<16x16xf32>
      %496 = arith.mulf %495, %494 : vector<16x16xf32>
      %497 = vector.broadcast %489 : vector<16x1xf32> to vector<16x16xf32>
      %498 = arith.addf %497, %496 : vector<16x16xf32>
      %499 = tpu.concatenate %468, %478, %488, %498 in 1 : vector<16x16xf32>, vector<16x16xf32>, vector<16x16xf32>, vector<16x16xf32> -> vector<16x64xf32>
      %500 = vector.extract_strided_slice %245 {offsets = [0, 6], sizes = [16, 1], strides = [1, 1]} : vector<16x16xf32> to vector<16x1xf32>
      %501 = vector.extract_strided_slice %94 {offsets = [0, 6], sizes = [16, 1], strides = [1, 1]} : vector<16x16xf32> to vector<16x1xf32>
      %502 = vector.extract_strided_slice %160 {offsets = [6, 0], sizes = [1, 16], strides = [1, 1]} : vector<16x16xf32> to vector<1x16xf32>
      %503 = vector.broadcast %501 : vector<16x1xf32> to vector<16x16xf32>
      %504 = vector.broadcast %502 : vector<1x16xf32> to vector<16x16xf32>
      %505 = arith.mulf %503, %504 : vector<16x16xf32>
      %cst_122 = arith.constant 1.000000e+02 : f32
      %506 = vector.broadcast %cst_122 : f32 to vector<16x16xf32>
      %507 = arith.mulf %506, %505 : vector<16x16xf32>
      %508 = vector.broadcast %500 : vector<16x1xf32> to vector<16x16xf32>
      %509 = arith.addf %508, %507 : vector<16x16xf32>
      %510 = vector.extract_strided_slice %247 {offsets = [0, 6], sizes = [16, 1], strides = [1, 1]} : vector<16x16xf32> to vector<16x1xf32>
      %511 = vector.extract_strided_slice %94 {offsets = [0, 6], sizes = [16, 1], strides = [1, 1]} : vector<16x16xf32> to vector<16x1xf32>
      %512 = vector.extract_strided_slice %235 {offsets = [6, 0], sizes = [1, 16], strides = [1, 1]} : vector<16x16xf32> to vector<1x16xf32>
      %513 = vector.broadcast %511 : vector<16x1xf32> to vector<16x16xf32>
      %514 = vector.broadcast %512 : vector<1x16xf32> to vector<16x16xf32>
      %515 = arith.mulf %513, %514 : vector<16x16xf32>
      %cst_123 = arith.constant 1.000000e+02 : f32
      %516 = vector.broadcast %cst_123 : f32 to vector<16x16xf32>
      %517 = arith.mulf %516, %515 : vector<16x16xf32>
      %518 = vector.broadcast %510 : vector<16x1xf32> to vector<16x16xf32>
      %519 = arith.addf %518, %517 : vector<16x16xf32>
      %520 = vector.extract_strided_slice %249 {offsets = [0, 6], sizes = [16, 1], strides = [1, 1]} : vector<16x16xf32> to vector<16x1xf32>
      %521 = vector.extract_strided_slice %94 {offsets = [0, 6], sizes = [16, 1], strides = [1, 1]} : vector<16x16xf32> to vector<16x1xf32>
      %522 = vector.extract_strided_slice %169 {offsets = [6, 0], sizes = [1, 16], strides = [1, 1]} : vector<16x16xf32> to vector<1x16xf32>
      %523 = vector.broadcast %521 : vector<16x1xf32> to vector<16x16xf32>
      %524 = vector.broadcast %522 : vector<1x16xf32> to vector<16x16xf32>
      %525 = arith.mulf %523, %524 : vector<16x16xf32>
      %cst_124 = arith.constant 1.000000e+02 : f32
      %526 = vector.broadcast %cst_124 : f32 to vector<16x16xf32>
      %527 = arith.mulf %526, %525 : vector<16x16xf32>
      %528 = vector.broadcast %520 : vector<16x1xf32> to vector<16x16xf32>
      %529 = arith.addf %528, %527 : vector<16x16xf32>
      %530 = vector.extract_strided_slice %251 {offsets = [0, 6], sizes = [16, 1], strides = [1, 1]} : vector<16x16xf32> to vector<16x1xf32>
      %531 = vector.extract_strided_slice %94 {offsets = [0, 6], sizes = [16, 1], strides = [1, 1]} : vector<16x16xf32> to vector<16x1xf32>
      %532 = vector.extract_strided_slice %244 {offsets = [6, 0], sizes = [1, 16], strides = [1, 1]} : vector<16x16xf32> to vector<1x16xf32>
      %533 = vector.broadcast %531 : vector<16x1xf32> to vector<16x16xf32>
      %534 = vector.broadcast %532 : vector<1x16xf32> to vector<16x16xf32>
      %535 = arith.mulf %533, %534 : vector<16x16xf32>
      %cst_125 = arith.constant 1.000000e+02 : f32
      %536 = vector.broadcast %cst_125 : f32 to vector<16x16xf32>
      %537 = arith.mulf %536, %535 : vector<16x16xf32>
      %538 = vector.broadcast %530 : vector<16x1xf32> to vector<16x16xf32>
      %539 = arith.addf %538, %537 : vector<16x16xf32>
      %540 = tpu.concatenate %509, %519, %529, %539 in 1 : vector<16x16xf32>, vector<16x16xf32>, vector<16x16xf32>, vector<16x16xf32> -> vector<16x64xf32>
      %541 = vector.extract_strided_slice %245 {offsets = [0, 7], sizes = [16, 1], strides = [1, 1]} : vector<16x16xf32> to vector<16x1xf32>
      %542 = vector.extract_strided_slice %94 {offsets = [0, 7], sizes = [16, 1], strides = [1, 1]} : vector<16x16xf32> to vector<16x1xf32>
      %543 = vector.extract_strided_slice %160 {offsets = [7, 0], sizes = [1, 16], strides = [1, 1]} : vector<16x16xf32> to vector<1x16xf32>
      %544 = vector.broadcast %542 : vector<16x1xf32> to vector<16x16xf32>
      %545 = vector.broadcast %543 : vector<1x16xf32> to vector<16x16xf32>
      %546 = arith.mulf %544, %545 : vector<16x16xf32>
      %cst_126 = arith.constant 1.000000e+02 : f32
      %547 = vector.broadcast %cst_126 : f32 to vector<16x16xf32>
      %548 = arith.mulf %547, %546 : vector<16x16xf32>
      %549 = vector.broadcast %541 : vector<16x1xf32> to vector<16x16xf32>
      %550 = arith.addf %549, %548 : vector<16x16xf32>
      %551 = vector.extract_strided_slice %247 {offsets = [0, 7], sizes = [16, 1], strides = [1, 1]} : vector<16x16xf32> to vector<16x1xf32>
      %552 = vector.extract_strided_slice %94 {offsets = [0, 7], sizes = [16, 1], strides = [1, 1]} : vector<16x16xf32> to vector<16x1xf32>
      %553 = vector.extract_strided_slice %235 {offsets = [7, 0], sizes = [1, 16], strides = [1, 1]} : vector<16x16xf32> to vector<1x16xf32>
      %554 = vector.broadcast %552 : vector<16x1xf32> to vector<16x16xf32>
      %555 = vector.broadcast %553 : vector<1x16xf32> to vector<16x16xf32>
      %556 = arith.mulf %554, %555 : vector<16x16xf32>
      %cst_127 = arith.constant 1.000000e+02 : f32
      %557 = vector.broadcast %cst_127 : f32 to vector<16x16xf32>
      %558 = arith.mulf %557, %556 : vector<16x16xf32>
      %559 = vector.broadcast %551 : vector<16x1xf32> to vector<16x16xf32>
      %560 = arith.addf %559, %558 : vector<16x16xf32>
      %561 = vector.extract_strided_slice %249 {offsets = [0, 7], sizes = [16, 1], strides = [1, 1]} : vector<16x16xf32> to vector<16x1xf32>
      %562 = vector.extract_strided_slice %94 {offsets = [0, 7], sizes = [16, 1], strides = [1, 1]} : vector<16x16xf32> to vector<16x1xf32>
      %563 = vector.extract_strided_slice %169 {offsets = [7, 0], sizes = [1, 16], strides = [1, 1]} : vector<16x16xf32> to vector<1x16xf32>
      %564 = vector.broadcast %562 : vector<16x1xf32> to vector<16x16xf32>
      %565 = vector.broadcast %563 : vector<1x16xf32> to vector<16x16xf32>
      %566 = arith.mulf %564, %565 : vector<16x16xf32>
      %cst_128 = arith.constant 1.000000e+02 : f32
      %567 = vector.broadcast %cst_128 : f32 to vector<16x16xf32>
      %568 = arith.mulf %567, %566 : vector<16x16xf32>
      %569 = vector.broadcast %561 : vector<16x1xf32> to vector<16x16xf32>
      %570 = arith.addf %569, %568 : vector<16x16xf32>
      %571 = vector.extract_strided_slice %251 {offsets = [0, 7], sizes = [16, 1], strides = [1, 1]} : vector<16x16xf32> to vector<16x1xf32>
      %572 = vector.extract_strided_slice %94 {offsets = [0, 7], sizes = [16, 1], strides = [1, 1]} : vector<16x16xf32> to vector<16x1xf32>
      %573 = vector.extract_strided_slice %244 {offsets = [7, 0], sizes = [1, 16], strides = [1, 1]} : vector<16x16xf32> to vector<1x16xf32>
      %574 = vector.broadcast %572 : vector<16x1xf32> to vector<16x16xf32>
      %575 = vector.broadcast %573 : vector<1x16xf32> to vector<16x16xf32>
      %576 = arith.mulf %574, %575 : vector<16x16xf32>
      %cst_129 = arith.constant 1.000000e+02 : f32
      %577 = vector.broadcast %cst_129 : f32 to vector<16x16xf32>
      %578 = arith.mulf %577, %576 : vector<16x16xf32>
      %579 = vector.broadcast %571 : vector<16x1xf32> to vector<16x16xf32>
      %580 = arith.addf %579, %578 : vector<16x16xf32>
      %581 = tpu.concatenate %550, %560, %570, %580 in 1 : vector<16x16xf32>, vector<16x16xf32>, vector<16x16xf32>, vector<16x16xf32> -> vector<16x64xf32>
      %582 = vector.extract_strided_slice %245 {offsets = [0, 8], sizes = [16, 1], strides = [1, 1]} : vector<16x16xf32> to vector<16x1xf32>
      %583 = vector.extract_strided_slice %94 {offsets = [0, 8], sizes = [16, 1], strides = [1, 1]} : vector<16x16xf32> to vector<16x1xf32>
      %584 = vector.extract_strided_slice %160 {offsets = [8, 0], sizes = [1, 16], strides = [1, 1]} : vector<16x16xf32> to vector<1x16xf32>
      %585 = vector.broadcast %583 : vector<16x1xf32> to vector<16x16xf32>
      %586 = vector.broadcast %584 : vector<1x16xf32> to vector<16x16xf32>
      %587 = arith.mulf %585, %586 : vector<16x16xf32>
      %cst_130 = arith.constant 1.000000e+02 : f32
      %588 = vector.broadcast %cst_130 : f32 to vector<16x16xf32>
      %589 = arith.mulf %588, %587 : vector<16x16xf32>
      %590 = vector.broadcast %582 : vector<16x1xf32> to vector<16x16xf32>
      %591 = arith.addf %590, %589 : vector<16x16xf32>
      %592 = vector.extract_strided_slice %247 {offsets = [0, 8], sizes = [16, 1], strides = [1, 1]} : vector<16x16xf32> to vector<16x1xf32>
      %593 = vector.extract_strided_slice %94 {offsets = [0, 8], sizes = [16, 1], strides = [1, 1]} : vector<16x16xf32> to vector<16x1xf32>
      %594 = vector.extract_strided_slice %235 {offsets = [8, 0], sizes = [1, 16], strides = [1, 1]} : vector<16x16xf32> to vector<1x16xf32>
      %595 = vector.broadcast %593 : vector<16x1xf32> to vector<16x16xf32>
      %596 = vector.broadcast %594 : vector<1x16xf32> to vector<16x16xf32>
      %597 = arith.mulf %595, %596 : vector<16x16xf32>
      %cst_131 = arith.constant 1.000000e+02 : f32
      %598 = vector.broadcast %cst_131 : f32 to vector<16x16xf32>
      %599 = arith.mulf %598, %597 : vector<16x16xf32>
      %600 = vector.broadcast %592 : vector<16x1xf32> to vector<16x16xf32>
      %601 = arith.addf %600, %599 : vector<16x16xf32>
      %602 = vector.extract_strided_slice %249 {offsets = [0, 8], sizes = [16, 1], strides = [1, 1]} : vector<16x16xf32> to vector<16x1xf32>
      %603 = vector.extract_strided_slice %94 {offsets = [0, 8], sizes = [16, 1], strides = [1, 1]} : vector<16x16xf32> to vector<16x1xf32>
      %604 = vector.extract_strided_slice %169 {offsets = [8, 0], sizes = [1, 16], strides = [1, 1]} : vector<16x16xf32> to vector<1x16xf32>
      %605 = vector.broadcast %603 : vector<16x1xf32> to vector<16x16xf32>
      %606 = vector.broadcast %604 : vector<1x16xf32> to vector<16x16xf32>
      %607 = arith.mulf %605, %606 : vector<16x16xf32>
      %cst_132 = arith.constant 1.000000e+02 : f32
      %608 = vector.broadcast %cst_132 : f32 to vector<16x16xf32>
      %609 = arith.mulf %608, %607 : vector<16x16xf32>
      %610 = vector.broadcast %602 : vector<16x1xf32> to vector<16x16xf32>
      %611 = arith.addf %610, %609 : vector<16x16xf32>
      %612 = vector.extract_strided_slice %251 {offsets = [0, 8], sizes = [16, 1], strides = [1, 1]} : vector<16x16xf32> to vector<16x1xf32>
      %613 = vector.extract_strided_slice %94 {offsets = [0, 8], sizes = [16, 1], strides = [1, 1]} : vector<16x16xf32> to vector<16x1xf32>
      %614 = vector.extract_strided_slice %244 {offsets = [8, 0], sizes = [1, 16], strides = [1, 1]} : vector<16x16xf32> to vector<1x16xf32>
      %615 = vector.broadcast %613 : vector<16x1xf32> to vector<16x16xf32>
      %616 = vector.broadcast %614 : vector<1x16xf32> to vector<16x16xf32>
      %617 = arith.mulf %615, %616 : vector<16x16xf32>
      %cst_133 = arith.constant 1.000000e+02 : f32
      %618 = vector.broadcast %cst_133 : f32 to vector<16x16xf32>
      %619 = arith.mulf %618, %617 : vector<16x16xf32>
      %620 = vector.broadcast %612 : vector<16x1xf32> to vector<16x16xf32>
      %621 = arith.addf %620, %619 : vector<16x16xf32>
      %622 = tpu.concatenate %591, %601, %611, %621 in 1 : vector<16x16xf32>, vector<16x16xf32>, vector<16x16xf32>, vector<16x16xf32> -> vector<16x64xf32>
      %623 = vector.extract_strided_slice %245 {offsets = [0, 9], sizes = [16, 1], strides = [1, 1]} : vector<16x16xf32> to vector<16x1xf32>
      %624 = vector.extract_strided_slice %94 {offsets = [0, 9], sizes = [16, 1], strides = [1, 1]} : vector<16x16xf32> to vector<16x1xf32>
      %625 = vector.extract_strided_slice %160 {offsets = [9, 0], sizes = [1, 16], strides = [1, 1]} : vector<16x16xf32> to vector<1x16xf32>
      %626 = vector.broadcast %624 : vector<16x1xf32> to vector<16x16xf32>
      %627 = vector.broadcast %625 : vector<1x16xf32> to vector<16x16xf32>
      %628 = arith.mulf %626, %627 : vector<16x16xf32>
      %cst_134 = arith.constant 1.000000e+02 : f32
      %629 = vector.broadcast %cst_134 : f32 to vector<16x16xf32>
      %630 = arith.mulf %629, %628 : vector<16x16xf32>
      %631 = vector.broadcast %623 : vector<16x1xf32> to vector<16x16xf32>
      %632 = arith.addf %631, %630 : vector<16x16xf32>
      %633 = vector.extract_strided_slice %247 {offsets = [0, 9], sizes = [16, 1], strides = [1, 1]} : vector<16x16xf32> to vector<16x1xf32>
      %634 = vector.extract_strided_slice %94 {offsets = [0, 9], sizes = [16, 1], strides = [1, 1]} : vector<16x16xf32> to vector<16x1xf32>
      %635 = vector.extract_strided_slice %235 {offsets = [9, 0], sizes = [1, 16], strides = [1, 1]} : vector<16x16xf32> to vector<1x16xf32>
      %636 = vector.broadcast %634 : vector<16x1xf32> to vector<16x16xf32>
      %637 = vector.broadcast %635 : vector<1x16xf32> to vector<16x16xf32>
      %638 = arith.mulf %636, %637 : vector<16x16xf32>
      %cst_135 = arith.constant 1.000000e+02 : f32
      %639 = vector.broadcast %cst_135 : f32 to vector<16x16xf32>
      %640 = arith.mulf %639, %638 : vector<16x16xf32>
      %641 = vector.broadcast %633 : vector<16x1xf32> to vector<16x16xf32>
      %642 = arith.addf %641, %640 : vector<16x16xf32>
      %643 = vector.extract_strided_slice %249 {offsets = [0, 9], sizes = [16, 1], strides = [1, 1]} : vector<16x16xf32> to vector<16x1xf32>
      %644 = vector.extract_strided_slice %94 {offsets = [0, 9], sizes = [16, 1], strides = [1, 1]} : vector<16x16xf32> to vector<16x1xf32>
      %645 = vector.extract_strided_slice %169 {offsets = [9, 0], sizes = [1, 16], strides = [1, 1]} : vector<16x16xf32> to vector<1x16xf32>
      %646 = vector.broadcast %644 : vector<16x1xf32> to vector<16x16xf32>
      %647 = vector.broadcast %645 : vector<1x16xf32> to vector<16x16xf32>
      %648 = arith.mulf %646, %647 : vector<16x16xf32>
      %cst_136 = arith.constant 1.000000e+02 : f32
      %649 = vector.broadcast %cst_136 : f32 to vector<16x16xf32>
      %650 = arith.mulf %649, %648 : vector<16x16xf32>
      %651 = vector.broadcast %643 : vector<16x1xf32> to vector<16x16xf32>
      %652 = arith.addf %651, %650 : vector<16x16xf32>
      %653 = vector.extract_strided_slice %251 {offsets = [0, 9], sizes = [16, 1], strides = [1, 1]} : vector<16x16xf32> to vector<16x1xf32>
      %654 = vector.extract_strided_slice %94 {offsets = [0, 9], sizes = [16, 1], strides = [1, 1]} : vector<16x16xf32> to vector<16x1xf32>
      %655 = vector.extract_strided_slice %244 {offsets = [9, 0], sizes = [1, 16], strides = [1, 1]} : vector<16x16xf32> to vector<1x16xf32>
      %656 = vector.broadcast %654 : vector<16x1xf32> to vector<16x16xf32>
      %657 = vector.broadcast %655 : vector<1x16xf32> to vector<16x16xf32>
      %658 = arith.mulf %656, %657 : vector<16x16xf32>
      %cst_137 = arith.constant 1.000000e+02 : f32
      %659 = vector.broadcast %cst_137 : f32 to vector<16x16xf32>
      %660 = arith.mulf %659, %658 : vector<16x16xf32>
      %661 = vector.broadcast %653 : vector<16x1xf32> to vector<16x16xf32>
      %662 = arith.addf %661, %660 : vector<16x16xf32>
      %663 = tpu.concatenate %632, %642, %652, %662 in 1 : vector<16x16xf32>, vector<16x16xf32>, vector<16x16xf32>, vector<16x16xf32> -> vector<16x64xf32>
      %664 = vector.extract_strided_slice %245 {offsets = [0, 10], sizes = [16, 1], strides = [1, 1]} : vector<16x16xf32> to vector<16x1xf32>
      %665 = vector.extract_strided_slice %94 {offsets = [0, 10], sizes = [16, 1], strides = [1, 1]} : vector<16x16xf32> to vector<16x1xf32>
      %666 = vector.extract_strided_slice %160 {offsets = [10, 0], sizes = [1, 16], strides = [1, 1]} : vector<16x16xf32> to vector<1x16xf32>
      %667 = vector.broadcast %665 : vector<16x1xf32> to vector<16x16xf32>
      %668 = vector.broadcast %666 : vector<1x16xf32> to vector<16x16xf32>
      %669 = arith.mulf %667, %668 : vector<16x16xf32>
      %cst_138 = arith.constant 1.000000e+02 : f32
      %670 = vector.broadcast %cst_138 : f32 to vector<16x16xf32>
      %671 = arith.mulf %670, %669 : vector<16x16xf32>
      %672 = vector.broadcast %664 : vector<16x1xf32> to vector<16x16xf32>
      %673 = arith.addf %672, %671 : vector<16x16xf32>
      %674 = vector.extract_strided_slice %247 {offsets = [0, 10], sizes = [16, 1], strides = [1, 1]} : vector<16x16xf32> to vector<16x1xf32>
      %675 = vector.extract_strided_slice %94 {offsets = [0, 10], sizes = [16, 1], strides = [1, 1]} : vector<16x16xf32> to vector<16x1xf32>
      %676 = vector.extract_strided_slice %235 {offsets = [10, 0], sizes = [1, 16], strides = [1, 1]} : vector<16x16xf32> to vector<1x16xf32>
      %677 = vector.broadcast %675 : vector<16x1xf32> to vector<16x16xf32>
      %678 = vector.broadcast %676 : vector<1x16xf32> to vector<16x16xf32>
      %679 = arith.mulf %677, %678 : vector<16x16xf32>
      %cst_139 = arith.constant 1.000000e+02 : f32
      %680 = vector.broadcast %cst_139 : f32 to vector<16x16xf32>
      %681 = arith.mulf %680, %679 : vector<16x16xf32>
      %682 = vector.broadcast %674 : vector<16x1xf32> to vector<16x16xf32>
      %683 = arith.addf %682, %681 : vector<16x16xf32>
      %684 = vector.extract_strided_slice %249 {offsets = [0, 10], sizes = [16, 1], strides = [1, 1]} : vector<16x16xf32> to vector<16x1xf32>
      %685 = vector.extract_strided_slice %94 {offsets = [0, 10], sizes = [16, 1], strides = [1, 1]} : vector<16x16xf32> to vector<16x1xf32>
      %686 = vector.extract_strided_slice %169 {offsets = [10, 0], sizes = [1, 16], strides = [1, 1]} : vector<16x16xf32> to vector<1x16xf32>
      %687 = vector.broadcast %685 : vector<16x1xf32> to vector<16x16xf32>
      %688 = vector.broadcast %686 : vector<1x16xf32> to vector<16x16xf32>
      %689 = arith.mulf %687, %688 : vector<16x16xf32>
      %cst_140 = arith.constant 1.000000e+02 : f32
      %690 = vector.broadcast %cst_140 : f32 to vector<16x16xf32>
      %691 = arith.mulf %690, %689 : vector<16x16xf32>
      %692 = vector.broadcast %684 : vector<16x1xf32> to vector<16x16xf32>
      %693 = arith.addf %692, %691 : vector<16x16xf32>
      %694 = vector.extract_strided_slice %251 {offsets = [0, 10], sizes = [16, 1], strides = [1, 1]} : vector<16x16xf32> to vector<16x1xf32>
      %695 = vector.extract_strided_slice %94 {offsets = [0, 10], sizes = [16, 1], strides = [1, 1]} : vector<16x16xf32> to vector<16x1xf32>
      %696 = vector.extract_strided_slice %244 {offsets = [10, 0], sizes = [1, 16], strides = [1, 1]} : vector<16x16xf32> to vector<1x16xf32>
      %697 = vector.broadcast %695 : vector<16x1xf32> to vector<16x16xf32>
      %698 = vector.broadcast %696 : vector<1x16xf32> to vector<16x16xf32>
      %699 = arith.mulf %697, %698 : vector<16x16xf32>
      %cst_141 = arith.constant 1.000000e+02 : f32
      %700 = vector.broadcast %cst_141 : f32 to vector<16x16xf32>
      %701 = arith.mulf %700, %699 : vector<16x16xf32>
      %702 = vector.broadcast %694 : vector<16x1xf32> to vector<16x16xf32>
      %703 = arith.addf %702, %701 : vector<16x16xf32>
      %704 = tpu.concatenate %673, %683, %693, %703 in 1 : vector<16x16xf32>, vector<16x16xf32>, vector<16x16xf32>, vector<16x16xf32> -> vector<16x64xf32>
      %705 = vector.extract_strided_slice %245 {offsets = [0, 11], sizes = [16, 1], strides = [1, 1]} : vector<16x16xf32> to vector<16x1xf32>
      %706 = vector.extract_strided_slice %94 {offsets = [0, 11], sizes = [16, 1], strides = [1, 1]} : vector<16x16xf32> to vector<16x1xf32>
      %707 = vector.extract_strided_slice %160 {offsets = [11, 0], sizes = [1, 16], strides = [1, 1]} : vector<16x16xf32> to vector<1x16xf32>
      %708 = vector.broadcast %706 : vector<16x1xf32> to vector<16x16xf32>
      %709 = vector.broadcast %707 : vector<1x16xf32> to vector<16x16xf32>
      %710 = arith.mulf %708, %709 : vector<16x16xf32>
      %cst_142 = arith.constant 1.000000e+02 : f32
      %711 = vector.broadcast %cst_142 : f32 to vector<16x16xf32>
      %712 = arith.mulf %711, %710 : vector<16x16xf32>
      %713 = vector.broadcast %705 : vector<16x1xf32> to vector<16x16xf32>
      %714 = arith.addf %713, %712 : vector<16x16xf32>
      %715 = vector.extract_strided_slice %247 {offsets = [0, 11], sizes = [16, 1], strides = [1, 1]} : vector<16x16xf32> to vector<16x1xf32>
      %716 = vector.extract_strided_slice %94 {offsets = [0, 11], sizes = [16, 1], strides = [1, 1]} : vector<16x16xf32> to vector<16x1xf32>
      %717 = vector.extract_strided_slice %235 {offsets = [11, 0], sizes = [1, 16], strides = [1, 1]} : vector<16x16xf32> to vector<1x16xf32>
      %718 = vector.broadcast %716 : vector<16x1xf32> to vector<16x16xf32>
      %719 = vector.broadcast %717 : vector<1x16xf32> to vector<16x16xf32>
      %720 = arith.mulf %718, %719 : vector<16x16xf32>
      %cst_143 = arith.constant 1.000000e+02 : f32
      %721 = vector.broadcast %cst_143 : f32 to vector<16x16xf32>
      %722 = arith.mulf %721, %720 : vector<16x16xf32>
      %723 = vector.broadcast %715 : vector<16x1xf32> to vector<16x16xf32>
      %724 = arith.addf %723, %722 : vector<16x16xf32>
      %725 = vector.extract_strided_slice %249 {offsets = [0, 11], sizes = [16, 1], strides = [1, 1]} : vector<16x16xf32> to vector<16x1xf32>
      %726 = vector.extract_strided_slice %94 {offsets = [0, 11], sizes = [16, 1], strides = [1, 1]} : vector<16x16xf32> to vector<16x1xf32>
      %727 = vector.extract_strided_slice %169 {offsets = [11, 0], sizes = [1, 16], strides = [1, 1]} : vector<16x16xf32> to vector<1x16xf32>
      %728 = vector.broadcast %726 : vector<16x1xf32> to vector<16x16xf32>
      %729 = vector.broadcast %727 : vector<1x16xf32> to vector<16x16xf32>
      %730 = arith.mulf %728, %729 : vector<16x16xf32>
      %cst_144 = arith.constant 1.000000e+02 : f32
      %731 = vector.broadcast %cst_144 : f32 to vector<16x16xf32>
      %732 = arith.mulf %731, %730 : vector<16x16xf32>
      %733 = vector.broadcast %725 : vector<16x1xf32> to vector<16x16xf32>
      %734 = arith.addf %733, %732 : vector<16x16xf32>
      %735 = vector.extract_strided_slice %251 {offsets = [0, 11], sizes = [16, 1], strides = [1, 1]} : vector<16x16xf32> to vector<16x1xf32>
      %736 = vector.extract_strided_slice %94 {offsets = [0, 11], sizes = [16, 1], strides = [1, 1]} : vector<16x16xf32> to vector<16x1xf32>
      %737 = vector.extract_strided_slice %244 {offsets = [11, 0], sizes = [1, 16], strides = [1, 1]} : vector<16x16xf32> to vector<1x16xf32>
      %738 = vector.broadcast %736 : vector<16x1xf32> to vector<16x16xf32>
      %739 = vector.broadcast %737 : vector<1x16xf32> to vector<16x16xf32>
      %740 = arith.mulf %738, %739 : vector<16x16xf32>
      %cst_145 = arith.constant 1.000000e+02 : f32
      %741 = vector.broadcast %cst_145 : f32 to vector<16x16xf32>
      %742 = arith.mulf %741, %740 : vector<16x16xf32>
      %743 = vector.broadcast %735 : vector<16x1xf32> to vector<16x16xf32>
      %744 = arith.addf %743, %742 : vector<16x16xf32>
      %745 = tpu.concatenate %714, %724, %734, %744 in 1 : vector<16x16xf32>, vector<16x16xf32>, vector<16x16xf32>, vector<16x16xf32> -> vector<16x64xf32>
      %746 = vector.extract_strided_slice %245 {offsets = [0, 12], sizes = [16, 1], strides = [1, 1]} : vector<16x16xf32> to vector<16x1xf32>
      %747 = vector.extract_strided_slice %94 {offsets = [0, 12], sizes = [16, 1], strides = [1, 1]} : vector<16x16xf32> to vector<16x1xf32>
      %748 = vector.extract_strided_slice %160 {offsets = [12, 0], sizes = [1, 16], strides = [1, 1]} : vector<16x16xf32> to vector<1x16xf32>
      %749 = vector.broadcast %747 : vector<16x1xf32> to vector<16x16xf32>
      %750 = vector.broadcast %748 : vector<1x16xf32> to vector<16x16xf32>
      %751 = arith.mulf %749, %750 : vector<16x16xf32>
      %cst_146 = arith.constant 1.000000e+02 : f32
      %752 = vector.broadcast %cst_146 : f32 to vector<16x16xf32>
      %753 = arith.mulf %752, %751 : vector<16x16xf32>
      %754 = vector.broadcast %746 : vector<16x1xf32> to vector<16x16xf32>
      %755 = arith.addf %754, %753 : vector<16x16xf32>
      %756 = vector.extract_strided_slice %247 {offsets = [0, 12], sizes = [16, 1], strides = [1, 1]} : vector<16x16xf32> to vector<16x1xf32>
      %757 = vector.extract_strided_slice %94 {offsets = [0, 12], sizes = [16, 1], strides = [1, 1]} : vector<16x16xf32> to vector<16x1xf32>
      %758 = vector.extract_strided_slice %235 {offsets = [12, 0], sizes = [1, 16], strides = [1, 1]} : vector<16x16xf32> to vector<1x16xf32>
      %759 = vector.broadcast %757 : vector<16x1xf32> to vector<16x16xf32>
      %760 = vector.broadcast %758 : vector<1x16xf32> to vector<16x16xf32>
      %761 = arith.mulf %759, %760 : vector<16x16xf32>
      %cst_147 = arith.constant 1.000000e+02 : f32
      %762 = vector.broadcast %cst_147 : f32 to vector<16x16xf32>
      %763 = arith.mulf %762, %761 : vector<16x16xf32>
      %764 = vector.broadcast %756 : vector<16x1xf32> to vector<16x16xf32>
      %765 = arith.addf %764, %763 : vector<16x16xf32>
      %766 = vector.extract_strided_slice %249 {offsets = [0, 12], sizes = [16, 1], strides = [1, 1]} : vector<16x16xf32> to vector<16x1xf32>
      %767 = vector.extract_strided_slice %94 {offsets = [0, 12], sizes = [16, 1], strides = [1, 1]} : vector<16x16xf32> to vector<16x1xf32>
      %768 = vector.extract_strided_slice %169 {offsets = [12, 0], sizes = [1, 16], strides = [1, 1]} : vector<16x16xf32> to vector<1x16xf32>
      %769 = vector.broadcast %767 : vector<16x1xf32> to vector<16x16xf32>
      %770 = vector.broadcast %768 : vector<1x16xf32> to vector<16x16xf32>
      %771 = arith.mulf %769, %770 : vector<16x16xf32>
      %cst_148 = arith.constant 1.000000e+02 : f32
      %772 = vector.broadcast %cst_148 : f32 to vector<16x16xf32>
      %773 = arith.mulf %772, %771 : vector<16x16xf32>
      %774 = vector.broadcast %766 : vector<16x1xf32> to vector<16x16xf32>
      %775 = arith.addf %774, %773 : vector<16x16xf32>
      %776 = vector.extract_strided_slice %251 {offsets = [0, 12], sizes = [16, 1], strides = [1, 1]} : vector<16x16xf32> to vector<16x1xf32>
      %777 = vector.extract_strided_slice %94 {offsets = [0, 12], sizes = [16, 1], strides = [1, 1]} : vector<16x16xf32> to vector<16x1xf32>
      %778 = vector.extract_strided_slice %244 {offsets = [12, 0], sizes = [1, 16], strides = [1, 1]} : vector<16x16xf32> to vector<1x16xf32>
      %779 = vector.broadcast %777 : vector<16x1xf32> to vector<16x16xf32>
      %780 = vector.broadcast %778 : vector<1x16xf32> to vector<16x16xf32>
      %781 = arith.mulf %779, %780 : vector<16x16xf32>
      %cst_149 = arith.constant 1.000000e+02 : f32
      %782 = vector.broadcast %cst_149 : f32 to vector<16x16xf32>
      %783 = arith.mulf %782, %781 : vector<16x16xf32>
      %784 = vector.broadcast %776 : vector<16x1xf32> to vector<16x16xf32>
      %785 = arith.addf %784, %783 : vector<16x16xf32>
      %786 = tpu.concatenate %755, %765, %775, %785 in 1 : vector<16x16xf32>, vector<16x16xf32>, vector<16x16xf32>, vector<16x16xf32> -> vector<16x64xf32>
      %787 = vector.extract_strided_slice %245 {offsets = [0, 13], sizes = [16, 1], strides = [1, 1]} : vector<16x16xf32> to vector<16x1xf32>
      %788 = vector.extract_strided_slice %94 {offsets = [0, 13], sizes = [16, 1], strides = [1, 1]} : vector<16x16xf32> to vector<16x1xf32>
      %789 = vector.extract_strided_slice %160 {offsets = [13, 0], sizes = [1, 16], strides = [1, 1]} : vector<16x16xf32> to vector<1x16xf32>
      %790 = vector.broadcast %788 : vector<16x1xf32> to vector<16x16xf32>
      %791 = vector.broadcast %789 : vector<1x16xf32> to vector<16x16xf32>
      %792 = arith.mulf %790, %791 : vector<16x16xf32>
      %cst_150 = arith.constant 1.000000e+02 : f32
      %793 = vector.broadcast %cst_150 : f32 to vector<16x16xf32>
      %794 = arith.mulf %793, %792 : vector<16x16xf32>
      %795 = vector.broadcast %787 : vector<16x1xf32> to vector<16x16xf32>
      %796 = arith.addf %795, %794 : vector<16x16xf32>
      %797 = vector.extract_strided_slice %247 {offsets = [0, 13], sizes = [16, 1], strides = [1, 1]} : vector<16x16xf32> to vector<16x1xf32>
      %798 = vector.extract_strided_slice %94 {offsets = [0, 13], sizes = [16, 1], strides = [1, 1]} : vector<16x16xf32> to vector<16x1xf32>
      %799 = vector.extract_strided_slice %235 {offsets = [13, 0], sizes = [1, 16], strides = [1, 1]} : vector<16x16xf32> to vector<1x16xf32>
      %800 = vector.broadcast %798 : vector<16x1xf32> to vector<16x16xf32>
      %801 = vector.broadcast %799 : vector<1x16xf32> to vector<16x16xf32>
      %802 = arith.mulf %800, %801 : vector<16x16xf32>
      %cst_151 = arith.constant 1.000000e+02 : f32
      %803 = vector.broadcast %cst_151 : f32 to vector<16x16xf32>
      %804 = arith.mulf %803, %802 : vector<16x16xf32>
      %805 = vector.broadcast %797 : vector<16x1xf32> to vector<16x16xf32>
      %806 = arith.addf %805, %804 : vector<16x16xf32>
      %807 = vector.extract_strided_slice %249 {offsets = [0, 13], sizes = [16, 1], strides = [1, 1]} : vector<16x16xf32> to vector<16x1xf32>
      %808 = vector.extract_strided_slice %94 {offsets = [0, 13], sizes = [16, 1], strides = [1, 1]} : vector<16x16xf32> to vector<16x1xf32>
      %809 = vector.extract_strided_slice %169 {offsets = [13, 0], sizes = [1, 16], strides = [1, 1]} : vector<16x16xf32> to vector<1x16xf32>
      %810 = vector.broadcast %808 : vector<16x1xf32> to vector<16x16xf32>
      %811 = vector.broadcast %809 : vector<1x16xf32> to vector<16x16xf32>
      %812 = arith.mulf %810, %811 : vector<16x16xf32>
      %cst_152 = arith.constant 1.000000e+02 : f32
      %813 = vector.broadcast %cst_152 : f32 to vector<16x16xf32>
      %814 = arith.mulf %813, %812 : vector<16x16xf32>
      %815 = vector.broadcast %807 : vector<16x1xf32> to vector<16x16xf32>
      %816 = arith.addf %815, %814 : vector<16x16xf32>
      %817 = vector.extract_strided_slice %251 {offsets = [0, 13], sizes = [16, 1], strides = [1, 1]} : vector<16x16xf32> to vector<16x1xf32>
      %818 = vector.extract_strided_slice %94 {offsets = [0, 13], sizes = [16, 1], strides = [1, 1]} : vector<16x16xf32> to vector<16x1xf32>
      %819 = vector.extract_strided_slice %244 {offsets = [13, 0], sizes = [1, 16], strides = [1, 1]} : vector<16x16xf32> to vector<1x16xf32>
      %820 = vector.broadcast %818 : vector<16x1xf32> to vector<16x16xf32>
      %821 = vector.broadcast %819 : vector<1x16xf32> to vector<16x16xf32>
      %822 = arith.mulf %820, %821 : vector<16x16xf32>
      %cst_153 = arith.constant 1.000000e+02 : f32
      %823 = vector.broadcast %cst_153 : f32 to vector<16x16xf32>
      %824 = arith.mulf %823, %822 : vector<16x16xf32>
      %825 = vector.broadcast %817 : vector<16x1xf32> to vector<16x16xf32>
      %826 = arith.addf %825, %824 : vector<16x16xf32>
      %827 = tpu.concatenate %796, %806, %816, %826 in 1 : vector<16x16xf32>, vector<16x16xf32>, vector<16x16xf32>, vector<16x16xf32> -> vector<16x64xf32>
      %828 = vector.extract_strided_slice %245 {offsets = [0, 14], sizes = [16, 1], strides = [1, 1]} : vector<16x16xf32> to vector<16x1xf32>
      %829 = vector.extract_strided_slice %94 {offsets = [0, 14], sizes = [16, 1], strides = [1, 1]} : vector<16x16xf32> to vector<16x1xf32>
      %830 = vector.extract_strided_slice %160 {offsets = [14, 0], sizes = [1, 16], strides = [1, 1]} : vector<16x16xf32> to vector<1x16xf32>
      %831 = vector.broadcast %829 : vector<16x1xf32> to vector<16x16xf32>
      %832 = vector.broadcast %830 : vector<1x16xf32> to vector<16x16xf32>
      %833 = arith.mulf %831, %832 : vector<16x16xf32>
      %cst_154 = arith.constant 1.000000e+02 : f32
      %834 = vector.broadcast %cst_154 : f32 to vector<16x16xf32>
      %835 = arith.mulf %834, %833 : vector<16x16xf32>
      %836 = vector.broadcast %828 : vector<16x1xf32> to vector<16x16xf32>
      %837 = arith.addf %836, %835 : vector<16x16xf32>
      %838 = vector.extract_strided_slice %247 {offsets = [0, 14], sizes = [16, 1], strides = [1, 1]} : vector<16x16xf32> to vector<16x1xf32>
      %839 = vector.extract_strided_slice %94 {offsets = [0, 14], sizes = [16, 1], strides = [1, 1]} : vector<16x16xf32> to vector<16x1xf32>
      %840 = vector.extract_strided_slice %235 {offsets = [14, 0], sizes = [1, 16], strides = [1, 1]} : vector<16x16xf32> to vector<1x16xf32>
      %841 = vector.broadcast %839 : vector<16x1xf32> to vector<16x16xf32>
      %842 = vector.broadcast %840 : vector<1x16xf32> to vector<16x16xf32>
      %843 = arith.mulf %841, %842 : vector<16x16xf32>
      %cst_155 = arith.constant 1.000000e+02 : f32
      %844 = vector.broadcast %cst_155 : f32 to vector<16x16xf32>
      %845 = arith.mulf %844, %843 : vector<16x16xf32>
      %846 = vector.broadcast %838 : vector<16x1xf32> to vector<16x16xf32>
      %847 = arith.addf %846, %845 : vector<16x16xf32>
      %848 = vector.extract_strided_slice %249 {offsets = [0, 14], sizes = [16, 1], strides = [1, 1]} : vector<16x16xf32> to vector<16x1xf32>
      %849 = vector.extract_strided_slice %94 {offsets = [0, 14], sizes = [16, 1], strides = [1, 1]} : vector<16x16xf32> to vector<16x1xf32>
      %850 = vector.extract_strided_slice %169 {offsets = [14, 0], sizes = [1, 16], strides = [1, 1]} : vector<16x16xf32> to vector<1x16xf32>
      %851 = vector.broadcast %849 : vector<16x1xf32> to vector<16x16xf32>
      %852 = vector.broadcast %850 : vector<1x16xf32> to vector<16x16xf32>
      %853 = arith.mulf %851, %852 : vector<16x16xf32>
      %cst_156 = arith.constant 1.000000e+02 : f32
      %854 = vector.broadcast %cst_156 : f32 to vector<16x16xf32>
      %855 = arith.mulf %854, %853 : vector<16x16xf32>
      %856 = vector.broadcast %848 : vector<16x1xf32> to vector<16x16xf32>
      %857 = arith.addf %856, %855 : vector<16x16xf32>
      %858 = vector.extract_strided_slice %251 {offsets = [0, 14], sizes = [16, 1], strides = [1, 1]} : vector<16x16xf32> to vector<16x1xf32>
      %859 = vector.extract_strided_slice %94 {offsets = [0, 14], sizes = [16, 1], strides = [1, 1]} : vector<16x16xf32> to vector<16x1xf32>
      %860 = vector.extract_strided_slice %244 {offsets = [14, 0], sizes = [1, 16], strides = [1, 1]} : vector<16x16xf32> to vector<1x16xf32>
      %861 = vector.broadcast %859 : vector<16x1xf32> to vector<16x16xf32>
      %862 = vector.broadcast %860 : vector<1x16xf32> to vector<16x16xf32>
      %863 = arith.mulf %861, %862 : vector<16x16xf32>
      %cst_157 = arith.constant 1.000000e+02 : f32
      %864 = vector.broadcast %cst_157 : f32 to vector<16x16xf32>
      %865 = arith.mulf %864, %863 : vector<16x16xf32>
      %866 = vector.broadcast %858 : vector<16x1xf32> to vector<16x16xf32>
      %867 = arith.addf %866, %865 : vector<16x16xf32>
      %868 = tpu.concatenate %837, %847, %857, %867 in 1 : vector<16x16xf32>, vector<16x16xf32>, vector<16x16xf32>, vector<16x16xf32> -> vector<16x64xf32>
      %869 = vector.extract_strided_slice %245 {offsets = [0, 15], sizes = [16, 1], strides = [1, 1]} : vector<16x16xf32> to vector<16x1xf32>
      %870 = vector.extract_strided_slice %94 {offsets = [0, 15], sizes = [16, 1], strides = [1, 1]} : vector<16x16xf32> to vector<16x1xf32>
      %871 = vector.extract_strided_slice %160 {offsets = [15, 0], sizes = [1, 16], strides = [1, 1]} : vector<16x16xf32> to vector<1x16xf32>
      %872 = vector.broadcast %870 : vector<16x1xf32> to vector<16x16xf32>
      %873 = vector.broadcast %871 : vector<1x16xf32> to vector<16x16xf32>
      %874 = arith.mulf %872, %873 : vector<16x16xf32>
      %cst_158 = arith.constant 1.000000e+02 : f32
      %875 = vector.broadcast %cst_158 : f32 to vector<16x16xf32>
      %876 = arith.mulf %875, %874 : vector<16x16xf32>
      %877 = vector.broadcast %869 : vector<16x1xf32> to vector<16x16xf32>
      %878 = arith.addf %877, %876 : vector<16x16xf32>
      %879 = vector.extract_strided_slice %247 {offsets = [0, 15], sizes = [16, 1], strides = [1, 1]} : vector<16x16xf32> to vector<16x1xf32>
      %880 = vector.extract_strided_slice %94 {offsets = [0, 15], sizes = [16, 1], strides = [1, 1]} : vector<16x16xf32> to vector<16x1xf32>
      %881 = vector.extract_strided_slice %235 {offsets = [15, 0], sizes = [1, 16], strides = [1, 1]} : vector<16x16xf32> to vector<1x16xf32>
      %882 = vector.broadcast %880 : vector<16x1xf32> to vector<16x16xf32>
      %883 = vector.broadcast %881 : vector<1x16xf32> to vector<16x16xf32>
      %884 = arith.mulf %882, %883 : vector<16x16xf32>
      %cst_159 = arith.constant 1.000000e+02 : f32
      %885 = vector.broadcast %cst_159 : f32 to vector<16x16xf32>
      %886 = arith.mulf %885, %884 : vector<16x16xf32>
      %887 = vector.broadcast %879 : vector<16x1xf32> to vector<16x16xf32>
      %888 = arith.addf %887, %886 : vector<16x16xf32>
      %889 = vector.extract_strided_slice %249 {offsets = [0, 15], sizes = [16, 1], strides = [1, 1]} : vector<16x16xf32> to vector<16x1xf32>
      %890 = vector.extract_strided_slice %94 {offsets = [0, 15], sizes = [16, 1], strides = [1, 1]} : vector<16x16xf32> to vector<16x1xf32>
      %891 = vector.extract_strided_slice %169 {offsets = [15, 0], sizes = [1, 16], strides = [1, 1]} : vector<16x16xf32> to vector<1x16xf32>
      %892 = vector.broadcast %890 : vector<16x1xf32> to vector<16x16xf32>
      %893 = vector.broadcast %891 : vector<1x16xf32> to vector<16x16xf32>
      %894 = arith.mulf %892, %893 : vector<16x16xf32>
      %cst_160 = arith.constant 1.000000e+02 : f32
      %895 = vector.broadcast %cst_160 : f32 to vector<16x16xf32>
      %896 = arith.mulf %895, %894 : vector<16x16xf32>
      %897 = vector.broadcast %889 : vector<16x1xf32> to vector<16x16xf32>
      %898 = arith.addf %897, %896 : vector<16x16xf32>
      %899 = vector.extract_strided_slice %251 {offsets = [0, 15], sizes = [16, 1], strides = [1, 1]} : vector<16x16xf32> to vector<16x1xf32>
      %900 = vector.extract_strided_slice %94 {offsets = [0, 15], sizes = [16, 1], strides = [1, 1]} : vector<16x16xf32> to vector<16x1xf32>
      %901 = vector.extract_strided_slice %244 {offsets = [15, 0], sizes = [1, 16], strides = [1, 1]} : vector<16x16xf32> to vector<1x16xf32>
      %902 = vector.broadcast %900 : vector<16x1xf32> to vector<16x16xf32>
      %903 = vector.broadcast %901 : vector<1x16xf32> to vector<16x16xf32>
      %904 = arith.mulf %902, %903 : vector<16x16xf32>
      %cst_161 = arith.constant 1.000000e+02 : f32
      %905 = vector.broadcast %cst_161 : f32 to vector<16x16xf32>
      %906 = arith.mulf %905, %904 : vector<16x16xf32>
      %907 = vector.broadcast %899 : vector<16x1xf32> to vector<16x16xf32>
      %908 = arith.addf %907, %906 : vector<16x16xf32>
      %909 = tpu.concatenate %878, %888, %898, %908 in 1 : vector<16x16xf32>, vector<16x16xf32>, vector<16x16xf32>, vector<16x16xf32> -> vector<16x64xf32>
      %910 = vector.extract_strided_slice %294 {offsets = [0, 0], sizes = [1, 64], strides = [1, 1]} : vector<16x64xf32> to vector<1x64xf32>
      %cst_162 = arith.constant 1.000000e+00 : f32
      %911 = vector.broadcast %cst_162 : f32 to vector<1x64xf32>
      %912 = arith.divf %911, %910 : vector<1x64xf32>
      %913 = vector.extract_strided_slice %94 {offsets = [0, 0], sizes = [16, 1], strides = [1, 1]} : vector<16x16xf32> to vector<16x1xf32>
      %914 = vector.broadcast %913 : vector<16x1xf32> to vector<16x64xf32>
      %915 = arith.subf %294, %914 : vector<16x64xf32>
      %916 = vector.extract_strided_slice %253 {offsets = [0, 0], sizes = [1, 64], strides = [1, 1]} : vector<16x64xf32> to vector<1x64xf32>
      %917 = arith.mulf %916, %912 : vector<1x64xf32>
      %918 = vector.broadcast %917 : vector<1x64xf32> to vector<16x64xf32>
      %919 = arith.mulf %915, %918 : vector<16x64xf32>
      %920 = arith.subf %253, %919 : vector<16x64xf32>
      %921 = vector.extract_strided_slice %335 {offsets = [0, 0], sizes = [1, 64], strides = [1, 1]} : vector<16x64xf32> to vector<1x64xf32>
      %922 = arith.mulf %921, %912 : vector<1x64xf32>
      %923 = vector.broadcast %922 : vector<1x64xf32> to vector<16x64xf32>
      %924 = arith.mulf %915, %923 : vector<16x64xf32>
      %925 = arith.subf %335, %924 : vector<16x64xf32>
      %926 = vector.extract_strided_slice %376 {offsets = [0, 0], sizes = [1, 64], strides = [1, 1]} : vector<16x64xf32> to vector<1x64xf32>
      %927 = arith.mulf %926, %912 : vector<1x64xf32>
      %928 = vector.broadcast %927 : vector<1x64xf32> to vector<16x64xf32>
      %929 = arith.mulf %915, %928 : vector<16x64xf32>
      %930 = arith.subf %376, %929 : vector<16x64xf32>
      %931 = vector.extract_strided_slice %417 {offsets = [0, 0], sizes = [1, 64], strides = [1, 1]} : vector<16x64xf32> to vector<1x64xf32>
      %932 = arith.mulf %931, %912 : vector<1x64xf32>
      %933 = vector.broadcast %932 : vector<1x64xf32> to vector<16x64xf32>
      %934 = arith.mulf %915, %933 : vector<16x64xf32>
      %935 = arith.subf %417, %934 : vector<16x64xf32>
      %936 = vector.extract_strided_slice %458 {offsets = [0, 0], sizes = [1, 64], strides = [1, 1]} : vector<16x64xf32> to vector<1x64xf32>
      %937 = arith.mulf %936, %912 : vector<1x64xf32>
      %938 = vector.broadcast %937 : vector<1x64xf32> to vector<16x64xf32>
      %939 = arith.mulf %915, %938 : vector<16x64xf32>
      %940 = arith.subf %458, %939 : vector<16x64xf32>
      %941 = vector.extract_strided_slice %499 {offsets = [0, 0], sizes = [1, 64], strides = [1, 1]} : vector<16x64xf32> to vector<1x64xf32>
      %942 = arith.mulf %941, %912 : vector<1x64xf32>
      %943 = vector.broadcast %942 : vector<1x64xf32> to vector<16x64xf32>
      %944 = arith.mulf %915, %943 : vector<16x64xf32>
      %945 = arith.subf %499, %944 : vector<16x64xf32>
      %946 = vector.extract_strided_slice %540 {offsets = [0, 0], sizes = [1, 64], strides = [1, 1]} : vector<16x64xf32> to vector<1x64xf32>
      %947 = arith.mulf %946, %912 : vector<1x64xf32>
      %948 = vector.broadcast %947 : vector<1x64xf32> to vector<16x64xf32>
      %949 = arith.mulf %915, %948 : vector<16x64xf32>
      %950 = arith.subf %540, %949 : vector<16x64xf32>
      %951 = vector.extract_strided_slice %581 {offsets = [0, 0], sizes = [1, 64], strides = [1, 1]} : vector<16x64xf32> to vector<1x64xf32>
      %952 = arith.mulf %951, %912 : vector<1x64xf32>
      %953 = vector.broadcast %952 : vector<1x64xf32> to vector<16x64xf32>
      %954 = arith.mulf %915, %953 : vector<16x64xf32>
      %955 = arith.subf %581, %954 : vector<16x64xf32>
      %956 = vector.extract_strided_slice %622 {offsets = [0, 0], sizes = [1, 64], strides = [1, 1]} : vector<16x64xf32> to vector<1x64xf32>
      %957 = arith.mulf %956, %912 : vector<1x64xf32>
      %958 = vector.broadcast %957 : vector<1x64xf32> to vector<16x64xf32>
      %959 = arith.mulf %915, %958 : vector<16x64xf32>
      %960 = arith.subf %622, %959 : vector<16x64xf32>
      %961 = vector.extract_strided_slice %663 {offsets = [0, 0], sizes = [1, 64], strides = [1, 1]} : vector<16x64xf32> to vector<1x64xf32>
      %962 = arith.mulf %961, %912 : vector<1x64xf32>
      %963 = vector.broadcast %962 : vector<1x64xf32> to vector<16x64xf32>
      %964 = arith.mulf %915, %963 : vector<16x64xf32>
      %965 = arith.subf %663, %964 : vector<16x64xf32>
      %966 = vector.extract_strided_slice %704 {offsets = [0, 0], sizes = [1, 64], strides = [1, 1]} : vector<16x64xf32> to vector<1x64xf32>
      %967 = arith.mulf %966, %912 : vector<1x64xf32>
      %968 = vector.broadcast %967 : vector<1x64xf32> to vector<16x64xf32>
      %969 = arith.mulf %915, %968 : vector<16x64xf32>
      %970 = arith.subf %704, %969 : vector<16x64xf32>
      %971 = vector.extract_strided_slice %745 {offsets = [0, 0], sizes = [1, 64], strides = [1, 1]} : vector<16x64xf32> to vector<1x64xf32>
      %972 = arith.mulf %971, %912 : vector<1x64xf32>
      %973 = vector.broadcast %972 : vector<1x64xf32> to vector<16x64xf32>
      %974 = arith.mulf %915, %973 : vector<16x64xf32>
      %975 = arith.subf %745, %974 : vector<16x64xf32>
      %976 = vector.extract_strided_slice %786 {offsets = [0, 0], sizes = [1, 64], strides = [1, 1]} : vector<16x64xf32> to vector<1x64xf32>
      %977 = arith.mulf %976, %912 : vector<1x64xf32>
      %978 = vector.broadcast %977 : vector<1x64xf32> to vector<16x64xf32>
      %979 = arith.mulf %915, %978 : vector<16x64xf32>
      %980 = arith.subf %786, %979 : vector<16x64xf32>
      %981 = vector.extract_strided_slice %827 {offsets = [0, 0], sizes = [1, 64], strides = [1, 1]} : vector<16x64xf32> to vector<1x64xf32>
      %982 = arith.mulf %981, %912 : vector<1x64xf32>
      %983 = vector.broadcast %982 : vector<1x64xf32> to vector<16x64xf32>
      %984 = arith.mulf %915, %983 : vector<16x64xf32>
      %985 = arith.subf %827, %984 : vector<16x64xf32>
      %986 = vector.extract_strided_slice %868 {offsets = [0, 0], sizes = [1, 64], strides = [1, 1]} : vector<16x64xf32> to vector<1x64xf32>
      %987 = arith.mulf %986, %912 : vector<1x64xf32>
      %988 = vector.broadcast %987 : vector<1x64xf32> to vector<16x64xf32>
      %989 = arith.mulf %915, %988 : vector<16x64xf32>
      %990 = arith.subf %868, %989 : vector<16x64xf32>
      %991 = vector.extract_strided_slice %909 {offsets = [0, 0], sizes = [1, 64], strides = [1, 1]} : vector<16x64xf32> to vector<1x64xf32>
      %992 = arith.mulf %991, %912 : vector<1x64xf32>
      %993 = vector.broadcast %992 : vector<1x64xf32> to vector<16x64xf32>
      %994 = arith.mulf %915, %993 : vector<16x64xf32>
      %995 = arith.subf %909, %994 : vector<16x64xf32>
      %996 = vector.extract_strided_slice %925 {offsets = [1, 0], sizes = [1, 64], strides = [1, 1]} : vector<16x64xf32> to vector<1x64xf32>
      %cst_163 = arith.constant 1.000000e+00 : f32
      %997 = vector.broadcast %cst_163 : f32 to vector<1x64xf32>
      %998 = arith.divf %997, %996 : vector<1x64xf32>
      %999 = vector.extract_strided_slice %94 {offsets = [0, 1], sizes = [16, 1], strides = [1, 1]} : vector<16x16xf32> to vector<16x1xf32>
      %1000 = vector.broadcast %999 : vector<16x1xf32> to vector<16x64xf32>
      %1001 = arith.subf %925, %1000 : vector<16x64xf32>
      %1002 = vector.extract_strided_slice %920 {offsets = [1, 0], sizes = [1, 64], strides = [1, 1]} : vector<16x64xf32> to vector<1x64xf32>
      %1003 = arith.mulf %1002, %998 : vector<1x64xf32>
      %1004 = vector.broadcast %1003 : vector<1x64xf32> to vector<16x64xf32>
      %1005 = arith.mulf %1001, %1004 : vector<16x64xf32>
      %1006 = arith.subf %920, %1005 : vector<16x64xf32>
      %1007 = vector.extract_strided_slice %930 {offsets = [1, 0], sizes = [1, 64], strides = [1, 1]} : vector<16x64xf32> to vector<1x64xf32>
      %1008 = arith.mulf %1007, %998 : vector<1x64xf32>
      %1009 = vector.broadcast %1008 : vector<1x64xf32> to vector<16x64xf32>
      %1010 = arith.mulf %1001, %1009 : vector<16x64xf32>
      %1011 = arith.subf %930, %1010 : vector<16x64xf32>
      %1012 = vector.extract_strided_slice %935 {offsets = [1, 0], sizes = [1, 64], strides = [1, 1]} : vector<16x64xf32> to vector<1x64xf32>
      %1013 = arith.mulf %1012, %998 : vector<1x64xf32>
      %1014 = vector.broadcast %1013 : vector<1x64xf32> to vector<16x64xf32>
      %1015 = arith.mulf %1001, %1014 : vector<16x64xf32>
      %1016 = arith.subf %935, %1015 : vector<16x64xf32>
      %1017 = vector.extract_strided_slice %940 {offsets = [1, 0], sizes = [1, 64], strides = [1, 1]} : vector<16x64xf32> to vector<1x64xf32>
      %1018 = arith.mulf %1017, %998 : vector<1x64xf32>
      %1019 = vector.broadcast %1018 : vector<1x64xf32> to vector<16x64xf32>
      %1020 = arith.mulf %1001, %1019 : vector<16x64xf32>
      %1021 = arith.subf %940, %1020 : vector<16x64xf32>
      %1022 = vector.extract_strided_slice %945 {offsets = [1, 0], sizes = [1, 64], strides = [1, 1]} : vector<16x64xf32> to vector<1x64xf32>
      %1023 = arith.mulf %1022, %998 : vector<1x64xf32>
      %1024 = vector.broadcast %1023 : vector<1x64xf32> to vector<16x64xf32>
      %1025 = arith.mulf %1001, %1024 : vector<16x64xf32>
      %1026 = arith.subf %945, %1025 : vector<16x64xf32>
      %1027 = vector.extract_strided_slice %950 {offsets = [1, 0], sizes = [1, 64], strides = [1, 1]} : vector<16x64xf32> to vector<1x64xf32>
      %1028 = arith.mulf %1027, %998 : vector<1x64xf32>
      %1029 = vector.broadcast %1028 : vector<1x64xf32> to vector<16x64xf32>
      %1030 = arith.mulf %1001, %1029 : vector<16x64xf32>
      %1031 = arith.subf %950, %1030 : vector<16x64xf32>
      %1032 = vector.extract_strided_slice %955 {offsets = [1, 0], sizes = [1, 64], strides = [1, 1]} : vector<16x64xf32> to vector<1x64xf32>
      %1033 = arith.mulf %1032, %998 : vector<1x64xf32>
      %1034 = vector.broadcast %1033 : vector<1x64xf32> to vector<16x64xf32>
      %1035 = arith.mulf %1001, %1034 : vector<16x64xf32>
      %1036 = arith.subf %955, %1035 : vector<16x64xf32>
      %1037 = vector.extract_strided_slice %960 {offsets = [1, 0], sizes = [1, 64], strides = [1, 1]} : vector<16x64xf32> to vector<1x64xf32>
      %1038 = arith.mulf %1037, %998 : vector<1x64xf32>
      %1039 = vector.broadcast %1038 : vector<1x64xf32> to vector<16x64xf32>
      %1040 = arith.mulf %1001, %1039 : vector<16x64xf32>
      %1041 = arith.subf %960, %1040 : vector<16x64xf32>
      %1042 = vector.extract_strided_slice %965 {offsets = [1, 0], sizes = [1, 64], strides = [1, 1]} : vector<16x64xf32> to vector<1x64xf32>
      %1043 = arith.mulf %1042, %998 : vector<1x64xf32>
      %1044 = vector.broadcast %1043 : vector<1x64xf32> to vector<16x64xf32>
      %1045 = arith.mulf %1001, %1044 : vector<16x64xf32>
      %1046 = arith.subf %965, %1045 : vector<16x64xf32>
      %1047 = vector.extract_strided_slice %970 {offsets = [1, 0], sizes = [1, 64], strides = [1, 1]} : vector<16x64xf32> to vector<1x64xf32>
      %1048 = arith.mulf %1047, %998 : vector<1x64xf32>
      %1049 = vector.broadcast %1048 : vector<1x64xf32> to vector<16x64xf32>
      %1050 = arith.mulf %1001, %1049 : vector<16x64xf32>
      %1051 = arith.subf %970, %1050 : vector<16x64xf32>
      %1052 = vector.extract_strided_slice %975 {offsets = [1, 0], sizes = [1, 64], strides = [1, 1]} : vector<16x64xf32> to vector<1x64xf32>
      %1053 = arith.mulf %1052, %998 : vector<1x64xf32>
      %1054 = vector.broadcast %1053 : vector<1x64xf32> to vector<16x64xf32>
      %1055 = arith.mulf %1001, %1054 : vector<16x64xf32>
      %1056 = arith.subf %975, %1055 : vector<16x64xf32>
      %1057 = vector.extract_strided_slice %980 {offsets = [1, 0], sizes = [1, 64], strides = [1, 1]} : vector<16x64xf32> to vector<1x64xf32>
      %1058 = arith.mulf %1057, %998 : vector<1x64xf32>
      %1059 = vector.broadcast %1058 : vector<1x64xf32> to vector<16x64xf32>
      %1060 = arith.mulf %1001, %1059 : vector<16x64xf32>
      %1061 = arith.subf %980, %1060 : vector<16x64xf32>
      %1062 = vector.extract_strided_slice %985 {offsets = [1, 0], sizes = [1, 64], strides = [1, 1]} : vector<16x64xf32> to vector<1x64xf32>
      %1063 = arith.mulf %1062, %998 : vector<1x64xf32>
      %1064 = vector.broadcast %1063 : vector<1x64xf32> to vector<16x64xf32>
      %1065 = arith.mulf %1001, %1064 : vector<16x64xf32>
      %1066 = arith.subf %985, %1065 : vector<16x64xf32>
      %1067 = vector.extract_strided_slice %990 {offsets = [1, 0], sizes = [1, 64], strides = [1, 1]} : vector<16x64xf32> to vector<1x64xf32>
      %1068 = arith.mulf %1067, %998 : vector<1x64xf32>
      %1069 = vector.broadcast %1068 : vector<1x64xf32> to vector<16x64xf32>
      %1070 = arith.mulf %1001, %1069 : vector<16x64xf32>
      %1071 = arith.subf %990, %1070 : vector<16x64xf32>
      %1072 = vector.extract_strided_slice %995 {offsets = [1, 0], sizes = [1, 64], strides = [1, 1]} : vector<16x64xf32> to vector<1x64xf32>
      %1073 = arith.mulf %1072, %998 : vector<1x64xf32>
      %1074 = vector.broadcast %1073 : vector<1x64xf32> to vector<16x64xf32>
      %1075 = arith.mulf %1001, %1074 : vector<16x64xf32>
      %1076 = arith.subf %995, %1075 : vector<16x64xf32>
      %1077 = vector.extract_strided_slice %1011 {offsets = [2, 0], sizes = [1, 64], strides = [1, 1]} : vector<16x64xf32> to vector<1x64xf32>
      %cst_164 = arith.constant 1.000000e+00 : f32
      %1078 = vector.broadcast %cst_164 : f32 to vector<1x64xf32>
      %1079 = arith.divf %1078, %1077 : vector<1x64xf32>
      %1080 = vector.extract_strided_slice %94 {offsets = [0, 2], sizes = [16, 1], strides = [1, 1]} : vector<16x16xf32> to vector<16x1xf32>
      %1081 = vector.broadcast %1080 : vector<16x1xf32> to vector<16x64xf32>
      %1082 = arith.subf %1011, %1081 : vector<16x64xf32>
      %1083 = vector.extract_strided_slice %1006 {offsets = [2, 0], sizes = [1, 64], strides = [1, 1]} : vector<16x64xf32> to vector<1x64xf32>
      %1084 = arith.mulf %1083, %1079 : vector<1x64xf32>
      %1085 = vector.broadcast %1084 : vector<1x64xf32> to vector<16x64xf32>
      %1086 = arith.mulf %1082, %1085 : vector<16x64xf32>
      %1087 = arith.subf %1006, %1086 : vector<16x64xf32>
      %1088 = vector.extract_strided_slice %1016 {offsets = [2, 0], sizes = [1, 64], strides = [1, 1]} : vector<16x64xf32> to vector<1x64xf32>
      %1089 = arith.mulf %1088, %1079 : vector<1x64xf32>
      %1090 = vector.broadcast %1089 : vector<1x64xf32> to vector<16x64xf32>
      %1091 = arith.mulf %1082, %1090 : vector<16x64xf32>
      %1092 = arith.subf %1016, %1091 : vector<16x64xf32>
      %1093 = vector.extract_strided_slice %1021 {offsets = [2, 0], sizes = [1, 64], strides = [1, 1]} : vector<16x64xf32> to vector<1x64xf32>
      %1094 = arith.mulf %1093, %1079 : vector<1x64xf32>
      %1095 = vector.broadcast %1094 : vector<1x64xf32> to vector<16x64xf32>
      %1096 = arith.mulf %1082, %1095 : vector<16x64xf32>
      %1097 = arith.subf %1021, %1096 : vector<16x64xf32>
      %1098 = vector.extract_strided_slice %1026 {offsets = [2, 0], sizes = [1, 64], strides = [1, 1]} : vector<16x64xf32> to vector<1x64xf32>
      %1099 = arith.mulf %1098, %1079 : vector<1x64xf32>
      %1100 = vector.broadcast %1099 : vector<1x64xf32> to vector<16x64xf32>
      %1101 = arith.mulf %1082, %1100 : vector<16x64xf32>
      %1102 = arith.subf %1026, %1101 : vector<16x64xf32>
      %1103 = vector.extract_strided_slice %1031 {offsets = [2, 0], sizes = [1, 64], strides = [1, 1]} : vector<16x64xf32> to vector<1x64xf32>
      %1104 = arith.mulf %1103, %1079 : vector<1x64xf32>
      %1105 = vector.broadcast %1104 : vector<1x64xf32> to vector<16x64xf32>
      %1106 = arith.mulf %1082, %1105 : vector<16x64xf32>
      %1107 = arith.subf %1031, %1106 : vector<16x64xf32>
      %1108 = vector.extract_strided_slice %1036 {offsets = [2, 0], sizes = [1, 64], strides = [1, 1]} : vector<16x64xf32> to vector<1x64xf32>
      %1109 = arith.mulf %1108, %1079 : vector<1x64xf32>
      %1110 = vector.broadcast %1109 : vector<1x64xf32> to vector<16x64xf32>
      %1111 = arith.mulf %1082, %1110 : vector<16x64xf32>
      %1112 = arith.subf %1036, %1111 : vector<16x64xf32>
      %1113 = vector.extract_strided_slice %1041 {offsets = [2, 0], sizes = [1, 64], strides = [1, 1]} : vector<16x64xf32> to vector<1x64xf32>
      %1114 = arith.mulf %1113, %1079 : vector<1x64xf32>
      %1115 = vector.broadcast %1114 : vector<1x64xf32> to vector<16x64xf32>
      %1116 = arith.mulf %1082, %1115 : vector<16x64xf32>
      %1117 = arith.subf %1041, %1116 : vector<16x64xf32>
      %1118 = vector.extract_strided_slice %1046 {offsets = [2, 0], sizes = [1, 64], strides = [1, 1]} : vector<16x64xf32> to vector<1x64xf32>
      %1119 = arith.mulf %1118, %1079 : vector<1x64xf32>
      %1120 = vector.broadcast %1119 : vector<1x64xf32> to vector<16x64xf32>
      %1121 = arith.mulf %1082, %1120 : vector<16x64xf32>
      %1122 = arith.subf %1046, %1121 : vector<16x64xf32>
      %1123 = vector.extract_strided_slice %1051 {offsets = [2, 0], sizes = [1, 64], strides = [1, 1]} : vector<16x64xf32> to vector<1x64xf32>
      %1124 = arith.mulf %1123, %1079 : vector<1x64xf32>
      %1125 = vector.broadcast %1124 : vector<1x64xf32> to vector<16x64xf32>
      %1126 = arith.mulf %1082, %1125 : vector<16x64xf32>
      %1127 = arith.subf %1051, %1126 : vector<16x64xf32>
      %1128 = vector.extract_strided_slice %1056 {offsets = [2, 0], sizes = [1, 64], strides = [1, 1]} : vector<16x64xf32> to vector<1x64xf32>
      %1129 = arith.mulf %1128, %1079 : vector<1x64xf32>
      %1130 = vector.broadcast %1129 : vector<1x64xf32> to vector<16x64xf32>
      %1131 = arith.mulf %1082, %1130 : vector<16x64xf32>
      %1132 = arith.subf %1056, %1131 : vector<16x64xf32>
      %1133 = vector.extract_strided_slice %1061 {offsets = [2, 0], sizes = [1, 64], strides = [1, 1]} : vector<16x64xf32> to vector<1x64xf32>
      %1134 = arith.mulf %1133, %1079 : vector<1x64xf32>
      %1135 = vector.broadcast %1134 : vector<1x64xf32> to vector<16x64xf32>
      %1136 = arith.mulf %1082, %1135 : vector<16x64xf32>
      %1137 = arith.subf %1061, %1136 : vector<16x64xf32>
      %1138 = vector.extract_strided_slice %1066 {offsets = [2, 0], sizes = [1, 64], strides = [1, 1]} : vector<16x64xf32> to vector<1x64xf32>
      %1139 = arith.mulf %1138, %1079 : vector<1x64xf32>
      %1140 = vector.broadcast %1139 : vector<1x64xf32> to vector<16x64xf32>
      %1141 = arith.mulf %1082, %1140 : vector<16x64xf32>
      %1142 = arith.subf %1066, %1141 : vector<16x64xf32>
      %1143 = vector.extract_strided_slice %1071 {offsets = [2, 0], sizes = [1, 64], strides = [1, 1]} : vector<16x64xf32> to vector<1x64xf32>
      %1144 = arith.mulf %1143, %1079 : vector<1x64xf32>
      %1145 = vector.broadcast %1144 : vector<1x64xf32> to vector<16x64xf32>
      %1146 = arith.mulf %1082, %1145 : vector<16x64xf32>
      %1147 = arith.subf %1071, %1146 : vector<16x64xf32>
      %1148 = vector.extract_strided_slice %1076 {offsets = [2, 0], sizes = [1, 64], strides = [1, 1]} : vector<16x64xf32> to vector<1x64xf32>
      %1149 = arith.mulf %1148, %1079 : vector<1x64xf32>
      %1150 = vector.broadcast %1149 : vector<1x64xf32> to vector<16x64xf32>
      %1151 = arith.mulf %1082, %1150 : vector<16x64xf32>
      %1152 = arith.subf %1076, %1151 : vector<16x64xf32>
      %1153 = vector.extract_strided_slice %1092 {offsets = [3, 0], sizes = [1, 64], strides = [1, 1]} : vector<16x64xf32> to vector<1x64xf32>
      %cst_165 = arith.constant 1.000000e+00 : f32
      %1154 = vector.broadcast %cst_165 : f32 to vector<1x64xf32>
      %1155 = arith.divf %1154, %1153 : vector<1x64xf32>
      %1156 = vector.extract_strided_slice %94 {offsets = [0, 3], sizes = [16, 1], strides = [1, 1]} : vector<16x16xf32> to vector<16x1xf32>
      %1157 = vector.broadcast %1156 : vector<16x1xf32> to vector<16x64xf32>
      %1158 = arith.subf %1092, %1157 : vector<16x64xf32>
      %1159 = vector.extract_strided_slice %1087 {offsets = [3, 0], sizes = [1, 64], strides = [1, 1]} : vector<16x64xf32> to vector<1x64xf32>
      %1160 = arith.mulf %1159, %1155 : vector<1x64xf32>
      %1161 = vector.broadcast %1160 : vector<1x64xf32> to vector<16x64xf32>
      %1162 = arith.mulf %1158, %1161 : vector<16x64xf32>
      %1163 = arith.subf %1087, %1162 : vector<16x64xf32>
      %1164 = vector.extract_strided_slice %1097 {offsets = [3, 0], sizes = [1, 64], strides = [1, 1]} : vector<16x64xf32> to vector<1x64xf32>
      %1165 = arith.mulf %1164, %1155 : vector<1x64xf32>
      %1166 = vector.broadcast %1165 : vector<1x64xf32> to vector<16x64xf32>
      %1167 = arith.mulf %1158, %1166 : vector<16x64xf32>
      %1168 = arith.subf %1097, %1167 : vector<16x64xf32>
      %1169 = vector.extract_strided_slice %1102 {offsets = [3, 0], sizes = [1, 64], strides = [1, 1]} : vector<16x64xf32> to vector<1x64xf32>
      %1170 = arith.mulf %1169, %1155 : vector<1x64xf32>
      %1171 = vector.broadcast %1170 : vector<1x64xf32> to vector<16x64xf32>
      %1172 = arith.mulf %1158, %1171 : vector<16x64xf32>
      %1173 = arith.subf %1102, %1172 : vector<16x64xf32>
      %1174 = vector.extract_strided_slice %1107 {offsets = [3, 0], sizes = [1, 64], strides = [1, 1]} : vector<16x64xf32> to vector<1x64xf32>
      %1175 = arith.mulf %1174, %1155 : vector<1x64xf32>
      %1176 = vector.broadcast %1175 : vector<1x64xf32> to vector<16x64xf32>
      %1177 = arith.mulf %1158, %1176 : vector<16x64xf32>
      %1178 = arith.subf %1107, %1177 : vector<16x64xf32>
      %1179 = vector.extract_strided_slice %1112 {offsets = [3, 0], sizes = [1, 64], strides = [1, 1]} : vector<16x64xf32> to vector<1x64xf32>
      %1180 = arith.mulf %1179, %1155 : vector<1x64xf32>
      %1181 = vector.broadcast %1180 : vector<1x64xf32> to vector<16x64xf32>
      %1182 = arith.mulf %1158, %1181 : vector<16x64xf32>
      %1183 = arith.subf %1112, %1182 : vector<16x64xf32>
      %1184 = vector.extract_strided_slice %1117 {offsets = [3, 0], sizes = [1, 64], strides = [1, 1]} : vector<16x64xf32> to vector<1x64xf32>
      %1185 = arith.mulf %1184, %1155 : vector<1x64xf32>
      %1186 = vector.broadcast %1185 : vector<1x64xf32> to vector<16x64xf32>
      %1187 = arith.mulf %1158, %1186 : vector<16x64xf32>
      %1188 = arith.subf %1117, %1187 : vector<16x64xf32>
      %1189 = vector.extract_strided_slice %1122 {offsets = [3, 0], sizes = [1, 64], strides = [1, 1]} : vector<16x64xf32> to vector<1x64xf32>
      %1190 = arith.mulf %1189, %1155 : vector<1x64xf32>
      %1191 = vector.broadcast %1190 : vector<1x64xf32> to vector<16x64xf32>
      %1192 = arith.mulf %1158, %1191 : vector<16x64xf32>
      %1193 = arith.subf %1122, %1192 : vector<16x64xf32>
      %1194 = vector.extract_strided_slice %1127 {offsets = [3, 0], sizes = [1, 64], strides = [1, 1]} : vector<16x64xf32> to vector<1x64xf32>
      %1195 = arith.mulf %1194, %1155 : vector<1x64xf32>
      %1196 = vector.broadcast %1195 : vector<1x64xf32> to vector<16x64xf32>
      %1197 = arith.mulf %1158, %1196 : vector<16x64xf32>
      %1198 = arith.subf %1127, %1197 : vector<16x64xf32>
      %1199 = vector.extract_strided_slice %1132 {offsets = [3, 0], sizes = [1, 64], strides = [1, 1]} : vector<16x64xf32> to vector<1x64xf32>
      %1200 = arith.mulf %1199, %1155 : vector<1x64xf32>
      %1201 = vector.broadcast %1200 : vector<1x64xf32> to vector<16x64xf32>
      %1202 = arith.mulf %1158, %1201 : vector<16x64xf32>
      %1203 = arith.subf %1132, %1202 : vector<16x64xf32>
      %1204 = vector.extract_strided_slice %1137 {offsets = [3, 0], sizes = [1, 64], strides = [1, 1]} : vector<16x64xf32> to vector<1x64xf32>
      %1205 = arith.mulf %1204, %1155 : vector<1x64xf32>
      %1206 = vector.broadcast %1205 : vector<1x64xf32> to vector<16x64xf32>
      %1207 = arith.mulf %1158, %1206 : vector<16x64xf32>
      %1208 = arith.subf %1137, %1207 : vector<16x64xf32>
      %1209 = vector.extract_strided_slice %1142 {offsets = [3, 0], sizes = [1, 64], strides = [1, 1]} : vector<16x64xf32> to vector<1x64xf32>
      %1210 = arith.mulf %1209, %1155 : vector<1x64xf32>
      %1211 = vector.broadcast %1210 : vector<1x64xf32> to vector<16x64xf32>
      %1212 = arith.mulf %1158, %1211 : vector<16x64xf32>
      %1213 = arith.subf %1142, %1212 : vector<16x64xf32>
      %1214 = vector.extract_strided_slice %1147 {offsets = [3, 0], sizes = [1, 64], strides = [1, 1]} : vector<16x64xf32> to vector<1x64xf32>
      %1215 = arith.mulf %1214, %1155 : vector<1x64xf32>
      %1216 = vector.broadcast %1215 : vector<1x64xf32> to vector<16x64xf32>
      %1217 = arith.mulf %1158, %1216 : vector<16x64xf32>
      %1218 = arith.subf %1147, %1217 : vector<16x64xf32>
      %1219 = vector.extract_strided_slice %1152 {offsets = [3, 0], sizes = [1, 64], strides = [1, 1]} : vector<16x64xf32> to vector<1x64xf32>
      %1220 = arith.mulf %1219, %1155 : vector<1x64xf32>
      %1221 = vector.broadcast %1220 : vector<1x64xf32> to vector<16x64xf32>
      %1222 = arith.mulf %1158, %1221 : vector<16x64xf32>
      %1223 = arith.subf %1152, %1222 : vector<16x64xf32>
      %1224 = vector.extract_strided_slice %1168 {offsets = [4, 0], sizes = [1, 64], strides = [1, 1]} : vector<16x64xf32> to vector<1x64xf32>
      %cst_166 = arith.constant 1.000000e+00 : f32
      %1225 = vector.broadcast %cst_166 : f32 to vector<1x64xf32>
      %1226 = arith.divf %1225, %1224 : vector<1x64xf32>
      %1227 = vector.extract_strided_slice %94 {offsets = [0, 4], sizes = [16, 1], strides = [1, 1]} : vector<16x16xf32> to vector<16x1xf32>
      %1228 = vector.broadcast %1227 : vector<16x1xf32> to vector<16x64xf32>
      %1229 = arith.subf %1168, %1228 : vector<16x64xf32>
      %1230 = vector.extract_strided_slice %1163 {offsets = [4, 0], sizes = [1, 64], strides = [1, 1]} : vector<16x64xf32> to vector<1x64xf32>
      %1231 = arith.mulf %1230, %1226 : vector<1x64xf32>
      %1232 = vector.broadcast %1231 : vector<1x64xf32> to vector<16x64xf32>
      %1233 = arith.mulf %1229, %1232 : vector<16x64xf32>
      %1234 = arith.subf %1163, %1233 : vector<16x64xf32>
      %1235 = vector.extract_strided_slice %1173 {offsets = [4, 0], sizes = [1, 64], strides = [1, 1]} : vector<16x64xf32> to vector<1x64xf32>
      %1236 = arith.mulf %1235, %1226 : vector<1x64xf32>
      %1237 = vector.broadcast %1236 : vector<1x64xf32> to vector<16x64xf32>
      %1238 = arith.mulf %1229, %1237 : vector<16x64xf32>
      %1239 = arith.subf %1173, %1238 : vector<16x64xf32>
      %1240 = vector.extract_strided_slice %1178 {offsets = [4, 0], sizes = [1, 64], strides = [1, 1]} : vector<16x64xf32> to vector<1x64xf32>
      %1241 = arith.mulf %1240, %1226 : vector<1x64xf32>
      %1242 = vector.broadcast %1241 : vector<1x64xf32> to vector<16x64xf32>
      %1243 = arith.mulf %1229, %1242 : vector<16x64xf32>
      %1244 = arith.subf %1178, %1243 : vector<16x64xf32>
      %1245 = vector.extract_strided_slice %1183 {offsets = [4, 0], sizes = [1, 64], strides = [1, 1]} : vector<16x64xf32> to vector<1x64xf32>
      %1246 = arith.mulf %1245, %1226 : vector<1x64xf32>
      %1247 = vector.broadcast %1246 : vector<1x64xf32> to vector<16x64xf32>
      %1248 = arith.mulf %1229, %1247 : vector<16x64xf32>
      %1249 = arith.subf %1183, %1248 : vector<16x64xf32>
      %1250 = vector.extract_strided_slice %1188 {offsets = [4, 0], sizes = [1, 64], strides = [1, 1]} : vector<16x64xf32> to vector<1x64xf32>
      %1251 = arith.mulf %1250, %1226 : vector<1x64xf32>
      %1252 = vector.broadcast %1251 : vector<1x64xf32> to vector<16x64xf32>
      %1253 = arith.mulf %1229, %1252 : vector<16x64xf32>
      %1254 = arith.subf %1188, %1253 : vector<16x64xf32>
      %1255 = vector.extract_strided_slice %1193 {offsets = [4, 0], sizes = [1, 64], strides = [1, 1]} : vector<16x64xf32> to vector<1x64xf32>
      %1256 = arith.mulf %1255, %1226 : vector<1x64xf32>
      %1257 = vector.broadcast %1256 : vector<1x64xf32> to vector<16x64xf32>
      %1258 = arith.mulf %1229, %1257 : vector<16x64xf32>
      %1259 = arith.subf %1193, %1258 : vector<16x64xf32>
      %1260 = vector.extract_strided_slice %1198 {offsets = [4, 0], sizes = [1, 64], strides = [1, 1]} : vector<16x64xf32> to vector<1x64xf32>
      %1261 = arith.mulf %1260, %1226 : vector<1x64xf32>
      %1262 = vector.broadcast %1261 : vector<1x64xf32> to vector<16x64xf32>
      %1263 = arith.mulf %1229, %1262 : vector<16x64xf32>
      %1264 = arith.subf %1198, %1263 : vector<16x64xf32>
      %1265 = vector.extract_strided_slice %1203 {offsets = [4, 0], sizes = [1, 64], strides = [1, 1]} : vector<16x64xf32> to vector<1x64xf32>
      %1266 = arith.mulf %1265, %1226 : vector<1x64xf32>
      %1267 = vector.broadcast %1266 : vector<1x64xf32> to vector<16x64xf32>
      %1268 = arith.mulf %1229, %1267 : vector<16x64xf32>
      %1269 = arith.subf %1203, %1268 : vector<16x64xf32>
      %1270 = vector.extract_strided_slice %1208 {offsets = [4, 0], sizes = [1, 64], strides = [1, 1]} : vector<16x64xf32> to vector<1x64xf32>
      %1271 = arith.mulf %1270, %1226 : vector<1x64xf32>
      %1272 = vector.broadcast %1271 : vector<1x64xf32> to vector<16x64xf32>
      %1273 = arith.mulf %1229, %1272 : vector<16x64xf32>
      %1274 = arith.subf %1208, %1273 : vector<16x64xf32>
      %1275 = vector.extract_strided_slice %1213 {offsets = [4, 0], sizes = [1, 64], strides = [1, 1]} : vector<16x64xf32> to vector<1x64xf32>
      %1276 = arith.mulf %1275, %1226 : vector<1x64xf32>
      %1277 = vector.broadcast %1276 : vector<1x64xf32> to vector<16x64xf32>
      %1278 = arith.mulf %1229, %1277 : vector<16x64xf32>
      %1279 = arith.subf %1213, %1278 : vector<16x64xf32>
      %1280 = vector.extract_strided_slice %1218 {offsets = [4, 0], sizes = [1, 64], strides = [1, 1]} : vector<16x64xf32> to vector<1x64xf32>
      %1281 = arith.mulf %1280, %1226 : vector<1x64xf32>
      %1282 = vector.broadcast %1281 : vector<1x64xf32> to vector<16x64xf32>
      %1283 = arith.mulf %1229, %1282 : vector<16x64xf32>
      %1284 = arith.subf %1218, %1283 : vector<16x64xf32>
      %1285 = vector.extract_strided_slice %1223 {offsets = [4, 0], sizes = [1, 64], strides = [1, 1]} : vector<16x64xf32> to vector<1x64xf32>
      %1286 = arith.mulf %1285, %1226 : vector<1x64xf32>
      %1287 = vector.broadcast %1286 : vector<1x64xf32> to vector<16x64xf32>
      %1288 = arith.mulf %1229, %1287 : vector<16x64xf32>
      %1289 = arith.subf %1223, %1288 : vector<16x64xf32>
      %1290 = vector.extract_strided_slice %1239 {offsets = [5, 0], sizes = [1, 64], strides = [1, 1]} : vector<16x64xf32> to vector<1x64xf32>
      %cst_167 = arith.constant 1.000000e+00 : f32
      %1291 = vector.broadcast %cst_167 : f32 to vector<1x64xf32>
      %1292 = arith.divf %1291, %1290 : vector<1x64xf32>
      %1293 = vector.extract_strided_slice %94 {offsets = [0, 5], sizes = [16, 1], strides = [1, 1]} : vector<16x16xf32> to vector<16x1xf32>
      %1294 = vector.broadcast %1293 : vector<16x1xf32> to vector<16x64xf32>
      %1295 = arith.subf %1239, %1294 : vector<16x64xf32>
      %1296 = vector.extract_strided_slice %1234 {offsets = [5, 0], sizes = [1, 64], strides = [1, 1]} : vector<16x64xf32> to vector<1x64xf32>
      %1297 = arith.mulf %1296, %1292 : vector<1x64xf32>
      %1298 = vector.broadcast %1297 : vector<1x64xf32> to vector<16x64xf32>
      %1299 = arith.mulf %1295, %1298 : vector<16x64xf32>
      %1300 = arith.subf %1234, %1299 : vector<16x64xf32>
      %1301 = vector.extract_strided_slice %1244 {offsets = [5, 0], sizes = [1, 64], strides = [1, 1]} : vector<16x64xf32> to vector<1x64xf32>
      %1302 = arith.mulf %1301, %1292 : vector<1x64xf32>
      %1303 = vector.broadcast %1302 : vector<1x64xf32> to vector<16x64xf32>
      %1304 = arith.mulf %1295, %1303 : vector<16x64xf32>
      %1305 = arith.subf %1244, %1304 : vector<16x64xf32>
      %1306 = vector.extract_strided_slice %1249 {offsets = [5, 0], sizes = [1, 64], strides = [1, 1]} : vector<16x64xf32> to vector<1x64xf32>
      %1307 = arith.mulf %1306, %1292 : vector<1x64xf32>
      %1308 = vector.broadcast %1307 : vector<1x64xf32> to vector<16x64xf32>
      %1309 = arith.mulf %1295, %1308 : vector<16x64xf32>
      %1310 = arith.subf %1249, %1309 : vector<16x64xf32>
      %1311 = vector.extract_strided_slice %1254 {offsets = [5, 0], sizes = [1, 64], strides = [1, 1]} : vector<16x64xf32> to vector<1x64xf32>
      %1312 = arith.mulf %1311, %1292 : vector<1x64xf32>
      %1313 = vector.broadcast %1312 : vector<1x64xf32> to vector<16x64xf32>
      %1314 = arith.mulf %1295, %1313 : vector<16x64xf32>
      %1315 = arith.subf %1254, %1314 : vector<16x64xf32>
      %1316 = vector.extract_strided_slice %1259 {offsets = [5, 0], sizes = [1, 64], strides = [1, 1]} : vector<16x64xf32> to vector<1x64xf32>
      %1317 = arith.mulf %1316, %1292 : vector<1x64xf32>
      %1318 = vector.broadcast %1317 : vector<1x64xf32> to vector<16x64xf32>
      %1319 = arith.mulf %1295, %1318 : vector<16x64xf32>
      %1320 = arith.subf %1259, %1319 : vector<16x64xf32>
      %1321 = vector.extract_strided_slice %1264 {offsets = [5, 0], sizes = [1, 64], strides = [1, 1]} : vector<16x64xf32> to vector<1x64xf32>
      %1322 = arith.mulf %1321, %1292 : vector<1x64xf32>
      %1323 = vector.broadcast %1322 : vector<1x64xf32> to vector<16x64xf32>
      %1324 = arith.mulf %1295, %1323 : vector<16x64xf32>
      %1325 = arith.subf %1264, %1324 : vector<16x64xf32>
      %1326 = vector.extract_strided_slice %1269 {offsets = [5, 0], sizes = [1, 64], strides = [1, 1]} : vector<16x64xf32> to vector<1x64xf32>
      %1327 = arith.mulf %1326, %1292 : vector<1x64xf32>
      %1328 = vector.broadcast %1327 : vector<1x64xf32> to vector<16x64xf32>
      %1329 = arith.mulf %1295, %1328 : vector<16x64xf32>
      %1330 = arith.subf %1269, %1329 : vector<16x64xf32>
      %1331 = vector.extract_strided_slice %1274 {offsets = [5, 0], sizes = [1, 64], strides = [1, 1]} : vector<16x64xf32> to vector<1x64xf32>
      %1332 = arith.mulf %1331, %1292 : vector<1x64xf32>
      %1333 = vector.broadcast %1332 : vector<1x64xf32> to vector<16x64xf32>
      %1334 = arith.mulf %1295, %1333 : vector<16x64xf32>
      %1335 = arith.subf %1274, %1334 : vector<16x64xf32>
      %1336 = vector.extract_strided_slice %1279 {offsets = [5, 0], sizes = [1, 64], strides = [1, 1]} : vector<16x64xf32> to vector<1x64xf32>
      %1337 = arith.mulf %1336, %1292 : vector<1x64xf32>
      %1338 = vector.broadcast %1337 : vector<1x64xf32> to vector<16x64xf32>
      %1339 = arith.mulf %1295, %1338 : vector<16x64xf32>
      %1340 = arith.subf %1279, %1339 : vector<16x64xf32>
      %1341 = vector.extract_strided_slice %1284 {offsets = [5, 0], sizes = [1, 64], strides = [1, 1]} : vector<16x64xf32> to vector<1x64xf32>
      %1342 = arith.mulf %1341, %1292 : vector<1x64xf32>
      %1343 = vector.broadcast %1342 : vector<1x64xf32> to vector<16x64xf32>
      %1344 = arith.mulf %1295, %1343 : vector<16x64xf32>
      %1345 = arith.subf %1284, %1344 : vector<16x64xf32>
      %1346 = vector.extract_strided_slice %1289 {offsets = [5, 0], sizes = [1, 64], strides = [1, 1]} : vector<16x64xf32> to vector<1x64xf32>
      %1347 = arith.mulf %1346, %1292 : vector<1x64xf32>
      %1348 = vector.broadcast %1347 : vector<1x64xf32> to vector<16x64xf32>
      %1349 = arith.mulf %1295, %1348 : vector<16x64xf32>
      %1350 = arith.subf %1289, %1349 : vector<16x64xf32>
      %1351 = vector.extract_strided_slice %1305 {offsets = [6, 0], sizes = [1, 64], strides = [1, 1]} : vector<16x64xf32> to vector<1x64xf32>
      %cst_168 = arith.constant 1.000000e+00 : f32
      %1352 = vector.broadcast %cst_168 : f32 to vector<1x64xf32>
      %1353 = arith.divf %1352, %1351 : vector<1x64xf32>
      %1354 = vector.extract_strided_slice %94 {offsets = [0, 6], sizes = [16, 1], strides = [1, 1]} : vector<16x16xf32> to vector<16x1xf32>
      %1355 = vector.broadcast %1354 : vector<16x1xf32> to vector<16x64xf32>
      %1356 = arith.subf %1305, %1355 : vector<16x64xf32>
      %1357 = vector.extract_strided_slice %1300 {offsets = [6, 0], sizes = [1, 64], strides = [1, 1]} : vector<16x64xf32> to vector<1x64xf32>
      %1358 = arith.mulf %1357, %1353 : vector<1x64xf32>
      %1359 = vector.broadcast %1358 : vector<1x64xf32> to vector<16x64xf32>
      %1360 = arith.mulf %1356, %1359 : vector<16x64xf32>
      %1361 = arith.subf %1300, %1360 : vector<16x64xf32>
      %1362 = vector.extract_strided_slice %1310 {offsets = [6, 0], sizes = [1, 64], strides = [1, 1]} : vector<16x64xf32> to vector<1x64xf32>
      %1363 = arith.mulf %1362, %1353 : vector<1x64xf32>
      %1364 = vector.broadcast %1363 : vector<1x64xf32> to vector<16x64xf32>
      %1365 = arith.mulf %1356, %1364 : vector<16x64xf32>
      %1366 = arith.subf %1310, %1365 : vector<16x64xf32>
      %1367 = vector.extract_strided_slice %1315 {offsets = [6, 0], sizes = [1, 64], strides = [1, 1]} : vector<16x64xf32> to vector<1x64xf32>
      %1368 = arith.mulf %1367, %1353 : vector<1x64xf32>
      %1369 = vector.broadcast %1368 : vector<1x64xf32> to vector<16x64xf32>
      %1370 = arith.mulf %1356, %1369 : vector<16x64xf32>
      %1371 = arith.subf %1315, %1370 : vector<16x64xf32>
      %1372 = vector.extract_strided_slice %1320 {offsets = [6, 0], sizes = [1, 64], strides = [1, 1]} : vector<16x64xf32> to vector<1x64xf32>
      %1373 = arith.mulf %1372, %1353 : vector<1x64xf32>
      %1374 = vector.broadcast %1373 : vector<1x64xf32> to vector<16x64xf32>
      %1375 = arith.mulf %1356, %1374 : vector<16x64xf32>
      %1376 = arith.subf %1320, %1375 : vector<16x64xf32>
      %1377 = vector.extract_strided_slice %1325 {offsets = [6, 0], sizes = [1, 64], strides = [1, 1]} : vector<16x64xf32> to vector<1x64xf32>
      %1378 = arith.mulf %1377, %1353 : vector<1x64xf32>
      %1379 = vector.broadcast %1378 : vector<1x64xf32> to vector<16x64xf32>
      %1380 = arith.mulf %1356, %1379 : vector<16x64xf32>
      %1381 = arith.subf %1325, %1380 : vector<16x64xf32>
      %1382 = vector.extract_strided_slice %1330 {offsets = [6, 0], sizes = [1, 64], strides = [1, 1]} : vector<16x64xf32> to vector<1x64xf32>
      %1383 = arith.mulf %1382, %1353 : vector<1x64xf32>
      %1384 = vector.broadcast %1383 : vector<1x64xf32> to vector<16x64xf32>
      %1385 = arith.mulf %1356, %1384 : vector<16x64xf32>
      %1386 = arith.subf %1330, %1385 : vector<16x64xf32>
      %1387 = vector.extract_strided_slice %1335 {offsets = [6, 0], sizes = [1, 64], strides = [1, 1]} : vector<16x64xf32> to vector<1x64xf32>
      %1388 = arith.mulf %1387, %1353 : vector<1x64xf32>
      %1389 = vector.broadcast %1388 : vector<1x64xf32> to vector<16x64xf32>
      %1390 = arith.mulf %1356, %1389 : vector<16x64xf32>
      %1391 = arith.subf %1335, %1390 : vector<16x64xf32>
      %1392 = vector.extract_strided_slice %1340 {offsets = [6, 0], sizes = [1, 64], strides = [1, 1]} : vector<16x64xf32> to vector<1x64xf32>
      %1393 = arith.mulf %1392, %1353 : vector<1x64xf32>
      %1394 = vector.broadcast %1393 : vector<1x64xf32> to vector<16x64xf32>
      %1395 = arith.mulf %1356, %1394 : vector<16x64xf32>
      %1396 = arith.subf %1340, %1395 : vector<16x64xf32>
      %1397 = vector.extract_strided_slice %1345 {offsets = [6, 0], sizes = [1, 64], strides = [1, 1]} : vector<16x64xf32> to vector<1x64xf32>
      %1398 = arith.mulf %1397, %1353 : vector<1x64xf32>
      %1399 = vector.broadcast %1398 : vector<1x64xf32> to vector<16x64xf32>
      %1400 = arith.mulf %1356, %1399 : vector<16x64xf32>
      %1401 = arith.subf %1345, %1400 : vector<16x64xf32>
      %1402 = vector.extract_strided_slice %1350 {offsets = [6, 0], sizes = [1, 64], strides = [1, 1]} : vector<16x64xf32> to vector<1x64xf32>
      %1403 = arith.mulf %1402, %1353 : vector<1x64xf32>
      %1404 = vector.broadcast %1403 : vector<1x64xf32> to vector<16x64xf32>
      %1405 = arith.mulf %1356, %1404 : vector<16x64xf32>
      %1406 = arith.subf %1350, %1405 : vector<16x64xf32>
      %1407 = vector.extract_strided_slice %1366 {offsets = [7, 0], sizes = [1, 64], strides = [1, 1]} : vector<16x64xf32> to vector<1x64xf32>
      %cst_169 = arith.constant 1.000000e+00 : f32
      %1408 = vector.broadcast %cst_169 : f32 to vector<1x64xf32>
      %1409 = arith.divf %1408, %1407 : vector<1x64xf32>
      %1410 = vector.extract_strided_slice %94 {offsets = [0, 7], sizes = [16, 1], strides = [1, 1]} : vector<16x16xf32> to vector<16x1xf32>
      %1411 = vector.broadcast %1410 : vector<16x1xf32> to vector<16x64xf32>
      %1412 = arith.subf %1366, %1411 : vector<16x64xf32>
      %1413 = vector.extract_strided_slice %1361 {offsets = [7, 0], sizes = [1, 64], strides = [1, 1]} : vector<16x64xf32> to vector<1x64xf32>
      %1414 = arith.mulf %1413, %1409 : vector<1x64xf32>
      %1415 = vector.broadcast %1414 : vector<1x64xf32> to vector<16x64xf32>
      %1416 = arith.mulf %1412, %1415 : vector<16x64xf32>
      %1417 = arith.subf %1361, %1416 : vector<16x64xf32>
      %1418 = vector.extract_strided_slice %1371 {offsets = [7, 0], sizes = [1, 64], strides = [1, 1]} : vector<16x64xf32> to vector<1x64xf32>
      %1419 = arith.mulf %1418, %1409 : vector<1x64xf32>
      %1420 = vector.broadcast %1419 : vector<1x64xf32> to vector<16x64xf32>
      %1421 = arith.mulf %1412, %1420 : vector<16x64xf32>
      %1422 = arith.subf %1371, %1421 : vector<16x64xf32>
      %1423 = vector.extract_strided_slice %1376 {offsets = [7, 0], sizes = [1, 64], strides = [1, 1]} : vector<16x64xf32> to vector<1x64xf32>
      %1424 = arith.mulf %1423, %1409 : vector<1x64xf32>
      %1425 = vector.broadcast %1424 : vector<1x64xf32> to vector<16x64xf32>
      %1426 = arith.mulf %1412, %1425 : vector<16x64xf32>
      %1427 = arith.subf %1376, %1426 : vector<16x64xf32>
      %1428 = vector.extract_strided_slice %1381 {offsets = [7, 0], sizes = [1, 64], strides = [1, 1]} : vector<16x64xf32> to vector<1x64xf32>
      %1429 = arith.mulf %1428, %1409 : vector<1x64xf32>
      %1430 = vector.broadcast %1429 : vector<1x64xf32> to vector<16x64xf32>
      %1431 = arith.mulf %1412, %1430 : vector<16x64xf32>
      %1432 = arith.subf %1381, %1431 : vector<16x64xf32>
      %1433 = vector.extract_strided_slice %1386 {offsets = [7, 0], sizes = [1, 64], strides = [1, 1]} : vector<16x64xf32> to vector<1x64xf32>
      %1434 = arith.mulf %1433, %1409 : vector<1x64xf32>
      %1435 = vector.broadcast %1434 : vector<1x64xf32> to vector<16x64xf32>
      %1436 = arith.mulf %1412, %1435 : vector<16x64xf32>
      %1437 = arith.subf %1386, %1436 : vector<16x64xf32>
      %1438 = vector.extract_strided_slice %1391 {offsets = [7, 0], sizes = [1, 64], strides = [1, 1]} : vector<16x64xf32> to vector<1x64xf32>
      %1439 = arith.mulf %1438, %1409 : vector<1x64xf32>
      %1440 = vector.broadcast %1439 : vector<1x64xf32> to vector<16x64xf32>
      %1441 = arith.mulf %1412, %1440 : vector<16x64xf32>
      %1442 = arith.subf %1391, %1441 : vector<16x64xf32>
      %1443 = vector.extract_strided_slice %1396 {offsets = [7, 0], sizes = [1, 64], strides = [1, 1]} : vector<16x64xf32> to vector<1x64xf32>
      %1444 = arith.mulf %1443, %1409 : vector<1x64xf32>
      %1445 = vector.broadcast %1444 : vector<1x64xf32> to vector<16x64xf32>
      %1446 = arith.mulf %1412, %1445 : vector<16x64xf32>
      %1447 = arith.subf %1396, %1446 : vector<16x64xf32>
      %1448 = vector.extract_strided_slice %1401 {offsets = [7, 0], sizes = [1, 64], strides = [1, 1]} : vector<16x64xf32> to vector<1x64xf32>
      %1449 = arith.mulf %1448, %1409 : vector<1x64xf32>
      %1450 = vector.broadcast %1449 : vector<1x64xf32> to vector<16x64xf32>
      %1451 = arith.mulf %1412, %1450 : vector<16x64xf32>
      %1452 = arith.subf %1401, %1451 : vector<16x64xf32>
      %1453 = vector.extract_strided_slice %1406 {offsets = [7, 0], sizes = [1, 64], strides = [1, 1]} : vector<16x64xf32> to vector<1x64xf32>
      %1454 = arith.mulf %1453, %1409 : vector<1x64xf32>
      %1455 = vector.broadcast %1454 : vector<1x64xf32> to vector<16x64xf32>
      %1456 = arith.mulf %1412, %1455 : vector<16x64xf32>
      %1457 = arith.subf %1406, %1456 : vector<16x64xf32>
      %1458 = vector.extract_strided_slice %1422 {offsets = [8, 0], sizes = [1, 64], strides = [1, 1]} : vector<16x64xf32> to vector<1x64xf32>
      %cst_170 = arith.constant 1.000000e+00 : f32
      %1459 = vector.broadcast %cst_170 : f32 to vector<1x64xf32>
      %1460 = arith.divf %1459, %1458 : vector<1x64xf32>
      %1461 = vector.extract_strided_slice %94 {offsets = [0, 8], sizes = [16, 1], strides = [1, 1]} : vector<16x16xf32> to vector<16x1xf32>
      %1462 = vector.broadcast %1461 : vector<16x1xf32> to vector<16x64xf32>
      %1463 = arith.subf %1422, %1462 : vector<16x64xf32>
      %1464 = vector.extract_strided_slice %1417 {offsets = [8, 0], sizes = [1, 64], strides = [1, 1]} : vector<16x64xf32> to vector<1x64xf32>
      %1465 = arith.mulf %1464, %1460 : vector<1x64xf32>
      %1466 = vector.broadcast %1465 : vector<1x64xf32> to vector<16x64xf32>
      %1467 = arith.mulf %1463, %1466 : vector<16x64xf32>
      %1468 = arith.subf %1417, %1467 : vector<16x64xf32>
      %1469 = vector.extract_strided_slice %1427 {offsets = [8, 0], sizes = [1, 64], strides = [1, 1]} : vector<16x64xf32> to vector<1x64xf32>
      %1470 = arith.mulf %1469, %1460 : vector<1x64xf32>
      %1471 = vector.broadcast %1470 : vector<1x64xf32> to vector<16x64xf32>
      %1472 = arith.mulf %1463, %1471 : vector<16x64xf32>
      %1473 = arith.subf %1427, %1472 : vector<16x64xf32>
      %1474 = vector.extract_strided_slice %1432 {offsets = [8, 0], sizes = [1, 64], strides = [1, 1]} : vector<16x64xf32> to vector<1x64xf32>
      %1475 = arith.mulf %1474, %1460 : vector<1x64xf32>
      %1476 = vector.broadcast %1475 : vector<1x64xf32> to vector<16x64xf32>
      %1477 = arith.mulf %1463, %1476 : vector<16x64xf32>
      %1478 = arith.subf %1432, %1477 : vector<16x64xf32>
      %1479 = vector.extract_strided_slice %1437 {offsets = [8, 0], sizes = [1, 64], strides = [1, 1]} : vector<16x64xf32> to vector<1x64xf32>
      %1480 = arith.mulf %1479, %1460 : vector<1x64xf32>
      %1481 = vector.broadcast %1480 : vector<1x64xf32> to vector<16x64xf32>
      %1482 = arith.mulf %1463, %1481 : vector<16x64xf32>
      %1483 = arith.subf %1437, %1482 : vector<16x64xf32>
      %1484 = vector.extract_strided_slice %1442 {offsets = [8, 0], sizes = [1, 64], strides = [1, 1]} : vector<16x64xf32> to vector<1x64xf32>
      %1485 = arith.mulf %1484, %1460 : vector<1x64xf32>
      %1486 = vector.broadcast %1485 : vector<1x64xf32> to vector<16x64xf32>
      %1487 = arith.mulf %1463, %1486 : vector<16x64xf32>
      %1488 = arith.subf %1442, %1487 : vector<16x64xf32>
      %1489 = vector.extract_strided_slice %1447 {offsets = [8, 0], sizes = [1, 64], strides = [1, 1]} : vector<16x64xf32> to vector<1x64xf32>
      %1490 = arith.mulf %1489, %1460 : vector<1x64xf32>
      %1491 = vector.broadcast %1490 : vector<1x64xf32> to vector<16x64xf32>
      %1492 = arith.mulf %1463, %1491 : vector<16x64xf32>
      %1493 = arith.subf %1447, %1492 : vector<16x64xf32>
      %1494 = vector.extract_strided_slice %1452 {offsets = [8, 0], sizes = [1, 64], strides = [1, 1]} : vector<16x64xf32> to vector<1x64xf32>
      %1495 = arith.mulf %1494, %1460 : vector<1x64xf32>
      %1496 = vector.broadcast %1495 : vector<1x64xf32> to vector<16x64xf32>
      %1497 = arith.mulf %1463, %1496 : vector<16x64xf32>
      %1498 = arith.subf %1452, %1497 : vector<16x64xf32>
      %1499 = vector.extract_strided_slice %1457 {offsets = [8, 0], sizes = [1, 64], strides = [1, 1]} : vector<16x64xf32> to vector<1x64xf32>
      %1500 = arith.mulf %1499, %1460 : vector<1x64xf32>
      %1501 = vector.broadcast %1500 : vector<1x64xf32> to vector<16x64xf32>
      %1502 = arith.mulf %1463, %1501 : vector<16x64xf32>
      %1503 = arith.subf %1457, %1502 : vector<16x64xf32>
      %1504 = vector.extract_strided_slice %1473 {offsets = [9, 0], sizes = [1, 64], strides = [1, 1]} : vector<16x64xf32> to vector<1x64xf32>
      %cst_171 = arith.constant 1.000000e+00 : f32
      %1505 = vector.broadcast %cst_171 : f32 to vector<1x64xf32>
      %1506 = arith.divf %1505, %1504 : vector<1x64xf32>
      %1507 = vector.extract_strided_slice %94 {offsets = [0, 9], sizes = [16, 1], strides = [1, 1]} : vector<16x16xf32> to vector<16x1xf32>
      %1508 = vector.broadcast %1507 : vector<16x1xf32> to vector<16x64xf32>
      %1509 = arith.subf %1473, %1508 : vector<16x64xf32>
      %1510 = vector.extract_strided_slice %1468 {offsets = [9, 0], sizes = [1, 64], strides = [1, 1]} : vector<16x64xf32> to vector<1x64xf32>
      %1511 = arith.mulf %1510, %1506 : vector<1x64xf32>
      %1512 = vector.broadcast %1511 : vector<1x64xf32> to vector<16x64xf32>
      %1513 = arith.mulf %1509, %1512 : vector<16x64xf32>
      %1514 = arith.subf %1468, %1513 : vector<16x64xf32>
      %1515 = vector.extract_strided_slice %1478 {offsets = [9, 0], sizes = [1, 64], strides = [1, 1]} : vector<16x64xf32> to vector<1x64xf32>
      %1516 = arith.mulf %1515, %1506 : vector<1x64xf32>
      %1517 = vector.broadcast %1516 : vector<1x64xf32> to vector<16x64xf32>
      %1518 = arith.mulf %1509, %1517 : vector<16x64xf32>
      %1519 = arith.subf %1478, %1518 : vector<16x64xf32>
      %1520 = vector.extract_strided_slice %1483 {offsets = [9, 0], sizes = [1, 64], strides = [1, 1]} : vector<16x64xf32> to vector<1x64xf32>
      %1521 = arith.mulf %1520, %1506 : vector<1x64xf32>
      %1522 = vector.broadcast %1521 : vector<1x64xf32> to vector<16x64xf32>
      %1523 = arith.mulf %1509, %1522 : vector<16x64xf32>
      %1524 = arith.subf %1483, %1523 : vector<16x64xf32>
      %1525 = vector.extract_strided_slice %1488 {offsets = [9, 0], sizes = [1, 64], strides = [1, 1]} : vector<16x64xf32> to vector<1x64xf32>
      %1526 = arith.mulf %1525, %1506 : vector<1x64xf32>
      %1527 = vector.broadcast %1526 : vector<1x64xf32> to vector<16x64xf32>
      %1528 = arith.mulf %1509, %1527 : vector<16x64xf32>
      %1529 = arith.subf %1488, %1528 : vector<16x64xf32>
      %1530 = vector.extract_strided_slice %1493 {offsets = [9, 0], sizes = [1, 64], strides = [1, 1]} : vector<16x64xf32> to vector<1x64xf32>
      %1531 = arith.mulf %1530, %1506 : vector<1x64xf32>
      %1532 = vector.broadcast %1531 : vector<1x64xf32> to vector<16x64xf32>
      %1533 = arith.mulf %1509, %1532 : vector<16x64xf32>
      %1534 = arith.subf %1493, %1533 : vector<16x64xf32>
      %1535 = vector.extract_strided_slice %1498 {offsets = [9, 0], sizes = [1, 64], strides = [1, 1]} : vector<16x64xf32> to vector<1x64xf32>
      %1536 = arith.mulf %1535, %1506 : vector<1x64xf32>
      %1537 = vector.broadcast %1536 : vector<1x64xf32> to vector<16x64xf32>
      %1538 = arith.mulf %1509, %1537 : vector<16x64xf32>
      %1539 = arith.subf %1498, %1538 : vector<16x64xf32>
      %1540 = vector.extract_strided_slice %1503 {offsets = [9, 0], sizes = [1, 64], strides = [1, 1]} : vector<16x64xf32> to vector<1x64xf32>
      %1541 = arith.mulf %1540, %1506 : vector<1x64xf32>
      %1542 = vector.broadcast %1541 : vector<1x64xf32> to vector<16x64xf32>
      %1543 = arith.mulf %1509, %1542 : vector<16x64xf32>
      %1544 = arith.subf %1503, %1543 : vector<16x64xf32>
      %1545 = vector.extract_strided_slice %1519 {offsets = [10, 0], sizes = [1, 64], strides = [1, 1]} : vector<16x64xf32> to vector<1x64xf32>
      %cst_172 = arith.constant 1.000000e+00 : f32
      %1546 = vector.broadcast %cst_172 : f32 to vector<1x64xf32>
      %1547 = arith.divf %1546, %1545 : vector<1x64xf32>
      %1548 = vector.extract_strided_slice %94 {offsets = [0, 10], sizes = [16, 1], strides = [1, 1]} : vector<16x16xf32> to vector<16x1xf32>
      %1549 = vector.broadcast %1548 : vector<16x1xf32> to vector<16x64xf32>
      %1550 = arith.subf %1519, %1549 : vector<16x64xf32>
      %1551 = vector.extract_strided_slice %1514 {offsets = [10, 0], sizes = [1, 64], strides = [1, 1]} : vector<16x64xf32> to vector<1x64xf32>
      %1552 = arith.mulf %1551, %1547 : vector<1x64xf32>
      %1553 = vector.broadcast %1552 : vector<1x64xf32> to vector<16x64xf32>
      %1554 = arith.mulf %1550, %1553 : vector<16x64xf32>
      %1555 = arith.subf %1514, %1554 : vector<16x64xf32>
      %1556 = vector.extract_strided_slice %1524 {offsets = [10, 0], sizes = [1, 64], strides = [1, 1]} : vector<16x64xf32> to vector<1x64xf32>
      %1557 = arith.mulf %1556, %1547 : vector<1x64xf32>
      %1558 = vector.broadcast %1557 : vector<1x64xf32> to vector<16x64xf32>
      %1559 = arith.mulf %1550, %1558 : vector<16x64xf32>
      %1560 = arith.subf %1524, %1559 : vector<16x64xf32>
      %1561 = vector.extract_strided_slice %1529 {offsets = [10, 0], sizes = [1, 64], strides = [1, 1]} : vector<16x64xf32> to vector<1x64xf32>
      %1562 = arith.mulf %1561, %1547 : vector<1x64xf32>
      %1563 = vector.broadcast %1562 : vector<1x64xf32> to vector<16x64xf32>
      %1564 = arith.mulf %1550, %1563 : vector<16x64xf32>
      %1565 = arith.subf %1529, %1564 : vector<16x64xf32>
      %1566 = vector.extract_strided_slice %1534 {offsets = [10, 0], sizes = [1, 64], strides = [1, 1]} : vector<16x64xf32> to vector<1x64xf32>
      %1567 = arith.mulf %1566, %1547 : vector<1x64xf32>
      %1568 = vector.broadcast %1567 : vector<1x64xf32> to vector<16x64xf32>
      %1569 = arith.mulf %1550, %1568 : vector<16x64xf32>
      %1570 = arith.subf %1534, %1569 : vector<16x64xf32>
      %1571 = vector.extract_strided_slice %1539 {offsets = [10, 0], sizes = [1, 64], strides = [1, 1]} : vector<16x64xf32> to vector<1x64xf32>
      %1572 = arith.mulf %1571, %1547 : vector<1x64xf32>
      %1573 = vector.broadcast %1572 : vector<1x64xf32> to vector<16x64xf32>
      %1574 = arith.mulf %1550, %1573 : vector<16x64xf32>
      %1575 = arith.subf %1539, %1574 : vector<16x64xf32>
      %1576 = vector.extract_strided_slice %1544 {offsets = [10, 0], sizes = [1, 64], strides = [1, 1]} : vector<16x64xf32> to vector<1x64xf32>
      %1577 = arith.mulf %1576, %1547 : vector<1x64xf32>
      %1578 = vector.broadcast %1577 : vector<1x64xf32> to vector<16x64xf32>
      %1579 = arith.mulf %1550, %1578 : vector<16x64xf32>
      %1580 = arith.subf %1544, %1579 : vector<16x64xf32>
      %1581 = vector.extract_strided_slice %1560 {offsets = [11, 0], sizes = [1, 64], strides = [1, 1]} : vector<16x64xf32> to vector<1x64xf32>
      %cst_173 = arith.constant 1.000000e+00 : f32
      %1582 = vector.broadcast %cst_173 : f32 to vector<1x64xf32>
      %1583 = arith.divf %1582, %1581 : vector<1x64xf32>
      %1584 = vector.extract_strided_slice %94 {offsets = [0, 11], sizes = [16, 1], strides = [1, 1]} : vector<16x16xf32> to vector<16x1xf32>
      %1585 = vector.broadcast %1584 : vector<16x1xf32> to vector<16x64xf32>
      %1586 = arith.subf %1560, %1585 : vector<16x64xf32>
      %1587 = vector.extract_strided_slice %1555 {offsets = [11, 0], sizes = [1, 64], strides = [1, 1]} : vector<16x64xf32> to vector<1x64xf32>
      %1588 = arith.mulf %1587, %1583 : vector<1x64xf32>
      %1589 = vector.broadcast %1588 : vector<1x64xf32> to vector<16x64xf32>
      %1590 = arith.mulf %1586, %1589 : vector<16x64xf32>
      %1591 = arith.subf %1555, %1590 : vector<16x64xf32>
      %1592 = vector.extract_strided_slice %1565 {offsets = [11, 0], sizes = [1, 64], strides = [1, 1]} : vector<16x64xf32> to vector<1x64xf32>
      %1593 = arith.mulf %1592, %1583 : vector<1x64xf32>
      %1594 = vector.broadcast %1593 : vector<1x64xf32> to vector<16x64xf32>
      %1595 = arith.mulf %1586, %1594 : vector<16x64xf32>
      %1596 = arith.subf %1565, %1595 : vector<16x64xf32>
      %1597 = vector.extract_strided_slice %1570 {offsets = [11, 0], sizes = [1, 64], strides = [1, 1]} : vector<16x64xf32> to vector<1x64xf32>
      %1598 = arith.mulf %1597, %1583 : vector<1x64xf32>
      %1599 = vector.broadcast %1598 : vector<1x64xf32> to vector<16x64xf32>
      %1600 = arith.mulf %1586, %1599 : vector<16x64xf32>
      %1601 = arith.subf %1570, %1600 : vector<16x64xf32>
      %1602 = vector.extract_strided_slice %1575 {offsets = [11, 0], sizes = [1, 64], strides = [1, 1]} : vector<16x64xf32> to vector<1x64xf32>
      %1603 = arith.mulf %1602, %1583 : vector<1x64xf32>
      %1604 = vector.broadcast %1603 : vector<1x64xf32> to vector<16x64xf32>
      %1605 = arith.mulf %1586, %1604 : vector<16x64xf32>
      %1606 = arith.subf %1575, %1605 : vector<16x64xf32>
      %1607 = vector.extract_strided_slice %1580 {offsets = [11, 0], sizes = [1, 64], strides = [1, 1]} : vector<16x64xf32> to vector<1x64xf32>
      %1608 = arith.mulf %1607, %1583 : vector<1x64xf32>
      %1609 = vector.broadcast %1608 : vector<1x64xf32> to vector<16x64xf32>
      %1610 = arith.mulf %1586, %1609 : vector<16x64xf32>
      %1611 = arith.subf %1580, %1610 : vector<16x64xf32>
      %1612 = vector.extract_strided_slice %1596 {offsets = [12, 0], sizes = [1, 64], strides = [1, 1]} : vector<16x64xf32> to vector<1x64xf32>
      %cst_174 = arith.constant 1.000000e+00 : f32
      %1613 = vector.broadcast %cst_174 : f32 to vector<1x64xf32>
      %1614 = arith.divf %1613, %1612 : vector<1x64xf32>
      %1615 = vector.extract_strided_slice %94 {offsets = [0, 12], sizes = [16, 1], strides = [1, 1]} : vector<16x16xf32> to vector<16x1xf32>
      %1616 = vector.broadcast %1615 : vector<16x1xf32> to vector<16x64xf32>
      %1617 = arith.subf %1596, %1616 : vector<16x64xf32>
      %1618 = vector.extract_strided_slice %1591 {offsets = [12, 0], sizes = [1, 64], strides = [1, 1]} : vector<16x64xf32> to vector<1x64xf32>
      %1619 = arith.mulf %1618, %1614 : vector<1x64xf32>
      %1620 = vector.broadcast %1619 : vector<1x64xf32> to vector<16x64xf32>
      %1621 = arith.mulf %1617, %1620 : vector<16x64xf32>
      %1622 = arith.subf %1591, %1621 : vector<16x64xf32>
      %1623 = vector.extract_strided_slice %1601 {offsets = [12, 0], sizes = [1, 64], strides = [1, 1]} : vector<16x64xf32> to vector<1x64xf32>
      %1624 = arith.mulf %1623, %1614 : vector<1x64xf32>
      %1625 = vector.broadcast %1624 : vector<1x64xf32> to vector<16x64xf32>
      %1626 = arith.mulf %1617, %1625 : vector<16x64xf32>
      %1627 = arith.subf %1601, %1626 : vector<16x64xf32>
      %1628 = vector.extract_strided_slice %1606 {offsets = [12, 0], sizes = [1, 64], strides = [1, 1]} : vector<16x64xf32> to vector<1x64xf32>
      %1629 = arith.mulf %1628, %1614 : vector<1x64xf32>
      %1630 = vector.broadcast %1629 : vector<1x64xf32> to vector<16x64xf32>
      %1631 = arith.mulf %1617, %1630 : vector<16x64xf32>
      %1632 = arith.subf %1606, %1631 : vector<16x64xf32>
      %1633 = vector.extract_strided_slice %1611 {offsets = [12, 0], sizes = [1, 64], strides = [1, 1]} : vector<16x64xf32> to vector<1x64xf32>
      %1634 = arith.mulf %1633, %1614 : vector<1x64xf32>
      %1635 = vector.broadcast %1634 : vector<1x64xf32> to vector<16x64xf32>
      %1636 = arith.mulf %1617, %1635 : vector<16x64xf32>
      %1637 = arith.subf %1611, %1636 : vector<16x64xf32>
      %1638 = vector.extract_strided_slice %1627 {offsets = [13, 0], sizes = [1, 64], strides = [1, 1]} : vector<16x64xf32> to vector<1x64xf32>
      %cst_175 = arith.constant 1.000000e+00 : f32
      %1639 = vector.broadcast %cst_175 : f32 to vector<1x64xf32>
      %1640 = arith.divf %1639, %1638 : vector<1x64xf32>
      %1641 = vector.extract_strided_slice %94 {offsets = [0, 13], sizes = [16, 1], strides = [1, 1]} : vector<16x16xf32> to vector<16x1xf32>
      %1642 = vector.broadcast %1641 : vector<16x1xf32> to vector<16x64xf32>
      %1643 = arith.subf %1627, %1642 : vector<16x64xf32>
      %1644 = vector.extract_strided_slice %1622 {offsets = [13, 0], sizes = [1, 64], strides = [1, 1]} : vector<16x64xf32> to vector<1x64xf32>
      %1645 = arith.mulf %1644, %1640 : vector<1x64xf32>
      %1646 = vector.broadcast %1645 : vector<1x64xf32> to vector<16x64xf32>
      %1647 = arith.mulf %1643, %1646 : vector<16x64xf32>
      %1648 = arith.subf %1622, %1647 : vector<16x64xf32>
      %1649 = vector.extract_strided_slice %1632 {offsets = [13, 0], sizes = [1, 64], strides = [1, 1]} : vector<16x64xf32> to vector<1x64xf32>
      %1650 = arith.mulf %1649, %1640 : vector<1x64xf32>
      %1651 = vector.broadcast %1650 : vector<1x64xf32> to vector<16x64xf32>
      %1652 = arith.mulf %1643, %1651 : vector<16x64xf32>
      %1653 = arith.subf %1632, %1652 : vector<16x64xf32>
      %1654 = vector.extract_strided_slice %1637 {offsets = [13, 0], sizes = [1, 64], strides = [1, 1]} : vector<16x64xf32> to vector<1x64xf32>
      %1655 = arith.mulf %1654, %1640 : vector<1x64xf32>
      %1656 = vector.broadcast %1655 : vector<1x64xf32> to vector<16x64xf32>
      %1657 = arith.mulf %1643, %1656 : vector<16x64xf32>
      %1658 = arith.subf %1637, %1657 : vector<16x64xf32>
      %1659 = vector.extract_strided_slice %1653 {offsets = [14, 0], sizes = [1, 64], strides = [1, 1]} : vector<16x64xf32> to vector<1x64xf32>
      %cst_176 = arith.constant 1.000000e+00 : f32
      %1660 = vector.broadcast %cst_176 : f32 to vector<1x64xf32>
      %1661 = arith.divf %1660, %1659 : vector<1x64xf32>
      %1662 = vector.extract_strided_slice %94 {offsets = [0, 14], sizes = [16, 1], strides = [1, 1]} : vector<16x16xf32> to vector<16x1xf32>
      %1663 = vector.broadcast %1662 : vector<16x1xf32> to vector<16x64xf32>
      %1664 = arith.subf %1653, %1663 : vector<16x64xf32>
      %1665 = vector.extract_strided_slice %1648 {offsets = [14, 0], sizes = [1, 64], strides = [1, 1]} : vector<16x64xf32> to vector<1x64xf32>
      %1666 = arith.mulf %1665, %1661 : vector<1x64xf32>
      %1667 = vector.broadcast %1666 : vector<1x64xf32> to vector<16x64xf32>
      %1668 = arith.mulf %1664, %1667 : vector<16x64xf32>
      %1669 = arith.subf %1648, %1668 : vector<16x64xf32>
      %1670 = vector.extract_strided_slice %1658 {offsets = [14, 0], sizes = [1, 64], strides = [1, 1]} : vector<16x64xf32> to vector<1x64xf32>
      %1671 = arith.mulf %1670, %1661 : vector<1x64xf32>
      %1672 = vector.broadcast %1671 : vector<1x64xf32> to vector<16x64xf32>
      %1673 = arith.mulf %1664, %1672 : vector<16x64xf32>
      %1674 = arith.subf %1658, %1673 : vector<16x64xf32>
      %1675 = vector.extract_strided_slice %1674 {offsets = [15, 0], sizes = [1, 64], strides = [1, 1]} : vector<16x64xf32> to vector<1x64xf32>
      %cst_177 = arith.constant 1.000000e+00 : f32
      %1676 = vector.broadcast %cst_177 : f32 to vector<1x64xf32>
      %1677 = arith.divf %1676, %1675 : vector<1x64xf32>
      %1678 = vector.extract_strided_slice %94 {offsets = [0, 15], sizes = [16, 1], strides = [1, 1]} : vector<16x16xf32> to vector<16x1xf32>
      %1679 = vector.broadcast %1678 : vector<16x1xf32> to vector<16x64xf32>
      %1680 = arith.subf %1674, %1679 : vector<16x64xf32>
      %1681 = vector.extract_strided_slice %1669 {offsets = [15, 0], sizes = [1, 64], strides = [1, 1]} : vector<16x64xf32> to vector<1x64xf32>
      %1682 = arith.mulf %1681, %1677 : vector<1x64xf32>
      %1683 = vector.broadcast %1682 : vector<1x64xf32> to vector<16x64xf32>
      %1684 = arith.mulf %1680, %1683 : vector<16x64xf32>
      %1685 = arith.subf %1669, %1684 : vector<16x64xf32>
      %c0_178 = arith.constant 0 : index
      %c0_179 = arith.constant 0 : index
      %c0_180 = arith.constant 0 : index
      %1686 = vector.load %arg8[%c0_178, %c0_179, %c0_180] : memref<1x16x64xf32, #tpu.memory_space<vmem>>, vector<1x16x64xf32>
      %1687 = vector.shape_cast %1686 : vector<1x16x64xf32> to vector<16x64xf32>
      %1688 = vector.shape_cast %1685 : vector<16x64xf32> to vector<1x16x64xf32>
      tpu.vector_store %arg8[%c0_178, %c0_179, %c0_180], %1688 {strides = array<i32>} : memref<1x16x64xf32, #tpu.memory_space<vmem>>, vector<1x16x64xf32>,
    } else {
    }
    return
  }
  func.func @transform_0(%arg0: i32, %arg1: i32) -> (i32, i32, i32) {
    %c0_i32 = arith.constant 0 : i32
    %c0_i32_0 = arith.constant 0 : i32
    return %arg0, %arg1, %c0_i32 : i32, i32, i32
  }
  func.func @transform_1(%arg0: i32, %arg1: i32) -> (i32, i32, i32) {
    %c1_i32 = arith.constant 1 : i32
    %0 = arith.minsi %arg1, %c1_i32 : i32
    %c0_i32 = arith.constant 0 : i32
    %c0_i32_0 = arith.constant 0 : i32
    return %arg0, %0, %c0_i32 : i32, i32, i32
  }
  func.func @transform_2(%arg0: i32, %arg1: i32) -> (i32, i32, i32) {
    %c0_i32 = arith.constant 0 : i32
    %c0_i32_0 = arith.constant 0 : i32
    %c0_i32_1 = arith.constant 0 : i32
    return %arg0, %c0_i32, %c0_i32_0 : i32, i32, i32
  }
  func.func @transform_3(%arg0: i32, %arg1: i32) -> (i32, i32, i32) {
    %c0_i32 = arith.constant 0 : i32
    %c0_i32_0 = arith.constant 0 : i32
    %c0_i32_1 = arith.constant 0 : i32
    return %arg0, %c0_i32, %c0_i32_0 : i32, i32, i32
  }
  func.func @transform_4(%arg0: i32, %arg1: i32) -> (i32, i32, i32) {
    %c0_i32 = arith.constant 0 : i32
    %c0_i32_0 = arith.constant 0 : i32
    return %arg0, %c0_i32, %arg1 : i32, i32, i32
  }
  func.func @transform_5(%arg0: i32, %arg1: i32) -> (i32, i32, i32) {
    %c1_i32 = arith.constant 1 : i32
    %0 = arith.minsi %arg1, %c1_i32 : i32
    %c0_i32 = arith.constant 0 : i32
    %c0_i32_0 = arith.constant 0 : i32
    return %arg0, %c0_i32, %0 : i32, i32, i32
  }
  func.func @transform_6(%arg0: i32, %arg1: i32) -> (i32, i32, i32) {
    %c0_i32 = arith.constant 0 : i32
    %c0_i32_0 = arith.constant 0 : i32
    %c0_i32_1 = arith.constant 0 : i32
    return %arg0, %c0_i32, %c0_i32_0 : i32, i32, i32
  }
}

</mosaic_0001>

<bundles_post_ra>
// kernel: tpu_custom_call.1
= control target key start
LH: loop header
LB: loop body
LE: loop exit
PB: predicated region body
PF: predicated region fallthrough
CT: control target
= control target key end

     0   :  { %s8775_s0 = inlined_call_operand.vmem [shape: bf16[4,320,32], index: 0, kind: input, shape index: {}]   ;;  %s8776_s1 = inlined_call_operand.vmem [shape: bf16[4,256,32], index: 1, kind: input, shape index: {}]   ;;  %s8777_s2 = inlined_call_operand.vmem [shape: f32[4,1,16], index: 2, kind: input, shape index: {}]   ;;  %s8778_s3 = inlined_call_operand.vmem [shape: f32[4,1,16], index: 3, kind: input, shape index: {}]   ;;  %s8779_s4 = inlined_call_operand.vmem [shape: bf16[4,16,320], index: 4, kind: input, shape index: {}]   ;;  %s8780_s5 = inlined_call_operand.vmem [shape: bf16[4,16,256], index: 5, kind: input, shape index: {}]   ;;  %s8781_s6 = inlined_call_operand.hbm [shape: f32[2,16,64], index: 6, kind: output, shape index: {}]  }
   0x1   :  { %8963 = sst [smem:[#allocation61_spill]] %s8775_s0 }
   0x2   :  { %8964 = sst [smem:[#allocation62_spill]] %s8777_s2 }
   0x3   :  { %8965 = sst [smem:[#allocation63_spill]] %s8778_s3 }
   0x4   :  { %8966 = sst [smem:[#allocation64_spill]] %s8781_s6 }
   0x5   :  { %11 = vsyncpa [#allocation9], 0 }
   0x6   :  { %13 = vsyncpa [#allocation9 + $0x1], 0  ;;  %s5702_s21 = smov 0   ;;  %s5704_s22 = smov 0  }
   0x7   :  { %s5706_s23 = smov 0   ;;  %s5708_s24 = smov 0  }
   0x8   :  { %s5710_s25 = smov 0   ;;  %s5712_s26 = smov 0  }
   0x9   :  { %s5714_s27 = smov 0   ;;  %s5716_s28 = smov 0  }
   0xa   :  { %s5718_s29 = smov 0   ;;  %s5720_s30 = smov 0  }
   0xb   :  { %s5722_s7 = smov 0   ;;  %s5724_s8 = smov 0  }
   0xc LB: > { %8967 = sst [smem:[#allocation11_spill]] %s5557_s23  ;;  %s28_s11 = sadd.s32 1, %s5585_s30  ;;  %s5593_s8 = sphi %s5724_s8, %s19_s8   ;;  %s5589_s7 = sphi %s5722_s7, %s9311_s7   ;;  %s5585_s30 = sphi %s5720_s30, %s9310_s30   ;;  %s5581_s29 = sphi %s5718_s29, %s9309_s29   ;;  %s5577_s28 = sphi %s5716_s28, %s9308_s28   ;;  %s5573_s27 = sphi %s5714_s27, %s9307_s27   ;;  %s5569_s26 = sphi %s5712_s26, %s9306_s26   ;;  %s5565_s25 = sphi %s5710_s25, %s9305_s25   ;;  %s5561_s24 = sphi %s5708_s24, %s9304_s24   ;;  %s5557_s23 = sphi %s5706_s23, %s9297_s23   ;;  %s5553_s22 = sphi %s5704_s22, %s9303_s22   ;;  %s5549_s21 = sphi %s5702_s21, %s9302_s21  }
   0xd   : > { %8968 = sst [smem:[#allocation12_spill]] %s5577_s28  ;;  %s31_s12 = sadd.s32 1, %s5589_s7 }
   0xe   : > { %8969 = sst [smem:[#allocation13_spill]] %s5581_s29  ;;  %p29_p0 = scmp.ge.s32.totalorder %s28_s11, 3 }
   0xf   : > { %s40_s13 = sadd.s32 1, %s5573_s27  ;;  %p47_p1 = scmp.ne.s32.totalorder %s5573_s27, %s5569_s26 }
  0x10   : > { %p48_p2 = scmp.eq.s32.totalorder %s5593_s8, 0  ;;  %s9313_s11 = smov (%p29_p0, %s28_s11), 0 }
  0x11   : > { %8970 = sst [smem:[#allocation14_spill]] %s9313_s11  ;;  %s9315_s12 = smov (!%p29_p0, %s31_s12), %s5589_s7 }
  0x12   : > { %s36_s14 = ssub.s32 %s5585_s30, %s9313_s11  ;;  %p5777_p3 = por %p48_p2, %p47_p1 }
  0x13   : > { %p33_p4 = scmp.ge.s32.totalorder %s9315_s12, 2  ;;  %p63_p5 = scmp.lt.s32.totalorder %s5585_s30, 1 }
  0x14   : > { %p65_p6 = scmp.lt.s32.totalorder %s9313_s11, 1  ;;  %s72_s16 = sadd.s32 1, %s5565_s25 }
  0x15   : > { %s9317_s12 = smov (%p33_p4, %s9315_s12), 0  ;;  %p79_p7 = scmp.ne.s32.totalorder %s5565_s25, %s5561_s24 }
  0x16   : > { %8972 = sst [smem:[#allocation15_spill]] %s9317_s12  ;;  %s35_s18 = ssub.s32 %s5589_s7, %s9317_s12 }
  0x17   : > { %s5787_s17 = scalar_select %p63_p5, %s5585_s30, 1 }
  0x18   : > { %s37_s19 = sor.u32 %s36_s14, %s35_s18  ;;  %p208_p8 = scmp.eq.s32.totalorder %s35_s18, 0 }
  0x19   : > { %p38_p9 = scmp.eq.s32.totalorder %s37_s19, 0  ;;  %p5795_p10 = por %p79_p7, %p48_p2 }
  0x1a   : > { %s66_s10 = scalar_select %p65_p6, %s9313_s11, 1 }
  0x1b   : > { %s5801_s9 = scalar_select %p38_p9, %s5573_s27, %s40_s13  }
  0x1c   : > { %s68_s6 = ssub.s32 %s5787_s17, %s66_s10  ;;  %s210_s28 = sadd.s32 1, %s5557_s23 }
  0x1d   : > { %8974 = sst [smem:[#allocation16_spill]] %s5801_s9  ;;  %s69_s3 = sor.u32 %s68_s6, %s35_s18 }
  0x1e   : > { %p220_p11 = scmp.ne.s32.totalorder %s5557_s23, %s5553_s22  ;;  %p70_p12 = scmp.eq.s32.totalorder %s69_s3, 0 }
  0x1f   : > { %s8975_s12 = sadd.s32 4294967295, %s5593_s8   ;;  %p226_p1 = scmp.ne.s32.totalorder %s5553_s22, %s5549_s21 }
  0x20   : > { %p221_p13 = scmp.eq.s32.totalorder %s8975_s12, 5  ;;  %s8979_s29 = sadd.s32 4294967294, %s5593_s8  }
  0x21   : > { %s5810_s2 = scalar_select %p208_p8, %s5557_s23, %s210_s28  }
  0x22   : > { %s5813_s14 = scalar_select %p70_p12, %s5565_s25, %s72_s16  }
  0x23   : > { %8976 = sst [smem:[#allocation17_spill]] %s5810_s2  ;;  %p5815_p0 = por %p221_p13, %p220_p11 }
  0x24   : > { %8977 = sst [smem:[#allocation18_spill]] %s5813_s14  ;;  %p227_p2 = scmp.eq.s32.totalorder %s8979_s29, 5 }
  0x25   : > { %p4915_p5 = scmp.ge.s32.totalorder %s5593_s8, 6 }
  0x26   : > { %p5823_p4 = por %p227_p2, %p226_p1 }
  0x27   : > { %243 = sbr.rel (%p4915_p5) target bundleno = 157 (0x9d), region = 16 }
  0x28   : > { %s8980_s13 = scalar_select %p5823_p4, 1, 0 }
  0x2a   : > { %8981 = sst [smem:[#allocation19_spill]] %s8980_s13 }
  0x2c   : > { %246 = sbr.rel (!%p5777_p3) target bundleno = 113 (0x71), region = 20  ;;  %s248_s3 = sand.u32 (%p5777_p3), 1, %s5573_s27  }
  0x2d   : > { %s4918_s6 = sshll.u32 (%p5777_p3), %s5585_s30, 4  ;;  %s4916_s28 = sshll.u32 (%p5777_p3), %s248_s3, 7 }
  0x2e   : > { %s253_s10 = ssub.s32 (%p5777_p3), 40, %s4918_s6  ;;  %s4995_s12 = smul.u32 (%p5777_p3), 80, %s5589_s7 }
  0x2f   : > { %p254_p6 = scmp.lt.s32.totalorder (%p5777_p3), %s253_s10, 16  ;;  %s8982_s0 = sld [smem:[#allocation61_spill]] (%p5777_p3) }
  0x30   : > { %s259_s29 = sadd.s32 (%p5777_p3), %s4995_s12, %s4918_s6  ;;  %s5841_s2 = scalar_lea.vmem (%p5777_p3), [#allocation4], %s4916_s28  }
  0x31   : > { %s9319_s10 = smov (!%p254_p6, %s253_s10), 16  ;;  %s4922_s18 = sshll.u32 %s259_s29, 2 }
  0x32   : > { %s4919_s16 = sshll.u32 %s9319_s10, 3 }
  0x33   : > { %p4923_p7 = scmp.eq.s32.totalorder %s4919_s16, 0 }
  0x34   : > { %s5844_s3 = sshrl.u32 (!%p4923_p7), %s9319_s10, 4 }
  0x35   : > { %s5839_s14 = scalar_lea.vmem %s8982_s0, %s4922_s18   ;;  %264 = sbr.rel (%p4923_p7) target bundleno = 113 (0x71), region = 24 }
  0x36   : > { %p4924_p8 = scmp.le.s32.totalorder (!%p4923_p7), %s5844_s3, 0 }
  0x3a   : > { %4827 = sbr.rel (%p4924_p8) target bundleno = 96 (0x60), region = 319  ;;  %s8983_s6 = smov (!%p4924_p8), %s5841_s2 }
  0x3b   : > { %s8984_s12 = smov (!%p4924_p8), %s5839_s14  ;;  %s5853_s29 = smov (!%p4924_p8), 0  }
  0x3c   : > { %s5855_s9 = smov (!%p4924_p8), 0  }
  0x3f LB: >> { %v281_v0 = vld [vmem:[%s5601_s12] sm:$0xf]  ;;  %v283_v1 = vld [vmem:[%s5601_s12 + $0x4] sm:$0xf]  ;;  %v285_v2 = vld [vmem:[%s5601_s12 + $0x8] sm:$0xf]  ;;  %s5609_s9 = sphi %s5855_s9, %s275_s9   ;;  %s5605_s29 = sphi %s5853_s29, %s8987_s29   ;;  %s5601_s12 = sphi %s8984_s12, %s8986_s12   ;;  %s5597_s6 = sphi %s8983_s6, %s8985_s6  }
  0x40   : >> { %282 = vst [vmem:[%s5597_s6] sm:$0xf] %v281_v0  ;;  %v287_v3 = vld [vmem:[%s5601_s12 + $0xc] sm:$0xf]  ;;  %v289_v4 = vld [vmem:[%s5601_s12 + $0x10] sm:$0xf]  ;;  %s345_s11 = sadd.s32 1, %s5605_s29 }
  0x41   : >> { %284 = vst [vmem:[%s5597_s6 + $0x4] sm:$0xf] %v283_v1  ;;  %v291_v5 = vld [vmem:[%s5601_s12 + $0x14] sm:$0xf]  ;;  %v293_v6 = vld [vmem:[%s5601_s12 + $0x18] sm:$0xf]  ;;  %p346_p9 = scmp.ge.s32.totalorder %s345_s11, %s5844_s3 }
  0x42   : >> { %286 = vst [vmem:[%s5597_s6 + $0x8] sm:$0xf] %v285_v2  ;;  %v295_v7 = vld [vmem:[%s5601_s12 + $0x1c] sm:$0xf]  ;;  %v297_v8 = vld [vmem:[%s5601_s12 + $0x20] sm:$0xf] }
  0x43   : >> { %288 = vst [vmem:[%s5597_s6 + $0xc] sm:$0xf] %v287_v3  ;;  %v299_v9 = vld [vmem:[%s5601_s12 + $0x24] sm:$0xf]  ;;  %v301_v10 = vld [vmem:[%s5601_s12 + $0x28] sm:$0xf] }
  0x44   : >> { %290 = vst [vmem:[%s5597_s6 + $0x10] sm:$0xf] %v289_v4  ;;  %v303_v11 = vld [vmem:[%s5601_s12 + $0x2c] sm:$0xf]  ;;  %v305_v12 = vld [vmem:[%s5601_s12 + $0x30] sm:$0xf] }
  0x45   : >> { %292 = vst [vmem:[%s5597_s6 + $0x14] sm:$0xf] %v291_v5  ;;  %v307_v13 = vld [vmem:[%s5601_s12 + $0x34] sm:$0xf]  ;;  %v309_v14 = vld [vmem:[%s5601_s12 + $0x38] sm:$0xf] }
  0x46   : >> { %294 = vst [vmem:[%s5597_s6 + $0x18] sm:$0xf] %v293_v6  ;;  %v311_v15 = vld [vmem:[%s5601_s12 + $0x3c] sm:$0xf]  ;;  %v313_v16 = vld [vmem:[%s5601_s12 + $0xa0] sm:$0xf] }
  0x47   : >> { %296 = vst [vmem:[%s5597_s6 + $0x1c] sm:$0xf] %v295_v7  ;;  %v315_v17 = vld [vmem:[%s5601_s12 + $0xa4] sm:$0xf]  ;;  %s9321_s11 = smov (%p346_p9, %s345_s11), 0  ;;  %s275_s9 = sadd.s32 1, %s5609_s9  }
  0x48   : >> { %298 = vst [vmem:[%s5597_s6 + $0x20] sm:$0xf] %v297_v8  ;;  %v317_v18 = vld [vmem:[%s5601_s12 + $0xa8] sm:$0xf]  ;;  %v319_v19 = vld [vmem:[%s5601_s12 + $0xac] sm:$0xf]  ;;  %p274_p11 = scmp.ge.s32.totalorder %s275_s9, %s5844_s3  ;;  %s8987_s29 = smov %s9321_s11 }
  0x49   : >> { %300 = vst [vmem:[%s5597_s6 + $0x24] sm:$0xf] %v299_v9  ;;  %s4925_s28 = sshll.u32 %s9321_s11, 6  ;;  %v321_v20 = vld [vmem:[%s5601_s12 + $0xb0] sm:$0xf] }
  0x4a   : >> { %302 = vst [vmem:[%s5597_s6 + $0x28] sm:$0xf] %v301_v10  ;;  %s5914_s16 = scalar_lea.vmem %s5839_s14, %s4925_s28   ;;  %s351_s18 = scalar_lea.vmem %s5841_s2, %s4925_s28 [#allocation4]   ;;  %v323_v21 = vld [vmem:[%s5601_s12 + $0xb4] sm:$0xf]  ;;  %v325_v22 = vld [vmem:[%s5601_s12 + $0xb8] sm:$0xf] }
  0x4b   : >> { %304 = vst [vmem:[%s5597_s6 + $0x2c] sm:$0xf] %v303_v11  ;;  %v327_v23 = vld [vmem:[%s5601_s12 + $0xbc] sm:$0xf]  ;;  %v329_v24 = vld [vmem:[%s5601_s12 + $0xc0] sm:$0xf] }
  0x4c   : >> { %306 = vst [vmem:[%s5597_s6 + $0x30] sm:$0xf] %v305_v12  ;;  %v331_v25 = vld [vmem:[%s5601_s12 + $0xc4] sm:$0xf]  ;;  %v333_v26 = vld [vmem:[%s5601_s12 + $0xc8] sm:$0xf] }
  0x4d   : >> { %308 = vst [vmem:[%s5597_s6 + $0x34] sm:$0xf] %v307_v13  ;;  %v335_v27 = vld [vmem:[%s5601_s12 + $0xcc] sm:$0xf]  ;;  %v337_v28 = vld [vmem:[%s5601_s12 + $0xd0] sm:$0xf] }
  0x4e   : >> { %310 = vst [vmem:[%s5597_s6 + $0x38] sm:$0xf] %v309_v14  ;;  %v339_v29 = vld [vmem:[%s5601_s12 + $0xd4] sm:$0xf]  ;;  %v341_v30 = vld [vmem:[%s5601_s12 + $0xd8] sm:$0xf] }
  0x4f   : >> { %312 = vst [vmem:[%s5597_s6 + $0x3c] sm:$0xf] %v311_v15  ;;  %v343_v31 = vld [vmem:[%s5601_s12 + $0xdc] sm:$0xf]  ;;  %s8986_s12 = smov %s5914_s16 }
  0x50   : >> { %314 = vst [vmem:[%s5597_s6 + $0x40] sm:$0xf] %v313_v16 }
  0x51   : >> { %316 = vst [vmem:[%s5597_s6 + $0x44] sm:$0xf] %v315_v17 }
  0x52   : >> { %318 = vst [vmem:[%s5597_s6 + $0x48] sm:$0xf] %v317_v18 }
  0x53   : >> { %320 = vst [vmem:[%s5597_s6 + $0x4c] sm:$0xf] %v319_v19 }
  0x54   : >> { %322 = vst [vmem:[%s5597_s6 + $0x50] sm:$0xf] %v321_v20 }
  0x55   : >> { %324 = vst [vmem:[%s5597_s6 + $0x54] sm:$0xf] %v323_v21 }
  0x56   : >> { %326 = vst [vmem:[%s5597_s6 + $0x58] sm:$0xf] %v325_v22 }
  0x57   : >> { %328 = vst [vmem:[%s5597_s6 + $0x5c] sm:$0xf] %v327_v23 }
  0x58   : >> { %330 = vst [vmem:[%s5597_s6 + $0x60] sm:$0xf] %v329_v24 }
  0x59   : >> { %332 = vst [vmem:[%s5597_s6 + $0x64] sm:$0xf] %v331_v25 }
  0x5a   : >> { %334 = vst [vmem:[%s5597_s6 + $0x68] sm:$0xf] %v333_v26 }
  0x5b   : >> { %336 = vst [vmem:[%s5597_s6 + $0x6c] sm:$0xf] %v335_v27  ;;  %277 = sbr.rel (!%p274_p11) target bundleno = 63 (0x3f), region = 325 }
  0x5c   : >> { %338 = vst [vmem:[%s5597_s6 + $0x70] sm:$0xf] %v337_v28 }
  0x5d   : >> { %340 = vst [vmem:[%s5597_s6 + $0x74] sm:$0xf] %v339_v29 }
  0x5e   : >> { %342 = vst [vmem:[%s5597_s6 + $0x78] sm:$0xf] %v341_v30 }
  0x5f   : >> { %344 = vst [vmem:[%s5597_s6 + $0x7c] sm:$0xf] %v343_v31  ;;  %s8985_s6 = smov %s351_s18 }
  0x60 PF: > { %s5955_s28 = sand.u32 15, %s9319_s10   ;;  %s4982_s0 = sshll.u32 %s5844_s3, 6 }
  0x61   : > { %s5959_s23 = scalar_lea.vmem %s5839_s14, %s4982_s0   ;;  %s358_s13 = scalar_lea.vmem %s5841_s2, %s4982_s0 [#allocation4]  }
  0x62   : > { %p4930_p12 = scmp.le.s32.totalorder %s5955_s28, 0 }
  0x63   : > { %s5611_s16 = smov (!%p4930_p12), %s358_s13   ;;  %s5615_s11 = smov (!%p4930_p12), %s5959_s23  }
  0x64   : > { %4841 = sbr.rel (%p4930_p12) target bundleno = 113 (0x71), region = 330  ;;  %s5619_s18 = smov (!%p4930_p12), 0  }
  0x65   : > { %s5623_s9 = smov (!%p4930_p12), 0  }
  0x69 LB: >> { %v368_v32 = vld [vmem:[%s5617_s11] sm:$0xf]  ;;  %s372_s14 = sadd.s32 1, %s5621_s18  ;;  %s362_s9 = sadd.s32 1, %s5625_s9   ;;  %s5625_s9 = sphi %s5623_s9, %s362_s9   ;;  %s5621_s18 = sphi %s5619_s18, %s5620_s18   ;;  %s5617_s11 = sphi %s5615_s11, %s377_s11   ;;  %s5613_s16 = sphi %s5611_s16, %s378_s16  }
  0x6a   : >> { %v370_v33 = vld [vmem:[%s5617_s11 + $0xa0] sm:$0xf]  ;;  %369 = vst [vmem:[%s5613_s16] sm:$0xf] %v368_v32  ;;  %p373_p13 = scmp.ge.s32.totalorder %s372_s14, %s5955_s28  ;;  %p361_p1 = scmp.ge.s32.totalorder %s362_s9, %s5955_s28 }
  0x6b   : >> { %371 = vst [vmem:[%s5613_s16 + $0x40] sm:$0xf] %v370_v33 }
  0x6c   : >> { %s9323_s14 = smov (%p373_p13, %s372_s14), 0  ;;  %364 = sbr.rel (!%p361_p1) target bundleno = 105 (0x69), region = 336 }
  0x6d   : >> { %s4931_s0 = sshll.u32 %s9323_s14, 2  ;;  %s5620_s18 = smov %s9323_s14  }
  0x6e   : >> { %s377_s11 = scalar_lea.vmem %s5959_s23, %s4931_s0   ;;  %s378_s16 = scalar_lea.vmem %s358_s13, %s4931_s0 [#allocation4]  }
  0x71 PF: > { %534 = sbr.rel (!%p5795_p10) target bundleno = 136 (0x88), region = 82  ;;  %s536_s2 = sand.u32 (%p5795_p10), 1, %s5565_s25  }
  0x72   : > { %s4935_s10 = sshll.u32 (%p5795_p10), %s5787_s17, 4  ;;  %s4933_s3 = sshll.u32 (%p5795_p10), %s536_s2, 7 }
  0x73   : > { %s4984_s6 = sshll.u32 (%p5795_p10), %s5589_s7, 6  ;;  %s538_s23 = scalar_lea.vmem (%p5795_p10), [#allocation5], %s4933_s3 }
  0x74   : > { %s544_s12 = sadd.s32 (%p5795_p10), %s4984_s6, %s4935_s10 }
  0x75   : > { %s4937_s29 = sshll.u32 (%p5795_p10), %s544_s12, 2 }
  0x76   : > { %s5975_s18 = scalar_lea.vmem %s8776_s1, %s4937_s29 }
  0x77   : > { %v563_v34 = vld [vmem:[%s5975_s18] sm:$0xff]   ;;  %v567_v35 = vld [vmem:[%s5975_s18 + $0x8] sm:$0xff]   ;;  %v571_v36 = vld [vmem:[%s5975_s18 + $0x10] sm:$0xff]  }
  0x78   : > { %564 = vst [vmem:[%s538_s23] sm:$0xff] %v563_v34   ;;  %v575_v37 = vld [vmem:[%s5975_s18 + $0x18] sm:$0xff]   ;;  %v579_v38 = vld [vmem:[%s5975_s18 + $0x20] sm:$0xff]   ;;  %v583_v39 = vld [vmem:[%s5975_s18 + $0x28] sm:$0xff]  }
  0x79   : > { %568 = vst [vmem:[%s538_s23 + $0x8] sm:$0xff] %v567_v35   ;;  %v587_v40 = vld [vmem:[%s5975_s18 + $0x30] sm:$0xff]   ;;  %v591_v41 = vld [vmem:[%s5975_s18 + $0x38] sm:$0xff]   ;;  %v595_v42 = vld [vmem:[%s5975_s18 + $0x80] sm:$0xff]  }
  0x7a   : > { %572 = vst [vmem:[%s538_s23 + $0x10] sm:$0xff] %v571_v36   ;;  %v599_v43 = vld [vmem:[%s5975_s18 + $0x88] sm:$0xff]   ;;  %v603_v44 = vld [vmem:[%s5975_s18 + $0x90] sm:$0xff]   ;;  %v607_v45 = vld [vmem:[%s5975_s18 + $0x98] sm:$0xff]  }
  0x7b   : > { %576 = vst [vmem:[%s538_s23 + $0x18] sm:$0xff] %v575_v37   ;;  %v611_v46 = vld [vmem:[%s5975_s18 + $0xa0] sm:$0xff]   ;;  %v615_v47 = vld [vmem:[%s5975_s18 + $0xa8] sm:$0xff]   ;;  %v619_v48 = vld [vmem:[%s5975_s18 + $0xb0] sm:$0xff]  }
  0x7c   : > { %580 = vst [vmem:[%s538_s23 + $0x20] sm:$0xff] %v579_v38   ;;  %v623_v49 = vld [vmem:[%s5975_s18 + $0xb8] sm:$0xff]  }
  0x7d   : > { %584 = vst [vmem:[%s538_s23 + $0x28] sm:$0xff] %v583_v39  }
  0x7e   : > { %588 = vst [vmem:[%s538_s23 + $0x30] sm:$0xff] %v587_v40  }
  0x7f   : > { %592 = vst [vmem:[%s538_s23 + $0x38] sm:$0xff] %v591_v41  }
  0x80   : > { %596 = vst [vmem:[%s538_s23 + $0x40] sm:$0xff] %v595_v42  }
  0x81   : > { %600 = vst [vmem:[%s538_s23 + $0x48] sm:$0xff] %v599_v43  }
  0x82   : > { %604 = vst [vmem:[%s538_s23 + $0x50] sm:$0xff] %v603_v44  }
  0x83   : > { %608 = vst [vmem:[%s538_s23 + $0x58] sm:$0xff] %v607_v45  }
  0x84   : > { %612 = vst [vmem:[%s538_s23 + $0x60] sm:$0xff] %v611_v46  }
  0x85   : > { %616 = vst [vmem:[%s538_s23 + $0x68] sm:$0xff] %v615_v47  }
  0x86   : > { %620 = vst [vmem:[%s538_s23 + $0x70] sm:$0xff] %v619_v48  }
  0x87   : > { %624 = vst [vmem:[%s538_s23 + $0x78] sm:$0xff] %v623_v49  }
  0x88 PF: > { %730 = sbr.rel (!%p5777_p3) target bundleno = 147 (0x93), region = 131  ;;  %s732_s13 = sand.u32 (%p5777_p3), 1, %s5573_s27  }
  0x89   : > { %s4996_s28 = smul.u32 (%p5777_p3), 12, %s5589_s7  ;;  %s4938_s9 = sshll.u32 (%p5777_p3), %s732_s13, 4 }
  0x8a   : > { %s734_s6 = scalar_lea.vmem (%p5777_p3), [#allocation6], %s4938_s9 }
  0x8b   : > { %s737_s14 = sadd.s32 (%p5777_p3), %s5585_s30, %s4996_s28 }
  0x8c   : > { %s4941_s0 = sshll.u32 (%p5777_p3), %s737_s14, 2 }
  0x8d   : > { %s739_s3 = scalar_lea.vmem %s8779_s4, %s4941_s0 }
  0x8e   : > { %v756_v50 = vld [vmem:[%s739_s3] sm:$0xf]  ;;  %v758_v51 = vld [vmem:[%s739_s3 + $0xc] sm:$0xf]  ;;  %v760_v52 = vld [vmem:[%s739_s3 + $0x18] sm:$0xf] }
  0x8f   : > { %757 = vst [vmem:[%s734_s6] sm:$0xf] %v756_v50  ;;  %v762_v53 = vld [vmem:[%s739_s3 + $0x24] sm:$0xf] }
  0x90   : > { %759 = vst [vmem:[%s734_s6 + $0x4] sm:$0xf] %v758_v51 }
  0x91   : > { %761 = vst [vmem:[%s734_s6 + $0x8] sm:$0xf] %v760_v52 }
  0x92   : > { %763 = vst [vmem:[%s734_s6 + $0xc] sm:$0xf] %v762_v53 }
  0x93 PF: > { %795 = sbr.rel (!%p5795_p10) target bundleno = 157 (0x9d), region = 172  ;;  %s797_s15 = sand.u32 (%p5795_p10), 1, %s5565_s25  }
  0x94   : > { %s4985_s12 = sshll.u32 (%p5795_p10), %s5589_s7, 3  ;;  %s4942_s29 = sshll.u32 (%p5795_p10), %s797_s15, 4 }
  0x95   : > { %s804_s16 = sadd.s32 (%p5795_p10), %s4985_s12, %s5787_s17  ;;  %s799_s28 = scalar_lea.vmem (%p5795_p10), [#allocation7], %s4942_s29 }
  0x96   : > { %s4945_s11 = sshll.u32 (%p5795_p10), %s804_s16, 2 }
  0x97   : > { %s806_s13 = scalar_lea.vmem (%p5795_p10), %s8780_s5, %s4945_s11 }
  0x98   : > { %v823_v54 = vld [vmem:[%s806_s13] sm:$0xf]  ;;  %v825_v55 = vld [vmem:[%s806_s13 + $0x8] sm:$0xf]  ;;  %v827_v56 = vld [vmem:[%s806_s13 + $0x10] sm:$0xf] }
  0x99   : > { %824 = vst [vmem:[%s799_s28] sm:$0xf] %v823_v54  ;;  %v829_v57 = vld [vmem:[%s806_s13 + $0x18] sm:$0xf] }
  0x9a   : > { %826 = vst [vmem:[%s799_s28 + $0x4] sm:$0xf] %v825_v55 }
  0x9b   : > { %828 = vst [vmem:[%s799_s28 + $0x8] sm:$0xf] %v827_v56 }
  0x9c   : > { %830 = vst [vmem:[%s799_s28 + $0xc] sm:$0xf] %v829_v57 }
  0x9d PF: > { %p4946_p3 = scmp.ge.s32.totalorder %s5593_s8, 1  ;;  %p861_p10 = scmp.lt.s32.totalorder %s5593_s8, 7 }
  0x9f   : > { %p862_p2 = pnand %p4946_p3, %p861_p10 }
  0xa0   : > { %s8988_s17 = sld [smem:[#allocation13_spill]] (!%p862_p2)  ;;  %s868_s20 = sand.u32 (!%p862_p2), 1, %s5569_s26  }
  0xa1   : > { %865 = sbr.rel (%p862_p2) target bundleno = 2559 (0x9ff), region = 213  ;;  %s875_s9 = sand.u32 (!%p862_p2), 1, %s5561_s24  }
  0xa2   : > { %s4947_s14 = sshll.u32 (!%p862_p2), %s868_s20, 7  ;;  %s4948_s0 = sshll.u32 (!%p862_p2), %s875_s9, 7 }
  0xa3   : > { %s4949_s2 = sshll.u32 (!%p862_p2), %s868_s20, 4  ;;  %s4950_s10 = sshll.u32 (!%p862_p2), %s875_s9, 4 }
  0xa4   : > { %s8788_s3 = sand.u32 (!%p862_p2), 1, %s5553_s22   ;;  %s8989_s16 = sld [smem:[#allocation62_spill]] (!%p862_p2) }
  0xa5   : > { %s4951_s15 = sshll.u32 (!%p862_p2), %s8788_s3, 4  ;;  %s8990_s13 = sld [smem:[#allocation63_spill]] (!%p862_p2) }
  0xa6   : > { %s4952_s6 = sshll.u32 %s8988_s17, 1  ;;  %s6027_s24 = scalar_lea.vmem [#allocation4], %s4947_s14 }
  0xa7   : > { %p949_p5 = scmp.lt.s32.totalorder %s4952_s6, 3  ;;  %s6029_s28 = scalar_lea.vmem [#allocation5], %s4948_s0 }
  0xa8   : > { %s6031_s20 = scalar_lea.vmem [#allocation6], %s4949_s2  ;;  %s6033_s17 = scalar_lea.vmem [#allocation7], %s4950_s10 }
  0xa9   : > { %s9325_s6 = smov (!%p949_p5, %s4952_s6), 3  ;;  %s6035_s9 = scalar_lea.vmem [#allocation8], %s4951_s15 }
  0xaa   : > { %s6020_s11 = scalar_lea.vmem %s8989_s16, %s9325_s6  ;;  %s8991_s3 = sld [smem:[#allocation12_spill]] }
  0xab   : > { %s6025_s26 = scalar_lea.vmem %s8990_s13, %s9325_s6 }
  0xb0   : > { %p4954_p6 = scmp.ne.s32.totalorder %s8991_s3, 0 }
  0xb2   : > { %966 = sbr.rel (%p4954_p6) target bundleno = 192 (0xc0), region = 233 }
  0xb7   : > { %vm967_vm0 = vcmask 261120   ;;  %v5627_v58 = vmov 0.0  }
  0xb8   : > { %968 = vst.msk [vmem:[#allocation2] sm:$0xff] %vm967_vm0, %v5627_v58 }
  0xb9   : > { %969 = vst.msk [vmem:[#allocation2 + $0x8] sm:$0xff] %vm967_vm0, %v5627_v58 }
  0xba   : > { %970 = vst.msk [vmem:[#allocation2 + $0x10] sm:$0xff] %vm967_vm0, %v5627_v58 }
  0xbb   : > { %971 = vst.msk [vmem:[#allocation2 + $0x18] sm:$0xff] %vm967_vm0, %v5627_v58 }
  0xbc   : > { %972 = vst.msk [vmem:[#allocation3] sm:$0xff] %vm967_vm0, %v5627_v58 }
  0xbd   : > { %973 = vst.msk [vmem:[#allocation3 + $0x8] sm:$0xff] %vm967_vm0, %v5627_v58 }
  0xbe   : > { %974 = vst.msk [vmem:[#allocation3 + $0x10] sm:$0xff] %vm967_vm0, %v5627_v58 }
  0xbf   : > { %975 = vst.msk [vmem:[#allocation3 + $0x18] sm:$0xff] %vm967_vm0, %v5627_v58 }
  0xc0 PF: > { %s8992_s14 = sld [smem:[#allocation12_spill]]  ;;  %v1014_v59 = vlaneseq  ;;  %v990_v3 = vld [vmem:[%s6027_s24 + $0x38] sm:$0xf]  ;;  %v991_v5 = vld [vmem:[%s6027_s24 + $0x3c] sm:$0xf] }
  0xc1   : > { %v1006_v4 = vld [vmem:[%s6027_s24 + $0x78] sm:$0xf]  ;;  %v1007_v7 = vld [vmem:[%s6027_s24 + $0x7c] sm:$0xf]  ;;  %v988_v21 = vld [vmem:[%s6027_s24 + $0x30] sm:$0xf] }
  0xc2   : > { %v6040_v60 = vshrl.u32 %v1014_v59, 7  ;;  %v1152_v6 = vld [vmem:[%s6029_s28 + $0x38] sm:$0xf]  ;;  %v1153_v9 = vld [vmem:[%s6029_s28 + $0x3c] sm:$0xf] }
  0xc3   : > { %v1168_v10 = vld [vmem:[%s6029_s28 + $0x78] sm:$0xf]  ;;  %v1169_v14 = vld [vmem:[%s6029_s28 + $0x7c] sm:$0xf]  ;;  %v989_v22 = vld [vmem:[%s6027_s24 + $0x34] sm:$0xf] }
  0xc4   : > { %v1029_v63 = vadd.s32 112, %v6040_v60  ;;  %v1030_v0 = vadd.s32 120, %v6040_v60  ;;  %v1027_v1 = vadd.s32 96, %v6040_v60  ;;  %v1028_v2 = vadd.s32 104, %v6040_v60  ;;  %v1004_v27 = vld [vmem:[%s6027_s24 + $0x70] sm:$0xf] }
  0xc5   : > { %v6079_v15 = vadd.s32 80, %v6040_v60  ;;  %v6082_v16 = vadd.s32 88, %v6040_v60  ;;  %v1005_v28 = vld [vmem:[%s6027_s24 + $0x74] sm:$0xf]  ;;  %v1150_v39 = vld [vmem:[%s6029_s28 + $0x30] sm:$0xf] }
  0xc6   : > { %s4955_s0 = sshll.u32 %s8992_s14, 7  ;;  %v1151_v40 = vld [vmem:[%s6029_s28 + $0x34] sm:$0xf]  ;;  %v1166_v46 = vld [vmem:[%s6029_s28 + $0x70] sm:$0xf]  ;;  %p4956_p7 = scmp.ne.s32.totalorder %s8992_s14, 2 }
  0xc7   : > { %s1013_s2 = ssub.s32 320, %s4955_s0  ;;  %s1174_s10 = ssub.s32 256, %s4955_s0  ;;  %v1167_v52 = vld [vmem:[%s6029_s28 + $0x74] sm:$0xf]  ;;  %v986_v57 = vld [vmem:[%s6027_s24 + $0x28] sm:$0xf] }
  0xc8   : > { %v6042_v61 = vstv %s1013_s2  ;;  %v6044_v62 = vstv %s1174_s10  ;;  %v1003_v8 = vld [vmem:[%s6027_s24 + $0x6c] sm:$0xf]  ;;  %v1146_v38 = vld [vmem:[%s6029_s28 + $0x20] sm:$0xf] }
  0xc9   : > { %vm1046_vm1 = vcmp.lt.s32.totalorder %v1029_v63, %v6042_v61  ;;  %vm1047_vm2 = vcmp.lt.s32.totalorder %v1030_v0, %v6042_v61  ;;  %vm1190_vm3 = vcmp.lt.s32.totalorder %v1029_v63, %v6044_v62  ;;  %vm1191_vm4 = vcmp.lt.s32.totalorder %v1030_v0, %v6044_v62  ;;  %v1147_v51 = vld [vmem:[%s6029_s28 + $0x24] sm:$0xf]  ;;  %v998_v11 = vld [vmem:[%s6027_s24 + $0x58] sm:$0xf] }
  0xca   : > { %vm6059_vm5 = vmpackc.low %vm1046_vm1, %vm1046_vm1  ;;  %vm1044_vm6 = vcmp.lt.s32.totalorder %v1027_v1, %v6042_v61  ;;  %vm1045_vm7 = vcmp.lt.s32.totalorder %v1028_v2, %v6042_v61  ;;  %vm1188_vm8 = vcmp.lt.s32.totalorder %v1027_v1, %v6044_v62  ;;  %vm1189_vm9 = vcmp.lt.s32.totalorder %v1028_v2, %v6044_v62  ;;  %v987_v2 = vld [vmem:[%s6027_s24 + $0x2c] sm:$0xf] }
  0xcb   : > { %vm6069_vm10 = vmpackc.low %vm1047_vm2, %vm1047_vm2  ;;  %v1113_v12 = vsel %vm6059_vm5, %v990_v3, 0  ;;  %v1129_v13 = vsel %vm6059_vm5, %v1006_v4, 0  ;;  %v1002_v3 = vld [vmem:[%s6027_s24 + $0x68] sm:$0xf]  ;;  %vm1042_vm1 = vcmp.lt.s32.totalorder %v6079_v15, %v6042_v61  ;;  %vm1043_vm2 = vcmp.lt.s32.totalorder %v6082_v16, %v6042_v61 }
  0xcc   : > { %v1114_v17 = vsel %vm6069_vm10, %v991_v5, 0  ;;  %v1318_v18 = vunpack.c.l.b16 %v1113_v12  ;;  %vm1239_vm11 = vmpackc.low %vm1190_vm3, %vm1190_vm3  ;;  %v1130_v19 = vsel %vm6069_vm10, %v1007_v7, 0  ;;  %v1468_v20 = vunpack.c.l.b16 %v1129_v13  ;;  %v1148_v7 = vld [vmem:[%s6029_s28 + $0x28] sm:$0xf]  ;;  %v1149_v12 = vld [vmem:[%s6029_s28 + $0x2c] sm:$0xf] }
  0xcd   : > { %v1319_v23 = vunpack.c.l.b16 %v1114_v17  ;;  %vm1240_vm12 = vmpackc.low %vm1191_vm4, %vm1191_vm4  ;;  %v1255_v24 = vsel %vm1239_vm11, %v1152_v6, 0  ;;  %v1469_v25 = vunpack.c.l.b16 %v1130_v19  ;;  %v1271_v26 = vsel %vm1239_vm11, %v1168_v10, 0  ;;  %v1164_v13 = vld [vmem:[%s6029_s28 + $0x68] sm:$0xf]  ;;  %v1165_v19 = vld [vmem:[%s6029_s28 + $0x6c] sm:$0xf] }
  0xce   : > { %v1256_v29 = vsel %vm1240_vm12, %v1153_v9, 0  ;;  %v1393_v30 = vunpack.c.l.b16 %v1255_v24  ;;  %v1272_v31 = vsel %vm1240_vm12, %v1169_v14, 0  ;;  %v1543_v32 = vunpack.c.l.b16 %v1271_v26  ;;  %vm6101_vm13 = vmpackc.low %vm1044_vm6, %vm1044_vm6 }
  0xcf   : > { %v1327_v34 = vpack.c.b16 %v1319_v23, %v1318_v18  ;;  %v1394_v35 = vunpack.c.l.b16 %v1256_v29  ;;  %v1477_v36 = vpack.c.b16 %v1469_v25, %v1468_v20  ;;  %v1544_v37 = vunpack.c.l.b16 %v1272_v31  ;;  %vm6108_vm14 = vmpackc.low %vm1045_vm7, %vm1045_vm7 }
  0xd0   : > { %v1111_v41 = vsel %vm6101_vm13, %v988_v21, 0  ;;  %v1112_v42 = vsel %vm6108_vm14, %v989_v22, 0  ;;  %vm6121_vm15 = vmpackc.low %vm1188_vm8, %vm1188_vm8  ;;  %v1127_v44 = vsel %vm6101_vm13, %v1004_v27, 0  ;;  %v1128_v45 = vsel %vm6108_vm14, %v1005_v28, 0 }
  0xd1   : > { %1336 = vmatpush.bf16.msra.mxu0 %v1327_v34  ;;  %v1402_v47 = vpack.c.b16 %v1394_v35, %v1393_v30  ;;  %1486 = vmatpush.bf16.msra.mxu2 %v1477_v36  ;;  %v1552_v48 = vpack.c.b16 %v1544_v37, %v1543_v32  ;;  %v1316_v49 = vunpack.c.l.b16 %v1111_v41  ;;  %v1317_v50 = vunpack.c.l.b16 %v1112_v42  ;;  %vm6133_vm0 = vmpackc.low %vm1189_vm9, %vm1189_vm9  ;;  %v984_v36 = vld [vmem:[%s6027_s24 + $0x20] sm:$0xf]  ;;  %v985_v37 = vld [vmem:[%s6027_s24 + $0x24] sm:$0xf] }
  0xd2   : > { %v1253_v53 = vsel %vm6121_vm15, %v1150_v39, 0  ;;  %v1254_v54 = vsel %vm6133_vm0, %v1151_v40, 0  ;;  %v1466_v55 = vunpack.c.l.b16 %v1127_v44  ;;  %v1467_v56 = vunpack.c.l.b16 %v1128_v45  ;;  %vm6155_vm3 = vmpackc.low %vm1042_vm1, %vm1042_vm1  ;;  %v1000_v41 = vld [vmem:[%s6027_s24 + $0x60] sm:$0xf]  ;;  %v1001_v45 = vld [vmem:[%s6027_s24 + $0x64] sm:$0xf] }
  0xd3   : > { %1411 = vmatpush.bf16.msra.mxu1 %v1402_v47  ;;  %1561 = vmatpush.bf16.msra.mxu3 %v1552_v48  ;;  %v1326_v58 = vpack.c.b16 %v1317_v50, %v1316_v49  ;;  %v1391_v63 = vunpack.c.l.b16 %v1253_v53  ;;  %v1392_v0 = vunpack.c.l.b16 %v1254_v54  ;;  %v1269_v1 = vsel %vm6121_vm15, %v1166_v46, 0  ;;  %vm6163_vm5 = vmpackc.low %vm1043_vm2, %vm1043_vm2  ;;  %v1162_v42 = vld [vmem:[%s6029_s28 + $0x60] sm:$0xf]  ;;  %v1163_v53 = vld [vmem:[%s6029_s28 + $0x64] sm:$0xf] }
  0xd4   : > { %v1476_v4 = vpack.c.b16 %v1467_v56, %v1466_v55  ;;  %v1270_v5 = vsel %vm6133_vm0, %v1167_v52, 0  ;;  %v1541_v6 = vunpack.c.l.b16 %v1269_v1  ;;  %vm1186_vm4 = vcmp.lt.s32.totalorder %v6079_v15, %v6044_v62 }
  0xd5   : > { %1337 = vmatpush.bf16.msra.mxu0 %v1326_v58  ;;  %v1401_v9 = vpack.c.b16 %v1392_v0, %v1391_v63  ;;  %v1542_v10 = vunpack.c.l.b16 %v1270_v5  ;;  %v1109_v17 = vsel %vm6155_vm3, %v986_v57, 0  ;;  %vm1187_vm6 = vcmp.lt.s32.totalorder %v6082_v16, %v6044_v62  ;;  %vm1235_vm7 = vmpackc.low %vm1186_vm4, %vm1186_vm4 }
  0xd6   : > { %1487 = vmatpush.bf16.msra.mxu2 %v1476_v4  ;;  %v1125_v18 = vsel %vm6155_vm3, %v1002_v3, 0  ;;  %v1023_v20 = vadd.s32 64, %v6040_v60  ;;  %v1110_v21 = vsel %vm6163_vm5, %v987_v2, 0  ;;  %v1314_v22 = vunpack.c.l.b16 %v1109_v17  ;;  %vm6179_vm8 = vmpackc.low %vm1187_vm6, %vm1187_vm6  ;;  %v979_v17 = vld [vmem:[%s6027_s24 + $0xc] sm:$0xf] }
  0xd7   : > { %1412 = vmatpush.bf16.msra.mxu1 %v1401_v9  ;;  %v1551_v15 = vpack.c.b16 %v1542_v10, %v1541_v6  ;;  %v1126_v23 = vsel %vm6163_vm5, %v1003_v8, 0  ;;  %v1315_v24 = vunpack.c.l.b16 %v1110_v21  ;;  %v1251_v25 = vsel %vm1235_vm7, %v1148_v7, 0  ;;  %v982_v6 = vld [vmem:[%s6027_s24 + $0x18] sm:$0xf]  ;;  %v983_v10 = vld [vmem:[%s6027_s24 + $0x1c] sm:$0xf] }
  0xd8   : > { %v1464_v26 = vunpack.c.l.b16 %v1125_v18  ;;  %v1465_v27 = vunpack.c.l.b16 %v1126_v23  ;;  %v1252_v28 = vsel %vm6179_vm8, %v1149_v12, 0  ;;  %v1389_v29 = vunpack.c.l.b16 %v1251_v25  ;;  %v999_v12 = vld [vmem:[%s6027_s24 + $0x5c] sm:$0xf]  ;;  %v1144_v18 = vld [vmem:[%s6029_s28 + $0x18] sm:$0xf] }
  0xd9   : > { %1562 = vmatpush.bf16.msra.mxu3 %v1551_v15  ;;  %v1267_v30 = vsel %vm1235_vm7, %v1164_v13, 0  ;;  %v1268_v31 = vsel %vm6179_vm8, %v1165_v19, 0  ;;  %v1325_v32 = vpack.c.b16 %v1315_v24, %v1314_v22  ;;  %v1390_v33 = vunpack.c.l.b16 %v1252_v28  ;;  %v1145_v19 = vld [vmem:[%s6029_s28 + $0x1c] sm:$0xf]  ;;  %v1160_v23 = vld [vmem:[%s6029_s28 + $0x58] sm:$0xf] }
  0xda   : > { %v1475_v34 = vpack.c.b16 %v1465_v27, %v1464_v26  ;;  %v1539_v35 = vunpack.c.l.b16 %v1267_v30  ;;  %v1540_v39 = vunpack.c.l.b16 %v1268_v31  ;;  %v1024_v40 = vadd.s32 72, %v6040_v60  ;;  %v1161_v24 = vld [vmem:[%s6029_s28 + $0x5c] sm:$0xf]  ;;  %v1170_v21 = vld [vmem:[%s6033_s17] sm:$0xf] }
  0xdb   : > { %vm1040_vm9 = vcmp.lt.s32.totalorder %v1023_v20, %v6042_v61  ;;  %vm1184_vm10 = vcmp.lt.s32.totalorder %v1023_v20, %v6044_v62  ;;  %1338 = vmatpush.bf16.msra.mxu0 %v1325_v32  ;;  %v1400_v43 = vpack.c.b16 %v1390_v33, %v1389_v29  ;;  %v1021_v46 = vadd.s32 48, %v6040_v60 }
  0xdc   : > { %1488 = vmatpush.bf16.msra.mxu2 %v1475_v34  ;;  %vm6195_vm11 = vmpackc.low %vm1040_vm9, %vm1040_vm9  ;;  %v1022_v47 = vadd.s32 56, %v6040_v60  ;;  %v6203_v48 = vadd.s32 32, %v6040_v60  ;;  %v1550_v49 = vpack.c.b16 %v1540_v39, %v1539_v35  ;;  %vm1041_vm12 = vcmp.lt.s32.totalorder %v1024_v40, %v6042_v61 }
  0xdd   : > { %v1107_v50 = vsel %vm6195_vm11, %v984_v36, 0  ;;  %vm1185_vm13 = vcmp.lt.s32.totalorder %v1024_v40, %v6044_v62  ;;  %vm6213_vm14 = vmpackc.low %vm1184_vm10, %vm1184_vm10  ;;  %1413 = vmatpush.bf16.msra.mxu1 %v1400_v43  ;;  %v1123_v56 = vsel %vm6195_vm11, %v1000_v41, 0  ;;  %vm1038_vm1 = vcmp.lt.s32.totalorder %v1021_v46, %v6042_v61  ;;  %v980_v41 = vld [vmem:[%s6027_s24 + $0x10] sm:$0xf] }
  0xde   : > { %vm1092_vm15 = vmpackc.low %vm1041_vm12, %vm1041_vm12  ;;  %v1312_v54 = vunpack.c.l.b16 %v1107_v50  ;;  %v1249_v55 = vsel %vm6213_vm14, %v1146_v38, 0  ;;  %v1265_v57 = vsel %vm6213_vm14, %v1162_v42, 0  ;;  %1563 = vmatpush.bf16.msra.mxu3 %v1550_v49  ;;  %v1462_v1 = vunpack.c.l.b16 %v1123_v56  ;;  %v981_v42 = vld [vmem:[%s6027_s24 + $0x14] sm:$0xf]  ;;  %v1142_v43 = vld [vmem:[%s6029_s28 + $0x10] sm:$0xf] }
  0xdf   : > { %v1108_v58 = vsel %vm1092_vm15, %v985_v37, 0  ;;  %vm1234_vm0 = vmpackc.low %vm1185_vm13, %vm1185_vm13  ;;  %v1387_v63 = vunpack.c.l.b16 %v1249_v55  ;;  %v1124_v0 = vsel %vm1092_vm15, %v1001_v45, 0  ;;  %v1537_v8 = vunpack.c.l.b16 %v1265_v57  ;;  %v1143_v57 = vld [vmem:[%s6029_s28 + $0x14] sm:$0xf]  ;;  %v977_v50 = vld [vmem:[%s6027_s24 + $0x4] sm:$0xf] }
  0xe0   : > { %v1313_v2 = vunpack.c.l.b16 %v1108_v58  ;;  %v1250_v3 = vsel %vm1234_vm0, %v1147_v51, 0  ;;  %v1463_v4 = vunpack.c.l.b16 %v1124_v0  ;;  %v1266_v5 = vsel %vm1234_vm0, %v1163_v53, 0  ;;  %vm6230_vm3 = vmpackc.low %vm1038_vm1, %vm1038_vm1  ;;  %v997_v51 = vld [vmem:[%s6027_s24 + $0x54] sm:$0xf] }
  0xe1   : > { %v1388_v7 = vunpack.c.l.b16 %v1250_v3  ;;  %v1538_v9 = vunpack.c.l.b16 %v1266_v5  ;;  %vm1039_vm2 = vcmp.lt.s32.totalorder %v1022_v47, %v6042_v61  ;;  %vm1182_vm4 = vcmp.lt.s32.totalorder %v1021_v46, %v6044_v62  ;;  %v996_v46 = vld [vmem:[%s6027_s24 + $0x50] sm:$0xf] }
  0xe2   : > { %v1324_v13 = vpack.c.b16 %v1313_v2, %v1312_v54  ;;  %v1474_v14 = vpack.c.b16 %v1463_v4, %v1462_v1  ;;  %vm6237_vm5 = vmpackc.low %vm1039_vm2, %vm1039_vm2  ;;  %v1105_v22 = vsel %vm6230_vm3, %v982_v6, 0  ;;  %vm1183_vm6 = vcmp.lt.s32.totalorder %v1022_v47, %v6044_v62  ;;  %v1158_v47 = vld [vmem:[%s6029_s28 + $0x50] sm:$0xf] }
  0xe3   : > { %v1399_v20 = vpack.c.b16 %v1388_v7, %v1387_v63  ;;  %v1549_v15 = vpack.c.b16 %v1538_v9, %v1537_v8  ;;  %v1106_v16 = vsel %vm6237_vm5, %v983_v10, 0  ;;  %v1310_v25 = vunpack.c.l.b16 %v1105_v22  ;;  %vm6248_vm7 = vmpackc.low %vm1182_vm4, %vm1182_vm4  ;;  %v1159_v63 = vld [vmem:[%s6029_s28 + $0x54] sm:$0xf]  ;;  %v1140_v22 = vld [vmem:[%s6029_s28 + $0x8] sm:$0xf] }
  0xe4   : > { %1339 = vmatpush.bf16.msra.mxu0 %v1324_v13  ;;  %1489 = vmatpush.bf16.msra.mxu2 %v1474_v14  ;;  %v1121_v27 = vsel %vm6230_vm3, %v998_v11, 0  ;;  %v1122_v28 = vsel %vm6237_vm5, %v999_v12, 0  ;;  %v1311_v29 = vunpack.c.l.b16 %v1106_v16  ;;  %vm1232_vm8 = vmpackc.low %vm1183_vm6, %vm1183_vm6  ;;  %v1247_v30 = vsel %vm6248_vm7, %v1144_v18, 0  ;;  %v978_v11 = vld [vmem:[%s6027_s24 + $0x8] sm:$0xf] }
  0xe5   : > { %1414 = vmatpush.bf16.msra.mxu1 %v1399_v20  ;;  %1564 = vmatpush.bf16.msra.mxu3 %v1549_v15  ;;  %v1460_v31 = vunpack.c.l.b16 %v1121_v27  ;;  %v1461_v32 = vunpack.c.l.b16 %v1122_v28  ;;  %v1248_v33 = vsel %vm1232_vm8, %v1145_v19, 0  ;;  %v1385_v34 = vunpack.c.l.b16 %v1247_v30  ;;  %v994_v18 = vld [vmem:[%s6027_s24 + $0x48] sm:$0xf]  ;;  %v995_v19 = vld [vmem:[%s6027_s24 + $0x4c] sm:$0xf] }
  0xe6   : > { %v1263_v35 = vsel %vm6248_vm7, %v1160_v23, 0  ;;  %v1264_v36 = vsel %vm1232_vm8, %v1161_v24, 0  ;;  %v1323_v37 = vpack.c.b16 %v1311_v29, %v1310_v25  ;;  %v1386_v38 = vunpack.c.l.b16 %v1248_v33  ;;  %v1141_v23 = vld [vmem:[%s6029_s28 + $0xc] sm:$0xf]  ;;  %v1156_v27 = vld [vmem:[%s6029_s28 + $0x48] sm:$0xf] }
  0xe7   : > { %v1473_v39 = vpack.c.b16 %v1461_v32, %v1460_v31  ;;  %v1535_v40 = vunpack.c.l.b16 %v1263_v35  ;;  %v1536_v44 = vunpack.c.l.b16 %v1264_v36  ;;  %v1020_v45 = vadd.s32 40, %v6040_v60  ;;  %v1157_v28 = vld [vmem:[%s6029_s28 + $0x4c] sm:$0xf]  ;;  %v1172_v25 = vld [vmem:[%s6033_s17 + $0x8] sm:$0xf] }
  0xe8   : > { %vm1036_vm9 = vcmp.lt.s32.totalorder %v6203_v48, %v6042_v61  ;;  %vm1180_vm10 = vcmp.lt.s32.totalorder %v6203_v48, %v6044_v62  ;;  %1340 = vmatpush.bf16.msra.mxu0 %v1323_v37  ;;  %v1398_v49 = vpack.c.b16 %v1386_v38, %v1385_v34  ;;  %v1017_v52 = vadd.s32 16, %v6040_v60 }
  0xe9   : > { %1490 = vmatpush.bf16.msra.mxu2 %v1473_v39  ;;  %vm6270_vm11 = vmpackc.low %vm1036_vm9, %vm1036_vm9  ;;  %v1018_v53 = vadd.s32 24, %v6040_v60  ;;  %v6278_v54 = vadd.s32 8, %v6040_v60  ;;  %v1548_v55 = vpack.c.b16 %v1536_v44, %v1535_v40  ;;  %vm1037_vm12 = vcmp.lt.s32.totalorder %v1020_v45, %v6042_v61 }
  0xea   : > { %v1103_v56 = vsel %vm6270_vm11, %v980_v41, 0  ;;  %vm1181_vm13 = vcmp.lt.s32.totalorder %v1020_v45, %v6044_v62  ;;  %vm6289_vm14 = vmpackc.low %vm1180_vm10, %vm1180_vm10  ;;  %1415 = vmatpush.bf16.msra.mxu1 %v1398_v49  ;;  %v1119_v2 = vsel %vm6270_vm11, %v996_v46, 0  ;;  %vm1034_vm1 = vcmp.lt.s32.totalorder %v1017_v52, %v6042_v61  ;;  %v976_v46 = vld [vmem:[%s6027_s24] sm:$0xf] }
  0xeb   : > { %vm1088_vm15 = vmpackc.low %vm1037_vm12, %vm1037_vm12  ;;  %v1308_v0 = vunpack.c.l.b16 %v1103_v56  ;;  %v1245_v1 = vsel %vm6289_vm14, %v1142_v43, 0  ;;  %v1261_v48 = vsel %vm6289_vm14, %v1158_v47, 0  ;;  %1565 = vmatpush.bf16.msra.mxu3 %v1548_v55  ;;  %v1458_v6 = vunpack.c.l.b16 %v1119_v2  ;;  %v992_v47 = vld [vmem:[%s6027_s24 + $0x40] sm:$0xf]  ;;  %v1139_v55 = vld [vmem:[%s6029_s28 + $0x4] sm:$0xf] }
  0xec   : > { %v1104_v3 = vsel %vm1088_vm15, %v981_v42, 0  ;;  %vm1230_vm0 = vmpackc.low %vm1181_vm13, %vm1181_vm13  ;;  %v1383_v4 = vunpack.c.l.b16 %v1245_v1  ;;  %v1120_v5 = vsel %vm1088_vm15, %v997_v51, 0  ;;  %v1533_v13 = vunpack.c.l.b16 %v1261_v48  ;;  %v1138_v51 = vld [vmem:[%s6029_s28] sm:$0xf] }
  0xed   : > { %v1309_v7 = vunpack.c.l.b16 %v1104_v3  ;;  %v1246_v8 = vsel %vm1230_vm0, %v1143_v57, 0  ;;  %v1459_v9 = vunpack.c.l.b16 %v1120_v5  ;;  %v1262_v10 = vsel %vm1230_vm0, %v1159_v63, 0  ;;  %vm6306_vm3 = vmpackc.low %vm1034_vm1, %vm1034_vm1  ;;  %v1154_v56 = vld [vmem:[%s6029_s28 + $0x40] sm:$0xf] }
  0xee   : > { %v1384_v12 = vunpack.c.l.b16 %v1246_v8  ;;  %v1534_v14 = vunpack.c.l.b16 %v1262_v10  ;;  %vm1035_vm2 = vcmp.lt.s32.totalorder %v1018_v53, %v6042_v61  ;;  %vm1178_vm4 = vcmp.lt.s32.totalorder %v1017_v52, %v6044_v62  ;;  %v993_v52 = vld [vmem:[%s6027_s24 + $0x44] sm:$0xf] }
  0xef   : > { %v1322_v20 = vpack.c.b16 %v1309_v7, %v1308_v0  ;;  %v1472_v15 = vpack.c.b16 %v1459_v9, %v1458_v6  ;;  %vm6313_vm5 = vmpackc.low %vm1035_vm2, %vm1035_vm2  ;;  %v1101_v26 = vsel %vm6306_vm3, %v978_v11, 0  ;;  %vm1179_vm6 = vcmp.lt.s32.totalorder %v1018_v53, %v6044_v62  ;;  %v1155_v0 = vld [vmem:[%s6029_s28 + $0x44] sm:$0xf] }
  0xf0   : > { %v1397_v24 = vpack.c.b16 %v1384_v12, %v1383_v4  ;;  %v1547_v16 = vpack.c.b16 %v1534_v14, %v1533_v13  ;;  %v1102_v29 = vsel %vm6313_vm5, %v979_v17, 0  ;;  %v1306_v30 = vunpack.c.l.b16 %v1101_v26  ;;  %vm6324_vm7 = vmpackc.low %vm1178_vm4, %vm1178_vm4  ;;  %v1008_v12 = vld [vmem:[%s6031_s20] sm:$0xf] }
  0xf1   : > { %1341 = vmatpush.bf16.msra.mxu0 %v1322_v20  ;;  %1491 = vmatpush.bf16.msra.mxu2 %v1472_v15  ;;  %v1117_v32 = vsel %vm6306_vm3, %v994_v18, 0  ;;  %v1118_v33 = vsel %vm6313_vm5, %v995_v19, 0  ;;  %v1307_v34 = vunpack.c.l.b16 %v1102_v29  ;;  %vm1228_vm8 = vmpackc.low %vm1179_vm6, %vm1179_vm6  ;;  %v1243_v35 = vsel %vm6324_vm7, %v1140_v22, 0  ;;  %v1009_v19 = vld [vmem:[%s6031_s20 + $0x4] sm:$0xf] }
  0xf2   : > { %1416 = vmatpush.bf16.msra.mxu1 %v1397_v24  ;;  %1566 = vmatpush.bf16.msra.mxu3 %v1547_v16  ;;  %v1456_v36 = vunpack.c.l.b16 %v1117_v32  ;;  %v1457_v37 = vunpack.c.l.b16 %v1118_v33  ;;  %v1244_v38 = vsel %vm1228_vm8, %v1141_v23, 0  ;;  %v1381_v39 = vunpack.c.l.b16 %v1243_v35  ;;  %v1010_v20 = vld [vmem:[%s6031_s20 + $0x8] sm:$0xf]  ;;  %v1011_v15 = vld [vmem:[%s6031_s20 + $0xc] sm:$0xf] }
  0xf3   : > { %v1259_v40 = vsel %vm6324_vm7, %v1156_v27, 0  ;;  %v1260_v41 = vsel %vm1228_vm8, %v1157_v28, 0  ;;  %v1321_v42 = vpack.c.b16 %v1307_v34, %v1306_v30  ;;  %v1382_v43 = vunpack.c.l.b16 %v1244_v38  ;;  %v1171_v22 = vld [vmem:[%s6033_s17 + $0x4] sm:$0xf]  ;;  %v1173_v29 = vld [vmem:[%s6033_s17 + $0xc] sm:$0xf] }
  0xf4   : > { %v1471_v44 = vpack.c.b16 %v1457_v37, %v1456_v36  ;;  %v1531_v45 = vunpack.c.l.b16 %v1259_v40  ;;  %v1532_v49 = vunpack.c.l.b16 %v1260_v41  ;;  %vm1032_vm9 = vcmp.lt.s32.totalorder %v6040_v60, %v6042_v61 }
  0xf5   : > { %vm1033_vm10 = vcmp.lt.s32.totalorder %v6278_v54, %v6042_v61  ;;  %vm1176_vm11 = vcmp.lt.s32.totalorder %v6040_v60, %v6044_v62  ;;  %1342 = vmatpush.bf16.msra.mxu0 %v1321_v42  ;;  %v1396_v53 = vpack.c.b16 %v1382_v43, %v1381_v39  ;;  %vm1083_vm12 = vmpackc.low %vm1032_vm9, %vm1032_vm9  ;;  %vm1177_vm13 = vcmp.lt.s32.totalorder %v6278_v54, %v6044_v62 }
  0xf6   : > { %1492 = vmatpush.bf16.msra.mxu2 %v1471_v44  ;;  %v1546_v57 = vpack.c.b16 %v1532_v49, %v1531_v45  ;;  %vm1084_vm14 = vmpackc.low %vm1033_vm10, %vm1033_vm10  ;;  %v1099_v58 = vsel %vm1083_vm12, %v976_v46, 0  ;;  %v1115_v63 = vsel %vm1083_vm12, %v992_v47, 0  ;;  %v6353_v1 = vand.u32 127, %v1014_v59  ;;  %v1280_v46 = vld [vmem:[#allocation2] sm:$0xff] }
  0xf7   : > { %1417 = vmatpush.bf16.msra.mxu1 %v1396_v53  ;;  %v1100_v2 = vsel %vm1084_vm14, %v977_v50, 0  ;;  %v1304_v48 = vunpack.c.l.b16 %v1099_v58  ;;  %vm1225_vm15 = vmpackc.low %vm1176_vm11, %vm1176_vm11  ;;  %v1116_v3 = vsel %vm1084_vm14, %v993_v52, 0  ;;  %v1454_v4 = vunpack.c.l.b16 %v1115_v63  ;;  %v1355_v47 = vld [vmem:[#allocation3] sm:$0xff]  ;;  %v1430_v53 = vld [vmem:[#allocation2 + $0x10] sm:$0xff] }
  0xf8   : > { %1567 = vmatpush.bf16.msra.mxu3 %v1546_v57  ;;  %v1305_v5 = vunpack.c.l.b16 %v1100_v2  ;;  %vm1226_vm0 = vmpackc.low %vm1177_vm13, %vm1177_vm13  ;;  %v1241_v59 = vsel %vm1225_vm15, %v1138_v51, 0  ;;  %v1455_v6 = vunpack.c.l.b16 %v1116_v3  ;;  %v1257_v7 = vsel %vm1225_vm15, %v1154_v56, 0  ;;  %v1505_v57 = vld [vmem:[#allocation3 + $0x10] sm:$0xff]  ;;  %v1356_v58 = vld [vmem:[#allocation3 + $0x8] sm:$0xff] }
  0xf9   : > { %v1242_v8 = vsel %vm1226_vm0, %v1139_v55, 0  ;;  %v1379_v9 = vunpack.c.l.b16 %v1241_v59  ;;  %v1258_v10 = vsel %vm1226_vm0, %v1155_v0, 0  ;;  %v1529_v11 = vunpack.c.l.b16 %v1257_v7  ;;  %v1281_v55 = vld [vmem:[#allocation2 + $0x8] sm:$0xff]  ;;  %v1431_v59 = vld [vmem:[#allocation2 + $0x18] sm:$0xff] }
  0xfa   : > { %v1320_v13 = vpack.c.b16 %v1305_v5, %v1304_v48  ;;  %v1380_v14 = vunpack.c.l.b16 %v1242_v8  ;;  %v1470_v17 = vpack.c.b16 %v1455_v6, %v1454_v4  ;;  %v1530_v18 = vunpack.c.l.b16 %v1258_v10  ;;  %v1506_v7 = vld [vmem:[#allocation3 + $0x18] sm:$0xff] }
  0xfb   : > { %vm1050_vm1 = vcmp.lt.s32.totalorder %v6353_v1, %v6042_v61  ;;  %vm1192_vm2 = vcmp.lt.s32.totalorder %v6353_v1, %v6044_v62  ;;  %vm1352_vm5 = vcmask 261120  }
  0xfc   : > { %1343 = vmatpush.bf16.msra.mxu0 %v1320_v13  ;;  %v1395_v23 = vpack.c.b16 %v1380_v14, %v1379_v9  ;;  %1493 = vmatpush.bf16.msra.mxu2 %v1470_v17  ;;  %v1545_v24 = vpack.c.b16 %v1530_v18, %v1529_v11  ;;  %vm6373_vm3 = vmpackc.low %vm1050_vm1, %vm1050_vm1 }
  0xfd   : > { %v1134_v26 = vsel %vm6373_vm3, %v1008_v12, 0  ;;  %v1135_v61 = vsel %vm6373_vm3, %v1009_v19, 0  ;;  %vm6382_vm4 = vmpackc.low %vm1192_vm2, %vm1192_vm2  ;;  %v1136_v62 = vsel %vm6373_vm3, %v1010_v20, 0  ;;  %v1137_v28 = vsel %vm6373_vm3, %v1011_v15, 0 }
  0xfe   : > { %1418 = vmatpush.bf16.msra.mxu1 %v1395_v23  ;;  %1568 = vmatpush.bf16.msra.mxu3 %v1545_v24  ;;  %v1284_v30 = vunpack.c.l.b16 %v1134_v26  ;;  %v1285_v31 = vunpack.c.l.b16 %v1135_v61  ;;  %v1276_v32 = vsel %vm6382_vm4, %v1170_v21, 0  ;;  %v1277_v33 = vsel %vm6382_vm4, %v1171_v22, 0 }
  0xff   : > { %v1359_v34 = vunpack.c.l.b16 %v1276_v32  ;;  %v1360_v35 = vunpack.c.l.b16 %v1277_v33  ;;  %v1434_v36 = vunpack.c.l.b16 %v1136_v62  ;;  %v1435_v37 = vunpack.c.l.b16 %v1137_v28 }
 0x100   : > { %v1286_v38 = vpack.c.b16 %v1285_v31, %v1284_v30  ;;  %v1278_v39 = vsel %vm6382_vm4, %v1172_v25, 0  ;;  %v1279_v40 = vsel %vm6382_vm4, %v1173_v29, 0 }
 0x101   : > { %v1361_v41 = vpack.c.b16 %v1360_v35, %v1359_v34  ;;  %v1436_v42 = vpack.c.b16 %v1435_v37, %v1434_v36  ;;  %v1509_v43 = vunpack.c.l.b16 %v1278_v39  ;;  %v1510_v44 = vunpack.c.l.b16 %v1279_v40 }
 0x102   : > { %1344 = vmatmul.bf16.vlgmr.msra.gmra.mxu0 %v1286_v38 }
 0x103   : > { %1419 = vmatmul.bf16.vlgmr.msra.gmra.mxu1 %v1361_v41  ;;  %1494 = vmatmul.bf16.vlgmr.msra.gmra.mxu2 %v1436_v42  ;;  %v1511_v45 = vpack.c.b16 %v1510_v44, %v1509_v43 }
 0x105   : > { %1569 = vmatmul.bf16.vlgmr.msra.gmra.mxu3 %v1511_v45 }
 0x17f   : > { %v1345_v49 = vpop.f32.mrf.mxu0 }
 0x180   : > { %v1350_v50 = vadd.f32 %v1345_v49, %v1280_v46  ;;  %v1420_v51 = vpop.f32.mrf.mxu1 }
 0x181   : > { %v1425_v52 = vadd.f32 %v1420_v51, %v1355_v47 }
 0x182   : > { %1353 = vst.msk [vmem:[#allocation2] sm:$0xff] %vm1352_vm5, %v1350_v50 }
 0x183   : > { %1427 = vst.msk [vmem:[#allocation3] sm:$0xff] %vm1352_vm5, %v1425_v52 }
 0x186   : > { %v1495_v56 = vpop.f32.mrf.mxu2 }
 0x187   : > { %v1500_v63 = vadd.f32 %v1495_v56, %v1430_v53  ;;  %v1347_v0 = vpop.f32.mrf.mxu0 }
 0x188   : > { %v1570_v2 = vpop.f32.mrf.mxu3  ;;  %v1351_v48 = vadd.f32 %v1347_v0, %v1281_v55  ;;  %v1422_v3 = vpop.f32.mrf.mxu1 }
 0x189   : > { %1502 = vst.msk [vmem:[#allocation2 + $0x10] sm:$0xff] %vm1352_vm5, %v1500_v63  ;;  %v1575_v4 = vadd.f32 %v1570_v2, %v1505_v57  ;;  %v1426_v5 = vadd.f32 %v1422_v3, %v1356_v58 }
 0x18a   : > { %1354 = vst.msk [vmem:[#allocation2 + $0x8] sm:$0xff] %vm1352_vm5, %v1351_v48 }
 0x18b   : > { %1577 = vst.msk [vmem:[#allocation3 + $0x10] sm:$0xff] %vm1352_vm5, %v1575_v4 }
 0x18c   : > { %1428 = vst.msk [vmem:[#allocation3 + $0x8] sm:$0xff] %vm1352_vm5, %v1426_v5 }
 0x18e   : > { %v1497_v6 = vpop.f32.mrf.mxu2 }
 0x18f   : > { %v1501_v8 = vadd.f32 %v1497_v6, %v1431_v59  ;;  %1582 = sbr.rel (%p4956_p7) target bundleno = 2537 (0x9e9), region = 237 }
 0x190   : > { %v1572_v9 = vpop.f32.mrf.mxu3 }
 0x191   : > { %1503 = vst.msk [vmem:[#allocation2 + $0x18] sm:$0xff] %vm1352_vm5, %v1501_v8  ;;  %v1576_v10 = vadd.f32 %v1572_v9, %v1506_v7 }
 0x193   : > { %1578 = vst.msk [vmem:[#allocation3 + $0x18] sm:$0xff] %vm1352_vm5, %v1576_v10 }
 0x194   : > { %v1592_v11 = vld [vmem:[#allocation3 + $0x8] sm:$0xff]  ;;  %vm1636_vm6 = vcmask 122880   ;;  %v1591_v13 = vld [vmem:[#allocation3] sm:$0xff]  ;;  %v1787_v14 = vld [vmem:[#allocation3 + $0x10] sm:$0xff]  ;;  %v5628_v20 = vmov 0   ;;  %vm6451_vm7 = vcmp.eq.s32.totalorder %v6040_v60, %v6353_v1  ;;  %vm6457_vm8 = vcmp.eq.s32.totalorder %v6278_v54, %v6353_v1  ;;  %s5633_s3 = smov 112  }
 0x195   : > { %4959 = vmatpush.xpose.msk.msra.mxu0 %vm1352_vm5, %v1592_v11  ;;  %4987 = vmatpush.xpose.msk.msra.mxu2 %vm1352_vm5, %v1592_v11  ;;  %v6413_v17 = vld [vmem:[%s6020_s11] sm:$0x1]  ;;  %v6418_v19 = vld [vmem:[%s6025_s26 + $0x1] sm:$0x1]  ;;  %v1590_v23 = vld [vmem:[#allocation2 + $0x8] sm:$0xff]  ;;  %v5629_v28 = vmov 0.0  }
 0x196   : > { %v1637_v18 = vsel %vm1636_vm6, %v6413_v17, -inf  ;;  %5204 = vset.pattern.permute.xlu1 %v5628_v20  ;;  %v1837_v15 = vsel %vm1636_vm6, %v6418_v19, -inf  ;;  %v6424_v21 = vld [vmem:[%s6020_s11 + $0x1] sm:$0x1]  ;;  %v6433_v16 = vld [vmem:[%s6025_s26] sm:$0x1] }
 0x197   : > { %1638 = vmax.xlane.f32.xlu0 %v1637_v18  ;;  %v1834_v22 = vsel %vm1636_vm6, %v6424_v21, -inf  ;;  %1838 = vmax.xlane.f32.xlu2 %v1837_v15  ;;  %v1640_v25 = vsel %vm1636_vm6, %v6433_v16, -inf  ;;  %v1589_v26 = vld [vmem:[#allocation2] sm:$0xff]  ;;  %v1785_v61 = vld [vmem:[#allocation2 + $0x10] sm:$0xff]  ;;  %v6467_v60 = vsel %vm6451_vm7, 1.0, %v5629_v28  ;;  %v6471_v29 = vsel %vm6457_vm8, 1.0, %v5629_v28 }
 0x198   : > { %v1786_v24 = vld [vmem:[#allocation2 + $0x18] sm:$0xff]  ;;  %1835 = vmax.xlane.f32.xlu1 %v1834_v22  ;;  %9039 = vst [vmem:[#allocation20_spill] sm:$0xff] %v6467_v60  ;;  %v6475_v54 = vpack.i.bf16 %v6471_v29, %v6467_v60  ;;  %v5630_v1 = vmov 2   ;;  %v5631_v30 = vmov 3   ;;  %v5632_v31 = vmov 1   ;;  %s5634_s6 = smov 48  }
 0x199   : > { %4960 = vmatpush.xpose.msk.msra.mxu0 %vm1352_vm5, %v1591_v13  ;;  %4988 = vmatpush.xpose.msk.msra.mxu2 %vm1352_vm5, %v1591_v13  ;;  %9040 = vst [vmem:[#allocation21_spill] sm:$0xff] %v6471_v29  ;;  %v5635_v59 = vmov 17   ;;  %s5636_s15 = smov 32   ;;  %v5637_v18 = vmov 16   ;;  %s5643_s12 = smov 16  }
 0x19a   : > { %v1788_v12 = vld [vmem:[#allocation3 + $0x18] sm:$0xff]  ;;  %5216 = vset.pattern.permute.xlu0 %v5630_v1  ;;  %5210 = vset.pattern.permute.xlu2 %v5632_v31 }
 0x19b   : > { %4967 = vmatpush.xpose.msk.msra.mxu1 %vm1352_vm5, %v1788_v12  ;;  %4991 = vmatpush.xpose.msk.msra.mxu3 %vm1352_vm5, %v1788_v12 }
 0x19d   : > { %4961 = vmatpush.xpose.msk.msra.mxu0 %vm1352_vm5, %v1590_v23  ;;  %4989 = vmatpush.xpose.msk.msra.mxu2 %vm1352_vm5, %v1590_v23 }
 0x19f   : > { %4968 = vmatpush.xpose.msk.msra.mxu1 %vm1352_vm5, %v1787_v14  ;;  %4992 = vmatpush.xpose.msk.msra.mxu3 %vm1352_vm5, %v1787_v14 }
 0x1a0   : > { %1641 = vmax.xlane.f32.xlu0 %v1640_v25 }
 0x1a1   : > { %4962 = vmatpush.xpose.msk.msra.mxu0 %vm1352_vm5, %v1589_v26  ;;  %4990 = vmatpush.xpose.msk.msra.mxu2 %vm1352_vm5, %v1589_v26 }
 0x1a3   : > { %4969 = vmatpush.xpose.msk.msra.mxu1 %vm1352_vm5, %v1786_v24  ;;  %4993 = vmatpush.xpose.msk.msra.mxu3 %vm1352_vm5, %v1786_v24 }
 0x1a4   : > { %4963 = vmatmul.msk.f32.vlgmr.msra.gmra.mxu0 %vm1352_vm5, %v1589_v26  ;;  %4965 = vmatmul.msk.f32.vlgmr.msra.gmra.mxu2 %vm1352_vm5, %v1591_v13 }
 0x1a7   : > { %4970 = vmatpush.xpose.msk.msra.mxu1 %vm1352_vm5, %v1785_v61  ;;  %4994 = vmatpush.xpose.msk.msra.mxu3 %vm1352_vm5, %v1785_v61 }
 0x1aa   : > { %4971 = vmatmul.msk.f32.vlgmr.msra.gmra.mxu1 %vm1352_vm5, %v1785_v61  ;;  %4973 = vmatmul.msk.f32.vlgmr.msra.gmra.mxu3 %vm1352_vm5, %v1787_v14 }
 0x1ac   : > { %4964 = vmatmul.msk.f32.gmra.mxu0 %vm1352_vm5, %v1590_v23  ;;  %4966 = vmatmul.msk.f32.gmra.mxu2 %vm1352_vm5, %v1592_v11 }
 0x1af   : > { %5212 = vperm.xlu2 %5210, %v6475_v54  }
 0x1b1   : > { %5206 = vperm.xlu1 %5204, %v6475_v54  }
 0x1b2   : > { %4972 = vmatmul.msk.f32.gmra.mxu1 %vm1352_vm5, %v1786_v24  ;;  %4974 = vmatmul.msk.f32.gmra.mxu3 %vm1352_vm5, %v1788_v12 }
 0x1b4   : > { %5218 = vperm.xlu0 %5216, %v6475_v54  }
 0x1b9   : > { %5222 = vset.pattern.permute.xlu1 %v5631_v30 }
 0x1ba   : > { %5224 = vperm.xlu1 %5222, %v6475_v54  }
 0x1bc   : > { %5228 = vset.pattern.permute.xlu0 %v5628_v20 }
 0x1c2   : > { %5229 = vset.pattern.permute.xlu1 %v5628_v20 }
 0x20a   : > { %v1639_v32 = vpop.xlane.xlu0 %1638  ;;  %v1839_v33 = vpop.xlane.xlu2 %1838 }
 0x20b   : > { %v1836_v34 = vpop.xlane.xlu1 %1835 }
 0x20c   : > { %v1840_v35 = vmax.f32 %v1836_v34, %v1839_v33 }
 0x20e   : > { %5383 = vrcp.f32 %v1840_v35  ;;  %v1852_v40 = vand.u32 2147483648, %v1840_v35  ;;  %vm1846_vm9 = vweird.f32 %v1840_v35  ;;  %v1850_v42 = vand.u32 2147483647, %v1840_v35 }
 0x210   : > { %v1853_v46 = vor.u32 1.1754944e-38, %v1852_v40  ;;  %vm1851_vm12 = vcmp.eq.f32.partialorder %v1850_v42, 8.507059e+37 }
 0x213   : > { %v1642_v36 = vpop.xlane.xlu0 %1641 }
 0x214   : > { %v1643_v37 = vmax.f32 %v1639_v32, %v1642_v36  ;;  %v5384_v38 = vpop.eup %5383 }
 0x215   : > { %v1842_v39 = vmul.f32 %v5384_v38, %v1840_v35  ;;  %vm1847_vm10 = vweird.f32 %v5384_v38 }
 0x216   : > { %5385 = vrcp.f32 %v1643_v37  ;;  %vm1848_vm11 = vmor %vm1846_vm9, %vm1847_vm10  ;;  %v1655_v47 = vand.u32 2147483648, %v1643_v37  ;;  %vm1649_vm13 = vweird.f32 %v1643_v37  ;;  %v1653_v51 = vand.u32 2147483647, %v1643_v37 }
 0x217   : > { %v1843_v41 = vsub.f32 1.0, %v1842_v39 }
 0x218   : > { %v1656_v58 = vor.u32 1.1754944e-38, %v1655_v47  ;;  %vm1654_vm0 = vcmp.eq.f32.partialorder %v1653_v51, 8.507059e+37 }
 0x219   : > { %v1844_v44 = vmul.f32 %v5384_v38, %v1843_v41 }
 0x21b   : > { %v1845_v49 = vadd.f32 %v5384_v38, %v1844_v44 }
 0x21c   : > { %v5386_v43 = vpop.eup %5385 }
 0x21d   : > { %v1645_v45 = vmul.f32 %v5386_v43, %v1643_v37  ;;  %vm1650_vm14 = vweird.f32 %v5386_v43  ;;  %v1849_v52 = vsel %vm1848_vm11, %v5384_v38, %v1845_v49 }
 0x21e   : > { %v1854_v56 = vsel %vm1851_vm12, %v1853_v46, %v1849_v52  ;;  %vm1651_vm15 = vmor %vm1649_vm13, %vm1650_vm14 }
 0x21f   : > { %v1646_v50 = vsub.f32 1.0, %v1645_v45  ;;  %v1885_v63 = vmul.f32 %v6418_v19, %v1854_v56  ;;  %v6508_v7 = vmul.f32 %v6424_v21, %v1854_v56 }
 0x221   : > { %v1647_v53 = vmul.f32 %v5386_v43, %v1646_v50  ;;  %v6488_v57 = vpop.f32.mrf.mxu0  ;;  %5387 = vrsqrt.f32 %v1885_v63  ;;  %vm1893_vm1 = vcmp.eq.f32.partialorder %v1885_v63, inf  ;;  %v1896_v19 = vand.u32 2147483648, %v1885_v63 }
 0x222   : > { %9041 = vst [vmem:[#allocation22_spill] sm:$0xff] %v6488_v57  ;;  %2028 = vperm.xlu0 %5228, %v6488_v57   ;;  %1983 = vrot.lane.b32.xlu2 %v6488_v57, %s5633_s3  ;;  %vm1895_vm2 = vcmp.eq.f32.partialorder %v1885_v63, 0.0  ;;  %vm1863_vm12 = vcmp.eq.f32.partialorder %v6508_v7, inf  ;;  %vm1865_vm13 = vcmp.eq.f32.partialorder %v6508_v7, 0.0 }
 0x223   : > { %v1648_v0 = vadd.f32 %v5386_v43, %v1647_v53 }
 0x225   : > { %v1652_v2 = vsel %vm1651_vm15, %v5386_v43, %v1648_v0 }
 0x226   : > { %v1657_v48 = vsel %vm1654_vm0, %v1656_v58, %v1652_v2 }
 0x227   : > { %v6486_v55 = vpop.f32.mrf.mxu1  ;;  %v6496_v3 = vmul.f32 %v1657_v48, %v6433_v16  ;;  %v5388_v5 = vpop.eup %5387  ;;  %v5638_v16 = vmov 18   ;;  %v6533_v38 = vmul.f32 %v1657_v48, %v6413_v17  ;;  %v1866_v48 = vand.u32 2147483648, %v6508_v7 }
 0x228   : > { %2044 = vperm.xlu1 %5229, %v6486_v55   ;;  %v1887_v6 = vmul.f32 %v5388_v5, %v1885_v63  ;;  %v6511_v11 = vpop.f32.mrf.mxu2 }
 0x229   : > { %5389 = vrsqrt.f32 %v6496_v3  ;;  %v6525_v34 = vpop.f32.mrf.mxu0  ;;  %vm1696_vm6 = vcmp.eq.f32.partialorder %v6496_v3, inf  ;;  %vm1698_vm9 = vcmp.eq.f32.partialorder %v6496_v3, 0.0  ;;  %v1699_v17 = vand.u32 2147483648, %v6496_v3 }
 0x22a   : > { %2143 = vperm.xlu2 %5210, %v6486_v55   ;;  %5235 = vset.pattern.permute.xlu0 %v5635_v59  ;;  %v1888_v8 = vmul.f32 %v5388_v5, %v1887_v6  ;;  %5391 = vrsqrt.f32 %v6508_v7  ;;  %9043 = vst [vmem:[#allocation24_spill] sm:$0xff] %v6525_v34  ;;  %vm1666_vm14 = vcmp.eq.f32.partialorder %v6533_v38, inf  ;;  %vm1668_vm15 = vcmp.eq.f32.partialorder %v6533_v38, 0.0 }
 0x22c   : > { %v1889_v10 = vmul.f32 0.5, %v1888_v8 }
 0x22d   : > { %v6498_v4 = vpop.f32.mrf.mxu3 }
 0x22e   : > { %9042 = vst [vmem:[#allocation23_spill] sm:$0xff] %v6498_v4  ;;  %1999 = vrot.lane.b32.xlu0 %v6498_v4, %s5634_s6  ;;  %v1890_v13 = vsub.f32 1.5, %v1889_v10 }
 0x22f   : > { %v5390_v9 = vpop.eup %5389  ;;  %v6543_v47 = vpop.f32.mrf.mxu1 }
 0x230   : > { %5230 = vset.pattern.permute.xlu1 %v5632_v31  ;;  %v1690_v12 = vmul.f32 %v5390_v9, %v6496_v3  ;;  %v1891_v14 = vmul.f32 %v5388_v5, %v1890_v13  ;;  %v5392_v22 = vpop.eup %5391  ;;  %v6559_v2 = vpop.f32.mrf.mxu2 }
 0x231   : > { %2128 = vperm.xlu1 %5230, %v6488_v57   ;;  %v1857_v26 = vmul.f32 %v5392_v22, %v6508_v7  ;;  %9044 = vst [vmem:[#allocation25_spill] sm:$0xff] %v6559_v2 }
 0x232   : > { %5231 = vset.pattern.permute.xlu2 %v5630_v1  ;;  %v1691_v15 = vmul.f32 %v5390_v9, %v1690_v12  ;;  %v1892_v21 = vmul.f32 %v1891_v14, %v1885_v63 }
 0x233   : > { %2226 = vperm.xlu2 %5231, %v6488_v57   ;;  %v1858_v33 = vmul.f32 %v5392_v22, %v1857_v26 }
 0x234   : > { %v1894_v23 = vsel %vm1893_vm1, %v1885_v63, %v1892_v21  ;;  %v1692_v25 = vmul.f32 0.5, %v1691_v15 }
 0x235   : > { %v1897_v24 = vsel %vm1895_vm2, %v1896_v19, %v1894_v23  ;;  %v1859_v36 = vmul.f32 0.5, %v1858_v33  ;;  %v6580_v19 = vpop.f32.mrf.mxu3  ;;  %v1669_v23 = vand.u32 2147483648, %v6533_v38 }
 0x236   : > { %2173 = vperm.xlu0 %5235, %v6498_v4   ;;  %v1898_v61 = vmul.f32 %v1897_v24, %v1897_v24  ;;  %v1693_v32 = vsub.f32 1.5, %v1692_v25  ;;  %9045 = vst [vmem:[#allocation26_spill] sm:$0xff] %v6580_v19 }
 0x237   : > { %v1860_v41 = vsub.f32 1.5, %v1859_v36 }
 0x238   : > { %v1899_v28 = vadd.f32 1.0, %v1898_v61  ;;  %v1694_v35 = vmul.f32 %v5390_v9, %v1693_v32 }
 0x239   : > { %1991 = vrot.lane.b32.xlu1 %v6511_v11, %s5636_s15  ;;  %v1861_v50 = vmul.f32 %v5392_v22, %v1860_v41 }
 0x23a   : > { %5232 = vset.pattern.permute.xlu1 %v5637_v18  ;;  %5393 = vrcp.f32 %v1899_v28  ;;  %v1695_v40 = vmul.f32 %v1694_v35, %v6496_v3  ;;  %v1911_v42 = vand.u32 2147483648, %v1899_v28  ;;  %vm1905_vm3 = vweird.f32 %v1899_v28 }
 0x23b   : > { %2241 = vperm.xlu2 %5231, %v6486_v55   ;;  %v1909_v44 = vand.u32 2147483647, %v1899_v28  ;;  %5395 = vrsqrt.f32 %v6533_v38  ;;  %v1862_v63 = vmul.f32 %v1861_v50, %v6508_v7 }
 0x23c   : > { %v1912_v46 = vor.u32 1.1754944e-38, %v1911_v42  ;;  %v1697_v49 = vsel %vm1696_vm6, %v6496_v3, %v1695_v40 }
 0x23d   : > { %vm1910_vm11 = vcmp.eq.f32.partialorder %v1909_v44, 8.507059e+37  ;;  %v6550_v53 = vsel %vm1698_vm9, %v1699_v17, %v1697_v49  ;;  %v1864_v5 = vsel %vm1863_vm12, %v6508_v7, %v1862_v63 }
 0x23e   : > { %5236 = vset.pattern.permute.xlu0 %v5638_v16  ;;  %v6572_v8 = vsel %vm1865_vm13, %v1866_v48, %v1864_v5 }
 0x23f   : > { %2256 = vperm.xlu0 %5236, %v6511_v11   ;;  %v1868_v10 = vmul.f32 %v6572_v8, %v6572_v8 }
 0x240   : > { %v5394_v37 = vpop.eup %5393 }
 0x241   : > { %2060 = vperm.xlu1 %5232, %v6511_v11   ;;  %v1901_v39 = vmul.f32 %v5394_v37, %v1899_v28  ;;  %vm1906_vm4 = vweird.f32 %v5394_v37  ;;  %v5396_v58 = vpop.eup %5395  ;;  %v1869_v7 = vadd.f32 1.0, %v1868_v10 }
 0x242   : > { %vm1907_vm10 = vmor %vm1905_vm3, %vm1906_vm4  ;;  %v1660_v3 = vmul.f32 %v5396_v58, %v6533_v38 }
 0x243   : > { %5233 = vset.pattern.permute.xlu2 %v5637_v18  ;;  %v1902_v43 = vsub.f32 1.0, %v1901_v39  ;;  %vm1875_vm4 = vweird.f32 %v1869_v7  ;;  %v1881_v41 = vand.u32 2147483648, %v1869_v7 }
 0x244   : > { %2075 = vperm.xlu2 %5233, %v6498_v4   ;;  %v1661_v9 = vmul.f32 %v5396_v58, %v1660_v3 }
 0x245   : > { %v1903_v45 = vmul.f32 %v5394_v37, %v1902_v43  ;;  %v1882_v44 = vor.u32 1.1754944e-38, %v1881_v41 }
 0x246   : > { %v1662_v12 = vmul.f32 0.5, %v1661_v9 }
 0x247   : > { %1985 = vrot.lane.b32.xlu0 %v6525_v34, %s5633_s3  ;;  %v1904_v51 = vadd.f32 %v5394_v37, %v1903_v45 }
 0x248   : > { %5239 = vset.pattern.permute.xlu0 %v5632_v31 }
 0x249   : > { %5237 = vset.pattern.permute.xlu1 %v5638_v16  ;;  %v1908_v52 = vsel %vm1907_vm10, %v5394_v37, %v1904_v51 }
 0x24a   : > { %2271 = vperm.xlu1 %5237, %v6498_v4   ;;  %v6552_v56 = vsel %vm1910_vm11, %v1912_v46, %v1908_v52  ;;  %vm1725_vm11 = vcmask 130048  }
 0x24b   : > { %v6556_v0 = vmul.f32 %v6552_v56, %v1897_v24  ;;  %v6617_v48 = vperm.slane %v6552_v56, 0 }
 0x24c   : > { %5234 = vset.pattern.permute.xlu2 %v5635_v59 }
 0x24d   : > { %2158 = vperm.xlu2 %5234, %v6511_v11   ;;  %9047 = vst [vmem:[#allocation28_spill] sm:$0xff] %v6617_v48 }
 0x24f   : > { %2132 = vperm.xlu0 %5239, %v6525_v34  }
 0x252   : > { %5240 = vset.pattern.permute.xlu1 %v5632_v31  ;;  %v1701_v31 = vmul.f32 %v6550_v53, %v6550_v53 }
 0x253   : > { %2147 = vperm.xlu1 %5240, %v6543_v47  }
 0x254   : > { %v1702_v6 = vadd.f32 1.0, %v1701_v31 }
 0x255   : > { %5238 = vset.pattern.permute.xlu2 %v5628_v20  ;;  %v1663_v20 = vsub.f32 1.5, %v1662_v12 }
 0x256   : > { %2032 = vperm.xlu2 %5238, %v6525_v34   ;;  %5397 = vrcp.f32 %v1702_v6  ;;  %vm1708_vm0 = vweird.f32 %v1702_v6  ;;  %v1714_v61 = vand.u32 2147483648, %v1702_v6  ;;  %v1712_v32 = vand.u32 2147483647, %v1702_v6 }
 0x257   : > { %5242 = vset.pattern.permute.xlu0 %v5637_v18  ;;  %5399 = vrcp.f32 %v1869_v7  ;;  %v1664_v14 = vmul.f32 %v5396_v58, %v1663_v20 }
 0x258   : > { %2064 = vperm.xlu0 %5242, %v6559_v2   ;;  %v1715_v36 = vor.u32 1.1754944e-38, %v1714_v61  ;;  %vm1713_vm3 = vcmp.eq.f32.partialorder %v1712_v32, 8.507059e+37 }
 0x259   : > { %v1665_v21 = vmul.f32 %v1664_v14, %v6533_v38 }
 0x25b   : > { %5241 = vset.pattern.permute.xlu1 %v5630_v1  ;;  %v1667_v26 = vsel %vm1666_vm14, %v6533_v38, %v1665_v21  ;;  %v1954_v21 = vsel %vm6457_vm8, %v6617_v48, 0.0 }
 0x25c   : > { %2230 = vperm.xlu1 %5241, %v6525_v34   ;;  %v5398_v13 = vpop.eup %5397  ;;  %v6592_v28 = vsel %vm1668_vm15, %v1669_v23, %v1667_v26  ;;  %v1958_v23 = vsel %vm1725_vm11, %v1954_v21, 0.0  ;;  %v6648_v26 = vpop.permute.xlu1 %5206 }
 0x25d   : > { %v1704_v1 = vmul.f32 %v5398_v13, %v1702_v6  ;;  %v5400_v22 = vpop.eup %5399  ;;  %vm1709_vm1 = vweird.f32 %v5398_v13  ;;  %v1671_v35 = vmul.f32 %v6592_v28, %v6592_v28  ;;  %v6780_v60 = vunpack.i.l.bf16 %v6648_v26 }
 0x25e   : > { %2049 = vperm.xlu2 %5238, %v6543_v47   ;;  %v1871_v25 = vmul.f32 %v5400_v22, %v1869_v7  ;;  %vm1710_vm2 = vmor %vm1708_vm0, %vm1709_vm1  ;;  %vm1876_vm6 = vweird.f32 %v5400_v22 }
 0x25f   : > { %v1705_v15 = vsub.f32 1.0, %v1704_v1  ;;  %v1672_v39 = vadd.f32 1.0, %v1671_v35  ;;  %vm1877_vm9 = vmor %vm1875_vm4, %vm1876_vm6 }
 0x260   : > { %5247 = vset.pattern.permute.xlu0 %v5631_v30  ;;  %v1872_v33 = vsub.f32 1.0, %v1871_v25 }
 0x261   : > { %v1706_v24 = vmul.f32 %v5398_v13, %v1705_v15  ;;  %5401 = vrcp.f32 %v1672_v39  ;;  %vm1678_vm12 = vweird.f32 %v1672_v39  ;;  %v1684_v6 = vand.u32 2147483648, %v1672_v39 }
 0x262   : > { %v1873_v38 = vmul.f32 %v5400_v22, %v1872_v33  ;;  %v1682_v12 = vand.u32 2147483647, %v1672_v39 }
 0x263   : > { %v1685_v56 = vor.u32 1.1754944e-38, %v1684_v6  ;;  %v8791_v6 = vmov 20  }
 0x264   : > { %2245 = vperm.xlu1 %5241, %v6543_v47   ;;  %v1874_v43 = vadd.f32 %v5400_v22, %v1873_v38  ;;  %vm1683_vm15 = vcmp.eq.f32.partialorder %v1682_v12, 8.507059e+37  ;;  %v6661_v35 = vpop.permute.xlu1 %5224 }
 0x266   : > { %1993 = vrot.lane.b32.xlu2 %v6559_v2, %s5636_s15  ;;  %v1878_v17 = vsel %vm1877_vm9, %v5400_v22, %v1874_v43  ;;  %v6639_v22 = vpop.permute.xlu2 %5212 }
 0x267   : > { %5245 = vset.pattern.permute.xlu2 %v5635_v59  ;;  %v5402_v50 = vpop.eup %5401 }
 0x268   : > { %v1674_v52 = vmul.f32 %v5402_v50, %v1672_v39  ;;  %vm1679_vm13 = vweird.f32 %v5402_v50 }
 0x269   : > { %vm1680_vm14 = vmor %vm1678_vm12, %vm1679_vm13 }
 0x26a   : > { %v1675_v31 = vsub.f32 1.0, %v1674_v52 }
 0x26c   : > { %5243 = vset.pattern.permute.xlu1 %v5637_v18  ;;  %v1707_v18 = vadd.f32 %v5398_v13, %v1706_v24  ;;  %v1676_v3 = vmul.f32 %v5402_v50, %v1675_v31  ;;  %v6697_v31 = vpop.permute.xlu0 %5218 }
 0x26d   : > { %2079 = vperm.xlu1 %5243, %v6580_v19  }
 0x26e   : > { %2001 = vrot.lane.b32.xlu2 %v6580_v19, %s5634_s6  ;;  %v1711_v37 = vsel %vm1710_vm2, %v5398_v13, %v1707_v18  ;;  %v1677_v10 = vadd.f32 %v5402_v50, %v1676_v3 }
 0x26f   : > { %v1716_v40 = vsel %vm1713_vm3, %v1715_v36, %v1711_v37 }
 0x270   : > { %v6601_v42 = vperm.slane %v1716_v40, 0  ;;  %v1719_v5 = vmul.f32 %v1716_v40, %v6550_v53  ;;  %v1681_v20 = vsel %vm1680_vm14, %v5402_v50, %v1677_v10 }
 0x271   : > { %v1686_v1 = vsel %vm1683_vm15, %v1685_v56, %v1681_v20  ;;  %v8789_v56 = vmov 5  }
 0x272   : > { %v1758_v45 = vsel %vm6457_vm8, %v6601_v42, 0.0  ;;  %v6659_v33 = vperm.slane %v1686_v1, 0 }
 0x273   : > { %v1762_v46 = vsel %vm1725_vm11, %v1758_v45, 0.0 }
 0x274   : > { %9051 = vst [vmem:[#allocation32_spill] sm:$0xff] %v6659_v33  ;;  %v1735_v37 = vsel %vm6451_vm7, %v6659_v33, 0.0 }
 0x275   : > { %5244 = vset.pattern.permute.xlu1 %v5635_v59  ;;  %v1879_v59 = vand.u32 2147483647, %v1869_v7  ;;  %v6625_v7 = vperm.slane %v1719_v5, 0  ;;  %v1737_v39 = vsel %vm1725_vm11, %v1735_v37, 0.0 }
 0x276   : > { %2162 = vperm.xlu1 %5244, %v6559_v2   ;;  %2177 = vperm.xlu2 %5245, %v6580_v19  }
 0x277   : > { %vm1880_vm10 = vcmp.eq.f32.partialorder %v1879_v59, 8.507059e+37  ;;  %9048 = vst [vmem:[#allocation29_spill] sm:$0xff] %v6625_v7  ;;  %v1746_v53 = vsel %vm6451_vm7, %v6625_v7, 0.0  ;;  %v1747_v40 = vsel %vm6457_vm8, %v6625_v7, 0.0  ;;  %v1736_v59 = vsel %vm6457_vm8, %v6659_v33, 0.0 }
 0x278   : > { %v1883_v49 = vsel %vm1880_vm10, %v1882_v44, %v1878_v17  ;;  %v1748_v14 = vsel %vm1725_vm11, %v1746_v53, 0.0  ;;  %v1751_v41 = vsel %vm1725_vm11, %v1747_v40, 0.0  ;;  %v1740_v45 = vsel %vm1725_vm11, %v1736_v59, 0.0 }
 0x279   : > { %v6609_v51 = vperm.slane %v1883_v49, 0  ;;  %v1915_v13 = vmul.f32 %v1883_v49, %v6572_v8  ;;  %v5639_v17 = vmov 19  }
 0x27b   : > { %9046 = vst [vmem:[#allocation27_spill] sm:$0xff] %v6609_v51  ;;  %v1932_v58 = vsel %vm6457_vm8, %v6609_v51, 0.0  ;;  %v6633_v15 = vperm.slane %v1915_v13, 0 }
 0x27c   : > { %v1936_v63 = vsel %vm1725_vm11, %v1932_v58, 0.0  ;;  %v6654_v18 = vpop.permute.xlu2 %1983  ;;  %v8793_v58 = vmov 4  }
 0x27d   : > { %9049 = vst [vmem:[#allocation30_spill] sm:$0xff] %v6633_v15  ;;  %v1920_v8 = vsel %vm6451_vm7, %v6633_v15, 0.0 }
 0x27e   : > { %5249 = vset.pattern.permute.xlu1 %v5631_v30  ;;  %5246 = vset.pattern.permute.xlu2 %v5638_v16  ;;  %v1953_v16 = vsel %vm6451_vm7, %v6617_v48, 0.0  ;;  %v1922_v25 = vsel %vm1725_vm11, %v1920_v8, 0.0  ;;  %9050 = vst [vmem:[#allocation31_spill] sm:$0xff] %v6654_v18 }
 0x27f   : > { %2260 = vperm.xlu2 %5246, %v6559_v2   ;;  %v1955_v9 = vsel %vm1725_vm11, %v1953_v16, 0.0 }
 0x282   : > { %1763 = vadd.xlane.f32.xlu0 %v1762_v46  ;;  %v1757_v46 = vsel %vm6451_vm7, %v6601_v42, 0.0 }
 0x283   : > { %v1759_v50 = vsel %vm1725_vm11, %v1757_v46, 0.0 }
 0x284   : > { %v6667_v38 = vpop.permute.xlu2 %2143 }
 0x287   : > { %2275 = vperm.xlu2 %5246, %v6580_v19  }
 0x28a   : > { %1937 = vadd.xlane.f32.xlu0 %v1936_v63  ;;  %v1931_v63 = vsel %vm6451_vm7, %v6609_v51, 0.0 }
 0x28b   : > { %v1933_v16 = vsel %vm1725_vm11, %v1931_v63, 0.0 }
 0x28d   : > { %v6680_v44 = vpop.permute.xlu2 %2226 }
 0x28f   : > { %5248 = vset.pattern.permute.xlu2 %v5631_v30  ;;  %v1718_v30 = vmul.f32 %v1686_v1, %v6592_v28 }
 0x291   : > { %v6645_v24 = vperm.slane %v1718_v30, 0 }
 0x292   : > { %1956 = vadd.xlane.f32.xlu0 %v1955_v9 }
 0x293   : > { %v1723_v61 = vsel %vm6451_vm7, %v6645_v24, 0.0  ;;  %v1724_v32 = vsel %vm6457_vm8, %v6645_v24, 0.0 }
 0x294   : > { %v1726_v28 = vsel %vm1725_vm11, %v1723_v61, 0.0  ;;  %v1729_v36 = vsel %vm1725_vm11, %v1724_v32, 0.0  ;;  %v6707_v9 = vpop.permute.xlu0 %2028 }
 0x295   : > { %v6690_v52 = vpop.permute.xlu2 %2241 }
 0x29a   : > { %1749 = vadd.xlane.f32.xlu0 %v1748_v14  ;;  %v6675_v43 = vpop.permute.xlu1 %2044 }
 0x29e   : > { %v6702_v5 = vpop.permute.xlu2 %2075 }
 0x2a0   : > { %1959 = vadd.xlane.f32.xlu1 %v1958_v23  ;;  %v6714_v20 = vpop.permute.xlu0 %1999 }
 0x2a1   : > { %9053 = vst [vmem:[#allocation34_spill] sm:$0xff] %v6714_v20 }
 0x2a2   : > { %1923 = vadd.xlane.f32.xlu0 %v1922_v25 }
 0x2a3   : > { %v6687_v49 = vpop.permute.xlu1 %2128 }
 0x2a7   : > { %v6709_v12 = vpop.permute.xlu2 %2158 }
 0x2a8   : > { %1727 = vadd.xlane.f32.xlu1 %v1726_v28  ;;  %v6721_v1 = vpop.permute.xlu0 %2173  ;;  %v1921_v28 = vsel %vm6457_vm8, %v6633_v15, 0.0 }
 0x2ab   : > { %v6699_v3 = vpop.permute.xlu1 %1991 }
 0x2ac   : > { %9052 = vst [vmem:[#allocation33_spill] sm:$0xff] %v6699_v3  ;;  %v9064_v3 = vmov 5  }
 0x2b0   : > { %1730 = vadd.xlane.f32.xlu1 %v1729_v36  ;;  %1738 = vadd.xlane.f32.xlu2 %v1737_v39  ;;  %v6718_v13 = vpop.permute.xlu2 %2032  ;;  %v1925_v36 = vsel %vm1725_vm11, %v1921_v28, 0.0  ;;  %v6747_v39 = vperm.slane %v6556_v0, 0 }
 0x2b1   : > { %v6728_v30 = vpop.permute.xlu0 %2256 }
 0x2b2   : > { %9057 = vst [vmem:[#allocation38_spill] sm:$0xff] %v6747_v39 }
 0x2b3   : > { %v2061_v10 = vpop.permute.xlu1 %2060 }
 0x2b6   : > { %2324 = vperm.xlu0 %5247, %v6488_v57  }
 0x2b8   : > { %1752 = vadd.xlane.f32.xlu1 %v1751_v41  ;;  %1741 = vadd.xlane.f32.xlu2 %v1740_v45  ;;  %v6726_v21 = vpop.permute.xlu2 %2049  ;;  %v1942_v41 = vsel %vm6451_vm7, %v6747_v39, 0.0  ;;  %vm2009_vm7 = vcmask 392192  }
 0x2b9   : > { %v6734_v25 = vpop.permute.xlu0 %1985  ;;  %v1944_v59 = vsel %vm1725_vm11, %v1942_v41, 0.0 }
 0x2ba   : > { %9055 = vst [vmem:[#allocation36_spill] sm:$0xff] %v6734_v25  ;;  %v9063_v25 = vmov 20  }
 0x2bc   : > { %v6716_v53 = vpop.permute.xlu1 %2271 }
 0x2be   : > { %5251 = vset.pattern.permute.xlu0 %v5639_v17 }
 0x2bf   : > { %2358 = vperm.xlu0 %5251, %v6559_v2  }
 0x2c0   : > { %1760 = vadd.xlane.f32.xlu2 %v1759_v50  ;;  %v6732_v8 = vpop.permute.xlu2 %1993  ;;  %v1943_v50 = vsel %vm6457_vm8, %v6747_v39, 0.0 }
 0x2c1   : > { %9054 = vst [vmem:[#allocation35_spill] sm:$0xff] %v6732_v8  ;;  %v6744_v37 = vpop.permute.xlu0 %2132  ;;  %v1947_v0 = vsel %vm1725_vm11, %v1943_v50, 0.0 }
 0x2c5   : > { %v6723_v14 = vpop.permute.xlu1 %2147 }
 0x2c7   : > { %5260 = vset.pattern.permute.xlu0 %v8793_v58 }
 0x2c8   : > { %2426 = vperm.xlu0 %5260, %v6525_v34   ;;  %1934 = vadd.xlane.f32.xlu2 %v1933_v16  ;;  %v6741_v32 = vpop.permute.xlu2 %2001 }
 0x2c9   : > { %9056 = vst [vmem:[#allocation37_spill] sm:$0xff] %v6741_v32 }
 0x2ce   : > { %v6730_v23 = vpop.permute.xlu1 %2230 }
 0x2d0   : > { %5263 = vset.pattern.permute.xlu0 %v8791_v6  ;;  %v6753_v45 = vpop.permute.xlu2 %2177 }
 0x2d1   : > { %2339 = vperm.xlu1 %5249, %v6486_v55   ;;  %2467 = vperm.xlu0 %5263, %v6498_v4  }
 0x2d6   : > { %v6736_v61 = vpop.permute.xlu1 %2245 }
 0x2d9   : > { %5250 = vset.pattern.permute.xlu1 %v5639_v17  ;;  %5264 = vset.pattern.permute.xlu0 %v8789_v56  ;;  %v6763_v16 = vpop.permute.xlu2 %2260 }
 0x2da   : > { %2354 = vperm.xlu1 %5250, %v6511_v11   ;;  %5266 = vperm.xlu0 %5264, %v6475_v54  }
 0x2df   : > { %v2080_v40 = vpop.permute.xlu1 %2079 }
 0x2e0   : > { %2328 = vperm.xlu2 %5248, %v6525_v34  }
 0x2e8   : > { %2343 = vperm.xlu2 %5248, %v6543_v47   ;;  %v2163_v46 = vpop.permute.xlu1 %2162 }
 0x2f0   : > { %5252 = vset.pattern.permute.xlu2 %v5639_v17  ;;  %v6755_v17 = vpop.permute.xlu0 %2064 }
 0x2f8   : > { %v6760_v63 = vpop.xlane.xlu0 %1763 }
 0x2f9   : > { %9058 = vst [vmem:[#allocation39_spill] sm:$0xff] %v6760_v63 }
 0x300   : > { %v6767_v28 = vpop.xlane.xlu0 %1937 }
 0x301   : > { %9060 = vst [vmem:[#allocation41_spill] sm:$0xff] %v6767_v28 }
 0x304   : > { %1926 = vadd.xlane.f32.xlu1 %v1925_v36  ;;  %v6769_v36 = vpop.permute.xlu2 %2275 }
 0x308   : > { %v1957_v62 = vpop.xlane.xlu0 %1956 }
 0x30c   : > { %1945 = vadd.xlane.f32.xlu1 %v1944_v59 }
 0x311   : > { %1948 = vadd.xlane.f32.xlu2 %v1947_v0  ;;  %v9061_v0 = vmov 4  }
 0x313   : > { %v6765_v27 = vpop.xlane.xlu1 %1959 }
 0x314   : > { %9059 = vst [vmem:[#allocation40_spill] sm:$0xff] %v6765_v27 }
 0x31b   : > { %v1728_v41 = vpop.xlane.xlu1 %1727 }
 0x31c   : > { %v1775_v59 = vsub.f32 %v1728_v41, %v6625_v7 }
 0x31e   : > { %v1777_v58 = vmul.f32 %v1775_v59, %v1775_v59 }
 0x323   : > { %v1739_v56 = vpop.xlane.xlu2 %1738 }
 0x324   : > { %v1779_v6 = vsub.f32 %v1739_v56, %v6601_v42 }
 0x325   : > { %2373 = vperm.xlu1 %5250, %v6580_v19  }
 0x326   : > { %v1781_v50 = vmul.f32 %v1779_v6, %v1779_v6  ;;  %v6788_v6 = vpop.xlane.xlu0 %1749 }
 0x328   : > { %v6774_v29 = vadd.f32 %v1781_v50, %v1777_v58 }
 0x329   : > { %2369 = vperm.xlu2 %5252, %v6498_v4  }
 0x32a   : > { %v8799_v32 = vperm.slane %v6774_v29, 0 }
 0x32b   : > { %v6783_v41 = vpop.xlane.xlu2 %1741 }
 0x32c   : > { %9062 = vst [vmem:[#allocation42_spill] sm:$0xff] %v6783_v41  ;;  %v2055_v56 = vmul.f32 %v6780_v60, %v8799_v32  ;;  %v9068_v41 = vperm.slane %v6774_v29, 0 }
 0x32d   : > { %5259 = vset.pattern.permute.xlu1 %v9061_v0 }
 0x32e   : > { %2422 = vperm.xlu1 %5259, %v6488_v57   ;;  %v2057_v58 = vmul.f32 100.0, %v2055_v56  ;;  %v1924_v8 = vpop.xlane.xlu0 %1923 }
 0x32f   : > { %v1971_v20 = vsub.f32 %v1924_v8, %v6747_v39 }
 0x330   : > { %v2067_v59 = vadd.f32 %v2061_v10, %v2057_v58 }
 0x331   : > { %5253 = vset.pattern.permute.xlu2 %v9061_v0  ;;  %v1973_v58 = vmul.f32 %v1971_v20, %v1971_v20  ;;  %v8800_v20 = vperm.slane %v6774_v29, 1 }
 0x332   : > { %5255 = vperm.xlu2 %5253, %v6475_v54   ;;  %2094 = vrot.lane.b32.xlu0 %v2067_v59, %s5636_s15  ;;  %v6804_v59 = vunpack.i.h.bf16 %v6648_v26 }
 0x333   : > { %v6794_v50 = vpop.xlane.xlu2 %1760 }
 0x336   : > { %2441 = vperm.xlu1 %5259, %v6543_v47  }
 0x33a   : > { %2437 = vperm.xlu2 %5253, %v6486_v55  }
 0x33b   : > { %v1935_v10 = vpop.xlane.xlu2 %1934 }
 0x33c   : > { %v1975_v56 = vsub.f32 %v1935_v10, %v6617_v48  ;;  %v6814_v10 = vunpack.i.h.bf16 %v6639_v22 }
 0x33e   : > { %5262 = vset.pattern.permute.xlu1 %v9063_v25  ;;  %v1977_v0 = vmul.f32 %v1975_v56, %v1975_v56 }
 0x33f   : > { %2456 = vperm.xlu1 %5262, %v6559_v2  }
 0x340   : > { %v6801_v32 = vadd.f32 %v1977_v0, %v1973_v58  ;;  %v2154_v58 = vmul.f32 %v6814_v10, %v8800_v20  ;;  %v6821_v0 = vpop.xlane.xlu1 %1730 }
 0x341   : > { %9065 = vst [vmem:[#allocation43_spill] sm:$0xff] %v6821_v0 }
 0x342   : > { %5261 = vset.pattern.permute.xlu2 %v9063_v25  ;;  %v2069_v8 = vperm.slane %v6801_v32, 0  ;;  %v2156_v25 = vmul.f32 100.0, %v2154_v58 }
 0x343   : > { %2452 = vperm.xlu2 %5261, %v6511_v11   ;;  %v6833_v28 = vpop.permute.xlu2 %2328 }
 0x344   : > { %v2071_v18 = vmul.f32 %v6804_v59, %v2069_v8  ;;  %v2166_v63 = vadd.f32 %v2163_v46, %v2156_v25  ;;  %v2070_v27 = vmul.f32 %v6780_v60, %v2069_v8 }
 0x346   : > { %v2073_v56 = vmul.f32 100.0, %v2071_v18 }
 0x347   : > { %5271 = vset.pattern.permute.xlu1 %v9064_v3 }
 0x348   : > { %2524 = vperm.xlu1 %5271, %v6525_v34   ;;  %v2083_v26 = vadd.f32 %v2080_v40, %v2073_v56  ;;  %v6826_v18 = vpop.xlane.xlu1 %1752 }
 0x349   : > { %9066 = vst [vmem:[#allocation44_spill] sm:$0xff] %v6826_v18 }
 0x34a   : > { %2104 = vrot.lane.b32.xlu0 %v2083_v26, %s5634_s6  ;;  %v1965_v26 = vsub.f32 %v1957_v62, %v6609_v51 }
 0x34b   : > { %2471 = vperm.xlu2 %5261, %v6580_v19  }
 0x34c   : > { %v1967_v25 = vmul.f32 %v1965_v26, %v1965_v26  ;;  %v2265_v26 = vperm.slane %v6801_v32, 2 }
 0x350   : > { %v6828_v40 = vpop.permute.xlu1 %2339 }
 0x352   : > { %2194 = vrot.lane.b32.xlu0 %v2166_v63, %s5636_s15 }
 0x353   : > { %5270 = vset.pattern.permute.xlu2 %v9064_v3  ;;  %v6839_v3 = vunpack.i.h.bf16 %v6697_v31 }
 0x354   : > { %2520 = vperm.xlu2 %5270, %v6488_v57  }
 0x358   : > { %v2355_v56 = vpop.permute.xlu1 %2354 }
 0x377   : > { %v6830_v20 = vpop.xlane.xlu1 %1926 }
 0x378   : > { %9067 = vst [vmem:[#allocation45_spill] sm:$0xff] %v6830_v20 }
 0x37f   : > { %v1946_v58 = vpop.xlane.xlu1 %1945 }
 0x380   : > { %v1961_v46 = vsub.f32 %v1946_v58, %v6633_v15  ;;  %v6849_v58 = vpop.permute.xlu2 %2343 }
 0x382   : > { %v1963_v63 = vmul.f32 %v1961_v46, %v1961_v46  ;;  %v6852_v46 = vunpack.i.l.bf16 %v6697_v31  ;;  %v2056_v31 = vmul.f32 %v6804_v59, %v9068_v41  ;;  %v6875_v41 = vunpack.i.l.bf16 %v6661_v35 }
 0x384   : > { %v6836_v48 = vadd.f32 %v1967_v25, %v1963_v63 }
 0x386   : > { %v2037_v18 = vperm.slane %v6836_v48, 0  ;;  %v8806_v39 = vperm.slane %v6836_v48, 2 }
 0x388   : > { %v2039_v20 = vmul.f32 %v6804_v59, %v2037_v18  ;;  %v2237_v62 = vmul.f32 %v6839_v3, %v8806_v39  ;;  %v2038_v0 = vmul.f32 %v6780_v60, %v2037_v18  ;;  %v2266_v18 = vmul.f32 %v6852_v46, %v2265_v26 }
 0x38a   : > { %v2041_v25 = vmul.f32 100.0, %v2039_v20  ;;  %v2239_v63 = vmul.f32 100.0, %v2237_v62  ;;  %v2040_v7 = vmul.f32 100.0, %v2038_v0  ;;  %v2268_v8 = vmul.f32 100.0, %v2266_v18 }
 0x38b   : > { %v6871_v20 = vunpack.i.l.bf16 %v6639_v22  ;;  %v2348_v0 = vperm.slane %v6774_v29, 3 }
 0x38c   : > { %v2053_v51 = vadd.f32 %v6726_v21, %v2041_v25  ;;  %v2249_v15 = vadd.f32 %v6736_v61, %v2239_v63  ;;  %v2052_v39 = vadd.f32 %v6675_v43, %v2040_v7  ;;  %v2072_v21 = vmul.f32 100.0, %v2070_v27  ;;  %v6868_v7 = vpop.xlane.xlu2 %1948 }
 0x38d   : > { %v2137_v61 = vperm.slane %v6836_v48, 1  ;;  %v2058_v43 = vmul.f32 100.0, %v2056_v31  ;;  %v2349_v22 = vmul.f32 %v6875_v41, %v2348_v0 }
 0x38e   : > { %2088 = vrot.lane.b32.xlu1 %v2053_v51, %s5643_s12  ;;  %2284 = vrot.lane.b32.xlu0 %v2249_v15, %s5643_s12  ;;  %v2082_v51 = vadd.f32 %v6702_v5, %v2072_v21  ;;  %v2278_v15 = vadd.f32 %v6716_v53, %v2268_v8  ;;  %v2167_v53 = vperm.slane %v6801_v32, 1  ;;  %v6893_v21 = vunpack.i.h.bf16 %v6661_v35 }
 0x38f   : > { %2086 = vrot.lane.b32.xlu2 %v2052_v39, %s5643_s12  ;;  %v2138_v39 = vmul.f32 %v6871_v20, %v2137_v61  ;;  %v2068_v27 = vadd.f32 %v6755_v17, %v2058_v43  ;;  %v2139_v62 = vmul.f32 %v6814_v10, %v2137_v61  ;;  %v2351_v18 = vmul.f32 100.0, %v2349_v22 }
 0x390   : > { %v2363_v17 = vperm.slane %v6801_v32, 3  ;;  %v9069_v43 = vperm.slane %v6774_v29, 1  ;;  %v2250_v22 = vperm.slane %v6774_v29, 2 }
 0x391   : > { %v2140_v5 = vmul.f32 100.0, %v2138_v39  ;;  %v2141_v63 = vmul.f32 100.0, %v2139_v62  ;;  %v2361_v8 = vadd.f32 %v2355_v56, %v2351_v18  ;;  %v2169_v18 = vmul.f32 %v6814_v10, %v2167_v53 }
 0x392   : > { %v2365_v62 = vmul.f32 %v6893_v21, %v2363_v17 }
 0x393   : > { %v2150_v61 = vadd.f32 %v6667_v38, %v2140_v5  ;;  %v2151_v39 = vadd.f32 %v6723_v14, %v2141_v63 }
 0x394   : > { %v6890_v31 = vpop.permute.xlu2 %2369  ;;  %v2367_v5 = vmul.f32 100.0, %v2365_v62 }
 0x396   : > { %2102 = vrot.lane.b32.xlu1 %v2082_v51, %s5634_s6  ;;  %2298 = vrot.lane.b32.xlu0 %v2278_v15, %s5634_s6  ;;  %v2153_v51 = vmul.f32 %v6871_v20, %v9069_v43  ;;  %v8807_v15 = vmov 21  }
 0x397   : > { %2096 = vrot.lane.b32.xlu2 %v2068_v27, %s5636_s15  ;;  %v2374_v25 = vpop.permute.xlu1 %2373  ;;  %5272 = vset.pattern.permute.xlu0 %v8807_v15  ;;  %v2168_v27 = vmul.f32 %v6871_v20, %v2167_v53 }
 0x398   : > { %v2155_v38 = vmul.f32 100.0, %v2153_v51  ;;  %v2377_v14 = vadd.f32 %v2374_v25, %v2367_v5 }
 0x399   : > { %v2170_v56 = vmul.f32 100.0, %v2168_v27 }
 0x39a   : > { %v2165_v63 = vadd.f32 %v6709_v12, %v2155_v38  ;;  %v2446_v12 = vperm.slane %v6774_v29, 4 }
 0x39b   : > { %v2180_v15 = vadd.f32 %v6721_v1, %v2170_v56  ;;  %v9070_v1 = vperm.slane %v6836_v48, 2 }
 0x39c   : > { %v5256_v43 = vpop.permute.xlu2 %5255 }
 0x39d   : > { %v2236_v62 = vmul.f32 %v6852_v46, %v9070_v1 }
 0x39e   : > { %2184 = vrot.lane.b32.xlu1 %v2150_v61, %s5643_s12  ;;  %2388 = vrot.lane.b32.xlu0 %v2361_v8, %s5636_s15  ;;  %v2251_v61 = vmul.f32 %v6852_v46, %v2250_v22  ;;  %v6918_v8 = vunpack.i.h.bf16 %v5256_v43 }
 0x39f   : > { %2186 = vrot.lane.b32.xlu2 %v2151_v39, %s5643_s12  ;;  %v2171_v39 = vmul.f32 100.0, %v2169_v18  ;;  %v2238_v5 = vmul.f32 100.0, %v2236_v62 }
 0x3a0   : > { %v6908_v35 = vpop.permute.xlu1 %2422  ;;  %v2253_v25 = vmul.f32 100.0, %v2251_v61  ;;  %v2448_v27 = vmul.f32 %v6918_v8, %v2446_v12 }
 0x3a1   : > { %v2181_v53 = vadd.f32 %v6753_v45, %v2171_v39  ;;  %v2248_v61 = vadd.f32 %v6690_v52, %v2238_v5 }
 0x3a2   : > { %v2263_v38 = vadd.f32 %v6728_v30, %v2253_v25  ;;  %v2450_v56 = vmul.f32 100.0, %v2448_v27  ;;  %v2252_v30 = vmul.f32 %v6839_v3, %v2250_v22  ;;  %v6938_v25 = vpop.permute.xlu0 %2324 }
 0x3a6   : > { %2192 = vrot.lane.b32.xlu1 %v2165_v63, %s5636_s15  ;;  %2398 = vrot.lane.b32.xlu0 %v2377_v14, %s5634_s6  ;;  %v2333_v63 = vperm.slane %v6836_v48, 3 }
 0x3a7   : > { %2200 = vrot.lane.b32.xlu2 %v2180_v15, %s5634_s6  ;;  %v2267_v15 = vmul.f32 %v6839_v3, %v2265_v26 }
 0x3a8   : > { %v2442_v51 = vpop.permute.xlu1 %2441  ;;  %v2334_v26 = vmul.f32 %v6875_v41, %v2333_v63  ;;  %v2335_v52 = vmul.f32 %v6893_v21, %v2333_v63 }
 0x3a9   : > { %v2269_v45 = vmul.f32 100.0, %v2267_v15 }
 0x3aa   : > { %v2336_v27 = vmul.f32 100.0, %v2334_v26  ;;  %v2359_v62 = vpop.permute.xlu0 %2358 }
 0x3ab   : > { %v2279_v39 = vadd.f32 %v6769_v36, %v2269_v45  ;;  %v2350_v36 = vmul.f32 %v6893_v21, %v2348_v0  ;;  %v2364_v45 = vmul.f32 %v6875_v41, %v2363_v17  ;;  %v6959_v0 = vunpack.i.l.bf16 %v5256_v43 }
 0x3ac   : > { %v2346_v22 = vadd.f32 %v6828_v40, %v2336_v27 }
 0x3ad   : > { %v2352_v15 = vmul.f32 100.0, %v2350_v36 }
 0x3ae   : > { %2202 = vrot.lane.b32.xlu1 %v2181_v53, %s5634_s6  ;;  %v2254_v53 = vmul.f32 100.0, %v2252_v30 }
 0x3af   : > { %2290 = vrot.lane.b32.xlu2 %v2263_v38, %s5636_s15  ;;  %v2337_v38 = vmul.f32 100.0, %v2335_v52 }
 0x3b0   : > { %v2264_v1 = vadd.f32 %v6763_v16, %v2254_v53  ;;  %v2431_v16 = vperm.slane %v6836_v48, 4 }
 0x3b1   : > { %v2457_v14 = vpop.permute.xlu1 %2456  ;;  %v2347_v5 = vadd.f32 %v6849_v58, %v2337_v38  ;;  %v2461_v58 = vperm.slane %v6801_v32, 4 }
 0x3b2   : > { %v2460_v18 = vadd.f32 %v2457_v14, %v2450_v56  ;;  %v2438_v56 = vpop.permute.xlu2 %2437  ;;  %v2362_v14 = vadd.f32 %v2359_v62, %v2352_v15  ;;  %v2433_v40 = vmul.f32 %v6918_v8, %v2431_v16  ;;  %v6961_v63 = vpop.permute.xlu0 %2426  ;;  %v2432_v53 = vmul.f32 %v6959_v0, %v2431_v16 }
 0x3b3   : > { %v2462_v17 = vmul.f32 %v6959_v0, %v2461_v58  ;;  %v2463_v15 = vmul.f32 %v6918_v8, %v2461_v58 }
 0x3b4   : > { %2488 = vrot.lane.b32.xlu0 %v2460_v18, %s5636_s15  ;;  %v2366_v18 = vmul.f32 100.0, %v2364_v45  ;;  %v2434_v27 = vmul.f32 100.0, %v2432_v53 }
 0x3b5   : > { %v2464_v43 = vmul.f32 100.0, %v2462_v17 }
 0x3b6   : > { %2282 = vrot.lane.b32.xlu1 %v2248_v61, %s5643_s12  ;;  %v2435_v61 = vmul.f32 100.0, %v2433_v40  ;;  %v2376_v30 = vadd.f32 %v6890_v31, %v2366_v18  ;;  %v2444_v52 = vadd.f32 %v2438_v56, %v2434_v27  ;;  %v1769_v56 = vsub.f32 %v6794_v50, %v6659_v33 }
 0x3b7   : > { %2300 = vrot.lane.b32.xlu2 %v2279_v39, %s5634_s6 }
 0x3b8   : > { %v2445_v39 = vadd.f32 %v2442_v51, %v2435_v61  ;;  %v1771_v16 = vmul.f32 %v1769_v56, %v1769_v56  ;;  %v9071_v61 = vmov 21  }
 0x3ba   : > { %v2453_v26 = vpop.permute.xlu2 %2452 }
 0x3bc   : > { %2550 = vperm.xlu0 %5272, %v6511_v11  }
 0x3be   : > { %2292 = vrot.lane.b32.xlu1 %v2264_v1, %s5636_s15  ;;  %v2468_v1 = vpop.permute.xlu0 %2467 }
 0x3bf   : > { %2380 = vrot.lane.b32.xlu2 %v2346_v22, %s5643_s12  ;;  %v2474_v36 = vadd.f32 %v2468_v1, %v2464_v43  ;;  %v2447_v22 = vmul.f32 %v6959_v0, %v2446_v12  ;;  %v1765_v12 = vsub.f32 %v6788_v6, %v6645_v24 }
 0x3c1   : > { %v2449_v51 = vmul.f32 100.0, %v2447_v22  ;;  %v1767_v40 = vmul.f32 %v1765_v12, %v1765_v12 }
 0x3c2   : > { %v2472_v31 = vpop.permute.xlu2 %2471 }
 0x3c3   : > { %v2459_v62 = vadd.f32 %v2453_v26, %v2449_v51  ;;  %v6985_v58 = vadd.f32 %v1771_v16, %v1767_v40 }
 0x3c5   : > { %v2122_v50 = vperm.slane %v6985_v58, 1  ;;  %v2022_v17 = vperm.slane %v6985_v58, 0  ;;  %v2220_v53 = vperm.slane %v6985_v58, 2 }
 0x3c6   : > { %2382 = vrot.lane.b32.xlu1 %v2347_v5, %s5643_s12  ;;  %v6972_v38 = vpop.permute.xlu0 %5266 }
 0x3c7   : > { %2390 = vrot.lane.b32.xlu2 %v2362_v14, %s5636_s15  ;;  %v2465_v14 = vmul.f32 100.0, %v2463_v15  ;;  %v2124_v6 = vmul.f32 %v6814_v10, %v2122_v50  ;;  %v2024_v27 = vmul.f32 %v6804_v59, %v2022_v17  ;;  %v2222_v1 = vmul.f32 %v6839_v3, %v2220_v53 }
 0x3c9   : > { %v2475_v45 = vadd.f32 %v2472_v31, %v2465_v14  ;;  %v2126_v43 = vmul.f32 100.0, %v2124_v6  ;;  %v2026_v56 = vmul.f32 100.0, %v2024_v27  ;;  %v2224_v12 = vmul.f32 100.0, %v2222_v1 }
 0x3ca   : > { %v6979_v5 = vpop.permute.xlu2 %2520 }
 0x3cb   : > { %v2136_v22 = vadd.f32 %v6744_v37, %v2126_v43  ;;  %v2036_v16 = vadd.f32 %v6718_v13, %v2026_v56 }
 0x3ce   : > { %2396 = vrot.lane.b32.xlu1 %v2376_v30, %s5634_s6  ;;  %v2095_v18 = vpop.permute.xlu0 %2094 }
 0x3cf   : > { %2480 = vrot.lane.b32.xlu2 %v2445_v39, %s5643_s12 }
 0x3d6   : > { %2478 = vrot.lane.b32.xlu1 %v2444_v52, %s5643_s12  ;;  %v2105_v39 = vpop.permute.xlu0 %2104  ;;  %v7000_v52 = vpop.permute.xlu1 %2524 }
 0x3d7   : > { %2494 = vrot.lane.b32.xlu2 %v2474_v36, %s5634_s6 }
 0x3de   : > { %2486 = vrot.lane.b32.xlu1 %v2459_v62, %s5636_s15  ;;  %v2195_v36 = vpop.permute.xlu0 %2194  ;;  %v2023_v62 = vmul.f32 %v6780_v60, %v2022_v17 }
 0x3df   : > { %2535 = vperm.xlu2 %5270, %v6486_v55  }
 0x3e0   : > { %v2025_v14 = vmul.f32 100.0, %v2023_v62  ;;  %v2123_v62 = vmul.f32 %v6871_v20, %v2122_v50 }
 0x3e6   : > { %2496 = vrot.lane.b32.xlu1 %v2475_v45, %s5634_s6  ;;  %v2234_v45 = vadd.f32 %v6730_v23, %v2224_v12 }
 0x3e7   : > { %5273 = vset.pattern.permute.xlu2 %v9071_v61 }
 0x3e8   : > { %2554 = vperm.xlu2 %5273, %v6559_v2  }
 0x3e9   : > { %v2087_v30 = vpop.permute.xlu2 %2086 }
 0x3ee   : > { %2539 = vperm.xlu1 %5271, %v6543_v47  }
 0x3f0   : > { %2569 = vperm.xlu2 %5273, %v6580_v19  }
 0x3f1   : > { %v2097_v26 = vpop.permute.xlu2 %2096 }
 0x3f6   : > { %5274 = vset.pattern.permute.xlu1 %v9071_v61 }
 0x3f7   : > { %2565 = vperm.xlu1 %5274, %v6498_v4  }
 0x3f9   : > { %v2187_v31 = vpop.permute.xlu2 %2186 }
 0x3fa   : > { %v2207_v51 = vsel %vm1725_vm11, %v2136_v22, %v2187_v31 }
 0x3fb   : > { %v2209_v15 = vsel %vm1352_vm5, %v2207_v51, %v2195_v36  ;;  %v2035_v36 = vadd.f32 %v6707_v9, %v2025_v14  ;;  %v2125_v9 = vmul.f32 100.0, %v2123_v62 }
 0x3fd   : > { %v2108_v1 = vsel %vm1725_vm11, %v2035_v36, %v2087_v30 }
 0x3fe   : > { %v2110_v13 = vsel %vm1352_vm5, %v2108_v1, %v2095_v18 }
 0x400   : > { %v2089_v40 = vpop.permute.xlu1 %2088  ;;  %v2285_v61 = vpop.permute.xlu0 %2284 }
 0x401   : > { %v2109_v6 = vsel %vm1725_vm11, %v2036_v16, %v2089_v40  ;;  %v7010_v37 = vsel %vm1725_vm11, %v2234_v45, %v2285_v61  ;;  %v2201_v43 = vpop.permute.xlu2 %2200  ;;  %v2135_v40 = vadd.f32 %v6687_v49, %v2125_v9 }
 0x402   : > { %v2111_v17 = vsel %vm1352_vm5, %v2109_v6, %v2097_v26 }
 0x403   : > { %v2113_v27 = vsel %vm2009_vm7, %v2111_v17, %v2105_v39 }
 0x404   : > { %v7033_v49 = vsub.f32 %v2113_v27, %v6804_v59 }
 0x406   : > { %9073 = vst [vmem:[#allocation47_spill] sm:$0xff] %v7033_v49 }
 0x408   : > { %v2103_v23 = vpop.permute.xlu1 %2102  ;;  %v2299_v51 = vpop.permute.xlu0 %2298 }
 0x409   : > { %v2112_v22 = vsel %vm2009_vm7, %v2110_v13, %v2103_v23  ;;  %v2291_v31 = vpop.permute.xlu2 %2290 }
 0x40a   : > { %5403 = vrcp.f32 %v2112_v22  ;;  %v3595_v39 = vand.u32 2147483648, %v2112_v22  ;;  %v3593_v18 = vand.u32 2147483647, %v2112_v22  ;;  %vm3589_vm0 = vweird.f32 %v2112_v22 }
 0x40b   : > { %v7036_v9 = vsub.f32 %v2112_v22, %v6780_v60 }
 0x40c   : > { %v3596_v6 = vor.u32 1.1754944e-38, %v3595_v39  ;;  %vm3594_vm2 = vcmp.eq.f32.partialorder %v3593_v18, 8.507059e+37 }
 0x40d   : > { %9074 = vst [vmem:[#allocation48_spill] sm:$0xff] %v7036_v9 }
 0x410   : > { %v5404_v56 = vpop.eup %5403  ;;  %v2185_v12 = vpop.permute.xlu1 %2184 }
 0x411   : > { %v3585_v16 = vmul.f32 %v5404_v56, %v2112_v22  ;;  %v7019_v26 = vpop.permute.xlu2 %2300  ;;  %v7021_v45 = vpop.permute.xlu0 %2388  ;;  %vm3590_vm8 = vweird.f32 %v5404_v56  ;;  %v2206_v50 = vsel %vm1725_vm11, %v2135_v40, %v2185_v12 }
 0x412   : > { %vm3591_vm1 = vmor %vm3589_vm0, %vm3590_vm8 }
 0x413   : > { %v3586_v14 = vsub.f32 1.0, %v3585_v16 }
 0x415   : > { %v3587_v30 = vmul.f32 %v5404_v56, %v3586_v14 }
 0x417   : > { %v3588_v61 = vadd.f32 %v5404_v56, %v3587_v30 }
 0x418   : > { %v2193_v17 = vpop.permute.xlu1 %2192 }
 0x419   : > { %v3592_v36 = vsel %vm3591_vm1, %v5404_v56, %v3588_v61  ;;  %v2208_v1 = vsel %vm1352_vm5, %v2206_v50, %v2193_v17  ;;  %v7026_v13 = vpop.permute.xlu2 %2380  ;;  %v8809_v56 = vperm.slane %v6985_v58, 4  ;;  %v7039_v14 = vpop.permute.xlu0 %2398  ;;  %v7056_v50 = vunpack.i.l.bf16 %v6972_v38 }
 0x41a   : > { %v7028_v23 = vsel %vm3594_vm2, %v3596_v6, %v3592_v36  ;;  %v2210_v62 = vsel %vm2009_vm7, %v2208_v1, %v2201_v43  ;;  %v2221_v43 = vmul.f32 %v6852_v46, %v2220_v53  ;;  %v8810_v36 = vperm.slane %v6774_v29, 5 }
 0x41b   : > { %9072 = vst [vmem:[#allocation46_spill] sm:$0xff] %v7028_v23  ;;  %v3607_v16 = vmul.f32 %v7028_v23, %v2210_v62  ;;  %v2418_v59 = vmul.f32 %v6918_v8, %v8809_v56 }
 0x41c   : > { %v2223_v61 = vmul.f32 100.0, %v2221_v43 }
 0x41d   : > { %v3608_v12 = vperm.slane %v3607_v16, 0  ;;  %v2420_v6 = vmul.f32 100.0, %v2418_v59 }
 0x41e   : > { %v2233_v53 = vadd.f32 %v6680_v44, %v2223_v61  ;;  %v2318_v61 = vperm.slane %v6985_v58, 3 }
 0x41f   : > { %v3609_v39 = vmul.f32 %v3608_v12, %v7036_v9  ;;  %v7043_v30 = vmul.f32 %v3608_v12, %v7033_v49 }
 0x420   : > { %v2203_v60 = vpop.permute.xlu1 %2202 }
 0x421   : > { %v3611_v27 = vsub.f32 %v2210_v62, %v3609_v39  ;;  %v2211_v22 = vsel %vm2009_vm7, %v2209_v15, %v2203_v60  ;;  %v7052_v18 = vpop.permute.xlu2 %2390  ;;  %v2430_v62 = vadd.f32 %v6961_v63, %v2420_v6  ;;  %v2545_v39 = vmul.f32 %v7056_v50, %v8810_v36 }
 0x422   : > { %v3612_v40 = vsub.f32 %v2211_v22, %v7043_v30 }
 0x423   : > { %5405 = vrcp.f32 %v3611_v27  ;;  %v3708_v6 = vand.u32 2147483648, %v3611_v27  ;;  %v3706_v56 = vand.u32 2147483647, %v3611_v27  ;;  %vm3702_vm4 = vweird.f32 %v3611_v27 }
 0x425   : > { %vm3707_vm9 = vcmp.eq.f32.partialorder %v3706_v56, 8.507059e+37  ;;  %v7092_v56 = vsub.f32 %v3611_v27, %v6871_v20 }
 0x426   : > { %v2489_v17 = vpop.permute.xlu0 %2488 }
 0x427   : > { %9076 = vst [vmem:[#allocation50_spill] sm:$0xff] %v7092_v56 }
 0x428   : > { %v2283_v1 = vpop.permute.xlu1 %2282 }
 0x429   : > { %v5406_v16 = vpop.eup %5405  ;;  %v2304_v15 = vsel %vm1725_vm11, %v2233_v53, %v2283_v1  ;;  %v2481_v12 = vpop.permute.xlu2 %2480  ;;  %v2547_v53 = vmul.f32 100.0, %v2545_v39 }
 0x42a   : > { %v3698_v30 = vmul.f32 %v5406_v16, %v3611_v27  ;;  %v2306_v43 = vsel %vm1352_vm5, %v2304_v15, %v2291_v31  ;;  %v2501_v59 = vsel %vm1725_vm11, %v2430_v62, %v2481_v12  ;;  %vm3703_vm3 = vweird.f32 %v5406_v16 }
 0x42b   : > { %v2308_v44 = vsel %vm2009_vm7, %v2306_v43, %v2299_v51  ;;  %v7069_v60 = vsel %vm1352_vm5, %v2501_v59, %v2489_v17  ;;  %v2529_v62 = vperm.slane %v6836_v48, 5  ;;  %vm3704_vm6 = vmor %vm3702_vm4, %vm3703_vm3  ;;  %v3709_v43 = vor.u32 1.1754944e-38, %v3708_v6 }
 0x42c   : > { %v3699_v22 = vsub.f32 1.0, %v3698_v30  ;;  %v3613_v63 = vmul.f32 %v7028_v23, %v2308_v44  ;;  %v2320_v30 = vmul.f32 %v6893_v21, %v2318_v61 }
 0x42e   : > { %v3700_v1 = vmul.f32 %v5406_v16, %v3699_v22  ;;  %v3614_v36 = vperm.slane %v3613_v63, 0  ;;  %v2551_v33 = vpop.permute.xlu0 %2550 }
 0x42f   : > { %v2557_v31 = vadd.f32 %v2551_v33, %v2547_v53  ;;  %v2319_v53 = vmul.f32 %v6875_v41, %v2318_v61 }
 0x430   : > { %v3701_v15 = vadd.f32 %v5406_v16, %v3700_v1  ;;  %v3615_v51 = vmul.f32 %v3614_v36, %v7036_v9  ;;  %v2293_v17 = vpop.permute.xlu1 %2292  ;;  %v3616_v12 = vmul.f32 %v3614_v36, %v7033_v49 }
 0x431   : > { %v2307_v39 = vsel %vm1352_vm5, %v7010_v37, %v2293_v17  ;;  %v7079_v59 = vpop.permute.xlu2 %2494  ;;  %2584 = vrot.lane.b32.xlu2 %v2557_v31, %s5636_s15  ;;  %v2530_v37 = vmul.f32 %v7056_v50, %v2529_v62  ;;  %v5645_v17 = vmov 6   ;;  %v2321_v31 = vmul.f32 100.0, %v2319_v53 }
 0x432   : > { %v3705_v33 = vsel %vm3704_vm6, %v5406_v16, %v3701_v15  ;;  %v3617_v22 = vsub.f32 %v2308_v44, %v3615_v51  ;;  %v2309_v63 = vsel %vm2009_vm7, %v2307_v39, %v7019_v26  ;;  %5275 = vset.pattern.permute.xlu1 %v5645_v17  ;;  %5282 = vset.pattern.permute.xlu2 %v5645_v17  ;;  %v2322_v16 = vmul.f32 100.0, %v2320_v30 }
 0x433   : > { %v7085_v36 = vsel %vm3707_vm9, %v3709_v43, %v3705_v33  ;;  %v3618_v1 = vsub.f32 %v2309_v63, %v3616_v12  ;;  %5281 = vset.pattern.permute.xlu0 %v5645_v17  ;;  %v7095_v26 = vsub.f32 %v3612_v40, %v6814_v10  ;;  %v2532_v43 = vmul.f32 100.0, %v2530_v37 }
 0x434   : > { %9075 = vst [vmem:[#allocation49_spill] sm:$0xff] %v7085_v36  ;;  %v3720_v6 = vmul.f32 %v7085_v36, %v3617_v22  ;;  %v2332_v61 = vadd.f32 %v6833_v28, %v2322_v16  ;;  %v7101_v39 = vunpack.i.h.bf16 %v6972_v38  ;;  %v2331_v28 = vadd.f32 %v6938_v25, %v2321_v31 }
 0x435   : > { %9077 = vst [vmem:[#allocation51_spill] sm:$0xff] %v7095_v26  ;;  %v9078_v53 = vperm.slane %v6774_v29, 5 }
 0x436   : > { %v3721_v44 = vperm.slane %v3720_v6, 1  ;;  %v2402_v38 = vsel %vm1725_vm11, %v2331_v28, %v7026_v13 }
 0x438   : > { %v3722_v15 = vmul.f32 %v3721_v44, %v7092_v56  ;;  %v3723_v51 = vmul.f32 %v3721_v44, %v7095_v26  ;;  %v2383_v12 = vpop.permute.xlu1 %2382 }
 0x439   : > { %v2403_v30 = vsel %vm1725_vm11, %v2332_v61, %v2383_v12  ;;  %v2536_v20 = vpop.permute.xlu2 %2535  ;;  %v2559_v61 = vperm.slane %v6801_v32, 5 }
 0x43a   : > { %v3724_v27 = vsub.f32 %v3617_v22, %v3722_v15  ;;  %v3725_v33 = vsub.f32 %v3618_v1, %v3723_v51  ;;  %v2405_v10 = vsel %vm1352_vm5, %v2403_v30, %v7052_v18  ;;  %v2542_v40 = vadd.f32 %v2536_v20, %v2532_v43 }
 0x43b   : > { %v2407_v63 = vsel %vm2009_vm7, %v2405_v10, %v7039_v14  ;;  %v2546_v22 = vmul.f32 %v7101_v39, %v9078_v53  ;;  %v2404_v1 = vsel %vm1352_vm5, %v2402_v38, %v7021_v45  ;;  %v2561_v45 = vmul.f32 %v7101_v39, %v2559_v61 }
 0x43c   : > { %5407 = vrcp.f32 %v3724_v27  ;;  %2576 = vrot.lane.b32.xlu1 %v2542_v40, %s5643_s12  ;;  %v9079_v15 = vperm.slane %v6985_v58, 4  ;;  %vm3809_vm12 = vweird.f32 %v3724_v27 }
 0x43d   : > { %v2548_v25 = vmul.f32 100.0, %v2546_v22  ;;  %v2563_v28 = vmul.f32 100.0, %v2561_v45 }
 0x43e   : > { %v2417_v51 = vmul.f32 %v6959_v0, %v9079_v15 }
 0x440   : > { %v2397_v18 = vpop.permute.xlu1 %2396  ;;  %v2419_v38 = vmul.f32 100.0, %v2417_v51 }
 0x441   : > { %v2406_v6 = vsel %vm2009_vm7, %v2404_v1, %v2397_v18  ;;  %v3815_v18 = vand.u32 2147483648, %v3724_v27 }
 0x442   : > { %v5408_v37 = vpop.eup %5407  ;;  %v3619_v14 = vmul.f32 %v7028_v23, %v2406_v6  ;;  %v2555_v17 = vpop.permute.xlu2 %2554 }
 0x443   : > { %v3805_v16 = vmul.f32 %v5408_v37, %v3724_v27  ;;  %v2558_v44 = vadd.f32 %v2555_v17, %v2548_v25  ;;  %vm3810_vm10 = vweird.f32 %v5408_v37 }
 0x444   : > { %v3620_v13 = vperm.slane %v3619_v14, 0  ;;  %v3813_v14 = vand.u32 2147483647, %v3724_v27  ;;  %vm3811_vm13 = vmor %vm3809_vm12, %vm3810_vm10 }
 0x445   : > { %v3806_v31 = vsub.f32 1.0, %v3805_v16  ;;  %2586 = vrot.lane.b32.xlu1 %v2558_v44, %s5636_s15 }
 0x446   : > { %v3621_v12 = vmul.f32 %v3620_v13, %v7036_v9  ;;  %v3622_v43 = vmul.f32 %v3620_v13, %v7033_v49  ;;  %v3816_v13 = vor.u32 1.1754944e-38, %v3815_v18  ;;  %vm3814_vm14 = vcmp.eq.f32.partialorder %v3813_v14, 8.507059e+37 }
 0x447   : > { %v3807_v30 = vmul.f32 %v5408_v37, %v3806_v31  ;;  %v2531_v14 = vmul.f32 %v7101_v39, %v2529_v62 }
 0x448   : > { %v3623_v20 = vsub.f32 %v2406_v6, %v3621_v12  ;;  %v3624_v10 = vsub.f32 %v2407_v63, %v3622_v43  ;;  %v2479_v40 = vpop.permute.xlu1 %2478  ;;  %v2429_v63 = vadd.f32 %v6908_v35, %v2419_v38 }
 0x449   : > { %v3808_v53 = vadd.f32 %v5408_v37, %v3807_v30 }
 0x44a   : > { %v3726_v22 = vmul.f32 %v7085_v36, %v3623_v20  ;;  %v2570_v1 = vpop.permute.xlu2 %2569  ;;  %v2500_v15 = vsel %vm1725_vm11, %v2429_v63, %v2479_v40  ;;  %v5646_v63 = vmov 22  }
 0x44b   : > { %v2573_v25 = vadd.f32 %v2570_v1, %v2563_v28  ;;  %v3812_v6 = vsel %vm3811_vm13, %v5408_v37, %v3808_v53  ;;  %v7146_v28 = vsub.f32 %v3724_v27, %v6852_v46 }
 0x44c   : > { %v3727_v17 = vperm.slane %v3726_v22, 1  ;;  %v7138_v12 = vsel %vm3814_vm14, %v3816_v13, %v3812_v6 }
 0x44d   : > { %5277 = vperm.xlu1 %5275, %v6475_v54   ;;  %2594 = vrot.lane.b32.xlu2 %v2573_v25, %s5634_s6  ;;  %9080 = vst [vmem:[#allocation52_spill] sm:$0xff] %v7138_v12 }
 0x44e   : > { %v3728_v16 = vmul.f32 %v3727_v17, %v7092_v56  ;;  %v3729_v44 = vmul.f32 %v3727_v17, %v7095_v26  ;;  %9081 = vst [vmem:[#allocation53_spill] sm:$0xff] %v7146_v28 }
 0x450   : > { %v3730_v31 = vsub.f32 %v3623_v20, %v3728_v16  ;;  %v7135_v45 = vsub.f32 %v3624_v10, %v3729_v44  ;;  %v2487_v51 = vpop.permute.xlu1 %2486  ;;  %v7149_v20 = vsub.f32 %v3725_v33, %v6839_v3  ;;  %v2533_v44 = vmul.f32 100.0, %v2531_v14 }
 0x451   : > { %v2502_v43 = vsel %vm1352_vm5, %v2500_v15, %v2487_v51 }
 0x452   : > { %v3827_v30 = vmul.f32 %v7138_v12, %v3730_v31  ;;  %v2504_v35 = vsel %vm2009_vm7, %v2502_v43, %v7079_v59  ;;  %9082 = vst [vmem:[#allocation54_spill] sm:$0xff] %v7149_v20 }
 0x453   : > { %v3625_v37 = vmul.f32 %v7028_v23, %v2504_v35 }
 0x454   : > { %v3828_v10 = vperm.slane %v3827_v30, 2 }
 0x455   : > { %v3626_v40 = vperm.slane %v3625_v37, 0  ;;  %2633 = vperm.xlu1 %5275, %v6486_v55   ;;  %2622 = vperm.xlu2 %5282, %v6525_v34  }
 0x456   : > { %v3829_v38 = vmul.f32 %v3828_v10, %v7146_v28  ;;  %v3830_v53 = vmul.f32 %v3828_v10, %v7149_v20 }
 0x457   : > { %v3627_v59 = vmul.f32 %v3626_v40, %v7036_v9  ;;  %v3628_v22 = vmul.f32 %v3626_v40, %v7033_v49 }
 0x458   : > { %v7157_v1 = vsub.f32 %v3730_v31, %v3829_v38  ;;  %v3832_v46 = vsub.f32 %v7135_v45, %v3830_v53  ;;  %v2497_v3 = vpop.permute.xlu1 %2496 }
 0x459   : > { %v3629_v27 = vsub.f32 %v2504_v35, %v3627_v59  ;;  %v2505_v33 = vsel %vm2009_vm7, %v7069_v60, %v2497_v3  ;;  %v2560_v35 = vmul.f32 %v7056_v50, %v2559_v61 }
 0x45a   : > { %5409 = vrcp.f32 %v7157_v1  ;;  %v3630_v25 = vsub.f32 %v2505_v33, %v3628_v22  ;;  %v3916_v30 = vand.u32 2147483648, %v7157_v1  ;;  %v3914_v10 = vand.u32 2147483647, %v7157_v1 }
 0x45b   : > { %v3732_v18 = vmul.f32 %v7085_v36, %v3629_v27  ;;  %vm3910_vm8 = vweird.f32 %v7157_v1  ;;  %v2562_v61 = vmul.f32 100.0, %v2560_v35 }
 0x45c   : > { %v3917_v22 = vor.u32 1.1754944e-38, %v3916_v30  ;;  %vm3915_vm1 = vcmp.eq.f32.partialorder %v3914_v10, 8.507059e+37  ;;  %v2657_v10 = vperm.slane %v6801_v32, 6 }
 0x45d   : > { %v3733_v17 = vperm.slane %v3732_v18, 1  ;;  %5283 = vset.pattern.permute.xlu1 %v5646_v63  ;;  %2637 = vperm.xlu2 %5282, %v6543_v47  }
 0x45e   : > { %2648 = vperm.xlu1 %5283, %v6511_v11  }
 0x45f   : > { %v3734_v6 = vmul.f32 %v3733_v17, %v7092_v56  ;;  %v3735_v60 = vmul.f32 %v3733_v17, %v7095_v26 }
 0x460   : > { %v5410_v16 = vpop.eup %5409  ;;  %v2540_v13 = vpop.permute.xlu1 %2539 }
 0x461   : > { %v3906_v31 = vmul.f32 %v5410_v16, %v7157_v1  ;;  %v3736_v45 = vsub.f32 %v3629_v27, %v3734_v6  ;;  %v3737_v15 = vsub.f32 %v3630_v25, %v3735_v60  ;;  %v2543_v51 = vadd.f32 %v2540_v13, %v2533_v44 }
 0x462   : > { %vm3911_vm15 = vweird.f32 %v5410_v16  ;;  %v7192_v6 = vsub.f32 %v3832_v46, %v6893_v21 }
 0x463   : > { %v3907_v62 = vsub.f32 1.0, %v3906_v31  ;;  %v3833_v43 = vmul.f32 %v7138_v12, %v3736_v45  ;;  %2578 = vrot.lane.b32.xlu0 %v2543_v51, %s5643_s12  ;;  %vm3912_vm0 = vmor %vm3910_vm8, %vm3911_vm15 }
 0x464   : > { %9083 = vst [vmem:[#allocation55_spill] sm:$0xff] %v7192_v6 }
 0x465   : > { %v3908_v37 = vmul.f32 %v5410_v16, %v3907_v62  ;;  %v3834_v40 = vperm.slane %v3833_v43, 2  ;;  %5285 = vset.pattern.permute.xlu2 %v5646_v63  ;;  %v5647_v62 = vmov 7  }
 0x466   : > { %2667 = vperm.xlu1 %5283, %v6580_v19   ;;  %2663 = vperm.xlu2 %5285, %v6498_v4  }
 0x467   : > { %v3909_v38 = vadd.f32 %v5410_v16, %v3908_v37  ;;  %v3835_v53 = vmul.f32 %v3834_v40, %v7146_v28  ;;  %v3836_v59 = vmul.f32 %v3834_v40, %v7149_v20 }
 0x469   : > { %v3913_v3 = vsel %vm3912_vm0, %v5410_v16, %v3909_v38  ;;  %v7184_v27 = vsub.f32 %v3736_v45, %v3835_v53  ;;  %v3838_v33 = vsub.f32 %v3737_v15, %v3836_v59  ;;  %v2566_v18 = vpop.permute.xlu1 %2565 }
 0x46a   : > { %v7186_v25 = vsel %vm3915_vm1, %v3917_v22, %v3913_v3  ;;  %v2572_v14 = vadd.f32 %v2566_v18, %v2562_v61  ;;  %v2642_v3 = vperm.slane %v6774_v29, 6 }
 0x46b   : > { %v3928_v17 = vmul.f32 %v7186_v25, %v7184_v27 }
 0x46c   : > { %2592 = vrot.lane.b32.xlu0 %v2572_v14, %s5634_s6  ;;  %v2514_v14 = vperm.slane %v6985_v58, 5 }
 0x46d   : > { %v3929_v60 = vperm.slane %v3928_v17, 3 }
 0x46e   : > { %5292 = vset.pattern.permute.xlu1 %v5647_v62  ;;  %5286 = vset.pattern.permute.xlu2 %v5647_v62 }
 0x46f   : > { %v3931_v44 = vmul.f32 %v3929_v60, %v7192_v6 }
 0x471   : > { %v7195_v16 = vsub.f32 %v3838_v33, %v3931_v44 }
 0x474   : > { %2618 = vperm.xlu0 %5281, %v6488_v57  }
 0x47c   : > { %5284 = vset.pattern.permute.xlu0 %v5646_v63  ;;  %v2627_v63 = vperm.slane %v6836_v48, 6 }
 0x47d   : > { %2652 = vperm.xlu0 %5284, %v6559_v2  }
 0x485   : > { %5293 = vset.pattern.permute.xlu0 %v5647_v62  ;;  %v2516_v62 = vmul.f32 %v7101_v39, %v2514_v14 }
 0x48b   : > { %v2585_v13 = vpop.permute.xlu2 %2584 }
 0x4a7   : > { %v7199_v45 = vpop.permute.xlu2 %2594 }
 0x4ae   : > { %v2577_v31 = vpop.permute.xlu1 %2576 }
 0x4af   : > { %v7201_v51 = vpop.permute.xlu2 %2622 }
 0x4b7   : > { %v2587_v15 = vpop.permute.xlu1 %2586  ;;  %v2638_v37 = vpop.permute.xlu2 %2637 }
 0x4bf   : > { %v5278_v21 = vpop.permute.xlu1 %5277 }
 0x4c0   : > { %v7203_v46 = vunpack.i.h.bf16 %v5278_v21  ;;  %v7205_v43 = vunpack.i.l.bf16 %v5278_v21  ;;  %v2664_v17 = vpop.permute.xlu2 %2663 }
 0x4c2   : > { %9084 = vst [vmem:[#allocation56_spill] sm:$0xff] %v7205_v43  ;;  %v2628_v30 = vmul.f32 %v7205_v43, %v2627_v63  ;;  %v2629_v35 = vmul.f32 %v7203_v46, %v2627_v63  ;;  %v2658_v38 = vmul.f32 %v7205_v43, %v2657_v10  ;;  %v2643_v18 = vmul.f32 %v7205_v43, %v2642_v3 }
 0x4c4   : > { %v2631_v40 = vmul.f32 100.0, %v2629_v35  ;;  %v2630_v53 = vmul.f32 100.0, %v2628_v30  ;;  %v2660_v33 = vmul.f32 100.0, %v2658_v38  ;;  %v2645_v21 = vmul.f32 100.0, %v2643_v18 }
 0x4c5   : > { %v2515_v35 = vmul.f32 %v7056_v50, %v2514_v14  ;;  %v7228_v14 = vsub.f32 %v7157_v1, %v6875_v41 }
 0x4c6   : > { %v2641_v59 = vadd.f32 %v2638_v37, %v2631_v40  ;;  %v2670_v44 = vadd.f32 %v2664_v17, %v2660_v33  ;;  %v2518_v37 = vmul.f32 100.0, %v2516_v62  ;;  %v2659_v40 = vmul.f32 %v7203_v46, %v2657_v10 }
 0x4c7   : > { %v2634_v22 = vpop.permute.xlu1 %2633 }
 0x4c8   : > { %v2640_v61 = vadd.f32 %v2634_v22, %v2630_v53  ;;  %2676 = vrot.lane.b32.xlu1 %v2641_v59, %s5643_s12  ;;  %v2528_v38 = vadd.f32 %v7000_v52, %v2518_v37  ;;  %v2517_v59 = vmul.f32 100.0, %v2515_v35 }
 0x4ca   : > { %2674 = vrot.lane.b32.xlu2 %v2640_v61, %s5643_s12  ;;  %v2661_v61 = vmul.f32 100.0, %v2659_v40  ;;  %v2527_v18 = vadd.f32 %v6979_v5, %v2517_v59  ;;  %v2612_v5 = vperm.slane %v6985_v58, 6 }
 0x4cc   : > { %v2598_v10 = vsel %vm1725_vm11, %v2527_v18, %v2577_v31  ;;  %v2613_v1 = vmul.f32 %v7205_v43, %v2612_v5 }
 0x4cd   : > { %v2600_v52 = vsel %vm1352_vm5, %v2598_v10, %v2585_v13 }
 0x4ce   : > { %v2615_v35 = vmul.f32 100.0, %v2613_v1 }
 0x4d0   : > { %v2649_v63 = vpop.permute.xlu1 %2648  ;;  %2690 = vrot.lane.b32.xlu1 %v2670_v44, %s5634_s6  ;;  %v3930_v44 = vmul.f32 %v3929_v60, %v7228_v14 }
 0x4d1   : > { %v2655_v30 = vadd.f32 %v2649_v63, %v2645_v21 }
 0x4d2   : > { %v7235_v21 = vsub.f32 %v7184_v27, %v3930_v44 }
 0x4d3   : > { %2682 = vrot.lane.b32.xlu0 %v2655_v30, %s5636_s15 }
 0x4d4   : > { %5411 = vrcp.f32 %v7235_v21  ;;  %vm4005_vm3 = vweird.f32 %v7235_v21 }
 0x4d5   : > { %v2579_v53 = vpop.permute.xlu0 %2578 }
 0x4d6   : > { %v2599_v22 = vsel %vm1725_vm11, %v2528_v38, %v2579_v53 }
 0x4d7   : > { %v2601_v60 = vsel %vm1352_vm5, %v2599_v22, %v2587_v15  ;;  %v5648_v15 = vmov 23  }
 0x4d8   : > { %v2668_v33 = vpop.permute.xlu1 %2667  ;;  %2716 = vperm.xlu1 %5292, %v6488_v57   ;;  %v2603_v30 = vsel %vm2009_vm7, %v2601_v60, %v7199_v45 }
 0x4d9   : > { %v2671_v17 = vadd.f32 %v2668_v33, %v2661_v61  ;;  %v2644_v33 = vmul.f32 %v7203_v46, %v2642_v3 }
 0x4da   : > { %v5412_v22 = vpop.eup %5411 }
 0x4db   : > { %2692 = vrot.lane.b32.xlu0 %v2671_v17, %s5634_s6  ;;  %v4001_v18 = vmul.f32 %v5412_v22, %v7235_v21  ;;  %vm4006_vm2 = vweird.f32 %v5412_v22 }
 0x4dc   : > { %vm4007_vm4 = vmor %vm4005_vm3, %vm4006_vm2 }
 0x4de   : > { %v2593_v62 = vpop.permute.xlu0 %2592 }
 0x4df   : > { %v2602_v63 = vsel %vm2009_vm7, %v2600_v52, %v2593_v62  ;;  %v2646_v52 = vmul.f32 100.0, %v2644_v33 }
 0x4e0   : > { %v3631_v41 = vmul.f32 %v7028_v23, %v2602_v63  ;;  %2735 = vperm.xlu1 %5292, %v6543_v47  }
 0x4e2   : > { %v3632_v31 = vperm.slane %v3631_v41, 0 }
 0x4e3   : > { %2720 = vperm.xlu0 %5293, %v6525_v34  }
 0x4e4   : > { %v3633_v27 = vmul.f32 %v3632_v31, %v7036_v9  ;;  %v3634_v13 = vmul.f32 %v3632_v31, %v7033_v49 }
 0x4e6   : > { %v3635_v37 = vsub.f32 %v2602_v63, %v3633_v27  ;;  %v3636_v40 = vsub.f32 %v2603_v30, %v3634_v13  ;;  %v2619_v38 = vpop.permute.xlu0 %2618  ;;  %v4002_v63 = vsub.f32 1.0, %v4001_v18 }
 0x4e7   : > { %v2625_v53 = vadd.f32 %v2619_v38, %v2615_v35  ;;  %v4009_v38 = vand.u32 2147483647, %v7235_v21 }
 0x4e8   : > { %v3738_v59 = vmul.f32 %v7085_v36, %v3635_v37  ;;  %5295 = vset.pattern.permute.xlu1 %v5648_v15  ;;  %v4003_v3 = vmul.f32 %v5412_v22, %v4002_v63 }
 0x4e9   : > { %2750 = vperm.xlu1 %5295, %v6559_v2   ;;  %vm4010_vm6 = vcmp.eq.f32.partialorder %v4009_v38, 8.507059e+37 }
 0x4ea   : > { %v3739_v61 = vperm.slane %v3738_v59, 1  ;;  %v4004_v35 = vadd.f32 %v5412_v22, %v4003_v3 }
 0x4eb   : > { %5296 = vset.pattern.permute.xlu0 %v5648_v15 }
 0x4ec   : > { %v3740_v45 = vmul.f32 %v3739_v61, %v7092_v56  ;;  %v3741_v17 = vmul.f32 %v3739_v61, %v7095_v26  ;;  %2761 = vperm.xlu0 %5296, %v6498_v4   ;;  %v4008_v61 = vsel %vm4007_vm4, %v5412_v22, %v4004_v35 }
 0x4ee   : > { %v3742_v44 = vsub.f32 %v3635_v37, %v3740_v45  ;;  %v3743_v10 = vsub.f32 %v3636_v40, %v3741_v17  ;;  %v4011_v40 = vand.u32 2147483648, %v7235_v21 }
 0x4ef   : > { %v2653_v62 = vpop.permute.xlu0 %2652 }
 0x4f0   : > { %v3839_v41 = vmul.f32 %v7138_v12, %v3742_v44  ;;  %v2656_v1 = vadd.f32 %v2653_v62, %v2646_v52  ;;  %v4012_v45 = vor.u32 1.1754944e-38, %v4011_v40  ;;  %v7276_v62 = vsub.f32 %v7195_v16, %v6918_v8 }
 0x4f1   : > { %v2614_v8 = vmul.f32 %v7203_v46, %v2612_v5 }
 0x4f2   : > { %v3840_v60 = vperm.slane %v3839_v41, 2  ;;  %2684 = vrot.lane.b32.xlu2 %v2656_v1, %s5636_s15  ;;  %9085 = vst [vmem:[#allocation57_spill] sm:$0xff] %v7276_v62 }
 0x4f4   : > { %v3841_v31 = vmul.f32 %v3840_v60, %v7146_v28  ;;  %v3842_v27 = vmul.f32 %v3840_v60, %v7149_v20 }
 0x4f6   : > { %v3843_v13 = vsub.f32 %v3742_v44, %v3841_v31  ;;  %v3844_v30 = vsub.f32 %v3743_v10, %v3842_v27  ;;  %v7271_v10 = vsel %vm4010_vm6, %v4012_v45, %v4008_v61  ;;  %v2616_v27 = vmul.f32 100.0, %v2614_v8 }
 0x4f8   : > { %v3934_v37 = vmul.f32 %v7186_v25, %v3843_v13  ;;  %v2626_v5 = vadd.f32 %v7201_v51, %v2616_v27 }
 0x4fa   : > { %v3935_v59 = vperm.slane %v3934_v37, 3  ;;  %5288 = vperm.xlu2 %5286, %v6475_v54  }
 0x4fc   : > { %v3936_v33 = vmul.f32 %v3935_v59, %v7228_v14  ;;  %v3937_v18 = vmul.f32 %v3935_v59, %v7192_v6 }
 0x4fe   : > { %v3938_v17 = vsub.f32 %v3843_v13, %v3936_v33  ;;  %v7269_v44 = vsub.f32 %v3844_v30, %v3937_v18 }
 0x500   : > { %v4023_v52 = vmul.f32 %v7271_v10, %v3938_v17 }
 0x502   : > { %v4024_v63 = vperm.slane %v4023_v52, 4  ;;  %2731 = vperm.xlu2 %5286, %v6486_v55  }
 0x504   : > { %v7280_v22 = vmul.f32 %v4024_v63, %v7276_v62 }
 0x50a   : > { %5294 = vset.pattern.permute.xlu2 %v5648_v15  ;;  %v7294_v15 = vsub.f32 %v7235_v21, %v6959_v0  ;;  %v5649_v21 = vmov 8  }
 0x50b   : > { %2746 = vperm.xlu2 %5294, %v6511_v11   ;;  %5297 = vset.pattern.permute.xlu0 %v5649_v21 }
 0x50c   : > { %9086 = vst [vmem:[#allocation58_spill] sm:$0xff] %v7294_v15  ;;  %v4025_v37 = vmul.f32 %v4024_v63, %v7294_v15  ;;  %5304 = vset.pattern.permute.xlu1 %v5649_v21 }
 0x50e   : > { %v7305_v45 = vsub.f32 %v3938_v17, %v4025_v37 }
 0x510   : > { %5413 = vrcp.f32 %v7305_v45  ;;  %vm4094_vm10 = vweird.f32 %v7305_v45 }
 0x513   : > { %2765 = vperm.xlu2 %5294, %v6580_v19  }
 0x51b   : > { %5303 = vset.pattern.permute.xlu2 %v5649_v21 }
 0x524   : > { %v2675_v16 = vpop.permute.xlu2 %2674 }
 0x525   : > { %v2696_v31 = vsel %vm1725_vm11, %v2625_v53, %v2675_v16 }
 0x53a   : > { %v2677_v1 = vpop.permute.xlu1 %2676 }
 0x53b   : > { %v2697_v53 = vsel %vm1725_vm11, %v2626_v5, %v2677_v1 }
 0x542   : > { %v2691_v60 = vpop.permute.xlu1 %2690 }
 0x545   : > { %v2683_v3 = vpop.permute.xlu0 %2682 }
 0x546   : > { %v2698_v13 = vsel %vm1352_vm5, %v2696_v31, %v2683_v3 }
 0x547   : > { %v2700_v30 = vsel %vm2009_vm7, %v2698_v13, %v2691_v60  ;;  %v2740_v13 = vperm.slane %v6774_v29, 7 }
 0x548   : > { %v3637_v35 = vmul.f32 %v7028_v23, %v2700_v30 }
 0x54a   : > { %v3638_v40 = vperm.slane %v3637_v35, 0  ;;  %v7299_v38 = vpop.permute.xlu1 %2716 }
 0x54c   : > { %v3639_v59 = vmul.f32 %v3638_v40, %v7036_v9  ;;  %v2685_v61 = vpop.permute.xlu2 %2684  ;;  %v3640_v33 = vmul.f32 %v3638_v40, %v7033_v49  ;;  %v2710_v40 = vperm.slane %v6985_v58, 7 }
 0x54d   : > { %v2693_v18 = vpop.permute.xlu0 %2692  ;;  %v2699_v0 = vsel %vm1352_vm5, %v2697_v53, %v2685_v61 }
 0x54e   : > { %v3641_v52 = vsub.f32 %v2700_v30, %v3639_v59  ;;  %v2701_v51 = vsel %vm2009_vm7, %v2699_v0, %v2693_v18  ;;  %v2725_v30 = vperm.slane %v6836_v48, 7 }
 0x54f   : > { %v3642_v63 = vsub.f32 %v2701_v51, %v3640_v33  ;;  %v7322_v33 = vpop.eup %5413 }
 0x550   : > { %v3744_v1 = vmul.f32 %v7085_v36, %v3641_v52  ;;  %v4090_v51 = vmul.f32 %v7322_v33, %v7305_v45  ;;  %vm4095_vm9 = vweird.f32 %v7322_v33 }
 0x551   : > { %vm4096_vm12 = vmor %vm4094_vm10, %vm4095_vm9 }
 0x552   : > { %v3745_v8 = vperm.slane %v3744_v1, 1  ;;  %v2736_v16 = vpop.permute.xlu1 %2735 }
 0x554   : > { %v3746_v60 = vmul.f32 %v3745_v8, %v7092_v56  ;;  %v3747_v3 = vmul.f32 %v3745_v8, %v7095_v26  ;;  %v5289_v31 = vpop.permute.xlu2 %5288  ;;  %v2755_v8 = vperm.slane %v6801_v32, 7  ;;  %v4091_v32 = vsub.f32 1.0, %v4090_v51 }
 0x555   : > { %v7312_v27 = vunpack.i.h.bf16 %v5289_v31  ;;  %v7314_v17 = vunpack.i.l.bf16 %v5289_v31  ;;  %v2721_v5 = vpop.permute.xlu0 %2720 }
 0x556   : > { %v3748_v35 = vsub.f32 %v3641_v52, %v3746_v60  ;;  %v3749_v37 = vsub.f32 %v3642_v63, %v3747_v3 }
 0x557   : > { %v2742_v53 = vmul.f32 %v7312_v27, %v2740_v13  ;;  %v2726_v59 = vmul.f32 %v7314_v17, %v2725_v30  ;;  %v2727_v61 = vmul.f32 %v7312_v27, %v2725_v30  ;;  %v2712_v29 = vmul.f32 %v7312_v27, %v2710_v40 }
 0x558   : > { %v3845_v18 = vmul.f32 %v7138_v12, %v3748_v35 }
 0x559   : > { %v2744_v48 = vmul.f32 100.0, %v2742_v53  ;;  %v2729_v0 = vmul.f32 100.0, %v2727_v61  ;;  %v2714_v52 = vmul.f32 100.0, %v2712_v29  ;;  %v2728_v1 = vmul.f32 100.0, %v2726_v59 }
 0x55a   : > { %v3846_v21 = vperm.slane %v3845_v18, 2  ;;  %v2756_v61 = vmul.f32 %v7314_v17, %v2755_v8 }
 0x55b   : > { %v2751_v63 = vpop.permute.xlu1 %2750  ;;  %v2739_v60 = vadd.f32 %v2736_v16, %v2729_v0  ;;  %v7333_v43 = vadd.f32 %v2721_v5, %v2714_v52 }
 0x55c   : > { %v3847_v3 = vmul.f32 %v3846_v21, %v7146_v28  ;;  %v3848_v31 = vmul.f32 %v3846_v21, %v7149_v20  ;;  %v2754_v30 = vadd.f32 %v2751_v63, %v2744_v48  ;;  %v2732_v41 = vpop.permute.xlu2 %2731  ;;  %v2741_v48 = vmul.f32 %v7314_v17, %v2740_v13 }
 0x55d   : > { %v2738_v53 = vadd.f32 %v2732_v41, %v2728_v1  ;;  %2774 = vrot.lane.b32.xlu2 %v2739_v60, %s5643_s12  ;;  %v2758_v0 = vmul.f32 100.0, %v2756_v61  ;;  %v4092_v41 = vmul.f32 %v7322_v33, %v4091_v32 }
 0x55e   : > { %v3849_v18 = vsub.f32 %v3748_v35, %v3847_v3  ;;  %v3850_v29 = vsub.f32 %v3749_v37, %v3848_v31  ;;  %2782 = vrot.lane.b32.xlu0 %v2754_v30, %s5636_s15  ;;  %v2762_v59 = vpop.permute.xlu0 %2761  ;;  %v2743_v37 = vmul.f32 100.0, %v2741_v48  ;;  %v2757_v31 = vmul.f32 %v7312_v27, %v2755_v8 }
 0x55f   : > { %2772 = vrot.lane.b32.xlu1 %v2738_v53, %s5643_s12  ;;  %v2768_v21 = vadd.f32 %v2762_v59, %v2758_v0  ;;  %v4093_v13 = vadd.f32 %v7322_v33, %v4092_v41  ;;  %v4100_v30 = vand.u32 2147483648, %v7305_v45  ;;  %v4098_v53 = vand.u32 2147483647, %v7305_v45 }
 0x560   : > { %v3940_v16 = vmul.f32 %v7186_v25, %v3849_v18 }
 0x561   : > { %v4101_v59 = vor.u32 1.1754944e-38, %v4100_v30  ;;  %vm4099_vm13 = vcmp.eq.f32.partialorder %v4098_v53, 8.507059e+37  ;;  %v9091_v30 = vld [vmem:[#allocation30_spill] sm:$0xff] }
 0x562   : > { %v3941_v5 = vperm.slane %v3940_v16, 3  ;;  %v2759_v16 = vmul.f32 100.0, %v2757_v31  ;;  %v1962_v53 = vsub.f32 %v6868_v7, %v9091_v30 }
 0x564   : > { %v3942_v52 = vmul.f32 %v3941_v5, %v7228_v14  ;;  %v3943_v35 = vmul.f32 %v3941_v5, %v7192_v6 }
 0x565   : > { %v2747_v63 = vpop.permute.xlu2 %2746  ;;  %2788 = vrot.lane.b32.xlu2 %v2768_v21, %s5634_s6  ;;  %v5650_v21 = vmov 24  }
 0x566   : > { %v3944_v1 = vsub.f32 %v3849_v18, %v3942_v52  ;;  %v3945_v51 = vsub.f32 %v3850_v29, %v3943_v35  ;;  %v2753_v60 = vadd.f32 %v2747_v63, %v2743_v37  ;;  %5299 = vperm.xlu0 %5297, %v6475_v54   ;;  %v4097_v18 = vsel %vm4096_vm12, %v7322_v33, %v4093_v13 }
 0x567   : > { %v7360_v41 = vsel %vm4099_vm13, %v4101_v59, %v4097_v18  ;;  %v9088_v52 = vsub.f32 %v7269_v44, %v7280_v22  ;;  %v9093_v18 = vld [vmem:[#allocation40_spill] sm:$0xff] }
 0x568   : > { %v4029_v3 = vmul.f32 %v7271_v10, %v3944_v1  ;;  %2780 = vrot.lane.b32.xlu1 %v2753_v60, %s5636_s15  ;;  %9087 = vst [vmem:[#allocation59_spill] sm:$0xff] %v7360_v41 }
 0x569   : > { %v7372_v35 = vsub.f32 %v9088_v52, %v7101_v39 }
 0x56a   : > { %v4030_v61 = vperm.slane %v4029_v3, 4  ;;  %v9090_v3 = vld [vmem:[#allocation42_spill] sm:$0xff] }
 0x56b   : > { %9089 = vst [vmem:[#allocation60_spill] sm:$0xff] %v7372_v35  ;;  %v1780_v31 = vsub.f32 %v9090_v3, %v6601_v42 }
 0x56c   : > { %v4031_v29 = vmul.f32 %v4030_v61, %v7294_v15  ;;  %v4032_v32 = vmul.f32 %v4030_v61, %v7276_v62  ;;  %v9092_v61 = vld [vmem:[#allocation27_spill] sm:$0xff] }
 0x56d   : > { %v2766_v48 = vpop.permute.xlu2 %2765  ;;  %2814 = vperm.xlu2 %5303, %v6488_v57  }
 0x56e   : > { %v7358_v8 = vsub.f32 %v3944_v1, %v4031_v29  ;;  %v4034_v0 = vsub.f32 %v3945_v51, %v4032_v32  ;;  %v2769_v5 = vadd.f32 %v2766_v48, %v2759_v16  ;;  %5305 = vset.pattern.permute.xlu0 %v5650_v21  ;;  %v2711_v51 = vmul.f32 %v7314_v17, %v2710_v40  ;;  %v9094_v32 = vld [vmem:[#allocation29_spill] sm:$0xff]  ;;  %v9095_v16 = vld [vmem:[#allocation43_spill] sm:$0xff] }
 0x56f   : > { %2844 = vperm.xlu0 %5305, %v6511_v11   ;;  %v1966_v29 = vsub.f32 %v9093_v18, %v9092_v61  ;;  %v9100_v61 = vld [vmem:[#allocation28_spill] sm:$0xff]  ;;  %v9101_v18 = vld [vmem:[#allocation41_spill] sm:$0xff] }
 0x570   : > { %v7365_v33 = vmul.f32 %v7360_v41, %v7358_v8  ;;  %2790 = vrot.lane.b32.xlu1 %v2769_v5, %s5634_s6  ;;  %v2713_v13 = vmul.f32 100.0, %v2711_v51  ;;  %v1964_v5 = vmul.f32 %v1962_v53, %v1962_v53  ;;  %v9098_v51 = vld [vmem:[#allocation45_spill] sm:$0xff] }
 0x571   : > { %v1968_v52 = vmul.f32 %v1966_v29, %v1966_v29 }
 0x572   : > { %v8813_v37 = vperm.slane %v7365_v33, 5  ;;  %v2723_v58 = vadd.f32 %v7299_v38, %v2713_v13  ;;  %v1976_v38 = vsub.f32 %v9101_v18, %v9100_v61 }
 0x573   : > { %v7408_v30 = vadd.f32 %v1968_v52, %v1964_v5 }
 0x574   : > { %v4115_v63 = vmul.f32 %v8813_v37, %v7372_v35 }
 0x575   : > { %2829 = vperm.xlu2 %5303, %v6486_v55   ;;  %9099 = vst [vmem:[#allocation30_spill] sm:$0xff] %v7408_v30 }
 0x576   : > { %v7379_v1 = vsub.f32 %v4034_v0, %v4115_v63  ;;  %v1782_v0 = vmul.f32 %v1780_v31, %v1780_v31 }
 0x578   : > { %2818 = vperm.xlu1 %5304, %v6525_v34  }
 0x57d   : > { %5306 = vset.pattern.permute.xlu2 %v5650_v21 }
 0x57e   : > { %2848 = vperm.xlu2 %5306, %v6559_v2  }
 0x580   : > { %2833 = vperm.xlu1 %5304, %v6543_v47  }
 0x586   : > { %2863 = vperm.xlu2 %5306, %v6580_v19  }
 0x588   : > { %5307 = vset.pattern.permute.xlu1 %v5650_v21 }
 0x589   : > { %2859 = vperm.xlu1 %5307, %v6498_v4  }
 0x5b7   : > { %v2775_v39 = vpop.permute.xlu2 %2774 }
 0x5b8   : > { %v2795_v44 = vsel %vm1725_vm11, %v7333_v43, %v2775_v39  ;;  %v1776_v43 = vsub.f32 %v9095_v16, %v9094_v32  ;;  %v9097_v39 = vld [vmem:[#allocation38_spill] sm:$0xff]  ;;  %v2823_v16 = vperm.slane %v7408_v30, 0 }
 0x5b9   : > { %v1972_v3 = vsub.f32 %v9098_v51, %v9097_v39 }
 0x5ba   : > { %v1778_v63 = vmul.f32 %v1776_v43, %v1776_v43  ;;  %v1978_v43 = vmul.f32 %v1976_v38, %v1976_v38 }
 0x5bb   : > { %v1974_v53 = vmul.f32 %v1972_v3, %v1972_v3 }
 0x5bc   : > { %v7404_v7 = vadd.f32 %v1782_v0, %v1778_v63 }
 0x5bd   : > { %v7423_v39 = vadd.f32 %v1978_v43, %v1974_v53 }
 0x5be   : > { %9096 = vst [vmem:[#allocation42_spill] sm:$0xff] %v7404_v7  ;;  %v2838_v29 = vperm.slane %v7404_v7, 0 }
 0x5bf   : > { %v2789_v22 = vpop.permute.xlu2 %2788  ;;  %9104 = vst [vmem:[#allocation29_spill] sm:$0xff] %v7423_v39 }
 0x5c7   : > { %v7391_v60 = vpop.permute.xlu2 %2814 }
 0x5cf   : > { %v2830_v42 = vpop.permute.xlu2 %2829 }
 0x5d0   : > { %v2783_v59 = vpop.permute.xlu0 %2782 }
 0x5d1   : > { %v2797_v40 = vsel %vm1352_vm5, %v2795_v44, %v2783_v59  ;;  %v2773_v48 = vpop.permute.xlu1 %2772  ;;  %v5651_v44 = vmov 9  }
 0x5d2   : > { %v2794_v21 = vsel %vm1725_vm11, %v2723_v58, %v2773_v48  ;;  %5308 = vset.pattern.permute.xlu1 %v5651_v44  ;;  %5315 = vset.pattern.permute.xlu2 %v5651_v44 }
 0x5d3   : > { %5314 = vset.pattern.permute.xlu0 %v5651_v44 }
 0x5d8   : > { %v5300_v13 = vpop.permute.xlu0 %5299  ;;  %v2849_v52 = vpop.permute.xlu2 %2848 }
 0x5d9   : > { %v7412_v31 = vunpack.i.l.bf16 %v5300_v13  ;;  %v7417_v58 = vunpack.i.h.bf16 %v5300_v13 }
 0x5da   : > { %v2781_v32 = vpop.permute.xlu1 %2780 }
 0x5db   : > { %9102 = vst [vmem:[#allocation27_spill] sm:$0xff] %v7412_v31  ;;  %v2796_v59 = vsel %vm1352_vm5, %v2794_v21, %v2781_v32  ;;  %v2839_v0 = vmul.f32 %v7412_v31, %v2838_v29  ;;  %v2824_v5 = vmul.f32 %v7412_v31, %v2823_v16  ;;  %v2840_v61 = vmul.f32 %v7417_v58, %v2838_v29 }
 0x5dc   : > { %9103 = vst [vmem:[#allocation40_spill] sm:$0xff] %v7417_v58  ;;  %v2798_v48 = vsel %vm2009_vm7, %v2796_v59, %v2789_v22  ;;  %v2853_v32 = vperm.slane %v7423_v39, 0 }
 0x5dd   : > { %v3643_v63 = vmul.f32 %v7028_v23, %v2798_v48  ;;  %v2826_v51 = vmul.f32 100.0, %v2824_v5  ;;  %v2841_v18 = vmul.f32 100.0, %v2839_v0  ;;  %v2842_v43 = vmul.f32 100.0, %v2840_v61 }
 0x5de   : > { %v2855_v5 = vmul.f32 %v7417_v58, %v2853_v32  ;;  %v7436_v0 = vsub.f32 %v7305_v45, %v7056_v50 }
 0x5df   : > { %v3644_v3 = vperm.slane %v3643_v63, 0  ;;  %v2836_v38 = vadd.f32 %v2830_v42, %v2826_v51 }
 0x5e0   : > { %9105 = vst [vmem:[#allocation43_spill] sm:$0xff] %v7436_v0  ;;  %v2864_v51 = vpop.permute.xlu2 %2863 }
 0x5e1   : > { %v3645_v21 = vmul.f32 %v3644_v3, %v7036_v9  ;;  %v2845_v13 = vpop.permute.xlu0 %2844  ;;  %v3646_v22 = vmul.f32 %v3644_v3, %v7033_v49  ;;  %2870 = vrot.lane.b32.xlu1 %v2836_v38, %s5643_s12  ;;  %v9106_v3 = vperm.slane %v7365_v33, 5 }
 0x5e2   : > { %v2851_v44 = vadd.f32 %v2845_v13, %v2841_v18  ;;  %v2791_v59 = vpop.permute.xlu1 %2790  ;;  %v2852_v18 = vadd.f32 %v2849_v52, %v2842_v43  ;;  %v2825_v52 = vmul.f32 %v7417_v58, %v2823_v16 }
 0x5e3   : > { %v3647_v37 = vsub.f32 %v2798_v48, %v3645_v21  ;;  %v2799_v53 = vsel %vm2009_vm7, %v2797_v40, %v2791_v59  ;;  %v4114_v48 = vmul.f32 %v9106_v3, %v7436_v0  ;;  %v2857_v40 = vmul.f32 100.0, %v2855_v5 }
 0x5e4   : > { %v3648_v29 = vsub.f32 %v2799_v53, %v3646_v22  ;;  %2878 = vrot.lane.b32.xlu2 %v2851_v44, %s5636_s15  ;;  %v2827_v43 = vmul.f32 100.0, %v2825_v52 }
 0x5e5   : > { %v3750_v42 = vmul.f32 %v7085_v36, %v3647_v37  ;;  %v2867_v21 = vadd.f32 %v2864_v51, %v2857_v40  ;;  %v7447_v45 = vsub.f32 %v7358_v8, %v4114_v48 }
 0x5e7   : > { %v3751_v63 = vperm.slane %v3750_v42, 1  ;;  %5415 = vrcp.f32 %v7447_v45  ;;  %vm4177_vm15 = vweird.f32 %v7447_v45 }
 0x5e9   : > { %v3752_v61 = vmul.f32 %v3751_v63, %v7092_v56  ;;  %v3753_v38 = vmul.f32 %v3751_v63, %v7095_v26  ;;  %2880 = vrot.lane.b32.xlu1 %v2852_v18, %s5636_s15  ;;  %v2854_v63 = vmul.f32 %v7412_v31, %v2853_v32 }
 0x5ea   : > { %v7444_v13 = vpop.permute.xlu1 %2818 }
 0x5eb   : > { %v3754_v22 = vsub.f32 %v3647_v37, %v3752_v61  ;;  %v3755_v50 = vsub.f32 %v3648_v29, %v3753_v38  ;;  %v2856_v40 = vmul.f32 100.0, %v2854_v63 }
 0x5ec   : > { %2888 = vrot.lane.b32.xlu2 %v2867_v21, %s5634_s6 }
 0x5ed   : > { %v3851_v33 = vmul.f32 %v7138_v12, %v3754_v22  ;;  %v5416_v16 = vpop.eup %5415 }
 0x5ee   : > { %v4173_v3 = vmul.f32 %v5416_v16, %v7447_v45  ;;  %vm4178_vm14 = vweird.f32 %v5416_v16 }
 0x5ef   : > { %v3852_v44 = vperm.slane %v3851_v33, 2  ;;  %vm4179_vm8 = vmor %vm4177_vm15, %vm4178_vm14 }
 0x5f1   : > { %v3853_v59 = vmul.f32 %v3852_v44, %v7146_v28  ;;  %v3854_v53 = vmul.f32 %v3852_v44, %v7149_v20  ;;  %5310 = vperm.xlu1 %5308, %v6475_v54  }
 0x5f2   : > { %v2834_v37 = vpop.permute.xlu1 %2833 }
 0x5f3   : > { %v3855_v5 = vsub.f32 %v3754_v22, %v3853_v59  ;;  %v3856_v8 = vsub.f32 %v3755_v50, %v3854_v53  ;;  %v2837_v29 = vadd.f32 %v2834_v37, %v2827_v43  ;;  %v4174_v50 = vsub.f32 1.0, %v4173_v3 }
 0x5f4   : > { %2916 = vperm.xlu2 %5315, %v6525_v34   ;;  %v5652_v53 = vmov 25  }
 0x5f5   : > { %v3946_v42 = vmul.f32 %v7186_v25, %v3855_v5  ;;  %2872 = vrot.lane.b32.xlu0 %v2837_v29, %s5643_s12  ;;  %v4175_v52 = vmul.f32 %v5416_v16, %v4174_v50  ;;  %v4183_v29 = vand.u32 2147483648, %v7447_v45 }
 0x5f7   : > { %v3947_v51 = vperm.slane %v3946_v42, 3  ;;  %v4181_v42 = vand.u32 2147483647, %v7447_v45 }
 0x5f9   : > { %v3948_v48 = vmul.f32 %v3947_v51, %v7228_v14  ;;  %v3949_v18 = vmul.f32 %v3947_v51, %v7192_v6  ;;  %2927 = vperm.xlu1 %5308, %v6486_v55   ;;  %vm4182_vm0 = vcmp.eq.f32.partialorder %v4181_v42, 8.507059e+37 }
 0x5fb   : > { %v3950_v61 = vsub.f32 %v3855_v5, %v3948_v48  ;;  %v3951_v38 = vsub.f32 %v3856_v8, %v3949_v18  ;;  %v2860_v21 = vpop.permute.xlu1 %2859  ;;  %v4176_v5 = vadd.f32 %v5416_v16, %v4175_v52  ;;  %v4184_v18 = vor.u32 1.1754944e-38, %v4183_v29  ;;  %v9112_v29 = vld [vmem:[#allocation31_spill] sm:$0xff] }
 0x5fc   : > { %2931 = vperm.xlu2 %5315, %v6543_v47   ;;  %v2866_v22 = vadd.f32 %v2860_v21, %v2856_v40  ;;  %v2005_v42 = vsel %vm1725_vm11, %v9112_v29, %v6486_v55 }
 0x5fd   : > { %v4035_v33 = vmul.f32 %v7271_v10, %v3950_v61  ;;  %v4180_v51 = vsel %vm4179_vm8, %v5416_v16, %v4176_v5  ;;  %v7491_v16 = vsub.f32 %v7379_v1, %v7203_v46 }
 0x5fe   : > { %2886 = vrot.lane.b32.xlu0 %v2866_v22, %s5634_s6 }
 0x5ff   : > { %v4036_v32 = vperm.slane %v4035_v33, 4 }
 0x601   : > { %v4037_v44 = vmul.f32 %v4036_v32, %v7294_v15  ;;  %v4038_v59 = vmul.f32 %v4036_v32, %v7276_v62  ;;  %5316 = vset.pattern.permute.xlu1 %v5652_v53  ;;  %v9108_v32 = vld [vmem:[#allocation44_spill] sm:$0xff] }
 0x602   : > { %2942 = vperm.xlu1 %5316, %v6511_v11   ;;  %v1766_v52 = vsub.f32 %v9108_v32, %v6645_v24 }
 0x603   : > { %v4039_v43 = vsub.f32 %v3950_v61, %v4037_v44  ;;  %v4040_v37 = vsub.f32 %v3951_v38, %v4038_v59  ;;  %v7483_v38 = vsel %vm4182_vm0, %v4184_v18, %v4180_v51  ;;  %v9109_v44 = vld [vmem:[#allocation32_spill] sm:$0xff]  ;;  %v9110_v59 = vld [vmem:[#allocation39_spill] sm:$0xff] }
 0x604   : > { %5318 = vset.pattern.permute.xlu2 %v5652_v53  ;;  %9107 = vst [vmem:[#allocation38_spill] sm:$0xff] %v7483_v38  ;;  %v1768_v46 = vmul.f32 %v1766_v52, %v1766_v52 }
 0x605   : > { %v4118_v8 = vmul.f32 %v7360_v41, %v4039_v43  ;;  %2957 = vperm.xlu2 %5318, %v6498_v4  }
 0x606   : > { %2912 = vperm.xlu0 %5314, %v6488_v57  }
 0x607   : > { %v4119_v63 = vperm.slane %v4118_v8, 5 }
 0x609   : > { %v4120_v3 = vmul.f32 %v4119_v63, %v7436_v0  ;;  %v4121_v48 = vmul.f32 %v4119_v63, %v7372_v35  ;;  %v9113_v63 = vld [vmem:[#allocation33_spill] sm:$0xff] }
 0x60a   : > { %2961 = vperm.xlu1 %5316, %v6580_v19   ;;  %v2007_v51 = vsel %vm1352_vm5, %v2005_v42, %v9113_v63 }
 0x60b   : > { %v7478_v40 = vsub.f32 %v4039_v43, %v4120_v3  ;;  %v7480_v61 = vsub.f32 %v4040_v37, %v4121_v48  ;;  %v9114_v3 = vld [vmem:[#allocation34_spill] sm:$0xff] }
 0x60c   : > { %v2010_v48 = vsel %vm2009_vm7, %v2007_v51, %v9114_v3  ;;  %v5653_v51 = vmov 10  }
 0x60d   : > { %v7487_v21 = vmul.f32 %v7483_v38, %v7478_v40  ;;  %v7519_v32 = vmul.f32 %v7028_v23, %v2010_v48  ;;  %5319 = vset.pattern.permute.xlu2 %v5653_v51 }
 0x60e   : > { %5317 = vset.pattern.permute.xlu0 %v5652_v53  ;;  %v1770_v53 = vsub.f32 %v9110_v59, %v9109_v44 }
 0x60f   : > { %v8815_v22 = vperm.slane %v7487_v21, 6  ;;  %2946 = vperm.xlu0 %5317, %v6559_v2  }
 0x610   : > { %v1772_v1 = vmul.f32 %v1770_v53, %v1770_v53 }
 0x611   : > { %v7498_v50 = vmul.f32 %v8815_v22, %v7491_v16 }
 0x612   : > { %v7506_v43 = vadd.f32 %v1772_v1, %v1768_v46  ;;  %v8814_v46 = vperm.slane %v7519_v32, 0  ;;  %5325 = vset.pattern.permute.xlu1 %v5653_v51 }
 0x614   : > { %9111 = vst [vmem:[#allocation45_spill] sm:$0xff] %v7506_v43  ;;  %v2808_v37 = vperm.slane %v7506_v43, 0  ;;  %v3603_v1 = vmul.f32 %v8814_v46, %v7036_v9 }
 0x616   : > { %v2809_v8 = vmul.f32 %v7412_v31, %v2808_v37  ;;  %v3605_v42 = vsub.f32 %v2010_v48, %v3603_v1 }
 0x617   : > { %5326 = vset.pattern.permute.xlu0 %v5653_v51 }
 0x618   : > { %v2811_v24 = vmul.f32 100.0, %v2809_v8  ;;  %v7531_v63 = vmul.f32 %v7085_v36, %v3605_v42 }
 0x61a   : > { %v2821_v18 = vadd.f32 %v7391_v60, %v2811_v24  ;;  %v2810_v60 = vmul.f32 %v7417_v58, %v2808_v37 }
 0x61c   : > { %v2812_v24 = vmul.f32 100.0, %v2810_v60 }
 0x61e   : > { %v2822_v48 = vadd.f32 %v7444_v13, %v2812_v24 }
 0x63e   : > { %v2879_v5 = vpop.permute.xlu2 %2878 }
 0x646   : > { %v2889_v52 = vpop.permute.xlu2 %2888 }
 0x64e   : > { %v7527_v29 = vpop.permute.xlu2 %2916 }
 0x64f   : > { %9115 = vst [vmem:[#allocation28_spill] sm:$0xff] %v7527_v29 }
 0x653   : > { %v2871_v44 = vpop.permute.xlu1 %2870 }
 0x654   : > { %v2892_v59 = vsel %vm1725_vm11, %v2821_v18, %v2871_v44  ;;  %v2921_v44 = vperm.slane %v7408_v30, 1 }
 0x655   : > { %v2894_v53 = vsel %vm1352_vm5, %v2892_v59, %v2879_v5  ;;  %v8820_v59 = vperm.slane %v7531_v63, 1 }
 0x656   : > { %v2932_v33 = vpop.permute.xlu2 %2931 }
 0x657   : > { %v3716_v58 = vmul.f32 %v8820_v59, %v7092_v56 }
 0x65b   : > { %v2881_v8 = vpop.permute.xlu1 %2880 }
 0x663   : > { %v5311_v5 = vpop.permute.xlu1 %5310 }
 0x664   : > { %v7533_v3 = vunpack.i.h.bf16 %v5311_v5  ;;  %v7535_v18 = vunpack.i.l.bf16 %v5311_v5  ;;  %v2951_v5 = vperm.slane %v7423_v39, 1 }
 0x666   : > { %9116 = vst [vmem:[#allocation41_spill] sm:$0xff] %v7533_v3  ;;  %v2922_v1 = vmul.f32 %v7535_v18, %v2921_v44  ;;  %v2923_v46 = vmul.f32 %v7533_v3, %v2921_v44  ;;  %v2952_v29 = vmul.f32 %v7535_v18, %v2951_v5 }
 0x667   : > { %v2873_v37 = vpop.permute.xlu0 %2872 }
 0x668   : > { %v2893_v60 = vsel %vm1725_vm11, %v2822_v48, %v2873_v37  ;;  %v2925_v22 = vmul.f32 100.0, %v2923_v46  ;;  %v2924_v13 = vmul.f32 100.0, %v2922_v1  ;;  %v3718_v48 = vsub.f32 %v3605_v42, %v3716_v58 }
 0x669   : > { %v2895_v51 = vsel %vm1352_vm5, %v2893_v60, %v2881_v8  ;;  %v2936_v8 = vperm.slane %v7404_v7, 1  ;;  %v2954_v46 = vmul.f32 100.0, %v2952_v29 }
 0x66a   : > { %v2897_v30 = vsel %vm2009_vm7, %v2895_v51, %v2889_v52  ;;  %v2935_v24 = vadd.f32 %v2932_v33, %v2925_v22  ;;  %v7554_v37 = vmul.f32 %v7138_v12, %v3718_v48  ;;  %v2958_v33 = vpop.permute.xlu2 %2957 }
 0x66b   : > { %v2928_v31 = vpop.permute.xlu1 %2927  ;;  %v2937_v52 = vmul.f32 %v7535_v18, %v2936_v8 }
 0x66c   : > { %v2934_v44 = vadd.f32 %v2928_v31, %v2924_v13  ;;  %2970 = vrot.lane.b32.xlu1 %v2935_v24, %s5643_s12  ;;  %v2964_v31 = vadd.f32 %v2958_v33, %v2954_v46  ;;  %v8823_v51 = vperm.slane %v7554_v37, 2 }
 0x66d   : > { %v2939_v42 = vmul.f32 100.0, %v2937_v52  ;;  %v2953_v52 = vmul.f32 %v7533_v3, %v2951_v5 }
 0x66e   : > { %2968 = vrot.lane.b32.xlu2 %v2934_v44, %s5643_s12 }
 0x66f   : > { %v2955_v39 = vmul.f32 100.0, %v2953_v52 }
 0x670   : > { %v2887_v60 = vpop.permute.xlu0 %2886 }
 0x671   : > { %v2896_v22 = vsel %vm2009_vm7, %v2894_v53, %v2887_v60  ;;  %v3823_v53 = vmul.f32 %v8823_v51, %v7146_v28 }
 0x672   : > { %v3649_v1 = vmul.f32 %v7028_v23, %v2896_v22 }
 0x674   : > { %v3650_v58 = vperm.slane %v3649_v1, 0  ;;  %v2943_v13 = vpop.permute.xlu1 %2942  ;;  %2984 = vrot.lane.b32.xlu1 %v2964_v31, %s5634_s6  ;;  %v3825_v1 = vsub.f32 %v3718_v48, %v3823_v53 }
 0x675   : > { %v2949_v44 = vadd.f32 %v2943_v13, %v2939_v42 }
 0x676   : > { %v3651_v29 = vmul.f32 %v3650_v58, %v7036_v9  ;;  %v3652_v24 = vmul.f32 %v3650_v58, %v7033_v49  ;;  %v2938_v58 = vmul.f32 %v7533_v3, %v2936_v8  ;;  %v7574_v13 = vmul.f32 %v7186_v25, %v3825_v1 }
 0x677   : > { %2976 = vrot.lane.b32.xlu0 %v2949_v44, %s5636_s15 }
 0x678   : > { %v3653_v60 = vsub.f32 %v2896_v22, %v3651_v29  ;;  %v3654_v59 = vsub.f32 %v2897_v30, %v3652_v24  ;;  %v7567_v46 = vpop.permute.xlu0 %2912  ;;  %v2940_v48 = vmul.f32 100.0, %v2938_v58  ;;  %v8827_v53 = vperm.slane %v7574_v13, 3 }
 0x67a   : > { %v3756_v33 = vmul.f32 %v7085_v36, %v3653_v60 }
 0x67c   : > { %v3757_v31 = vperm.slane %v3756_v33, 1  ;;  %v2962_v42 = vpop.permute.xlu1 %2961  ;;  %3010 = vperm.xlu1 %5325, %v6488_v57   ;;  %v9117_v33 = vld [vmem:[#allocation56_spill] sm:$0xff] }
 0x67d   : > { %v2965_v29 = vadd.f32 %v2962_v42, %v2955_v39  ;;  %v7583_v51 = vsub.f32 %v7447_v45, %v9117_v33  ;;  %v9118_v39 = vperm.slane %v7487_v21, 6 }
 0x67e   : > { %v3758_v30 = vmul.f32 %v3757_v31, %v7092_v56  ;;  %v3759_v22 = vmul.f32 %v3757_v31, %v7095_v26 }
 0x67f   : > { %2986 = vrot.lane.b32.xlu0 %v2965_v29, %s5634_s6 }
 0x680   : > { %v3760_v24 = vsub.f32 %v3653_v60, %v3758_v30  ;;  %v3761_v5 = vsub.f32 %v3654_v59, %v3759_v22  ;;  %v4197_v59 = vmul.f32 %v9118_v39, %v7583_v51  ;;  %v3924_v60 = vmul.f32 %v8827_v53, %v7228_v14 }
 0x681   : > { %v2947_v44 = vpop.permute.xlu0 %2946 }
 0x682   : > { %v3857_v8 = vmul.f32 %v7138_v12, %v3760_v24  ;;  %v2950_v52 = vadd.f32 %v2947_v44, %v2940_v48  ;;  %v4199_v30 = vsub.f32 %v7478_v40, %v4197_v59  ;;  %v3926_v22 = vsub.f32 %v3825_v1, %v3924_v60 }
 0x683   : > { %v5654_v44 = vmov 26  }
 0x684   : > { %v3858_v57 = vperm.slane %v3857_v8, 2  ;;  %2978 = vrot.lane.b32.xlu2 %v2950_v52, %s5636_s15  ;;  %3029 = vperm.xlu1 %5325, %v6543_v47   ;;  %v7599_v29 = vmul.f32 %v7271_v10, %v3926_v22  ;;  %5417 = vrcp.f32 %v4199_v30  ;;  %vm4254_vm2 = vweird.f32 %v4199_v30 }
 0x686   : > { %v3859_v31 = vmul.f32 %v3858_v57, %v7146_v28  ;;  %v3860_v58 = vmul.f32 %v3858_v57, %v7149_v20  ;;  %v8826_v40 = vperm.slane %v7599_v29, 4 }
 0x687   : > { %3014 = vperm.xlu0 %5326, %v6525_v34  }
 0x688   : > { %v3861_v42 = vsub.f32 %v3760_v24, %v3859_v31  ;;  %v3862_v45 = vsub.f32 %v3761_v5, %v3860_v58  ;;  %v4019_v33 = vmul.f32 %v8826_v40, %v7294_v15 }
 0x68a   : > { %v3952_v21 = vmul.f32 %v7186_v25, %v3861_v42  ;;  %v5418_v52 = vpop.eup %5417  ;;  %v4021_v58 = vsub.f32 %v3926_v22, %v4019_v33  ;;  %v4260_v33 = vand.u32 2147483648, %v4199_v30 }
 0x68b   : > { %v4250_v59 = vmul.f32 %v5418_v52, %v4199_v30  ;;  %vm4255_vm1 = vweird.f32 %v5418_v52 }
 0x68c   : > { %v3953_v48 = vperm.slane %v3952_v21, 3  ;;  %5321 = vperm.xlu2 %5319, %v6475_v54   ;;  %5328 = vset.pattern.permute.xlu1 %v5654_v44  ;;  %v4106_v21 = vmul.f32 %v7360_v41, %v4021_v58  ;;  %vm4256_vm3 = vmor %vm4254_vm2, %vm4255_vm1 }
 0x68d   : > { %3044 = vperm.xlu1 %5328, %v6559_v2  }
 0x68e   : > { %v3954_v57 = vmul.f32 %v3953_v48, %v7228_v14  ;;  %v3955_v24 = vmul.f32 %v3953_v48, %v7192_v6  ;;  %v4251_v48 = vsub.f32 1.0, %v4250_v59  ;;  %v4258_v59 = vand.u32 2147483647, %v4199_v30 }
 0x68f   : > { %5329 = vset.pattern.permute.xlu0 %v5654_v44 }
 0x690   : > { %v3956_v1 = vsub.f32 %v3861_v42, %v3954_v57  ;;  %v3957_v5 = vsub.f32 %v3862_v45, %v3955_v24  ;;  %3055 = vperm.xlu0 %5329, %v6498_v4   ;;  %v4252_v40 = vmul.f32 %v5418_v52, %v4251_v48  ;;  %vm4259_vm4 = vcmp.eq.f32.partialorder %v4258_v59, 8.507059e+37  ;;  %v9121_v59 = vld [vmem:[#allocation36_spill] sm:$0xff] }
 0x692   : > { %v4041_v8 = vmul.f32 %v7271_v10, %v3956_v1 }
 0x694   : > { %v4042_v39 = vperm.slane %v4041_v8, 4  ;;  %3025 = vperm.xlu2 %5319, %v6486_v55   ;;  %v4107_v8 = vperm.slane %v4106_v21, 5 }
 0x696   : > { %v4043_v60 = vmul.f32 %v4042_v39, %v7294_v15  ;;  %v4044_v31 = vmul.f32 %v4042_v39, %v7276_v62  ;;  %v4108_v22 = vmul.f32 %v4107_v8, %v7436_v0 }
 0x698   : > { %v4045_v42 = vsub.f32 %v3956_v1, %v4043_v60  ;;  %v4046_v45 = vsub.f32 %v3957_v5, %v4044_v31  ;;  %v4253_v1 = vadd.f32 %v5418_v52, %v4252_v40  ;;  %v4110_v60 = vsub.f32 %v4021_v58, %v4108_v22 }
 0x69a   : > { %v4124_v57 = vmul.f32 %v7360_v41, %v4045_v42  ;;  %v4257_v31 = vsel %vm4256_vm3, %v5418_v52, %v4253_v1  ;;  %v9119_v52 = vsub.f32 %v7480_v61, %v7498_v50 }
 0x69c   : > { %v4125_v24 = vperm.slane %v4124_v57, 5  ;;  %5327 = vset.pattern.permute.xlu2 %v5654_v44  ;;  %v7635_v58 = vsub.f32 %v9119_v52, %v7312_v27 }
 0x69d   : > { %3040 = vperm.xlu2 %5327, %v6511_v11  }
 0x69e   : > { %v4126_v53 = vmul.f32 %v4125_v24, %v7436_v0  ;;  %v4127_v2 = vmul.f32 %v4125_v24, %v7372_v35 }
 0x6a0   : > { %v4128_v4 = vsub.f32 %v4045_v42, %v4126_v53  ;;  %v4129_v39 = vsub.f32 %v4046_v45, %v4127_v2  ;;  %v4261_v2 = vor.u32 1.1754944e-38, %v4260_v33  ;;  %v4189_v42 = vmul.f32 %v7483_v38, %v4110_v60 }
 0x6a2   : > { %v4201_v5 = vmul.f32 %v7483_v38, %v4128_v4  ;;  %v7625_v48 = vsel %vm4259_vm4, %v4261_v2, %v4257_v31  ;;  %v4190_v24 = vperm.slane %v4189_v42, 6  ;;  %v9123_v31 = vperm.slane %v7531_v63, 1 }
 0x6a3   : > { %v9125_v42 = vperm.slane %v7554_v37, 2 }
 0x6a4   : > { %v4202_v44 = vperm.slane %v4201_v5, 6  ;;  %v7629_v5 = vsub.f32 %v4199_v30, %v7314_v17  ;;  %v2006_v17 = vsel %vm1725_vm11, %v9121_v59, %v6543_v47  ;;  %v4191_v30 = vmul.f32 %v4190_v24, %v7583_v51 }
 0x6a5   : > { %3059 = vperm.xlu2 %5327, %v6580_v19  }
 0x6a6   : > { %v4203_v21 = vmul.f32 %v4202_v44, %v7583_v51  ;;  %v4204_v53 = vmul.f32 %v4202_v44, %v7491_v16  ;;  %v9122_v44 = vld [vmem:[#allocation35_spill] sm:$0xff]  ;;  %v4193_v52 = vsub.f32 %v4110_v60, %v4191_v30 }
 0x6a7   : > { %v2008_v61 = vsel %vm1352_vm5, %v2006_v17, %v9122_v44 }
 0x6a8   : > { %v4205_v40 = vsub.f32 %v4128_v4, %v4203_v21  ;;  %v4206_v45 = vsub.f32 %v4129_v39, %v4204_v53  ;;  %v9120_v39 = vperm.slane %v7519_v32, 0  ;;  %v3717_v21 = vmul.f32 %v9123_v31, %v7095_v26  ;;  %v9124_v53 = vld [vmem:[#allocation37_spill] sm:$0xff] }
 0x6a9   : > { %v2011_v32 = vsel %vm2009_vm7, %v2008_v61, %v9124_v53  ;;  %v4192_v61 = vmul.f32 %v4190_v24, %v7491_v16 }
 0x6aa   : > { %v4272_v57 = vmul.f32 %v7625_v48, %v4205_v40  ;;  %v3604_v33 = vmul.f32 %v9120_v39, %v7033_v49 }
 0x6ac   : > { %v4273_v22 = vperm.slane %v4272_v57, 7  ;;  %v3606_v2 = vsub.f32 %v2011_v32, %v3604_v33  ;;  %v3824_v57 = vmul.f32 %v9125_v42, %v7149_v20  ;;  %v4109_v33 = vmul.f32 %v4107_v8, %v7372_v35 }
 0x6ae   : > { %v4274_v1 = vmul.f32 %v4273_v22, %v7629_v5  ;;  %v4275_v4 = vmul.f32 %v4273_v22, %v7635_v58  ;;  %v3719_v22 = vsub.f32 %v3606_v2, %v3717_v21  ;;  %v2906_v2 = vperm.slane %v7506_v43, 1 }
 0x6b0   : > { %v4276_v27 = vsub.f32 %v4205_v40, %v4274_v1  ;;  %v7648_v50 = vsub.f32 %v4206_v45, %v4275_v4  ;;  %v9126_v40 = vperm.slane %v7574_v13, 3  ;;  %v4266_v1 = vmul.f32 %v7625_v48, %v4193_v52 }
 0x6b1   : > { %v3826_v63 = vsub.f32 %v3719_v22, %v3824_v57  ;;  %v9127_v4 = vperm.slane %v7599_v29, 4  ;;  %v2907_v22 = vmul.f32 %v7535_v18, %v2906_v2 }
 0x6b2   : > { %5419 = vrcp.f32 %v7648_v50  ;;  %v3925_v45 = vmul.f32 %v9126_v40, %v7192_v6  ;;  %v4267_v44 = vperm.slane %v4266_v1, 7  ;;  %v4331_v13 = vand.u32 2147483648, %v7648_v50 }
 0x6b3   : > { %v4020_v39 = vmul.f32 %v9127_v4, %v7276_v62  ;;  %v4329_v53 = vand.u32 2147483647, %v7648_v50  ;;  %vm4325_vm9 = vweird.f32 %v7648_v50 }
 0x6b4   : > { %v3927_v17 = vsub.f32 %v3826_v63, %v3925_v45  ;;  %v4269_v29 = vmul.f32 %v4267_v44, %v7635_v58  ;;  %v4332_v42 = vor.u32 1.1754944e-38, %v4331_v13  ;;  %v4268_v1 = vmul.f32 %v4267_v44, %v7629_v5  ;;  %v9128_v63 = vld [vmem:[#allocation27_spill] sm:$0xff] }
 0x6b5   : > { %vm4330_vm12 = vcmp.eq.f32.partialorder %v4329_v53, 8.507059e+37  ;;  %v7685_v4 = vsub.f32 %v4276_v27, %v9128_v63  ;;  %v2908_v44 = vmul.f32 %v7533_v3, %v2906_v2  ;;  %v9129_v27 = vld [vmem:[#allocation28_spill] sm:$0xff] }
 0x6b6   : > { %v4022_v60 = vsub.f32 %v3927_v17, %v4020_v39  ;;  %v2909_v17 = vmul.f32 100.0, %v2907_v22 }
 0x6b7   : > { %v2910_v13 = vmul.f32 100.0, %v2908_v44 }
 0x6b8   : > { %v5420_v59 = vpop.eup %5419  ;;  %v4111_v31 = vsub.f32 %v4022_v60, %v4109_v33 }
 0x6b9   : > { %v4321_v37 = vmul.f32 %v5420_v59, %v7648_v50  ;;  %vm4326_vm6 = vweird.f32 %v5420_v59 }
 0x6ba   : > { %v4194_v8 = vsub.f32 %v4111_v31, %v4192_v61  ;;  %vm4327_vm10 = vmor %vm4325_vm9, %vm4326_vm6  ;;  %v2920_v31 = vadd.f32 %v9129_v27, %v2910_v13  ;;  %v3034_v27 = vperm.slane %v7404_v7, 2 }
 0x6bb   : > { %v4322_v30 = vsub.f32 1.0, %v4321_v37  ;;  %v2919_v37 = vadd.f32 %v7567_v46, %v2909_v17  ;;  %v9130_v46 = vld [vmem:[#allocation30_spill] sm:$0xff] }
 0x6bc   : > { %v7674_v24 = vsub.f32 %v4194_v8, %v4269_v29 }
 0x6bd   : > { %v4323_v21 = vmul.f32 %v5420_v59, %v4322_v30 }
 0x6bf   : > { %v4324_v32 = vadd.f32 %v5420_v59, %v4323_v21 }
 0x6c1   : > { %v4328_v57 = vsel %vm4327_vm10, %v5420_v59, %v4324_v32  ;;  %v4270_v59 = vsub.f32 %v4193_v52, %v4268_v1 }
 0x6c2   : > { %v7677_v40 = vsel %vm4330_vm12, %v4332_v42, %v4328_v57  ;;  %v3019_v57 = vperm.slane %v9130_v46, 2  ;;  %v9132_v46 = vld [vmem:[#allocation29_spill] sm:$0xff] }
 0x6c3   : > { %v7681_v45 = vmul.f32 %v7677_v40, %v7674_v24  ;;  %v3049_v7 = vperm.slane %v9132_v46, 2 }
 0x6c5   : > { %v8832_v39 = vperm.slane %v7681_v45, 0 }
 0x6c7   : > { %v4339_v33 = vmul.f32 %v8832_v39, %v7685_v4 }
 0x6c8   : > { %v2969_v60 = vpop.permute.xlu2 %2968 }
 0x6c9   : > { %v7692_v30 = vsub.f32 %v4270_v59, %v4339_v33  ;;  %v2990_v61 = vsel %vm1725_vm11, %v2919_v37, %v2969_v60 }
 0x6de   : > { %v2979_v21 = vpop.permute.xlu2 %2978  ;;  %v2971_v53 = vpop.permute.xlu1 %2970 }
 0x6df   : > { %v2991_v52 = vsel %vm1725_vm11, %v2920_v31, %v2971_v53 }
 0x6e0   : > { %v2993_v29 = vsel %vm1352_vm5, %v2991_v52, %v2979_v21 }
 0x6e6   : > { %v5322_v32 = vpop.permute.xlu2 %5321  ;;  %v2985_v8 = vpop.permute.xlu1 %2984 }
 0x6e7   : > { %v7699_v42 = vunpack.i.l.bf16 %v5322_v32  ;;  %v7706_v33 = vunpack.i.h.bf16 %v5322_v32 }
 0x6e9   : > { %v3020_v22 = vmul.f32 %v7699_v42, %v3019_v57  ;;  %v2977_v1 = vpop.permute.xlu0 %2976  ;;  %9131 = vst [vmem:[#allocation44_spill] sm:$0xff] %v7706_v33  ;;  %v3021_v52 = vmul.f32 %v7706_v33, %v3019_v57  ;;  %v3035_v32 = vmul.f32 %v7699_v42, %v3034_v27 }
 0x6ea   : > { %v2992_v2 = vsel %vm1352_vm5, %v2990_v61, %v2977_v1  ;;  %v5655_v61 = vmov 11  }
 0x6eb   : > { %v2994_v63 = vsel %vm2009_vm7, %v2992_v2, %v2985_v8  ;;  %v3022_v59 = vmul.f32 100.0, %v3020_v22  ;;  %5330 = vset.pattern.permute.xlu0 %v5655_v61  ;;  %5337 = vset.pattern.permute.xlu1 %v5655_v61 }
 0x6ec   : > { %v3655_v17 = vmul.f32 %v7028_v23, %v2994_v63  ;;  %5336 = vset.pattern.permute.xlu2 %v5655_v61 }
 0x6ee   : > { %v3026_v37 = vpop.permute.xlu2 %3025  ;;  %v3656_v60 = vperm.slane %v3655_v17, 0  ;;  %v7708_v44 = vpop.permute.xlu1 %3010  ;;  %v3023_v17 = vmul.f32 100.0, %v3021_v52 }
 0x6ef   : > { %v3032_v13 = vadd.f32 %v3026_v37, %v3022_v59  ;;  %v3037_v59 = vmul.f32 100.0, %v3035_v32  ;;  %v3050_v32 = vmul.f32 %v7699_v42, %v3049_v7 }
 0x6f0   : > { %v3657_v31 = vmul.f32 %v3656_v60, %v7036_v9  ;;  %v3658_v21 = vmul.f32 %v3656_v60, %v7033_v49 }
 0x6f1   : > { %3066 = vrot.lane.b32.xlu1 %v3032_v13, %s5643_s12  ;;  %v2987_v53 = vpop.permute.xlu0 %2986 }
 0x6f2   : > { %v3659_v8 = vsub.f32 %v2994_v63, %v3657_v31  ;;  %v2995_v22 = vsel %vm2009_vm7, %v2993_v29, %v2987_v53  ;;  %v3051_v29 = vmul.f32 %v7706_v33, %v3049_v7 }
 0x6f3   : > { %v3660_v1 = vsub.f32 %v2995_v22, %v3658_v21  ;;  %v3036_v21 = vmul.f32 %v7706_v33, %v3034_v27 }
 0x6f4   : > { %v3762_v2 = vmul.f32 %v7085_v36, %v3659_v8  ;;  %v3053_v52 = vmul.f32 100.0, %v3051_v29 }
 0x6f6   : > { %v3763_v37 = vperm.slane %v3762_v2, 1  ;;  %v3030_v60 = vpop.permute.xlu1 %3029  ;;  %v3038_v2 = vmul.f32 100.0, %v3036_v21 }
 0x6f7   : > { %v3041_v13 = vpop.permute.xlu2 %3040  ;;  %v3033_v39 = vadd.f32 %v3030_v60, %v3023_v17 }
 0x6f8   : > { %v3047_v3 = vadd.f32 %v3041_v13, %v3037_v59  ;;  %v3764_v57 = vmul.f32 %v3763_v37, %v7092_v56  ;;  %v3765_v49 = vmul.f32 %v3763_v37, %v7095_v26  ;;  %v3052_v13 = vmul.f32 100.0, %v3050_v32 }
 0x6f9   : > { %v7721_v61 = vpop.permute.xlu0 %3014  ;;  %3068 = vrot.lane.b32.xlu2 %v3033_v39, %s5643_s12 }
 0x6fa   : > { %3074 = vrot.lane.b32.xlu1 %v3047_v3, %s5636_s15  ;;  %v3766_v63 = vsub.f32 %v3659_v8, %v3764_v57  ;;  %v3767_v31 = vsub.f32 %v3660_v1, %v3765_v49 }
 0x6fc   : > { %v3863_v53 = vmul.f32 %v7138_v12, %v3766_v63 }
 0x6fe   : > { %v3864_v22 = vperm.slane %v3863_v53, 2 }
 0x6ff   : > { %v3060_v17 = vpop.permute.xlu2 %3059  ;;  %v3045_v59 = vpop.permute.xlu1 %3044 }
 0x700   : > { %v3063_v37 = vadd.f32 %v3060_v17, %v3053_v52  ;;  %v3865_v39 = vmul.f32 %v3864_v22, %v7146_v28  ;;  %v3866_v3 = vmul.f32 %v3864_v22, %v7149_v20  ;;  %v3048_v60 = vadd.f32 %v3045_v59, %v3038_v2 }
 0x702   : > { %3084 = vrot.lane.b32.xlu1 %v3063_v37, %s5634_s6  ;;  %v3867_v49 = vsub.f32 %v3766_v63, %v3865_v39  ;;  %v3868_v27 = vsub.f32 %v3767_v31, %v3866_v3  ;;  %v3056_v8 = vpop.permute.xlu0 %3055  ;;  %3076 = vrot.lane.b32.xlu0 %v3048_v60, %s5636_s15  ;;  %v9133_v31 = vld [vmem:[#allocation22_spill] sm:$0xff]  ;;  %v5656_v37 = vmov 27  }
 0x703   : > { %v3062_v1 = vadd.f32 %v3056_v8, %v3052_v13  ;;  %v9134_v8 = vld [vmem:[#allocation23_spill] sm:$0xff] }
 0x704   : > { %v3958_v7 = vmul.f32 %v7186_v25, %v3867_v49 }
 0x705   : > { %3082 = vrot.lane.b32.xlu2 %v3062_v1, %s5634_s6 }
 0x706   : > { %v3959_v57 = vperm.slane %v3958_v7, 3 }
 0x708   : > { %v3960_v29 = vmul.f32 %v3959_v57, %v7228_v14  ;;  %v3961_v21 = vmul.f32 %v3959_v57, %v7192_v6  ;;  %v9135_v57 = vld [vmem:[#allocation25_spill] sm:$0xff] }
 0x70a   : > { %3112 = vperm.xlu1 %5337, %v6525_v34   ;;  %v3962_v53 = vsub.f32 %v3867_v49, %v3960_v29  ;;  %v3963_v52 = vsub.f32 %v3868_v27, %v3961_v21  ;;  %5332 = vperm.xlu0 %5330, %v6475_v54  }
 0x70c   : > { %v4047_v63 = vmul.f32 %v7271_v10, %v3962_v53 }
 0x70d   : > { %3108 = vperm.xlu2 %5336, %v9133_v31  }
 0x70e   : > { %v4048_v32 = vperm.slane %v4047_v63, 4 }
 0x710   : > { %v4049_v22 = vmul.f32 %v4048_v32, %v7294_v15  ;;  %v4050_v2 = vmul.f32 %v4048_v32, %v7276_v62 }
 0x712   : > { %3127 = vperm.xlu1 %5337, %v6543_v47   ;;  %v4051_v17 = vsub.f32 %v3962_v53, %v4049_v22  ;;  %v4052_v59 = vsub.f32 %v3963_v52, %v4050_v2  ;;  %5338 = vset.pattern.permute.xlu0 %v5656_v37 }
 0x713   : > { %3138 = vperm.xlu0 %5338, %v6511_v11  }
 0x714   : > { %v4130_v39 = vmul.f32 %v7360_v41, %v4051_v17 }
 0x715   : > { %3123 = vperm.xlu2 %5336, %v6486_v55  }
 0x716   : > { %v4131_v3 = vperm.slane %v4130_v39, 5  ;;  %v9136_v39 = vld [vmem:[#allocation40_spill] sm:$0xff] }
 0x718   : > { %v4132_v60 = vmul.f32 %v4131_v3, %v7436_v0  ;;  %v4133_v13 = vmul.f32 %v4131_v3, %v7372_v35  ;;  %v7761_v3 = vsub.f32 %v7648_v50, %v9136_v39 }
 0x71a   : > { %5340 = vset.pattern.permute.xlu1 %v5656_v37  ;;  %v4134_v49 = vsub.f32 %v4051_v17, %v4132_v60  ;;  %v4135_v27 = vsub.f32 %v4052_v59, %v4133_v13 }
 0x71b   : > { %3153 = vperm.xlu1 %5340, %v9134_v8  }
 0x71c   : > { %v4207_v1 = vmul.f32 %v7483_v38, %v4134_v49 }
 0x71d   : > { %5339 = vset.pattern.permute.xlu2 %v5656_v37 }
 0x71e   : > { %v4208_v7 = vperm.slane %v4207_v1, 6  ;;  %3142 = vperm.xlu2 %5339, %v9135_v57  }
 0x720   : > { %v4209_v29 = vmul.f32 %v4208_v7, %v7583_v51  ;;  %v4210_v21 = vmul.f32 %v4208_v7, %v7491_v16 }
 0x722   : > { %v4211_v53 = vsub.f32 %v4134_v49, %v4209_v29  ;;  %v4212_v52 = vsub.f32 %v4135_v27, %v4210_v21 }
 0x724   : > { %v4278_v63 = vmul.f32 %v7625_v48, %v4211_v53 }
 0x726   : > { %v4279_v32 = vperm.slane %v4278_v63, 7  ;;  %3157 = vperm.xlu2 %5339, %v6580_v19   ;;  %v9137_v63 = vperm.slane %v7681_v45, 0  ;;  %v5657_v19 = vmov 12  }
 0x727   : > { %5341 = vset.pattern.permute.xlu1 %v5657_v19  ;;  %5347 = vset.pattern.permute.xlu0 %v5657_v19 }
 0x728   : > { %v4280_v22 = vmul.f32 %v4279_v32, %v7629_v5  ;;  %v4281_v2 = vmul.f32 %v4279_v32, %v7635_v58  ;;  %v4340_v32 = vmul.f32 %v9137_v63, %v7761_v3 }
 0x72a   : > { %v4282_v17 = vsub.f32 %v4211_v53, %v4280_v22  ;;  %v4283_v59 = vsub.f32 %v4212_v52, %v4281_v2 }
 0x72c   : > { %v4343_v37 = vmul.f32 %v7677_v40, %v4283_v59 }
 0x72e   : > { %v4344_v60 = vperm.slane %v4343_v37, 0  ;;  %5348 = vset.pattern.permute.xlu2 %v5657_v19 }
 0x730   : > { %v4345_v13 = vmul.f32 %v4344_v60, %v7685_v4  ;;  %v4346_v49 = vmul.f32 %v4344_v60, %v7761_v3 }
 0x732   : > { %v4347_v27 = vsub.f32 %v4282_v17, %v4345_v13  ;;  %v7765_v1 = vsub.f32 %v4283_v59, %v4346_v49  ;;  %v7776_v59 = vsub.f32 %v7674_v24, %v4340_v32  ;;  %v3004_v49 = vperm.slane %v7506_v43, 2 }
 0x734   : > { %5421 = vrcp.f32 %v7765_v1  ;;  %v4396_v53 = vand.u32 2147483648, %v7765_v1  ;;  %v4394_v50 = vand.u32 2147483647, %v7765_v1  ;;  %vm4390_vm14 = vweird.f32 %v7765_v1 }
 0x735   : > { %v7785_v60 = vsub.f32 %v4347_v27, %v7535_v18  ;;  %v3005_v27 = vmul.f32 %v7699_v42, %v3004_v49 }
 0x736   : > { %v4397_v2 = vor.u32 1.1754944e-38, %v4396_v53  ;;  %vm4395_vm8 = vcmp.eq.f32.partialorder %v4394_v50, 8.507059e+37 }
 0x73a   : > { %v5422_v7 = vpop.eup %5421 }
 0x73b   : > { %v4386_v29 = vmul.f32 %v5422_v7, %v7765_v1  ;;  %vm4391_vm13 = vweird.f32 %v5422_v7 }
 0x73c   : > { %vm4392_vm15 = vmor %vm4390_vm14, %vm4391_vm13 }
 0x73d   : > { %v4387_v21 = vsub.f32 1.0, %v4386_v29 }
 0x73f   : > { %v4388_v52 = vmul.f32 %v5422_v7, %v4387_v21 }
 0x741   : > { %v4389_v22 = vadd.f32 %v5422_v7, %v4388_v52  ;;  %v3007_v52 = vmul.f32 100.0, %v3005_v27 }
 0x743   : > { %v4393_v17 = vsel %vm4392_vm15, %v5422_v7, %v4389_v22  ;;  %v3006_v7 = vmul.f32 %v7706_v33, %v3004_v49  ;;  %v3017_v50 = vadd.f32 %v7708_v44, %v3007_v52 }
 0x744   : > { %v7778_v37 = vsel %vm4395_vm8, %v4397_v2, %v4393_v17 }
 0x745   : > { %v7782_v39 = vmul.f32 %v7778_v37, %v7776_v59  ;;  %v3008_v29 = vmul.f32 100.0, %v3006_v7 }
 0x747   : > { %v8838_v45 = vperm.slane %v7782_v39, 1  ;;  %v3018_v21 = vadd.f32 %v7721_v61, %v3008_v29 }
 0x749   : > { %v7791_v13 = vmul.f32 %v8838_v45, %v7785_v60 }
 0x753   : > { %v3069_v53 = vpop.permute.xlu2 %3068 }
 0x754   : > { %v3089_v18 = vsel %vm1725_vm11, %v3018_v21, %v3069_v53  ;;  %v9138_v53 = vld [vmem:[#allocation47_spill] sm:$0xff] }
 0x75f   : > { %v3083_v22 = vpop.permute.xlu2 %3082 }
 0x763   : > { %v3067_v63 = vpop.permute.xlu1 %3066 }
 0x764   : > { %v3088_v32 = vsel %vm1725_vm11, %v3017_v50, %v3067_v63 }
 0x767   : > { %v7805_v61 = vpop.permute.xlu2 %3108 }
 0x76c   : > { %v3075_v2 = vpop.permute.xlu1 %3074 }
 0x76d   : > { %v3090_v17 = vsel %vm1352_vm5, %v3088_v32, %v3075_v2 }
 0x76e   : > { %v3092_v24 = vsel %vm2009_vm7, %v3090_v17, %v3083_v22 }
 0x76f   : > { %v3661_v7 = vmul.f32 %v7028_v23, %v3092_v24  ;;  %v3124_v17 = vpop.permute.xlu2 %3123 }
 0x771   : > { %v3662_v29 = vperm.slane %v3661_v7, 0 }
 0x773   : > { %v3663_v21 = vmul.f32 %v3662_v29, %v7036_v9  ;;  %v3664_v27 = vmul.f32 %v3662_v29, %v9138_v53 }
 0x774   : > { %v3085_v49 = vpop.permute.xlu1 %3084  ;;  %v3077_v52 = vpop.permute.xlu0 %3076 }
 0x775   : > { %v3665_v44 = vsub.f32 %v3092_v24, %v3663_v21  ;;  %v3091_v50 = vsel %vm1352_vm5, %v3089_v18, %v3077_v52 }
 0x776   : > { %v3093_v32 = vsel %vm2009_vm7, %v3091_v50, %v3085_v49 }
 0x777   : > { %v3768_v63 = vmul.f32 %v7085_v36, %v3665_v44  ;;  %v3666_v2 = vsub.f32 %v3093_v32, %v3664_v27  ;;  %v9141_v27 = vld [vmem:[#allocation42_spill] sm:$0xff] }
 0x778   : > { %v3132_v50 = vperm.slane %v9141_v27, 3 }
 0x779   : > { %v3769_v22 = vperm.slane %v3768_v63, 1  ;;  %v9142_v63 = vld [vmem:[#allocation30_spill] sm:$0xff] }
 0x77a   : > { %v3117_v32 = vperm.slane %v9142_v63, 3 }
 0x77b   : > { %v3770_v45 = vmul.f32 %v3769_v22, %v7092_v56  ;;  %v3771_v7 = vmul.f32 %v3769_v22, %v7095_v26 }
 0x77c   : > { %v7814_v33 = vpop.permute.xlu1 %3112  ;;  %v5333_v21 = vpop.permute.xlu0 %5332 }
 0x77d   : > { %9139 = vst [vmem:[#allocation32_spill] sm:$0xff] %v7814_v33  ;;  %v3772_v24 = vsub.f32 %v3665_v44, %v3770_v45  ;;  %v3773_v29 = vsub.f32 %v3666_v2, %v3771_v7  ;;  %v7816_v18 = vunpack.i.h.bf16 %v5333_v21  ;;  %v7818_v52 = vunpack.i.l.bf16 %v5333_v21  ;;  %v3143_v7 = vpop.permute.xlu2 %3142 }
 0x77e   : > { %v3147_v21 = vperm.slane %v9132_v46, 3 }
 0x77f   : > { %9140 = vst [vmem:[#allocation39_spill] sm:$0xff] %v7816_v18  ;;  %v3869_v49 = vmul.f32 %v7138_v12, %v3772_v24  ;;  %v3133_v57 = vmul.f32 %v7818_v52, %v3132_v50  ;;  %v3118_v26 = vmul.f32 %v7818_v52, %v3117_v32  ;;  %v3119_v45 = vmul.f32 %v7816_v18, %v3117_v32 }
 0x780   : > { %v3134_v12 = vmul.f32 %v7816_v18, %v3132_v50 }
 0x781   : > { %v3870_v22 = vperm.slane %v3869_v49, 2  ;;  %v3120_v2 = vmul.f32 100.0, %v3118_v26  ;;  %v3121_v27 = vmul.f32 100.0, %v3119_v45  ;;  %v3135_v63 = vmul.f32 100.0, %v3133_v57 }
 0x782   : > { %v3148_v26 = vmul.f32 %v7818_v52, %v3147_v21 }
 0x783   : > { %v3871_v44 = vmul.f32 %v3870_v22, %v7146_v28  ;;  %v3872_v19 = vmul.f32 %v3870_v22, %v7149_v20  ;;  %v3130_v53 = vadd.f32 %v3124_v17, %v3120_v2  ;;  %v3149_v28 = vmul.f32 %v7816_v18, %v3147_v21 }
 0x784   : > { %v3128_v56 = vpop.permute.xlu1 %3127  ;;  %v3136_v22 = vmul.f32 100.0, %v3134_v12 }
 0x785   : > { %v3873_v36 = vsub.f32 %v3772_v24, %v3871_v44  ;;  %v3874_v49 = vsub.f32 %v3773_v29, %v3872_v19  ;;  %v3139_v9 = vpop.permute.xlu0 %3138  ;;  %v3131_v23 = vadd.f32 %v3128_v56, %v3121_v27  ;;  %3164 = vrot.lane.b32.xlu1 %v3130_v53, %s5643_s12  ;;  %v3151_v56 = vmul.f32 100.0, %v3149_v28 }
 0x786   : > { %v3145_v33 = vadd.f32 %v3139_v9, %v3135_v63  ;;  %v3150_v24 = vmul.f32 100.0, %v3148_v26  ;;  %v3146_v45 = vadd.f32 %v3143_v7, %v3136_v22  ;;  %v3158_v63 = vpop.permute.xlu2 %3157  ;;  %v8859_v22 = vmov 14  }
 0x787   : > { %v3964_v32 = vmul.f32 %v7186_v25, %v3873_v36  ;;  %3166 = vrot.lane.b32.xlu0 %v3131_v23, %s5643_s12  ;;  %v3161_v44 = vadd.f32 %v3158_v63, %v3151_v56 }
 0x788   : > { %3172 = vrot.lane.b32.xlu2 %v3145_v33, %s5636_s15 }
 0x789   : > { %v3965_v50 = vperm.slane %v3964_v32, 3 }
 0x78b   : > { %v3966_v57 = vmul.f32 %v3965_v50, %v7228_v14  ;;  %v3967_v17 = vmul.f32 %v3965_v50, %v7192_v6 }
 0x78d   : > { %v3968_v29 = vsub.f32 %v3873_v36, %v3966_v57  ;;  %v3969_v27 = vsub.f32 %v3874_v49, %v3967_v17  ;;  %v3154_v9 = vpop.permute.xlu1 %3153  ;;  %3174 = vrot.lane.b32.xlu1 %v3146_v45, %s5636_s15  ;;  %v9143_v17 = vld [vmem:[#allocation20_spill] sm:$0xff] }
 0x78e   : > { %v3160_v53 = vadd.f32 %v3154_v9, %v3150_v24  ;;  %v5659_v9 = vmov 28  }
 0x78f   : > { %v4053_v23 = vmul.f32 %v7271_v10, %v3968_v29 }
 0x790   : > { %3180 = vrot.lane.b32.xlu0 %v3160_v53, %s5634_s6  ;;  %3182 = vrot.lane.b32.xlu2 %v3161_v44, %s5634_s6  ;;  %v8865_v53 = vmov 13  }
 0x791   : > { %v4054_v12 = vperm.slane %v4053_v23, 4 }
 0x793   : > { %v4055_v33 = vmul.f32 %v4054_v12, %v7294_v15  ;;  %v4056_v28 = vmul.f32 %v4054_v12, %v7276_v62 }
 0x795   : > { %v4057_v36 = vsub.f32 %v3968_v29, %v4055_v33  ;;  %v4058_v19 = vsub.f32 %v3969_v27, %v4056_v28  ;;  %5343 = vperm.xlu1 %5341, %v6475_v54  }
 0x797   : > { %v4136_v2 = vmul.f32 %v7360_v41, %v4057_v36 }
 0x798   : > { %3206 = vperm.xlu0 %5347, %v9133_v31   ;;  %3210 = vperm.xlu2 %5348, %v6525_v34  }
 0x799   : > { %v4137_v7 = vperm.slane %v4136_v2, 5 }
 0x79b   : > { %v4138_v21 = vmul.f32 %v4137_v7, %v7436_v0  ;;  %v4139_v49 = vmul.f32 %v4137_v7, %v7372_v35 }
 0x79d   : > { %v4140_v32 = vsub.f32 %v4057_v36, %v4138_v21  ;;  %v4141_v26 = vsub.f32 %v4058_v19, %v4139_v49  ;;  %3221 = vperm.xlu1 %5341, %v6486_v55   ;;  %v8863_v19 = vmov 29  }
 0x79f   : > { %v4213_v50 = vmul.f32 %v7483_v38, %v4140_v32 }
 0x7a0   : > { %5359 = vset.pattern.permute.xlu0 %v8859_v22  ;;  %3225 = vperm.xlu2 %5348, %v6543_v47  }
 0x7a1   : > { %v4214_v57 = vperm.slane %v4213_v50, 6  ;;  %3389 = vperm.xlu0 %5359, %v9143_v17  }
 0x7a3   : > { %v4215_v56 = vmul.f32 %v4214_v57, %v7583_v51  ;;  %v4216_v24 = vmul.f32 %v4214_v57, %v7491_v16 }
 0x7a5   : > { %v4217_v29 = vsub.f32 %v4140_v32, %v4215_v56  ;;  %v4218_v27 = vsub.f32 %v4141_v26, %v4216_v24  ;;  %5349 = vset.pattern.permute.xlu1 %v5659_v9  ;;  %v9144_v32 = vld [vmem:[#allocation41_spill] sm:$0xff] }
 0x7a6   : > { %3236 = vperm.xlu1 %5349, %v6511_v11   ;;  %v7874_v26 = vsub.f32 %v7765_v1, %v9144_v32  ;;  %v8861_v1 = vmov 30  }
 0x7a7   : > { %v4284_v45 = vmul.f32 %v7625_v48, %v4217_v29 }
 0x7a8   : > { %5350 = vset.pattern.permute.xlu2 %v8865_v53 }
 0x7a9   : > { %v4285_v63 = vperm.slane %v4284_v45, 7  ;;  %5360 = vset.pattern.permute.xlu0 %v5659_v9  ;;  %5352 = vperm.xlu2 %5350, %v6475_v54  }
 0x7aa   : > { %3251 = vperm.xlu0 %5360, %v9134_v8  }
 0x7ab   : > { %v4286_v23 = vmul.f32 %v4285_v63, %v7629_v5  ;;  %v4287_v44 = vmul.f32 %v4285_v63, %v7635_v58 }
 0x7ad   : > { %v4288_v12 = vsub.f32 %v4217_v29, %v4286_v23  ;;  %v4289_v33 = vsub.f32 %v4218_v27, %v4287_v44 }
 0x7ae   : > { %5356 = vset.pattern.permute.xlu1 %v8865_v53 }
 0x7af   : > { %v4349_v28 = vmul.f32 %v7677_v40, %v4289_v33  ;;  %3319 = vperm.xlu1 %5356, %v6486_v55  }
 0x7b1   : > { %v4350_v36 = vperm.slane %v4349_v28, 0  ;;  %5357 = vset.pattern.permute.xlu2 %v8863_v19 }
 0x7b2   : > { %3334 = vperm.xlu2 %5357, %v6511_v11  }
 0x7b3   : > { %v4351_v54 = vmul.f32 %v4350_v36, %v7685_v4  ;;  %v4352_v2 = vmul.f32 %v4350_v36, %v7761_v3 }
 0x7b5   : > { %v4353_v7 = vsub.f32 %v4288_v12, %v4351_v54  ;;  %v4354_v21 = vsub.f32 %v4289_v33, %v4352_v2  ;;  %v9145_v33 = vperm.slane %v7782_v39, 1 }
 0x7b7   : > { %v4408_v49 = vmul.f32 %v7778_v37, %v4354_v21  ;;  %5358 = vset.pattern.permute.xlu1 %v8863_v19  ;;  %v4405_v28 = vmul.f32 %v9145_v33, %v7874_v26 }
 0x7b8   : > { %3349 = vperm.xlu1 %5358, %v9134_v8  }
 0x7b9   : > { %v4409_v50 = vperm.slane %v4408_v49, 1 }
 0x7ba   : > { %5361 = vset.pattern.permute.xlu2 %v8859_v22 }
 0x7bb   : > { %v4410_v57 = vmul.f32 %v4409_v50, %v7785_v60  ;;  %v4411_v56 = vmul.f32 %v4409_v50, %v7874_v26  ;;  %3417 = vperm.xlu2 %5361, %v6486_v55   ;;  %v9146_v50 = vsub.f32 %v7692_v30, %v7791_v13 }
 0x7bd   : > { %v4412_v24 = vsub.f32 %v4353_v7, %v4410_v57  ;;  %v7882_v29 = vsub.f32 %v4354_v21, %v4411_v56  ;;  %v7897_v7 = vsub.f32 %v7776_v59, %v4405_v28  ;;  %v3102_v57 = vperm.slane %v7506_v43, 3 }
 0x7bf   : > { %5423 = vrcp.f32 %v7882_v29  ;;  %v4455_v23 = vand.u32 2147483648, %v7882_v29  ;;  %v4453_v12 = vand.u32 2147483647, %v7882_v29  ;;  %vm4449_vm1 = vweird.f32 %v7882_v29 }
 0x7c0   : > { %5362 = vset.pattern.permute.xlu1 %v8861_v1  ;;  %v7906_v39 = vsub.f32 %v4412_v24, %v7699_v42  ;;  %v3103_v56 = vmul.f32 %v7818_v52, %v3102_v57 }
 0x7c1   : > { %3432 = vperm.xlu1 %5362, %v6511_v11   ;;  %v4456_v54 = vor.u32 1.1754944e-38, %v4455_v23  ;;  %vm4454_vm3 = vcmp.eq.f32.partialorder %v4453_v12, 8.507059e+37  ;;  %v9148_v23 = vld [vmem:[#allocation32_spill] sm:$0xff] }
 0x7c3   : > { %5363 = vset.pattern.permute.xlu2 %v8861_v1 }
 0x7c4   : > { %3447 = vperm.xlu2 %5363, %v9134_v8  }
 0x7c5   : > { %v5424_v27 = vpop.eup %5423 }
 0x7c6   : > { %v4445_v45 = vmul.f32 %v5424_v27, %v7882_v29  ;;  %vm4450_vm0 = vweird.f32 %v5424_v27 }
 0x7c7   : > { %vm4451_vm2 = vmor %vm4449_vm1, %vm4450_vm0 }
 0x7c8   : > { %v4446_v63 = vsub.f32 1.0, %v4445_v45  ;;  %v3105_v45 = vmul.f32 100.0, %v3103_v56  ;;  %v9149_v56 = vld [vmem:[#allocation46_spill] sm:$0xff] }
 0x7ca   : > { %v4447_v44 = vmul.f32 %v5424_v27, %v4446_v63  ;;  %v3115_v63 = vadd.f32 %v7805_v61, %v3105_v45 }
 0x7cc   : > { %v4448_v36 = vadd.f32 %v5424_v27, %v4447_v44  ;;  %5365 = vset.pattern.permute.xlu2 %v5659_v9 }
 0x7ce   : > { %v4452_v2 = vsel %vm4451_vm2, %v5424_v27, %v4448_v36  ;;  %v3104_v27 = vmul.f32 %v7816_v18, %v3102_v57 }
 0x7cf   : > { %v7899_v21 = vsel %vm4454_vm3, %v4456_v54, %v4452_v2  ;;  %v8857_v2 = vmov 15  }
 0x7d0   : > { %v7903_v49 = vmul.f32 %v7899_v21, %v7897_v7  ;;  %v3106_v24 = vmul.f32 100.0, %v3104_v27  ;;  %5364 = vset.pattern.permute.xlu1 %v8857_v2 }
 0x7d2   : > { %v8856_v32 = vperm.slane %v7903_v49, 2  ;;  %v3116_v44 = vadd.f32 %v9148_v23, %v3106_v24  ;;  %v9151_v23 = vld [vmem:[#allocation47_spill] sm:$0xff] }
 0x7d4   : > { %v4463_v9 = vmul.f32 %v8856_v32, %v7906_v39 }
 0x7d6   : > { %v7915_v59 = vsub.f32 %v9146_v50, %v4463_v9 }
 0x7d8   : > { %9147 = vst [vmem:[#allocation31_spill] sm:$0xff] %v7915_v59  ;;  %v8904_v59 = vperm.slane %v9132_v46, 7 }
 0x7e2   : > { %v3173_v42 = vpop.permute.xlu2 %3172 }
 0x7ea   : > { %v3183_v36 = vpop.permute.xlu2 %3182 }
 0x7f2   : > { %v3211_v24 = vpop.permute.xlu2 %3210 }
 0x7f7   : > { %v3165_v12 = vpop.permute.xlu1 %3164 }
 0x7f8   : > { %v3186_v33 = vsel %vm1725_vm11, %v3115_v63, %v3165_v12  ;;  %v9150_v63 = vld [vmem:[#allocation48_spill] sm:$0xff] }
 0x7f9   : > { %v3167_v28 = vpop.permute.xlu0 %3166  ;;  %v3188_v30 = vsel %vm1352_vm5, %v3186_v33, %v3173_v42  ;;  %v3200_v33 = vperm.slane %v7506_v43, 4 }
 0x7fa   : > { %v3187_v13 = vsel %vm1725_vm11, %v3116_v44, %v3167_v28  ;;  %v9152_v28 = vld [vmem:[#allocation30_spill] sm:$0xff]  ;;  %v7948_v34 = vpop.permute.xlu2 %3225 }
 0x7fb   : > { %v8872_v32 = vperm.slane %v9152_v28, 4 }
 0x7ff   : > { %v3175_v54 = vpop.permute.xlu1 %3174 }
 0x800   : > { %v3189_v9 = vsel %vm1352_vm5, %v3187_v13, %v3175_v54 }
 0x801   : > { %v3191_v61 = vsel %vm2009_vm7, %v3189_v9, %v3183_v36  ;;  %v9155_v9 = vld [vmem:[#allocation49_spill] sm:$0xff] }
 0x802   : > { %v3181_v50 = vpop.permute.xlu0 %3180 }
 0x803   : > { %v3190_v57 = vsel %vm2009_vm7, %v3188_v30, %v3181_v50 }
 0x804   : > { %v3667_v27 = vmul.f32 %v9149_v56, %v3190_v57 }
 0x806   : > { %v3668_v45 = vperm.slane %v3667_v27, 0 }
 0x807   : > { %v5344_v12 = vpop.permute.xlu1 %5343 }
 0x808   : > { %v3669_v42 = vmul.f32 %v3668_v45, %v9150_v63  ;;  %v3670_v44 = vmul.f32 %v3668_v45, %v9151_v23  ;;  %v7934_v54 = vunpack.i.h.bf16 %v5344_v12  ;;  %v7936_v36 = vunpack.i.l.bf16 %v5344_v12 }
 0x80a   : > { %v3671_v2 = vsub.f32 %v3190_v57, %v3669_v42  ;;  %v3672_v13 = vsub.f32 %v3191_v61, %v3670_v44  ;;  %9153 = vst [vmem:[#allocation33_spill] sm:$0xff] %v7934_v54  ;;  %v3207_v30 = vpop.permute.xlu0 %3206  ;;  %v3201_v27 = vmul.f32 %v7936_v36, %v3200_v33  ;;  %v3202_v22 = vmul.f32 %v7934_v54, %v3200_v33  ;;  %v9156_v57 = vld [vmem:[#allocation50_spill] sm:$0xff]  ;;  %v9157_v42 = vld [vmem:[#allocation51_spill] sm:$0xff] }
 0x80b   : > { %9154 = vst [vmem:[#allocation34_spill] sm:$0xff] %v7936_v36  ;;  %v3216_v45 = vmul.f32 %v7936_v36, %v8872_v32 }
 0x80c   : > { %v3774_v50 = vmul.f32 %v9155_v9, %v3671_v2  ;;  %v3203_v19 = vmul.f32 100.0, %v3201_v27  ;;  %v3204_v53 = vmul.f32 100.0, %v3202_v22  ;;  %v9161_v22 = vld [vmem:[#allocation52_spill] sm:$0xff] }
 0x80d   : > { %v3218_v18 = vmul.f32 100.0, %v3216_v45 }
 0x80e   : > { %v3775_v1 = vperm.slane %v3774_v50, 1  ;;  %v7946_v12 = vadd.f32 %v3207_v30, %v3203_v19  ;;  %v7950_v63 = vadd.f32 %v3211_v24, %v3204_v53  ;;  %v9160_v50 = vld [vmem:[#allocation42_spill] sm:$0xff]  ;;  %v9162_v53 = vld [vmem:[#allocation53_spill] sm:$0xff] }
 0x80f   : > { %v3222_v23 = vpop.permute.xlu1 %3221  ;;  %v8873_v27 = vperm.slane %v9160_v50, 4 }
 0x810   : > { %v3776_v61 = vmul.f32 %v3775_v1, %v9156_v57  ;;  %v3777_v44 = vmul.f32 %v3775_v1, %v9157_v42  ;;  %v3228_v33 = vadd.f32 %v3222_v23, %v3218_v18  ;;  %9158 = vst [vmem:[#allocation56_spill] sm:$0xff] %v7950_v63  ;;  %v8874_v1 = vperm.slane %v9132_v46, 4  ;;  %v7966_v42 = vpop.permute.xlu2 %5352 }
 0x811   : > { %v3231_v19 = vmul.f32 %v7936_v36, %v8873_v27  ;;  %v9167_v63 = vmov 29  }
 0x812   : > { %v3778_v9 = vsub.f32 %v3671_v2, %v3776_v61  ;;  %v3779_v43 = vsub.f32 %v3672_v13, %v3777_v44  ;;  %3262 = vrot.lane.b32.xlu1 %v3228_v33, %s5643_s12  ;;  %v3246_v18 = vmul.f32 %v7936_v36, %v8874_v1 }
 0x813   : > { %v7952_v56 = vpop.permute.xlu0 %3389  ;;  %v3233_v23 = vmul.f32 100.0, %v3231_v19 }
 0x814   : > { %9159 = vst [vmem:[#allocation36_spill] sm:$0xff] %v7952_v56  ;;  %v3875_v32 = vmul.f32 %v9161_v22, %v3778_v9  ;;  %v3248_v33 = vmul.f32 100.0, %v3246_v18 }
 0x816   : > { %v3876_v30 = vperm.slane %v3875_v32, 2 }
 0x818   : > { %v3877_v2 = vmul.f32 %v3876_v30, %v9162_v53  ;;  %v3878_v24 = vmul.f32 %v3876_v30, %v7149_v20  ;;  %v3237_v61 = vpop.permute.xlu1 %3236  ;;  %v8893_v20 = vperm.slane %v9132_v46, 5 }
 0x819   : > { %v3243_v44 = vadd.f32 %v3237_v61, %v3233_v23  ;;  %v9164_v23 = vld [vmem:[#allocation26_spill] sm:$0xff]  ;;  %v7981_v61 = vunpack.i.l.bf16 %v7966_v42 }
 0x81a   : > { %v3879_v13 = vsub.f32 %v3778_v9, %v3877_v2  ;;  %v3880_v45 = vsub.f32 %v3779_v43, %v3878_v24  ;;  %3487 = vperm.xlu1 %5364, %v9143_v17   ;;  %v9163_v2 = vld [vmem:[#allocation25_spill] sm:$0xff]  ;;  %v3335_v24 = vpop.permute.xlu2 %3334 }
 0x81b   : > { %3270 = vrot.lane.b32.xlu0 %v3243_v44, %s5636_s15  ;;  %9165 = vst [vmem:[#allocation35_spill] sm:$0xff] %v7981_v61 }
 0x81c   : > { %v3970_v27 = vmul.f32 %v7186_v25, %v3879_v13  ;;  %v3252_v32 = vpop.permute.xlu0 %3251 }
 0x81d   : > { %v3258_v1 = vadd.f32 %v3252_v32, %v3248_v33  ;;  %v9166_v32 = vmov 13  }
 0x81e   : > { %v3971_v36 = vperm.slane %v3970_v27, 3 }
 0x81f   : > { %3278 = vrot.lane.b32.xlu2 %v3258_v1, %s5634_s6 }
 0x820   : > { %v3972_v19 = vmul.f32 %v3971_v36, %v7228_v14  ;;  %v3973_v43 = vmul.f32 %v3971_v36, %v7192_v6 }
 0x822   : > { %v3974_v9 = vsub.f32 %v3879_v13, %v3972_v19  ;;  %v3975_v30 = vsub.f32 %v3880_v45, %v3973_v43  ;;  %3515 = vperm.xlu1 %5364, %v6486_v55   ;;  %v8876_v45 = vperm.slane %v9160_v50, 5  ;;  %v8881_v55 = vmov 31  }
 0x823   : > { %3240 = vperm.xlu0 %5360, %v9163_v2   ;;  %v8890_v43 = vperm.slane %v9152_v28, 5 }
 0x824   : > { %v4059_v18 = vmul.f32 %v7271_v10, %v3974_v9  ;;  %v3329_v33 = vmul.f32 %v7981_v61, %v8876_v45 }
 0x826   : > { %v4060_v17 = vperm.slane %v4059_v18, 4  ;;  %v3418_v18 = vpop.permute.xlu2 %3417 }
 0x827   : > { %3255 = vperm.xlu2 %5365, %v9164_v23  }
 0x828   : > { %v4061_v27 = vmul.f32 %v4060_v17, %v7294_v15  ;;  %v4062_v1 = vmul.f32 %v4060_v17, %v7276_v62  ;;  %v3314_v17 = vmul.f32 %v7981_v61, %v8890_v43 }
 0x82a   : > { %v4063_v36 = vsub.f32 %v3974_v9, %v4061_v27  ;;  %v4064_v13 = vsub.f32 %v3975_v30, %v4062_v1  ;;  %5367 = vset.pattern.permute.xlu1 %v8881_v55  ;;  %v3331_v27 = vmul.f32 100.0, %v3329_v33  ;;  %v3316_v6 = vmul.f32 100.0, %v3314_v17 }
 0x82b   : > { %5368 = vset.pattern.permute.xlu0 %v9166_v32  ;;  %3545 = vperm.xlu1 %5367, %v9134_v8   ;;  %v3320_v8 = vpop.permute.xlu1 %3319 }
 0x82c   : > { %v4142_v44 = vmul.f32 %v7360_v41, %v4063_v36  ;;  %3304 = vperm.xlu0 %5368, %v9133_v31   ;;  %v3341_v45 = vadd.f32 %v3335_v24, %v3331_v27 }
 0x82e   : > { %v4143_v19 = vperm.slane %v4142_v44, 5 }
 0x82f   : > { %5366 = vset.pattern.permute.xlu2 %v8881_v55  ;;  %v8887_v55 = vperm.slane %v9132_v46, 6 }
 0x830   : > { %v4144_v9 = vmul.f32 %v4143_v19, %v7436_v0  ;;  %v4145_v30 = vmul.f32 %v4143_v19, %v7372_v35  ;;  %3530 = vperm.xlu2 %5366, %v6511_v11   ;;  %v3326_v35 = vadd.f32 %v3320_v8, %v3316_v6  ;;  %v3344_v6 = vmul.f32 %v7981_v61, %v8893_v20 }
 0x831   : > { %v3442_v11 = vmul.f32 %v8887_v55, %v7952_v56  ;;  %v8898_v20 = vperm.slane %v9152_v28, 7 }
 0x832   : > { %v4146_v1 = vsub.f32 %v4063_v36, %v4144_v9  ;;  %v4147_v44 = vsub.f32 %v4064_v13, %v4145_v30  ;;  %v3346_v17 = vmul.f32 100.0, %v3344_v6  ;;  %v9169_v6 = vmov 14  }
 0x833   : > { %3368 = vrot.lane.b32.xlu1 %v3341_v45, %s5636_s15  ;;  %v3448_v45 = vpop.permute.xlu2 %3447  ;;  %v3444_v33 = vmul.f32 100.0, %v3442_v11  ;;  %v3350_v9 = vpop.permute.xlu1 %3349 }
 0x834   : > { %v4219_v62 = vmul.f32 %v7483_v38, %v4146_v1  ;;  %5370 = vset.pattern.permute.xlu0 %v9167_v63  ;;  %5369 = vset.pattern.permute.xlu1 %v9166_v32 }
 0x835   : > { %3338 = vperm.xlu0 %5370, %v9163_v2   ;;  %v3454_v27 = vadd.f32 %v3448_v45, %v3444_v33 }
 0x836   : > { %v4220_v19 = vperm.slane %v4219_v62, 6 }
 0x838   : > { %v4221_v24 = vmul.f32 %v4220_v19, %v7583_v51  ;;  %v4222_v36 = vmul.f32 %v4220_v19, %v7491_v16  ;;  %3360 = vrot.lane.b32.xlu2 %v3326_v35, %s5643_s12  ;;  %v3356_v19 = vadd.f32 %v3350_v9, %v3346_v17 }
 0x839   : > { %5371 = vset.pattern.permute.xlu2 %v9167_v63  ;;  %v9168_v63 = vmov 30  }
 0x83a   : > { %v4223_v62 = vsub.f32 %v4146_v1, %v4221_v24  ;;  %v4224_v13 = vsub.f32 %v4147_v44, %v4222_v36  ;;  %v8888_v24 = vperm.slane %v9152_v28, 6  ;;  %v8889_v36 = vperm.slane %v9160_v50, 6 }
 0x83b   : > { %3323 = vperm.xlu1 %5369, %v6543_v47  }
 0x83c   : > { %v4290_v30 = vmul.f32 %v7625_v48, %v4223_v62  ;;  %v3412_v33 = vmul.f32 %v8888_v24, %v7952_v56  ;;  %v3427_v9 = vmul.f32 %v8889_v36, %v7952_v56  ;;  %v9170_v36 = vmov 31  }
 0x83d   : > { %3474 = vrot.lane.b32.xlu0 %v3454_v27, %s5634_s6 }
 0x83e   : > { %v4291_v8 = vperm.slane %v4290_v30, 7  ;;  %5374 = vset.pattern.permute.xlu0 %v9168_v63  ;;  %v3414_v27 = vmul.f32 100.0, %v3412_v33 }
 0x840   : > { %v4292_v55 = vmul.f32 %v4291_v8, %v7629_v5  ;;  %v4293_v35 = vmul.f32 %v4291_v8, %v7635_v58  ;;  %3376 = vrot.lane.b32.xlu2 %v3356_v19, %s5634_s6  ;;  %v3429_v8 = vmul.f32 100.0, %v3427_v9  ;;  %v3424_v24 = vadd.f32 %v3418_v18, %v3414_v27 }
 0x841   : > { %v9171_v9 = vperm.slane %v9152_v28, 4 }
 0x842   : > { %v4294_v1 = vsub.f32 %v4223_v62, %v4292_v55  ;;  %v4295_v44 = vsub.f32 %v4224_v13, %v4293_v35  ;;  %v3433_v13 = vpop.permute.xlu1 %3432 }
 0x843   : > { %5372 = vset.pattern.permute.xlu1 %v9169_v6  ;;  %v3439_v35 = vadd.f32 %v3433_v13, %v3429_v8  ;;  %v3217_v18 = vmul.f32 %v7934_v54, %v9171_v9 }
 0x844   : > { %v4355_v11 = vmul.f32 %v7677_v40, %v4295_v44  ;;  %3402 = vperm.xlu1 %5372, %v9133_v31  }
 0x845   : > { %3436 = vperm.xlu0 %5374, %v9163_v2   ;;  %v3219_v8 = vmul.f32 100.0, %v3217_v18 }
 0x846   : > { %v4356_v45 = vperm.slane %v4355_v11, 0 }
 0x848   : > { %v4357_v55 = vmul.f32 %v4356_v45, %v7685_v4  ;;  %v4358_v62 = vmul.f32 %v4356_v45, %v7761_v3  ;;  %3353 = vperm.xlu2 %5371, %v9164_v23  }
 0x84a   : > { %v4359_v30 = vsub.f32 %v4294_v1, %v4357_v55  ;;  %v4360_v17 = vsub.f32 %v4295_v44, %v4358_v62  ;;  %v9172_v55 = vld [vmem:[#allocation44_spill] sm:$0xff] }
 0x84b   : > { %v8052_v62 = vsub.f32 %v7882_v29, %v9172_v55  ;;  %v9176_v29 = vmov 15  }
 0x84c   : > { %v4414_v19 = vmul.f32 %v7778_v37, %v4360_v17  ;;  %3466 = vrot.lane.b32.xlu1 %v3439_v35, %s5636_s15 }
 0x84d   : > { %5378 = vset.pattern.permute.xlu0 %v9170_v36  ;;  %9173 = vst [vmem:[#allocation37_spill] sm:$0xff] %v8052_v62 }
 0x84e   : > { %v4415_v11 = vperm.slane %v4414_v19, 1  ;;  %v3229_v19 = vadd.f32 %v7948_v34, %v3219_v8 }
 0x850   : > { %v4416_v43 = vmul.f32 %v4415_v11, %v7785_v60  ;;  %v4417_v45 = vmul.f32 %v4415_v11, %v7874_v26  ;;  %3458 = vrot.lane.b32.xlu2 %v3424_v24, %s5643_s12 }
 0x851   : > { %5373 = vset.pattern.permute.xlu2 %v9169_v6 }
 0x852   : > { %v4418_v1 = vsub.f32 %v4359_v30, %v4416_v43  ;;  %v4419_v44 = vsub.f32 %v4360_v17, %v4417_v45  ;;  %v9174_v43 = vld [vmem:[#allocation21_spill] sm:$0xff] }
 0x854   : > { %v4467_v33 = vmul.f32 %v7899_v21, %v4419_v44  ;;  %3421 = vperm.xlu1 %5372, %v6543_v47  }
 0x856   : > { %v4468_v13 = vperm.slane %v4467_v33, 2 }
 0x858   : > { %v4469_v27 = vmul.f32 %v4468_v13, %v7906_v39  ;;  %v4470_v24 = vmul.f32 %v4468_v13, %v8052_v62  ;;  %3393 = vperm.xlu2 %5373, %v9174_v43  }
 0x85a   : > { %v4471_v30 = vsub.f32 %v4418_v1, %v4469_v27  ;;  %v8058_v17 = vsub.f32 %v4419_v44, %v4470_v24  ;;  %v9177_v44 = vperm.slane %v7903_v49, 2 }
 0x85c   : > { %9175 = vst [vmem:[#allocation27_spill] sm:$0xff] %v8058_v17  ;;  %5425 = vrcp.f32 %v8058_v17  ;;  %3264 = vrot.lane.b32.xlu1 %v3229_v19, %s5643_s12  ;;  %v4508_v1 = vand.u32 2147483648, %v8058_v17  ;;  %v4464_v34 = vmul.f32 %v9177_v44, %v8052_v62  ;;  %v4506_v9 = vand.u32 2147483647, %v8058_v17 }
 0x85d   : > { %5376 = vset.pattern.permute.xlu1 %v9176_v29  ;;  %vm4502_vm6 = vweird.f32 %v8058_v17  ;;  %v8085_v27 = vsub.f32 %v4471_v30, %v7818_v52  ;;  %v8142_v62 = vunpack.i.h.bf16 %v7966_v42 }
 0x85e   : > { %v4509_v18 = vor.u32 1.1754944e-38, %v4508_v1  ;;  %v8076_v55 = vsub.f32 %v7897_v7, %v4464_v34  ;;  %vm4507_vm10 = vcmp.eq.f32.partialorder %v4506_v9, 8.507059e+37 }
 0x85f   : > { %9181 = vst [vmem:[#allocation23_spill] sm:$0xff] %v8085_v27 }
 0x860   : > { %5375 = vset.pattern.permute.xlu2 %v9168_v63  ;;  %9178 = vst [vmem:[#allocation28_spill] sm:$0xff] %v8076_v55 }
 0x861   : > { %3451 = vperm.xlu2 %5375, %v9164_v23  }
 0x862   : > { %v5426_v35 = vpop.eup %5425 }
 0x863   : > { %v4498_v11 = vmul.f32 %v5426_v35, %v8058_v17  ;;  %vm4503_vm4 = vweird.f32 %v5426_v35 }
 0x864   : > { %3500 = vperm.xlu1 %5376, %v9133_v31   ;;  %vm4504_vm9 = vmor %vm4502_vm6, %vm4503_vm4 }
 0x865   : > { %v4499_v45 = vsub.f32 1.0, %v4498_v11 }
 0x867   : > { %v4500_v33 = vmul.f32 %v5426_v35, %v4499_v45 }
 0x869   : > { %5377 = vset.pattern.permute.xlu2 %v9176_v29  ;;  %v4501_v63 = vadd.f32 %v5426_v35, %v4500_v33  ;;  %v8892_v33 = vperm.slane %v9160_v50, 7 }
 0x86b   : > { %v4505_v31 = vsel %vm4504_vm9, %v5426_v35, %v4501_v63  ;;  %v9183_v35 = vperm.slane %v9132_v46, 4 }
 0x86c   : > { %v8078_v13 = vsel %vm4507_vm10, %v4509_v18, %v4505_v31 }
 0x86d   : > { %9179 = vst [vmem:[#allocation29_spill] sm:$0xff] %v8078_v13  ;;  %v8082_v49 = vmul.f32 %v8078_v13, %v8076_v55  ;;  %v3247_v11 = vmul.f32 %v7934_v54, %v9183_v35  ;;  %v9188_v55 = vld [vmem:[#allocation45_spill] sm:$0xff] }
 0x86f   : > { %9180 = vst [vmem:[#allocation22_spill] sm:$0xff] %v8082_v49  ;;  %v8891_v24 = vperm.slane %v8082_v49, 3  ;;  %v3249_v45 = vmul.f32 100.0, %v3247_v11 }
 0x871   : > { %v8091_v8 = vmul.f32 %v8891_v24, %v8085_v27 }
 0x873   : > { %9182 = vst [vmem:[#allocation40_spill] sm:$0xff] %v8091_v8 }
 0x879   : > { %v3279_v19 = vpop.permute.xlu2 %3278 }
 0x881   : > { %v3256_v1 = vpop.permute.xlu2 %3255 }
 0x882   : > { %v3259_v44 = vadd.f32 %v3256_v1, %v3249_v45  ;;  %v9185_v45 = vld [vmem:[#allocation46_spill] sm:$0xff] }
 0x884   : > { %3280 = vrot.lane.b32.xlu0 %v3259_v44, %s5634_s6  ;;  %v3263_v52 = vpop.permute.xlu1 %3262 }
 0x885   : > { %v3284_v30 = vsel %vm1725_vm11, %v7946_v12, %v3263_v52  ;;  %v9186_v12 = vperm.slane %v9160_v50, 4 }
 0x887   : > { %v3232_v52 = vmul.f32 %v7934_v54, %v9186_v12  ;;  %v8909_v12 = vperm.slane %v9188_v55, 5 }
 0x88a   : > { %v3531_v34 = vpop.permute.xlu2 %3530 }
 0x88c   : > { %v8102_v9 = vpop.permute.xlu1 %3487 }
 0x88d   : > { %9184 = vst [vmem:[#allocation20_spill] sm:$0xff] %v8102_v9  ;;  %v3525_v63 = vmul.f32 %v8892_v33, %v8102_v9  ;;  %v3271_v18 = vpop.permute.xlu0 %3270  ;;  %v9187_v33 = vld [vmem:[#allocation48_spill] sm:$0xff] }
 0x88e   : > { %v3286_v31 = vsel %vm1352_vm5, %v3284_v30, %v3271_v18  ;;  %v3234_v18 = vmul.f32 100.0, %v3232_v52  ;;  %v3299_v52 = vmul.f32 %v7981_v61, %v8909_v12 }
 0x88f   : > { %v3527_v35 = vmul.f32 100.0, %v3525_v63  ;;  %v3288_v11 = vsel %vm2009_vm7, %v3286_v31, %v3279_v19 }
 0x890   : > { %v8110_v1 = vmul.f32 %v9185_v45, %v3288_v11  ;;  %v3301_v54 = vmul.f32 100.0, %v3299_v52 }
 0x891   : > { %v3537_v7 = vadd.f32 %v3531_v34, %v3527_v35  ;;  %v9189_v34 = vld [vmem:[#allocation49_spill] sm:$0xff] }
 0x892   : > { %v3361_v44 = vpop.permute.xlu2 %3360  ;;  %v8897_v24 = vperm.slane %v8110_v1, 0 }
 0x893   : > { %3564 = vrot.lane.b32.xlu1 %v3537_v7, %s5636_s15  ;;  %v3510_v7 = vmul.f32 %v8898_v20, %v8102_v9 }
 0x894   : > { %v3675_v30 = vmul.f32 %v8897_v24, %v9187_v33  ;;  %v3516_v63 = vpop.permute.xlu1 %3515 }
 0x895   : > { %v3241_v19 = vpop.permute.xlu0 %3240 }
 0x896   : > { %v3677_v31 = vsub.f32 %v3288_v11, %v3675_v30  ;;  %v3244_v8 = vadd.f32 %v3241_v19, %v3234_v18  ;;  %v3540_v11 = vmul.f32 %v8904_v59, %v8102_v9  ;;  %v3512_v19 = vmul.f32 100.0, %v3510_v7 }
 0x898   : > { %v8124_v35 = vmul.f32 %v9189_v34, %v3677_v31  ;;  %3272 = vrot.lane.b32.xlu2 %v3244_v8, %s5636_s15  ;;  %v3542_v20 = vmul.f32 100.0, %v3540_v11  ;;  %v3522_v27 = vadd.f32 %v3516_v63, %v3512_v19 }
 0x89a   : > { %v3377_v24 = vpop.permute.xlu2 %3376  ;;  %v8914_v30 = vperm.slane %v8124_v35, 1 }
 0x89b   : > { %3519 = vperm.xlu1 %5376, %v6543_v47  }
 0x89c   : > { %v3782_v18 = vmul.f32 %v8914_v30, %v9156_v57 }
 0x89d   : > { %v3546_v8 = vpop.permute.xlu1 %3545 }
 0x89e   : > { %v3784_v49 = vsub.f32 %v3677_v31, %v3782_v18  ;;  %v3552_v17 = vadd.f32 %v3546_v8, %v3542_v20  ;;  %v3305_v59 = vpop.permute.xlu0 %3304 }
 0x89f   : > { %v3311_v13 = vadd.f32 %v3305_v59, %v3301_v54  ;;  %v9190_v59 = vld [vmem:[#allocation24_spill] sm:$0xff]  ;;  %v9191_v54 = vperm.slane %v9160_v50, 5 }
 0x8a0   : > { %v8145_v12 = vmul.f32 %v9161_v22, %v3784_v49  ;;  %3556 = vrot.lane.b32.xlu2 %v3522_v27, %s5643_s12  ;;  %3572 = vrot.lane.b32.xlu0 %v3552_v17, %s5634_s6 }
 0x8a1   : > { %v3382_v7 = vsel %vm1725_vm11, %v3311_v13, %v3361_v44  ;;  %v3330_v42 = vmul.f32 %v8142_v62, %v9191_v54 }
 0x8a2   : > { %v3354_v47 = vpop.permute.xlu2 %3353  ;;  %v8913_v11 = vperm.slane %v8145_v12, 2 }
 0x8a3   : > { %5380 = vset.pattern.permute.xlu1 %v9166_v32  ;;  %v9192_v32 = vperm.slane %v9132_v46, 5  ;;  %v3332_v19 = vmul.f32 100.0, %v3330_v42 }
 0x8a4   : > { %v3883_v20 = vmul.f32 %v8913_v11, %v9162_v53  ;;  %3308 = vperm.xlu1 %5380, %v9190_v59  }
 0x8a5   : > { %v3369_v27 = vpop.permute.xlu1 %3368  ;;  %v3345_v52 = vmul.f32 %v8142_v62, %v9192_v32 }
 0x8a6   : > { %v3885_v63 = vsub.f32 %v3784_v49, %v3883_v20  ;;  %v3384_v17 = vsel %vm1352_vm5, %v3382_v7, %v3369_v27 }
 0x8a7   : > { %v3386_v13 = vsel %vm2009_vm7, %v3384_v17, %v3377_v24  ;;  %v3339_v44 = vpop.permute.xlu0 %3338  ;;  %v3347_v54 = vmul.f32 100.0, %v3345_v52 }
 0x8a8   : > { %v8162_v31 = vmul.f32 %v7186_v25, %v3885_v63  ;;  %v8168_v18 = vmul.f32 %v9185_v45, %v3386_v13  ;;  %3491 = vperm.xlu2 %5377, %v9174_v43   ;;  %3534 = vperm.xlu0 %5378, %v9163_v2   ;;  %v3342_v7 = vadd.f32 %v3339_v44, %v3332_v19  ;;  %v8911_v44 = vperm.slane %v9188_v55, 6 }
 0x8a9   : > { %v3357_v42 = vadd.f32 %v3354_v47, %v3347_v54 }
 0x8aa   : > { %9193 = vst [vmem:[#allocation41_spill] sm:$0xff] %v8168_v18  ;;  %v3459_v49 = vpop.permute.xlu2 %3458  ;;  %v8912_v8 = vperm.slane %v8162_v31, 3  ;;  %v8910_v24 = vperm.slane %v8168_v18, 0 }
 0x8ac   : > { %v3978_v20 = vmul.f32 %v8912_v8, %v7228_v14  ;;  %v3681_v27 = vmul.f32 %v8910_v24, %v9187_v33  ;;  %3370 = vrot.lane.b32.xlu1 %v3342_v7, %s5636_s15 }
 0x8ad   : > { %v3324_v43 = vpop.permute.xlu1 %3323  ;;  %5382 = vset.pattern.permute.xlu1 %v9176_v29  ;;  %v9195_v29 = vperm.slane %v9152_v28, 5 }
 0x8ae   : > { %v3980_v2 = vsub.f32 %v3885_v63, %v3978_v20  ;;  %v3683_v17 = vsub.f32 %v3386_v13, %v3681_v27  ;;  %v3397_v63 = vmul.f32 %v8911_v44, %v7952_v56  ;;  %v9196_v13 = vperm.slane %v9160_v50, 6 }
 0x8af   : > { %v3475_v32 = vpop.permute.xlu0 %3474  ;;  %v3315_v47 = vmul.f32 %v8142_v62, %v9195_v29 }
 0x8b0   : > { %v8184_v19 = vmul.f32 %v7271_v10, %v3980_v2  ;;  %v8187_v52 = vmul.f32 %v9189_v34, %v3683_v17  ;;  %5379 = vset.pattern.permute.xlu2 %v9170_v36  ;;  %3378 = vrot.lane.b32.xlu0 %v3357_v42, %s5634_s6  ;;  %v3399_v24 = vmul.f32 100.0, %v3397_v63 }
 0x8b1   : > { %3549 = vperm.xlu2 %5379, %v9164_v23   ;;  %v3317_v29 = vmul.f32 100.0, %v3315_v47 }
 0x8b2   : > { %v8191_v7 = vpop.permute.xlu2 %3393  ;;  %v8918_v36 = vperm.slane %v8184_v19, 4  ;;  %v8919_v54 = vperm.slane %v8187_v52, 1 }
 0x8b3   : > { %9194 = vst [vmem:[#allocation32_spill] sm:$0xff] %v8191_v7  ;;  %v3428_v20 = vmul.f32 %v9196_v13, %v8191_v7  ;;  %v3327_v30 = vadd.f32 %v3324_v43, %v3317_v29 }
 0x8b4   : > { %v4067_v27 = vmul.f32 %v8918_v36, %v7294_v15  ;;  %v3788_v23 = vmul.f32 %v8919_v54, %v9156_v57 }
 0x8b5   : > { %v3430_v42 = vmul.f32 100.0, %v3428_v20  ;;  %v9197_v20 = vperm.slane %v9132_v46, 6 }
 0x8b6   : > { %v4069_v44 = vsub.f32 %v3980_v2, %v4067_v27  ;;  %v3790_v8 = vsub.f32 %v3683_v17, %v3788_v23  ;;  %v3403_v11 = vpop.permute.xlu1 %3402 }
 0x8b7   : > { %v3409_v13 = vadd.f32 %v3403_v11, %v3399_v24  ;;  %v3437_v56 = vpop.permute.xlu0 %3436 }
 0x8b8   : > { %v8212_v61 = vmul.f32 %v7360_v41, %v4069_v44  ;;  %v8215_v18 = vmul.f32 %v9161_v22, %v3790_v8  ;;  %v3440_v36 = vadd.f32 %v3437_v56, %v3430_v42 }
 0x8b9   : > { %3362 = vrot.lane.b32.xlu2 %v3327_v30, %s5643_s12  ;;  %v3480_v54 = vsel %vm1725_vm11, %v3409_v13, %v3459_v49 }
 0x8ba   : > { %v8921_v47 = vperm.slane %v8212_v61, 5  ;;  %v8920_v2 = vperm.slane %v8215_v18, 2  ;;  %3468 = vrot.lane.b32.xlu0 %v3440_v36, %s5636_s15  ;;  %5381 = vset.pattern.permute.xlu2 %v9169_v6  ;;  %v3443_v36 = vmul.f32 %v9197_v20, %v8191_v7 }
 0x8bb   : > { %v3452_v13 = vpop.permute.xlu2 %3451 }
 0x8bc   : > { %v4150_v11 = vmul.f32 %v8921_v47, %v7436_v0  ;;  %v3889_v56 = vmul.f32 %v8920_v2, %v9162_v53 }
 0x8be   : > { %v4152_v24 = vsub.f32 %v4069_v44, %v4150_v11  ;;  %v3891_v30 = vsub.f32 %v3790_v8, %v3889_v56  ;;  %v3467_v43 = vpop.permute.xlu1 %3466  ;;  %v9199_v8 = vperm.slane %v9152_v28, 6  ;;  %v3445_v11 = vmul.f32 100.0, %v3443_v36 }
 0x8bf   : > { %v3482_v49 = vsel %vm1352_vm5, %v3480_v54, %v3467_v43 }
 0x8c0   : > { %v8231_v17 = vmul.f32 %v7483_v38, %v4152_v24  ;;  %v8234_v63 = vmul.f32 %v7186_v25, %v3891_v30  ;;  %v3484_v6 = vsel %vm2009_vm7, %v3482_v49, %v3475_v32  ;;  %v3413_v44 = vmul.f32 %v9199_v8, %v8191_v7 }
 0x8c1   : > { %v8241_v27 = vmul.f32 %v9185_v45, %v3484_v6  ;;  %3406 = vperm.xlu2 %5381, %v9190_v59   ;;  %v3455_v2 = vadd.f32 %v3452_v13, %v3445_v11 }
 0x8c2   : > { %v8924_v54 = vperm.slane %v8231_v17, 6  ;;  %v8925_v23 = vperm.slane %v8234_v63, 3  ;;  %v3415_v43 = vmul.f32 100.0, %v3413_v44 }
 0x8c3   : > { %9198 = vst [vmem:[#allocation30_spill] sm:$0xff] %v8241_v27  ;;  %v8926_v42 = vperm.slane %v8241_v27, 0 }
 0x8c4   : > { %v4227_v32 = vmul.f32 %v8924_v54, %v7583_v51  ;;  %v3984_v29 = vmul.f32 %v8925_v23, %v7228_v14 }
 0x8c5   : > { %v3687_v56 = vmul.f32 %v8926_v42, %v9187_v33 }
 0x8c6   : > { %v8259_v49 = vsub.f32 %v4152_v24, %v4227_v32  ;;  %v3986_v20 = vsub.f32 %v3891_v30, %v3984_v29  ;;  %v3422_v8 = vpop.permute.xlu1 %3421 }
 0x8c7   : > { %v3689_v47 = vsub.f32 %v3484_v6, %v3687_v56  ;;  %v3425_v7 = vadd.f32 %v3422_v8, %v3415_v43  ;;  %v8931_v56 = vperm.slane %v9188_v55, 7  ;;  %v9201_v43 = vld [vmem:[#allocation56_spill] sm:$0xff] }
 0x8c8   : > { %v8263_v54 = vmul.f32 %v7625_v48, %v8259_v49  ;;  %v8266_v23 = vmul.f32 %v7271_v10, %v3986_v20 }
 0x8c9   : > { %v8269_v36 = vmul.f32 %v9189_v34, %v3689_v47  ;;  %3476 = vrot.lane.b32.xlu2 %v3455_v2, %s5634_s6  ;;  %3460 = vrot.lane.b32.xlu1 %v3425_v7, %s5643_s12 }
 0x8ca   : > { %v8929_v24 = vperm.slane %v8263_v54, 7  ;;  %v8927_v30 = vperm.slane %v8266_v23, 4 }
 0x8cb   : > { %9200 = vst [vmem:[#allocation50_spill] sm:$0xff] %v8269_v36  ;;  %v8928_v6 = vperm.slane %v8269_v36, 1 }
 0x8cc   : > { %v8279_v44 = vmul.f32 %v8929_v24, %v7629_v5  ;;  %v4073_v32 = vmul.f32 %v8927_v30, %v7294_v15 }
 0x8cd   : > { %v3794_v2 = vmul.f32 %v8928_v6, %v9156_v57  ;;  %v3495_v6 = vmul.f32 %v8931_v56, %v8102_v9 }
 0x8ce   : > { %v4075_v29 = vsub.f32 %v3986_v20, %v4073_v32  ;;  %v3265_v13 = vpop.permute.xlu1 %3264 }
 0x8cf   : > { %v3796_v11 = vsub.f32 %v3689_v47, %v3794_v2  ;;  %v3285_v8 = vsel %vm1725_vm11, %v9201_v43, %v3265_v13  ;;  %v3497_v13 = vmul.f32 100.0, %v3495_v6 }
 0x8d0   : > { %v8293_v42 = vmul.f32 %v7360_v41, %v4075_v29 }
 0x8d1   : > { %v8296_v30 = vmul.f32 %v9161_v22, %v3796_v11  ;;  %3504 = vperm.xlu1 %5382, %v9190_v59  }
 0x8d2   : > { %v8934_v20 = vperm.slane %v8293_v42, 5 }
 0x8d3   : > { %9202 = vst [vmem:[#allocation42_spill] sm:$0xff] %v8296_v30  ;;  %v8935_v47 = vperm.slane %v8296_v30, 2 }
 0x8d4   : > { %v4156_v32 = vmul.f32 %v8934_v20, %v7436_v0 }
 0x8d5   : > { %v3895_v2 = vmul.f32 %v8935_v47, %v9162_v53 }
 0x8d6   : > { %v4158_v43 = vsub.f32 %v4075_v29, %v4156_v32  ;;  %v3501_v7 = vpop.permute.xlu1 %3500 }
 0x8d7   : > { %v3897_v59 = vsub.f32 %v3796_v11, %v3895_v2  ;;  %v3507_v24 = vadd.f32 %v3501_v7, %v3497_v13 }
 0x8d8   : > { %v8311_v36 = vmul.f32 %v7483_v38, %v4158_v43 }
 0x8d9   : > { %v8314_v56 = vmul.f32 %v7186_v25, %v3897_v59 }
 0x8da   : > { %v8937_v9 = vperm.slane %v8311_v36, 6 }
 0x8db   : > { %9203 = vst [vmem:[#allocation52_spill] sm:$0xff] %v8314_v56  ;;  %v8936_v27 = vperm.slane %v8314_v56, 3 }
 0x8dc   : > { %v4233_v20 = vmul.f32 %v8937_v9, %v7583_v51 }
 0x8dd   : > { %v3990_v6 = vmul.f32 %v8936_v27, %v7228_v14 }
 0x8de   : > { %v8324_v29 = vsub.f32 %v4158_v43, %v4233_v20 }
 0x8df   : > { %v3992_v7 = vsub.f32 %v3897_v59, %v3990_v6 }
 0x8e0   : > { %9204 = vst [vmem:[#allocation53_spill] sm:$0xff] %v8324_v29  ;;  %v8328_v11 = vmul.f32 %v7625_v48, %v8324_v29 }
 0x8e1   : > { %v8331_v32 = vmul.f32 %v7271_v10, %v3992_v7 }
 0x8e2   : > { %v8939_v2 = vperm.slane %v8328_v11, 7 }
 0x8e3   : > { %9205 = vst [vmem:[#allocation25_spill] sm:$0xff] %v8331_v32  ;;  %v8941_v13 = vperm.slane %v8331_v32, 4 }
 0x8e4   : > { %v8338_v47 = vmul.f32 %v8939_v2, %v7629_v5 }
 0x8e5   : > { %v4079_v20 = vmul.f32 %v8941_v13, %v7294_v15 }
 0x8e6   : > { %9206 = vst [vmem:[#allocation26_spill] sm:$0xff] %v8338_v47 }
 0x8e7   : > { %v4081_v59 = vsub.f32 %v3992_v7, %v4079_v20  ;;  %v9208_v7 = vld [vmem:[#allocation47_spill] sm:$0xff]  ;;  %v9209_v20 = vperm.slane %v8110_v1, 0 }
 0x8e9   : > { %v8346_v6 = vmul.f32 %v7360_v41, %v4081_v59  ;;  %v3676_v41 = vmul.f32 %v9209_v20, %v9208_v7 }
 0x8eb   : > { %9207 = vst [vmem:[#allocation44_spill] sm:$0xff] %v8346_v6  ;;  %v8945_v27 = vperm.slane %v8346_v6, 5  ;;  %v9211_v6 = vperm.slane %v8124_v35, 1 }
 0x8ed   : > { %v4162_v9 = vmul.f32 %v8945_v27, %v7436_v0 }
 0x8ef   : > { %v4164_v56 = vsub.f32 %v4081_v59, %v4162_v9  ;;  %v9210_v59 = vld [vmem:[#allocation51_spill] sm:$0xff] }
 0x8f1   : > { %v8353_v2 = vmul.f32 %v7483_v38, %v4164_v56  ;;  %v3783_v38 = vmul.f32 %v9211_v6, %v9210_v59 }
 0x8f2   : > { %v3273_v30 = vpop.permute.xlu2 %3272 }
 0x8f3   : > { %v8951_v13 = vperm.slane %v8353_v2, 6  ;;  %v3287_v32 = vsel %vm1352_vm5, %v3285_v8, %v3273_v30  ;;  %v9212_v30 = vld [vmem:[#allocation54_spill] sm:$0xff]  ;;  %v9213_v8 = vperm.slane %v8145_v12, 2 }
 0x8f5   : > { %v4239_v47 = vmul.f32 %v8951_v13, %v7583_v51  ;;  %v3884_v15 = vmul.f32 %v9213_v8, %v9212_v30  ;;  %v9214_v13 = vld [vmem:[#allocation55_spill] sm:$0xff] }
 0x8f6   : > { %v3281_v43 = vpop.permute.xlu0 %3280 }
 0x8f7   : > { %v3289_v27 = vsel %vm2009_vm7, %v3287_v32, %v3281_v43  ;;  %v8367_v0 = vsub.f32 %v4164_v56, %v4239_v47  ;;  %v9215_v32 = vperm.slane %v8162_v31, 3  ;;  %v9217_v43 = vperm.slane %v8184_v19, 4 }
 0x8f8   : > { %v3678_v9 = vsub.f32 %v3289_v27, %v3676_v41  ;;  %v9219_v31 = vperm.slane %v8212_v61, 5 }
 0x8f9   : > { %v8374_v1 = vmul.f32 %v7625_v48, %v8367_v0  ;;  %v3979_v41 = vmul.f32 %v9215_v32, %v9214_v13 }
 0x8fa   : > { %v3785_v29 = vsub.f32 %v3678_v9, %v3783_v38  ;;  %v3557_v27 = vpop.permute.xlu2 %3556  ;;  %v9216_v38 = vld [vmem:[#allocation57_spill] sm:$0xff] }
 0x8fb   : > { %v8952_v35 = vperm.slane %v8374_v1, 7  ;;  %v3578_v56 = vsel %vm1725_vm11, %v3507_v24, %v3557_v27  ;;  %v4068_v12 = vmul.f32 %v9217_v43, %v9216_v38  ;;  %v9220_v24 = vperm.slane %v8231_v17, 6 }
 0x8fc   : > { %v3886_v20 = vsub.f32 %v3785_v29, %v3884_v15  ;;  %v9218_v29 = vld [vmem:[#allocation60_spill] sm:$0xff]  ;;  %v9223_v17 = vperm.slane %v9152_v28, 7 }
 0x8fd   : > { %v8387_v6 = vmul.f32 %v8952_v35, %v7629_v5  ;;  %v4151_v9 = vmul.f32 %v9219_v31, %v9218_v29 }
 0x8fe   : > { %v3981_v47 = vsub.f32 %v3886_v20, %v3979_v41  ;;  %v4228_v20 = vmul.f32 %v9220_v24, %v7491_v16  ;;  %v9221_v41 = vperm.slane %v8263_v54, 7 }
 0x900   : > { %v4070_v15 = vsub.f32 %v3981_v47, %v4068_v12  ;;  %v4299_v27 = vmul.f32 %v9221_v41, %v7635_v58  ;;  %v9224_v41 = vsub.f32 %v8259_v49, %v8279_v44 }
 0x902   : > { %v4153_v32 = vsub.f32 %v4070_v15, %v4151_v9  ;;  %v8400_v43 = vpop.permute.xlu2 %3491  ;;  %v9222_v15 = vperm.slane %v9132_v46, 7 }
 0x904   : > { %v4230_v19 = vsub.f32 %v4153_v32, %v4228_v20  ;;  %v3541_v9 = vmul.f32 %v9222_v15, %v8400_v43  ;;  %v3511_v32 = vmul.f32 %v9223_v17, %v8400_v43 }
 0x905   : > { %v3565_v12 = vpop.permute.xlu1 %3564 }
 0x906   : > { %v4301_v47 = vsub.f32 %v4230_v19, %v4299_v27  ;;  %v3580_v31 = vsel %vm1352_vm5, %v3578_v56, %v3565_v12  ;;  %v3543_v20 = vmul.f32 100.0, %v3541_v9  ;;  %v3513_v35 = vmul.f32 100.0, %v3511_v32 }
 0x908   : > { %v4361_v61 = vmul.f32 %v7677_v40, %v4301_v47 }
 0x90a   : > { %v4362_v8 = vperm.slane %v4361_v61, 0 }
 0x90b   : > { %v3550_v19 = vpop.permute.xlu2 %3549 }
 0x90c   : > { %v4363_v54 = vmul.f32 %v4362_v8, %v7685_v4  ;;  %v4364_v24 = vmul.f32 %v4362_v8, %v7761_v3  ;;  %v3553_v12 = vadd.f32 %v3550_v19, %v3543_v20 }
 0x90d   : > { %v3520_v46 = vpop.permute.xlu1 %3519 }
 0x90e   : > { %v4365_v27 = vsub.f32 %v9224_v41, %v4363_v54  ;;  %v4366_v56 = vsub.f32 %v4301_v47, %v4364_v24  ;;  %v3523_v15 = vadd.f32 %v3520_v46, %v3513_v35  ;;  %3574 = vrot.lane.b32.xlu1 %v3553_v12, %s5634_s6  ;;  %v9226_v35 = vperm.slane %v9160_v50, 7 }
 0x90f   : > { %v9227_v41 = vperm.slane %v9188_v55, 5 }
 0x910   : > { %v4420_v61 = vmul.f32 %v7778_v37, %v4366_v56  ;;  %3558 = vrot.lane.b32.xlu0 %v3523_v15, %s5643_s12  ;;  %v3526_v54 = vmul.f32 %v9226_v35, %v8400_v43 }
 0x911   : > { %v3300_v12 = vmul.f32 %v8142_v62, %v9227_v41  ;;  %v9229_v41 = vld [vmem:[#allocation29_spill] sm:$0xff] }
 0x912   : > { %v4421_v28 = vperm.slane %v4420_v61, 1  ;;  %v3573_v17 = vpop.permute.xlu0 %3572 }
 0x913   : > { %v3582_v49 = vsel %vm2009_vm7, %v3580_v31, %v3573_v17 }
 0x914   : > { %v4422_v8 = vmul.f32 %v4421_v28, %v7785_v60  ;;  %v4423_v9 = vmul.f32 %v4421_v28, %v7874_v26  ;;  %v8422_v32 = vmul.f32 %v9185_v45, %v3582_v49  ;;  %v3528_v45 = vmul.f32 100.0, %v3526_v54 }
 0x915   : > { %v3302_v28 = vmul.f32 100.0, %v3300_v12 }
 0x916   : > { %v4424_v44 = vsub.f32 %v4365_v27, %v4422_v8  ;;  %v4425_v47 = vsub.f32 %v4366_v56, %v4423_v9  ;;  %9225 = vst [vmem:[#allocation21_spill] sm:$0xff] %v8422_v32  ;;  %v8953_v20 = vperm.slane %v8422_v32, 0  ;;  %v3309_v19 = vpop.permute.xlu1 %3308  ;;  %v9228_v56 = vld [vmem:[#allocation37_spill] sm:$0xff]  ;;  %v9230_v32 = vld [vmem:[#allocation39_spill] sm:$0xff] }
 0x918   : > { %v4473_v24 = vmul.f32 %v7899_v21, %v4425_v47  ;;  %v3693_v31 = vmul.f32 %v8953_v20, %v9187_v33 }
 0x91a   : > { %v4474_v46 = vperm.slane %v4473_v24, 2  ;;  %v3695_v61 = vsub.f32 %v3582_v49, %v3693_v31  ;;  %v3535_v15 = vpop.permute.xlu0 %3534  ;;  %v3312_v24 = vadd.f32 %v3309_v19, %v3302_v28  ;;  %v9232_v19 = vld [vmem:[#allocation41_spill] sm:$0xff] }
 0x91b   : > { %v3538_v8 = vadd.f32 %v3535_v15, %v3528_v45  ;;  %v9233_v31 = vperm.slane %v9232_v19, 0 }
 0x91c   : > { %v4475_v27 = vmul.f32 %v4474_v46, %v7906_v39  ;;  %v4476_v50 = vmul.f32 %v4474_v46, %v9228_v56  ;;  %v8440_v35 = vmul.f32 %v9189_v34, %v3695_v61  ;;  %v9231_v46 = vld [vmem:[#allocation27_spill] sm:$0xff] }
 0x91d   : > { %3566 = vrot.lane.b32.xlu2 %v3538_v8, %s5636_s15  ;;  %v8447_v49 = vsub.f32 %v9231_v46, %v9230_v32  ;;  %v3682_v45 = vmul.f32 %v9233_v31, %v9208_v7 }
 0x91e   : > { %v8437_v9 = vsub.f32 %v4424_v44, %v4475_v27  ;;  %v4478_v17 = vsub.f32 %v4425_v47, %v4476_v50  ;;  %v8958_v54 = vperm.slane %v8440_v35, 1  ;;  %v3371_v20 = vpop.permute.xlu1 %3370  ;;  %v3363_v47 = vpop.permute.xlu2 %3362  ;;  %v9234_v27 = vld [vmem:[#allocation23_spill] sm:$0xff] }
 0x91f   : > { %v3383_v34 = vsel %vm1725_vm11, %v3312_v24, %v3363_v47 }
 0x920   : > { %v4520_v33 = vmul.f32 %v9229_v41, %v4478_v17  ;;  %v3800_v44 = vmul.f32 %v8958_v54, %v9156_v57  ;;  %v3385_v32 = vsel %vm1352_vm5, %v3383_v34, %v3371_v20  ;;  %v9235_v57 = vperm.slane %v8187_v52, 1  ;;  %v9260_v54 = vld [vmem:[#allocation50_spill] sm:$0xff] }
 0x922   : > { %v4521_v12 = vperm.slane %v4520_v33, 3  ;;  %v3802_v28 = vsub.f32 %v3695_v61, %v3800_v44  ;;  %v3379_v8 = vpop.permute.xlu0 %3378  ;;  %v3789_v46 = vmul.f32 %v9235_v57, %v9210_v59 }
 0x923   : > { %v3387_v33 = vsel %vm2009_vm7, %v3385_v32, %v3379_v8 }
 0x924   : > { %v4522_v50 = vmul.f32 %v4521_v12, %v9234_v27  ;;  %v4523_v15 = vmul.f32 %v4521_v12, %v8447_v49  ;;  %v8467_v19 = vmul.f32 %v9161_v22, %v3802_v28  ;;  %v3684_v31 = vsub.f32 %v3387_v33, %v3682_v45 }
 0x925   : > { %v9236_v12 = vperm.slane %v8215_v18, 2  ;;  %v9239_v33 = vperm.slane %v8293_v42, 5 }
 0x926   : > { %v4524_v24 = vsub.f32 %v8437_v9, %v4522_v50  ;;  %v8464_v47 = vsub.f32 %v4478_v17, %v4523_v15  ;;  %v8957_v61 = vperm.slane %v8467_v19, 2  ;;  %v3791_v20 = vsub.f32 %v3684_v31, %v3789_v46 }
 0x927   : > { %v3890_v44 = vmul.f32 %v9236_v12, %v9212_v30  ;;  %v9237_v17 = vperm.slane %v8234_v63, 3  ;;  %v9238_v50 = vperm.slane %v8266_v23, 4  ;;  %v9241_v12 = vperm.slane %v8328_v11, 7  ;;  %v9245_v11 = vld [vmem:[#allocation32_spill] sm:$0xff] }
 0x928   : > { %5427 = vrcp.f32 %v8464_v47  ;;  %v3901_v52 = vmul.f32 %v8957_v61, %v9162_v53  ;;  %v4157_v53 = vmul.f32 %v9239_v33, %v9218_v29  ;;  %vm4549_vm13 = vweird.f32 %v8464_v47 }
 0x929   : > { %v3892_v9 = vsub.f32 %v3791_v20, %v3890_v44  ;;  %v3985_v22 = vmul.f32 %v9237_v17, %v9214_v13  ;;  %v4074_v15 = vmul.f32 %v9238_v50, %v9216_v38  ;;  %v4305_v42 = vmul.f32 %v9241_v12, %v7635_v58  ;;  %v9248_v12 = vld [vmem:[#allocation58_spill] sm:$0xff] }
 0x92a   : > { %v3903_v34 = vsub.f32 %v3802_v28, %v3901_v52  ;;  %v9240_v28 = vperm.slane %v8311_v36, 6  ;;  %v4555_v44 = vand.u32 2147483648, %v8464_v47  ;;  %v9242_v52 = vld [vmem:[#allocation22_spill] sm:$0xff]  ;;  %v4553_v36 = vand.u32 2147483647, %v8464_v47 }
 0x92b   : > { %v3987_v45 = vsub.f32 %v3892_v9, %v3985_v22  ;;  %v9243_v9 = vperm.slane %v9242_v52, 3  ;;  %v9246_v33 = vperm.slane %v9188_v55, 6 }
 0x92c   : > { %v8484_v8 = vmul.f32 %v7186_v25, %v3903_v34  ;;  %v4234_v31 = vmul.f32 %v9240_v28, %v7491_v16  ;;  %v9247_v28 = vld [vmem:[#allocation28_spill] sm:$0xff]  ;;  %vm4554_vm15 = vcmp.eq.f32.partialorder %v4553_v36, 8.507059e+37 }
 0x92d   : > { %v4076_v18 = vsub.f32 %v3987_v45, %v4074_v15  ;;  %v4517_v17 = vmul.f32 %v9243_v9, %v8447_v49  ;;  %v3407_v15 = vpop.permute.xlu2 %3406 }
 0x92e   : > { %v5428_v32 = vpop.eup %5427  ;;  %v8956_v63 = vperm.slane %v8484_v8, 3 }
 0x92f   : > { %v4545_v57 = vmul.f32 %v5428_v32, %v8464_v47  ;;  %v4159_v46 = vsub.f32 %v4076_v18, %v4157_v53  ;;  %vm4550_vm12 = vweird.f32 %v5428_v32  ;;  %v3398_v53 = vmul.f32 %v9246_v33, %v9245_v11  ;;  %v9250_v33 = vld [vmem:[#allocation53_spill] sm:$0xff]  ;;  %v9267_v11 = vld [vmem:[#allocation38_spill] sm:$0xff] }
 0x930   : > { %v3996_v25 = vmul.f32 %v8956_v63, %v7228_v14  ;;  %vm4551_vm14 = vmor %vm4549_vm13, %vm4550_vm12  ;;  %vm4672_vm12 = vcmask 523264  }
 0x931   : > { %v4546_v23 = vsub.f32 1.0, %v4545_v57  ;;  %v4236_v20 = vsub.f32 %v4159_v46, %v4234_v31  ;;  %v4556_v46 = vor.u32 1.1754944e-38, %v4555_v44  ;;  %v8514_v31 = vsub.f32 %v9247_v28, %v4517_v17 }
 0x932   : > { %v3998_v45 = vsub.f32 %v3903_v34, %v3996_v25  ;;  %v3400_v52 = vmul.f32 100.0, %v3398_v53 }
 0x933   : > { %v4547_v22 = vmul.f32 %v5428_v32, %v4546_v23  ;;  %v4307_v50 = vsub.f32 %v4236_v20, %v4305_v42 }
 0x934   : > { %v8507_v14 = vmul.f32 %v7271_v10, %v3998_v45 }
 0x935   : > { %v4548_v18 = vadd.f32 %v5428_v32, %v4547_v22  ;;  %v4367_v57 = vmul.f32 %v7677_v40, %v4307_v50 }
 0x936   : > { %9244 = vst [vmem:[#allocation46_spill] sm:$0xff] %v8507_v14  ;;  %v8955_v23 = vperm.slane %v8507_v14, 4 }
 0x937   : > { %v4552_v34 = vsel %vm4551_vm14, %v5428_v32, %v4548_v18  ;;  %v4368_v25 = vperm.slane %v4367_v57, 0  ;;  %v9249_v32 = vld [vmem:[#allocation34_spill] sm:$0xff]  ;;  %v3410_v18 = vadd.f32 %v3407_v15, %v3400_v52  ;;  %v9257_v52 = vld [vmem:[#allocation31_spill] sm:$0xff] }
 0x938   : > { %v8517_v20 = vsel %vm4554_vm15, %v4556_v46, %v4552_v34  ;;  %v4085_v42 = vmul.f32 %v8955_v23, %v9248_v12  ;;  %v8529_v17 = vsub.f32 %v4524_v24, %v9249_v32  ;;  %v9251_v57 = vld [vmem:[#allocation26_spill] sm:$0xff]  ;;  %v9253_v23 = vld [vmem:[#allocation59_spill] sm:$0xff] }
 0x939   : > { %v8521_v10 = vmul.f32 %v8517_v20, %v8514_v31  ;;  %v4369_v44 = vmul.f32 %v4368_v25, %v7685_v4  ;;  %v4370_v9 = vmul.f32 %v4368_v25, %v7761_v3  ;;  %v9252_v46 = vsub.f32 %v9250_v33, %v9251_v57  ;;  %v3469_v25 = vpop.permute.xlu0 %3468  ;;  %v3477_v33 = vpop.permute.xlu2 %3476 }
 0x93a   : > { %v4087_v36 = vsub.f32 %v3998_v45, %v4085_v42  ;;  %v9255_v45 = vld [vmem:[#allocation30_spill] sm:$0xff] }
 0x93b   : > { %v8959_v22 = vperm.slane %v8521_v10, 4  ;;  %v4371_v28 = vsub.f32 %v9252_v46, %v4369_v44  ;;  %v4372_v34 = vsub.f32 %v4307_v50, %v4370_v9  ;;  %v3461_v12 = vpop.permute.xlu1 %3460  ;;  %v9256_v15 = vperm.slane %v9255_v45, 0  ;;  %v9258_v44 = vld [vmem:[#allocation40_spill] sm:$0xff]  ;;  %v9262_v45 = vld [vmem:[#allocation43_spill] sm:$0xff] }
 0x93c   : > { %v8539_v63 = vmul.f32 %v9253_v23, %v4087_v36  ;;  %v3481_v32 = vsel %vm1725_vm11, %v3410_v18, %v3461_v12  ;;  %v9259_v50 = vsub.f32 %v9257_v52, %v9258_v44  ;;  %v9261_v18 = vperm.slane %v9260_v54, 1  ;;  %v9265_v54 = vld [vmem:[#allocation52_spill] sm:$0xff] }
 0x93d   : > { %v4563_v53 = vmul.f32 %v8959_v22, %v8529_v17  ;;  %v4426_v24 = vmul.f32 %v7778_v37, %v4372_v34  ;;  %v3688_v42 = vmul.f32 %v9256_v15, %v9208_v7  ;;  %v3483_v57 = vsel %vm1352_vm5, %v3481_v32, %v3469_v25  ;;  %v9263_v25 = vld [vmem:[#allocation42_spill] sm:$0xff] }
 0x93e   : > { %9254 = vst [vmem:[#allocation48_spill] sm:$0xff] %v8539_v63  ;;  %v8961_v23 = vperm.slane %v8539_v63, 5  ;;  %v3485_v61 = vsel %vm2009_vm7, %v3483_v57, %v3477_v33  ;;  %v3795_v12 = vmul.f32 %v9261_v18, %v9210_v59  ;;  %v9264_v32 = vperm.slane %v9263_v25, 2 }
 0x93f   : > { %v8549_v9 = vsub.f32 %v9259_v50, %v4563_v53  ;;  %v4427_v46 = vperm.slane %v4426_v24, 1  ;;  %v3690_v22 = vsub.f32 %v3485_v61, %v3688_v42  ;;  %v9266_v18 = vperm.slane %v9265_v54, 3 }
 0x940   : > { %v4168_v15 = vmul.f32 %v8961_v23, %v9262_v45  ;;  %v3896_v44 = vmul.f32 %v9264_v32, %v9212_v30 }
 0x941   : > { %v4428_v53 = vmul.f32 %v4427_v46, %v7785_v60  ;;  %v4429_v52 = vmul.f32 %v4427_v46, %v7874_v26  ;;  %v3797_v24 = vsub.f32 %v3690_v22, %v3795_v12  ;;  %v3991_v61 = vmul.f32 %v9266_v18, %v9214_v13  ;;  %v9268_v46 = vld [vmem:[#allocation25_spill] sm:$0xff] }
 0x942   : > { %v4170_v50 = vsub.f32 %v4087_v36, %v4168_v15  ;;  %v9269_v23 = vperm.slane %v9268_v46, 4 }
 0x943   : > { %v4430_v33 = vsub.f32 %v4371_v28, %v4428_v53  ;;  %v4431_v57 = vsub.f32 %v4372_v34, %v4429_v52  ;;  %v3898_v42 = vsub.f32 %v3797_v24, %v3896_v44  ;;  %v9270_v28 = vld [vmem:[#allocation44_spill] sm:$0xff] }
 0x944   : > { %v8569_v63 = vmul.f32 %v9267_v11, %v4170_v50  ;;  %v4080_v14 = vmul.f32 %v9269_v23, %v9216_v38  ;;  %v9271_v34 = vperm.slane %v9270_v28, 5  ;;  %v9272_v23 = vperm.slane %v8353_v2, 6 }
 0x945   : > { %v4479_v45 = vmul.f32 %v7899_v21, %v4431_v57  ;;  %v3993_v25 = vsub.f32 %v3898_v42, %v3991_v61 }
 0x946   : > { %v4244_v22 = vperm.slane %v8569_v63, 6  ;;  %v4163_v12 = vmul.f32 %v9271_v34, %v9218_v29  ;;  %v4240_v32 = vmul.f32 %v9272_v23, %v7491_v16  ;;  %v9275_v23 = vld [vmem:[#allocation33_spill] sm:$0xff] }
 0x947   : > { %v4480_v36 = vperm.slane %v4479_v45, 2  ;;  %v4082_v15 = vsub.f32 %v3993_v25, %v4080_v14  ;;  %v9273_v14 = vperm.slane %v8374_v1, 7 }
 0x948   : > { %v4245_v11 = vmul.f32 %v4244_v22, %v7583_v51 }
 0x949   : > { %v4481_v53 = vmul.f32 %v4480_v36, %v7906_v39  ;;  %v4482_v52 = vmul.f32 %v4480_v36, %v9228_v56  ;;  %v4165_v44 = vsub.f32 %v4082_v15, %v4163_v12  ;;  %v4311_v61 = vmul.f32 %v9273_v14, %v7635_v58 }
 0x94a   : > { %v8587_v24 = vsub.f32 %v4170_v50, %v4245_v11 }
 0x94b   : > { %v4483_v54 = vsub.f32 %v4430_v33, %v4481_v53  ;;  %v4484_v18 = vsub.f32 %v4431_v57, %v4482_v52  ;;  %v4242_v42 = vsub.f32 %v4165_v44, %v4240_v32  ;;  %v8616_v32 = vsub.f32 %v8464_v47, %v9275_v23 }
 0x94c   : > { %v8594_v51 = vmul.f32 %v7625_v48, %v8587_v24 }
 0x94d   : > { %v4526_v45 = vmul.f32 %v9229_v41, %v4484_v18  ;;  %v4313_v46 = vsub.f32 %v4242_v42, %v4311_v61 }
 0x94e   : > { %v4315_v2 = vperm.slane %v8594_v51, 7 }
 0x94f   : > { %v4527_v25 = vperm.slane %v4526_v45, 3  ;;  %v4373_v50 = vmul.f32 %v7677_v40, %v4313_v46 }
 0x950   : > { %v8602_v33 = vmul.f32 %v4315_v2, %v7629_v5  ;;  %v9274_v5 = vsub.f32 %v8367_v0, %v8387_v6 }
 0x951   : > { %v4528_v1 = vmul.f32 %v4527_v25, %v9234_v27  ;;  %v4529_v57 = vmul.f32 %v4527_v25, %v8447_v49  ;;  %v4374_v36 = vperm.slane %v4373_v50, 0 }
 0x952   : > { %v4318_v48 = vsub.f32 %v8587_v24, %v8602_v33 }
 0x953   : > { %v4530_v28 = vsub.f32 %v4483_v54, %v4528_v1  ;;  %v4531_v34 = vsub.f32 %v4484_v18, %v4529_v57  ;;  %v4375_v12 = vmul.f32 %v4374_v36, %v7685_v4  ;;  %v4376_v15 = vmul.f32 %v4374_v36, %v7761_v3 }
 0x955   : > { %v4567_v11 = vmul.f32 %v8517_v20, %v4531_v34  ;;  %v4377_v53 = vsub.f32 %v9274_v5, %v4375_v12  ;;  %v4378_v52 = vsub.f32 %v4313_v46, %v4376_v15 }
 0x957   : > { %v4568_v44 = vperm.slane %v4567_v11, 4  ;;  %v4432_v14 = vmul.f32 %v7778_v37, %v4378_v52 }
 0x959   : > { %v4569_v54 = vmul.f32 %v4568_v44, %v8529_v17  ;;  %v4570_v18 = vmul.f32 %v4568_v44, %v8616_v32  ;;  %v4433_v61 = vperm.slane %v4432_v14, 1 }
 0x95b   : > { %v4571_v42 = vsub.f32 %v4530_v28, %v4569_v54  ;;  %v4572_v45 = vsub.f32 %v4531_v34, %v4570_v18  ;;  %v4434_v25 = vmul.f32 %v4433_v61, %v7785_v60  ;;  %v4435_v0 = vmul.f32 %v4433_v61, %v7874_v26 }
 0x95c   : > { %v9276_v34 = vperm.slane %v8521_v10, 4 }
 0x95d   : > { %5429 = vrcp.f32 %v4572_v45  ;;  %v4436_v6 = vsub.f32 %v4377_v53, %v4434_v25  ;;  %v4437_v46 = vsub.f32 %v4378_v52, %v4435_v0  ;;  %v4596_v23 = vand.u32 2147483648, %v4572_v45 }
 0x95e   : > { %v4564_v5 = vmul.f32 %v9276_v34, %v8616_v32  ;;  %v4594_v44 = vand.u32 2147483647, %v4572_v45  ;;  %vm4590_vm0 = vweird.f32 %v4572_v45 }
 0x95f   : > { %v4485_v47 = vmul.f32 %v7899_v21, %v4437_v46  ;;  %v4597_v61 = vor.u32 1.1754944e-38, %v4596_v23 }
 0x960   : > { %v4566_v18 = vsub.f32 %v8514_v31, %v4564_v5  ;;  %vm4595_vm2 = vcmp.eq.f32.partialorder %v4594_v44, 8.507059e+37  ;;  %v8641_v31 = vsub.f32 %v4572_v45, %v8142_v62 }
 0x961   : > { %v4486_v50 = vperm.slane %v4485_v47, 2 }
 0x963   : > { %v5430_v1 = vpop.eup %5429  ;;  %v4487_v36 = vmul.f32 %v4486_v50, %v7906_v39  ;;  %v4488_v12 = vmul.f32 %v4486_v50, %v9228_v56 }
 0x964   : > { %v4586_v57 = vmul.f32 %v5430_v1, %v4572_v45  ;;  %vm4591_vm8 = vweird.f32 %v5430_v1 }
 0x965   : > { %v4489_v15 = vsub.f32 %v4436_v6, %v4487_v36  ;;  %v4490_v11 = vsub.f32 %v4437_v46, %v4488_v12  ;;  %vm4592_vm1 = vmor %vm4590_vm0, %vm4591_vm8 }
 0x966   : > { %v4587_v28 = vsub.f32 1.0, %v4586_v57  ;;  %v9277_v57 = vld [vmem:[#allocation35_spill] sm:$0xff] }
 0x967   : > { %v4532_v53 = vmul.f32 %v9229_v41, %v4490_v11  ;;  %v8637_v36 = vsub.f32 %v4571_v42, %v9277_v57  ;;  %v9279_v57 = vld [vmem:[#allocation21_spill] sm:$0xff] }
 0x968   : > { %v4588_v52 = vmul.f32 %v5430_v1, %v4587_v28 }
 0x969   : > { %v4533_v14 = vperm.slane %v4532_v53, 3 }
 0x96a   : > { %v4589_v54 = vadd.f32 %v5430_v1, %v4588_v52 }
 0x96b   : > { %v4534_v25 = vmul.f32 %v4533_v14, %v9234_v27  ;;  %v4535_v0 = vmul.f32 %v4533_v14, %v8447_v49 }
 0x96c   : > { %v4593_v6 = vsel %vm4592_vm1, %v5430_v1, %v4589_v54  ;;  %v9278_v54 = vperm.slane %v9188_v55, 7 }
 0x96d   : > { %v8633_v10 = vsel %vm4595_vm2, %v4597_v61, %v4593_v6  ;;  %v4536_v46 = vsub.f32 %v4489_v15, %v4534_v25  ;;  %v4537_v47 = vsub.f32 %v4490_v11, %v4535_v0  ;;  %v3505_v25 = vpop.permute.xlu1 %3504 }
 0x96e   : > { %v4602_v50 = vmul.f32 %v8633_v10, %v4566_v18  ;;  %v3496_v61 = vmul.f32 %v9278_v54, %v8400_v43 }
 0x96f   : > { %v4573_v12 = vmul.f32 %v8517_v20, %v4537_v47 }
 0x970   : > { %v4603_v28 = vperm.slane %v4602_v50, 5  ;;  %v3498_v50 = vmul.f32 100.0, %v3496_v61 }
 0x971   : > { %v4574_v34 = vperm.slane %v4573_v12, 4  ;;  %v9280_v12 = vperm.slane %v9279_v57, 0 }
 0x972   : > { %v8644_v5 = vmul.f32 %v4603_v28, %v8637_v36  ;;  %v4605_v1 = vmul.f32 %v4603_v28, %v8641_v31 }
 0x973   : > { %v4575_v15 = vmul.f32 %v4574_v34, %v8529_v17  ;;  %v4576_v11 = vmul.f32 %v4574_v34, %v8616_v32  ;;  %v3694_v28 = vmul.f32 %v9280_v12, %v9208_v7  ;;  %v9283_v7 = vperm.slane %v8484_v8, 3 }
 0x974   : > { %v4606_v42 = vsub.f32 %v8549_v9, %v8644_v5  ;;  %v4607_v23 = vsub.f32 %v4566_v18, %v4605_v1  ;;  %v3508_v9 = vadd.f32 %v3505_v25, %v3498_v50 }
 0x975   : > { %v4577_v53 = vsub.f32 %v4536_v46, %v4575_v15  ;;  %v4578_v52 = vsub.f32 %v4537_v47, %v4576_v11  ;;  %v9281_v15 = vperm.slane %v8440_v35, 1  ;;  %v3997_v54 = vmul.f32 %v9283_v7, %v9214_v13  ;;  %v9284_v35 = vld [vmem:[#allocation46_spill] sm:$0xff] }
 0x977   : > { %v4608_v62 = vmul.f32 %v8633_v10, %v4578_v52  ;;  %v3567_v46 = vpop.permute.xlu2 %3566  ;;  %v3801_v11 = vmul.f32 %v9281_v15, %v9210_v59  ;;  %v9285_v59 = vperm.slane %v9284_v35, 4 }
 0x979   : > { %v4609_v45 = vperm.slane %v4608_v62, 5  ;;  %v9282_v62 = vperm.slane %v8467_v19, 2  ;;  %v9286_v19 = vld [vmem:[#allocation48_spill] sm:$0xff] }
 0x97a   : > { %v9287_v57 = vperm.slane %v9286_v19, 5 }
 0x97b   : > { %v4610_v44 = vmul.f32 %v4609_v45, %v8637_v36  ;;  %v4611_v14 = vmul.f32 %v4609_v45, %v8641_v31  ;;  %v3902_v45 = vmul.f32 %v9282_v62, %v9212_v30 }
 0x97c   : > { %v4169_v12 = vmul.f32 %v9287_v57, %v9218_v29 }
 0x97d   : > { %v4612_v0 = vsub.f32 %v4577_v53, %v4610_v44  ;;  %v4613_v6 = vsub.f32 %v4578_v52, %v4611_v14 }
 0x97f   : > { %5431 = vrcp.f32 %v4613_v6  ;;  %v4631_v61 = vand.u32 2147483648, %v4613_v6 }
 0x980   : > { %v3575_v34 = vpop.permute.xlu1 %3574 }
 0x981   : > { %v4632_v30 = vor.u32 1.1754944e-38, %v4631_v61 }
 0x982   : > { %v3559_v18 = vpop.permute.xlu0 %3558 }
 0x983   : > { %v3579_v47 = vsel %vm1725_vm11, %v3508_v9, %v3559_v18  ;;  %v4629_v9 = vand.u32 2147483647, %v4613_v6  ;;  %v4086_v18 = vmul.f32 %v9285_v59, %v9216_v38  ;;  %vm4625_vm11 = vweird.f32 %v4613_v6 }
 0x984   : > { %v3581_v5 = vsel %vm1352_vm5, %v3579_v47, %v3567_v46  ;;  %v4317_v38 = vmul.f32 %v4315_v2, %v7635_v58 }
 0x985   : > { %v5432_v1 = vpop.eup %5431  ;;  %v3583_v55 = vsel %vm2009_vm7, %v3581_v5, %v3575_v34  ;;  %vm4630_vm3 = vcmp.eq.f32.partialorder %v4629_v9, 8.507059e+37  ;;  %v4246_v34 = vmul.f32 %v4244_v22, %v7491_v16 }
 0x986   : > { %v3696_v53 = vsub.f32 %v3583_v55, %v3694_v28  ;;  %v4621_v52 = vmul.f32 %v5432_v1, %v4613_v6  ;;  %vm4626_vm5 = vweird.f32 %v5432_v1 }
 0x987   : > { %vm4627_vm7 = vmor %vm4625_vm11, %vm4626_vm5 }
 0x988   : > { %v3803_v44 = vsub.f32 %v3696_v53, %v3801_v11  ;;  %v4622_v14 = vsub.f32 1.0, %v4621_v52  ;;  %v9288_v11 = vld [vmem:[#allocation36_spill] sm:$0xff] }
 0x989   : > { %v4635_v53 = vsub.f32 %v4612_v0, %v9288_v11  ;;  %v9289_v52 = vld [vmem:[#allocation32_spill] sm:$0xff] }
 0x98a   : > { %v3904_v25 = vsub.f32 %v3803_v44, %v3902_v45  ;;  %v4623_v50 = vmul.f32 %v5432_v1, %v4622_v14  ;;  %v4636_v62 = vsub.f32 %v4613_v6, %v9289_v52  ;;  %v9290_v11 = vld [vmem:[#allocation20_spill] sm:$0xff] }
 0x98c   : > { %v3999_v46 = vsub.f32 %v3904_v25, %v3997_v54  ;;  %v4624_v47 = vadd.f32 %v5432_v1, %v4623_v50 }
 0x98e   : > { %v4088_v8 = vsub.f32 %v3999_v46, %v4086_v18  ;;  %v4628_v13 = vsel %vm4627_vm7, %v5432_v1, %v4624_v47 }
 0x98f   : > { %v4633_v28 = vsel %vm4630_vm3, %v4632_v30, %v4628_v13 }
 0x990   : > { %v4171_v5 = vsub.f32 %v4088_v8, %v4169_v12  ;;  %v4637_v55 = vmul.f32 %v4633_v28, %v4607_v23 }
 0x992   : > { %v4248_v15 = vsub.f32 %v4171_v5, %v4246_v34  ;;  %v4638_v29 = vperm.slane %v4637_v55, 6 }
 0x994   : > { %v4319_v45 = vsub.f32 %v4248_v15, %v4317_v38  ;;  %v4639_v1 = vmul.f32 %v4638_v29, %v4635_v53  ;;  %v4640_v44 = vmul.f32 %v4638_v29, %v4636_v62 }
 0x996   : > { %v4379_v14 = vmul.f32 %v7677_v40, %v4319_v45  ;;  %v8687_v7 = vsub.f32 %v4606_v42, %v4639_v1  ;;  %v8689_v16 = vsub.f32 %v4607_v23, %v4640_v44 }
 0x998   : > { %v4380_v63 = vperm.slane %v4379_v14, 0 }
 0x99a   : > { %v4381_v22 = vmul.f32 %v4380_v63, %v7685_v4  ;;  %v4382_v58 = vmul.f32 %v4380_v63, %v7761_v3 }
 0x99c   : > { %v4383_v51 = vsub.f32 %v4318_v48, %v4381_v22  ;;  %v4384_v2 = vsub.f32 %v4319_v45, %v4382_v58 }
 0x99e   : > { %v4438_v0 = vmul.f32 %v7778_v37, %v4384_v2 }
 0x9a0   : > { %v4439_v6 = vperm.slane %v4438_v0, 1 }
 0x9a2   : > { %v4440_v54 = vmul.f32 %v4439_v6, %v7785_v60  ;;  %v4441_v40 = vmul.f32 %v4439_v6, %v7874_v26 }
 0x9a4   : > { %v4442_v42 = vsub.f32 %v4383_v51, %v4440_v54  ;;  %v4443_v23 = vsub.f32 %v4384_v2, %v4441_v40 }
 0x9a6   : > { %v4491_v61 = vmul.f32 %v7899_v21, %v4443_v23 }
 0x9a8   : > { %v4492_v25 = vperm.slane %v4491_v61, 2 }
 0x9aa   : > { %v4493_v4 = vmul.f32 %v4492_v25, %v7906_v39  ;;  %v4494_v3 = vmul.f32 %v4492_v25, %v9228_v56 }
 0x9ac   : > { %v4495_v50 = vsub.f32 %v4442_v42, %v4493_v4  ;;  %v4496_v24 = vsub.f32 %v4443_v23, %v4494_v3 }
 0x9ae   : > { %v4538_v33 = vmul.f32 %v9229_v41, %v4496_v24 }
 0x9b0   : > { %v4539_v48 = vperm.slane %v4538_v33, 3 }
 0x9b2   : > { %v4540_v37 = vmul.f32 %v4539_v48, %v9234_v27  ;;  %v4541_v60 = vmul.f32 %v4539_v48, %v8447_v49 }
 0x9b4   : > { %v4542_v9 = vsub.f32 %v4495_v50, %v4540_v37  ;;  %v4543_v26 = vsub.f32 %v4496_v24, %v4541_v60 }
 0x9b6   : > { %v4579_v35 = vmul.f32 %v8517_v20, %v4543_v26 }
 0x9b8   : > { %v4580_v59 = vperm.slane %v4579_v35, 4 }
 0x9ba   : > { %v4581_v21 = vmul.f32 %v4580_v59, %v8529_v17  ;;  %v4582_v39 = vmul.f32 %v4580_v59, %v8616_v32 }
 0x9bc   : > { %v4583_v18 = vsub.f32 %v4542_v9, %v4581_v21  ;;  %v4584_v56 = vsub.f32 %v4543_v26, %v4582_v39 }
 0x9be   : > { %v4614_v46 = vmul.f32 %v8633_v10, %v4584_v56 }
 0x9c0   : > { %v4615_v47 = vperm.slane %v4614_v46, 5 }
 0x9c2   : > { %v4616_v41 = vmul.f32 %v4615_v47, %v8637_v36  ;;  %v4617_v27 = vmul.f32 %v4615_v47, %v8641_v31 }
 0x9c4   : > { %v4618_v30 = vsub.f32 %v4583_v18, %v4616_v41  ;;  %v4619_v49 = vsub.f32 %v4584_v56, %v4617_v27 }
 0x9c6   : > { %v4643_v19 = vmul.f32 %v4633_v28, %v4619_v49 }
 0x9c8   : > { %v4644_v57 = vperm.slane %v4643_v19, 6 }
 0x9ca   : > { %v4645_v12 = vmul.f32 %v4644_v57, %v4635_v53  ;;  %v4646_v20 = vmul.f32 %v4644_v57, %v4636_v62 }
 0x9cc   : > { %v4647_v8 = vsub.f32 %v4618_v30, %v4645_v12  ;;  %v4648_v13 = vsub.f32 %v4619_v49, %v4646_v20 }
 0x9ce   : > { %5433 = vrcp.f32 %v4648_v13  ;;  %v4660_v5 = vand.u32 2147483648, %v4648_v13  ;;  %v4658_v10 = vand.u32 2147483647, %v4648_v13  ;;  %vm4654_vm6 = vweird.f32 %v4648_v13 }
 0x9cf   : > { %v4664_v53 = vsub.f32 %v4647_v8, %v9290_v11  ;;  %v4665_v52 = vsub.f32 %v4648_v13, %v8400_v43 }
 0x9d0   : > { %v4661_v36 = vor.u32 1.1754944e-38, %v4660_v5  ;;  %vm4659_vm10 = vcmp.eq.f32.partialorder %v4658_v10, 8.507059e+37 }
 0x9d4   : > { %v5434_v17 = vpop.eup %5433 }
 0x9d5   : > { %v4650_v32 = vmul.f32 %v5434_v17, %v4648_v13  ;;  %vm4655_vm4 = vweird.f32 %v5434_v17 }
 0x9d6   : > { %vm4656_vm9 = vmor %vm4654_vm6, %vm4655_vm4 }
 0x9d7   : > { %v4651_v34 = vsub.f32 1.0, %v4650_v32 }
 0x9d9   : > { %v4652_v55 = vmul.f32 %v5434_v17, %v4651_v34 }
 0x9db   : > { %v4653_v38 = vadd.f32 %v5434_v17, %v4652_v55 }
 0x9dd   : > { %v4657_v31 = vsel %vm4656_vm9, %v5434_v17, %v4653_v38 }
 0x9de   : > { %v4662_v28 = vsel %vm4659_vm10, %v4661_v36, %v4657_v31 }
 0x9df   : > { %v4666_v15 = vmul.f32 %v4662_v28, %v8689_v16 }
 0x9e1   : > { %v4667_v62 = vperm.slane %v4666_v15, 7 }
 0x9e3   : > { %v4668_v29 = vmul.f32 %v4667_v62, %v4664_v53  ;;  %v4669_v45 = vmul.f32 %v4667_v62, %v4665_v52 }
 0x9e5   : > { %v4670_v1 = vsub.f32 %v8687_v7, %v4668_v29  ;;  %v4671_v44 = vsub.f32 %v8689_v16, %v4669_v45 }
 0x9e7   : > { %4673 = vst.msk [vmem:[%s6035_s9] sm:$0xff] %vm4672_vm12, %v4670_v1 }
 0x9e8   : > { %4674 = vst.msk [vmem:[%s6035_s9 + $0x8] sm:$0xff] %vm4672_vm12, %v4671_v44 }
 0x9e9 PF: > { %s9291_s29 = sld [smem:[#allocation13_spill]]  ;;  %s4688_s24 = sshll.u32 %s6035_s9, 4  ;;  %s4689_s24 = int_to_ptr.vmem [resolvable:$true] %s4688_s24 }
 0x9ea   : > { %s9292_s23 = sld [smem:[#allocation64_spill]]  ;;  %s9294_s20 = sand.u32 1, %s5553_s22  }
 0x9eb   : > { %s4676_s17 = scalar_lea.sflag [#allocation9], %s9294_s20 }
 0x9ef   : > { %s4986_s16 = sshll.u32 %s9291_s29, 4 }
 0x9f0   : > { %s9293_s13 = smov %s9292_s23  ;;  %s4687_s26 = scalar_lea.hbm %s9292_s23, %s4986_s16 }
 0x9f1   : > { %s4690_s28 = sshll.u32 %s4687_s26, 4  ;;  %s5455_s3 = scalar_lea.hbm %s9293_s13, 32  ;;  %s4691_s28 = int_to_ptr.hbm [resolvable:$true] %s4690_s28 }
 0x9f2   : > { %s5449_s14 = sshra.s32 %s4691_s28, 4  ;;  %s5450_s14 = int_to_ptr.hbm [resolvable:$true] %s5449_s14 }
 0x9f3   : > { %s5451_s0 = scalar_lea.hbm %s5450_s14, 16  ;;  %p5456_p12 = scmp.lt.s32.totalorder %s5450_s14, %s9293_s13 }
 0x9f4   : > { %p5452_p8 = scmp.ne.s32.totalorder %s5450_s14, %s5451_s0  ;;  %p5457_p13 = scmp.lt.s32.totalorder %s5455_s3, %s5451_s0 }
 0x9f6   : > { %p5453_p9 = pnand %p5452_p8, %p5815_p0  ;;  %p5458_p1 = por %p5457_p13, %p5456_p12 }
 0x9f8   : > { %p5454_p11 = pneg %p5453_p9 }
 0x9fa   : > { %p5459_p3 = pnand %p5458_p1, %p5454_p11 }
 0x9fc   : > { %5462 = shalt.err (!%p5459_p3)
}
 0x9fd   : > { %s5665_s9 = smov 128   ;;  %s5666_s12 = smov 8  }
 0x9fe   : > { %4997 = dma.vmem_to_hbm [thread:$0]  (%p5815_p0), %s4689_s24, 256, %s4691_s28, %s4676_s17, %s5665_s9, %s5665_s9, %s5666_s12  }
 0x9ff PF: > { %p5003_p10 = scmp.ge.s32.totalorder %s5593_s8, 2  ;;  %s4705_s16 = sand.u32 1, %s5549_s21  }
 0xa00   : > { %s4706_s11 = scalar_lea.sflag [#allocation9], %s4705_s16 }
 0xa01   : > { %p5000_p2 = pnand %p5003_p10, %p5823_p4 }
 0xa03   : > { %p5001_p5 = pneg %p5000_p2 }
 0xa05   : > { %5544 = dma.done.wait (%p5001_p5), %s4706_s11, 256  }
 0xa06   : > { %5546 = vsyncadd (%p5001_p5), %s4706_s11, 4294967040  ;;  %s19_s8 = sadd.s32 1, %s5593_s8   ;;  %s9296_s18 = sld [smem:[#allocation11_spill]] }
 0xa07   : > { %p16_p6 = scmp.ge.s32.totalorder %s19_s8, 8   ;;  %s9297_s23 = sld [smem:[#allocation17_spill]] }
 0xa08   : > { %s9298_s19 = sld [smem:[#allocation18_spill]]  ;;  %s9302_s21 = smov %s5553_s22 }
 0xa09   : > { %s9299_s28 = sld [smem:[#allocation16_spill]]  ;;  %s9304_s24 = smov %s5565_s25 }
 0xa0a   : > { %s9300_s20 = sld [smem:[#allocation14_spill]]  ;;  %s9306_s26 = smov %s5573_s27 }
 0xa0b   : > { %s9301_s17 = sld [smem:[#allocation15_spill]]  ;;  %s9309_s29 = smov %s5589_s7 }
 0xa0c   : > { %s9303_s22 = smov %s9296_s18 }
 0xa0d   :  { %18 = sbr.rel (!%p16_p6) target bundleno = 12 (0xc), region = 347 }
 0xa0e   : > { %s9305_s25 = smov %s9298_s19 }
 0xa0f   : > { %s9307_s27 = smov %s9299_s28  ;;  %s9308_s28 = smov %s5585_s30 }
 0xa10   : > { %s9310_s30 = smov %s9300_s20 }
 0xa11   : > { %s9311_s7 = smov %s9301_s17 }
 0xa12   :  { %4712 = vsyncpa [#allocation9], 1 }
 0xa13   :  { %4714 = vsyncpa [#allocation9 + $0x1], 1 }

</bundles_post_ra>
